<compile_context>
chip_gen: v7x
topology: tpu7x:2x2x1
jax: 0.10.0
libtpu: 0.0.40
codegen_flags: <defaults>
</compile_context>

<pallas_src>
import functools

import numpy as np
import jax
import jax.numpy as jnp
from jax import lax
from jax.experimental import pallas as pl
from jax.experimental.pallas import tpu as pltpu


C_MID = 64    # shared_conv output channels
C_PAD = 128   # lane-dense padded channel count of the fused SeparateHead output

HEAD_SIZES = {'center': 2, 'center_z': 1, 'dim': 3, 'rot': 2}  # + 'hm': num_class


def _round_up(x, m):
    return (x + m - 1) // m * m


# ------------------------------- Pallas kernel -------------------------------

def _centerhead_kernel(xp_ref, mask_ref, w1_ref, s1_ref, w2_ref, b2_ref, out_ref, *,
                       tile_h, wp, exp_lo, exp_hi, sig_lo, sig_hi):
    """Fused CenterHead hot path for one (batch, row-tile) grid step.

    xp_ref:   (1, (H+6)*wp, C_in) bf16   zero-padded input, spatial dims flattened
    mask_ref: (1, l_feat, 1)      f32    1.0 where the feat halo position is a real
                                         feature pixel (realizes conv-2's zero pad)
    w1_ref:   (9, C_in, 64)       bf16   shared conv weight (BN scale folded in)
    s1_ref:   (1, 64)             f32    folded conv bias + BN shift
    w2_ref:   (9, 64, 128)        bf16   fused SeparateHead weight (dim/hm columns
                                         duplicated into spare lanes, zero padded)
    b2_ref:   (1, 128)            f32    fused SeparateHead bias (same layout)
    out_ref:  (1, tile_h*wp, 128) f32    [raw heads | exp(dim) | sigmoid(hm) | 0...]
    """
    t = pl.program_id(1)
    l_out = tile_h * wp
    l_feat = (tile_h + 3) * wp
    l_in = (tile_h + 6) * wp

    start = pl.multiple_of(t * l_out, 16)                      # wp % 16 == 0
    xin = xp_ref[0, pl.ds(start, l_in), :]                     # (l_in, C_in) bf16

    # shared_conv: 3x3 conv (C_in -> 64) as 9 shifted MXU matmuls, f32 accumulate.
    facc = jnp.zeros((l_feat, C_MID), jnp.float32)
    for dy in range(3):
        xs = xin[dy * wp: dy * wp + l_feat + 2, :]             # 16-aligned bf16 shift
        for dx in range(3):
            z = jnp.dot(xs, w1_ref[dy * 3 + dx],
                        preferred_element_type=jnp.float32)    # (l_feat + 2, 64)
            facc = facc + z[dx: dx + l_feat, :]                # f32 column shift
    feat = jnp.maximum(facc + s1_ref[...], 0.0)                # folded BN: shift+ReLU
    feat = (feat * mask_ref[0]).astype(jnp.bfloat16)           # zero the halo ring

    # SeparateHead: five branches fused into one 3x3 conv (64 -> 128 lanes).
    hacc = jnp.zeros((l_out, C_PAD), jnp.float32)
    for dy in range(3):
        fs = feat[dy * wp: dy * wp + l_out + 2, :]             # 16-aligned bf16 shift
        for dx in range(3):
            z = jnp.dot(fs, w2_ref[dy * 3 + dx],
                        preferred_element_type=jnp.float32)    # (l_out + 2, 128)
            hacc = hacc + z[dx: dx + l_out, :]
    raw = hacc + b2_ref[...]

    # generate_predicted_boxes prep fused into the epilogue (EUP ops, ~free):
    # duplicated dim lanes get exp(), duplicated hm lanes get sigmoid(),
    # the first 8+num_class lanes stay raw -> single lane-dense f32 store.
    ch = lax.broadcasted_iota(jnp.int32, raw.shape, 1)
    exp_m = (ch >= exp_lo) & (ch < exp_hi)
    sig_m = (ch >= sig_lo) & (ch < sig_hi)
    expd = jnp.exp(jnp.where(exp_m, raw, 0.0))                 # never exp(hm logits)
    out_ref[0] = jnp.where(exp_m, expd,
                           jnp.where(sig_m, jax.nn.sigmoid(raw), raw))


# ------------------------------ wrapper / tiling ------------------------------

def _pick_tile_h(H, W, c_in, budget_bytes=8 * 1024 * 1024):
    """Largest row tile whose per-step working set fits the budget; prefer >=2
    tiles so both v7x TensorCores get work even at batch 1."""
    wp = _round_up(W + 4, 16)
    cands = []
    for th in range(1, H + 1):
        if H % th:
            continue
        work = ((th + 6) * wp * c_in * 2                 # input slab view (bf16)
                + (th + 3) * wp * C_MID * 6              # f32 acc + bf16 feat
                + (th + 2) * wp * C_PAD * 4              # per-tap matmul result
                + th * wp * C_PAD * 4 * 3)               # head acc + buffered output
        if work <= budget_bytes:
            cands.append(th)
    if not cands:
        return H
    multi = [c for c in cands if H // c >= 2]
    return max(multi) if multi else max(cands)


def centerhead_conv_pallas(x_nhwc, w1f, s1, w2p, b2p, num_class):
    """Fused shared_conv + SeparateHead (+ decode activations) Pallas call.

    Returns out: (N, H, W, C_PAD) f32 with channel layout
      [center(2), center_z(1), dim(3), rot(2), hm(num_class),       <- raw
       exp(dim)(3), sigmoid(hm)(num_class), zero pad].
    """
    N, H, W, c_in = x_nhwc.shape
    wp = _round_up(W + 4, 16)              # padded row pitch, bf16-sublane aligned
    th = _pick_tile_h(H, W, c_in)
    T = H // th
    l_out, l_feat = th * wp, (th + 3) * wp
    p_flat = (H + 6) * wp
    c_head = 8 + num_class

    # One cheap zero pad (2 rows top / 4 bottom, 2 cols left / wp-W-2 right),
    # flattened to (N, (H+6)*wp, C_in) bf16.  No 9x im2col expansion.
    xp = jnp.pad(x_nhwc.astype(jnp.bfloat16),
                 ((0, 0), (2, 4), (2, wp - W - 2), (0, 0)))
    xp = xp.reshape(N, p_flat, c_in)

    # Static per-tile mask realizing the second conv's zero padding of `feat`.
    q = np.arange(l_feat)
    rows = []
    for ti in range(T):
        u = ti * th - 1 + q // wp
        v = q % wp - 1
        rows.append((u >= 0) & (u < H) & (v >= 0) & (v < W) & (q // wp < th + 2))
    mask = jnp.asarray(np.stack(rows).astype(np.float32)[..., None])  # (T, l_feat, 1)

    kern = functools.partial(_centerhead_kernel, tile_h=th, wp=wp,
                             exp_lo=c_head, exp_hi=c_head + 3,
                             sig_lo=c_head + 3, sig_hi=c_head + 3 + num_class)
    flops = 2 * N * T * 9 * ((l_feat + 2) * c_in * C_MID
                             + (l_out + 2) * C_MID * C_PAD)
    bytes_accessed = int(xp.size * 2 + mask.size * 4 + w1f.size * 2 + s1.size * 4
                         + w2p.size * 2 + b2p.size * 4 + N * H * wp * C_PAD * 4)

    out = pl.pallas_call(
        kern,
        out_shape=jax.ShapeDtypeStruct((N, H * wp, C_PAD), jnp.float32),
        grid=(N, T),
        in_specs=[
            pl.BlockSpec((1, p_flat, c_in), lambda n, t: (n, 0, 0)),  # resident / image
            pl.BlockSpec((1, l_feat, 1), lambda n, t: (t, 0, 0)),
            pl.BlockSpec((9, c_in, C_MID), lambda n, t: (0, 0, 0)),
            pl.BlockSpec((1, C_MID), lambda n, t: (0, 0)),
            pl.BlockSpec((9, C_MID, C_PAD), lambda n, t: (0, 0, 0)),
            pl.BlockSpec((1, C_PAD), lambda n, t: (0, 0)),
        ],
        out_specs=pl.BlockSpec((1, l_out, C_PAD), lambda n, t: (n, t, 0)),
        compiler_params=pltpu.CompilerParams(
            dimension_semantics=("parallel", "parallel"),
            vmem_limit_bytes=32 * 1024 * 1024),
        cost_estimate=pl.CostEstimate(flops=flops,
                                      transcendentals=N * H * wp * (3 + num_class),
                                      bytes_accessed=bytes_accessed),
    )(xp, mask, w1f, s1, w2p, b2p)

    # strip the width padding (lane padding is stripped by the callers)
    return out.reshape(N, H, wp, C_PAD)[:, :, :W, :]


# ------------------------------ decode (JAX glue) -----------------------------

def decode_bbox(hm_sig, center, center_z, dim_exp, rot, *, width, K,
                voxel_size, pcr, stride, score_thresh):
    """JAX port of CenterHead._topk + decode_bbox_from_heatmap (dense outputs)."""
    N, HW, _ = hm_sig.shape
    scores_cls = jnp.transpose(hm_sig, (0, 2, 1))                    # (N, nc, HW)
    topk_scores, topk_inds = lax.top_k(scores_cls, K)                # (N, nc, K)
    topk_ys = (topk_inds // width).astype(jnp.float32)
    topk_xs = (topk_inds % width).astype(jnp.float32)
    topk_score, topk_ind = lax.top_k(topk_scores.reshape(N, -1), K)  # (N, K)
    topk_classes = (topk_ind // K).astype(jnp.int32)

    def gather_flat(a):
        return jnp.take_along_axis(a.reshape(N, -1), topk_ind, axis=1)

    inds = gather_flat(topk_inds)
    ys = gather_flat(topk_ys)
    xs = gather_flat(topk_xs)

    def gather_feat(f):                                              # f: (N, HW, C)
        return jnp.take_along_axis(f, inds[:, :, None], axis=1)

    ctr = gather_feat(center)
    cz = gather_feat(center_z)
    dm = gather_feat(dim_exp)
    rt = gather_feat(rot)
    angle = jnp.arctan2(rt[..., 1:2], rt[..., 0:1])                  # atan2(sin, cos)

    xs = xs[..., None] + ctr[..., 0:1]
    ys = ys[..., None] + ctr[..., 1:2]
    xs = xs * stride * voxel_size[0] + pcr[0]
    ys = ys * stride * voxel_size[1] + pcr[1]
    boxes = jnp.concatenate([xs, ys, cz, dm, angle], axis=-1)        # (N, K, 7)

    mask = jnp.all(boxes[..., :3] >= pcr[:3], axis=-1)
    mask = mask & jnp.all(boxes[..., :3] <= pcr[3:], axis=-1)
    for i, th in enumerate(score_thresh):
        is_i = topk_classes == i
        mask = mask & (jnp.logical_not(is_i) | (is_i & (topk_score > th)))
    return boxes, topk_score, topk_classes, mask


# -------------------------------- parameters ----------------------------------

def init_params(key, c_in, num_class):
    """Deterministic synthetic weights mirroring the module __init__ shapes."""
    head_channels = dict(HEAD_SIZES)
    head_channels['hm'] = num_class
    keys = jax.random.split(key, 2 + len(head_channels))
    params = {}

    # shared_conv = Conv2d(c_in, 64, 3, bias=True) + BatchNorm2d(64) + ReLU
    params['shared_w'] = (jax.random.normal(keys[0], (9 * c_in, C_MID), jnp.float32)
                          / np.sqrt(9 * c_in))
    shared_b = jax.random.normal(keys[1], (C_MID,), jnp.float32) * 0.01
    eps = 1e-5
    gamma = jnp.ones((C_MID,), jnp.float32)
    beta = jnp.zeros((C_MID,), jnp.float32)
    mean = jnp.zeros((C_MID,), jnp.float32)
    var = jnp.ones((C_MID,), jnp.float32)
    bn_scale = gamma / jnp.sqrt(var + eps)
    bn_shift = beta - mean * bn_scale
    params['shared_scale'] = bn_scale
    params['shared_shift'] = bn_scale * shared_b + bn_shift

    # SeparateHead: each branch is a single Conv2d(64, oc, 3, bias=True).
    ws, bs = [], []
    for i, (name, oc) in enumerate(head_channels.items()):
        w = (jax.random.normal(keys[2 + i], (9 * C_MID, oc), jnp.float32)
             * np.sqrt(2.0 / (9 * C_MID + oc)))              # xavier-normal-like
        b = jnp.full((oc,), -2.19 if name == 'hm' else 0.0, jnp.float32)
        ws.append(w)
        bs.append(b)
    params['head_w'] = jnp.concatenate(ws, axis=1)            # (576, 8 + num_class)
    params['head_b'] = jnp.concatenate(bs, axis=0)
    return params


def _prepare_head_params(params, num_class):
    """Fold BN scale into the shared conv weight; build the fused 128-lane head
    weight with duplicated dim / hm columns for the in-kernel decode activations."""
    c_in9, c_mid = params['shared_w'].shape
    c_in = c_in9 // 9
    w1f = (params['shared_w'].reshape(9, c_in, c_mid)
           * params['shared_scale'][None, None, :]).astype(jnp.bfloat16)
    s1 = params['shared_shift'].reshape(1, c_mid).astype(jnp.float32)

    c_head = 8 + num_class
    assert c_head + 3 + num_class <= C_PAD, "too many classes for 128-lane packing"
    w2 = params['head_w'].reshape(9, c_mid, c_head)
    b2 = params['head_b']
    w2p = jnp.zeros((9, c_mid, C_PAD), jnp.float32)
    w2p = w2p.at[:, :, :c_head].set(w2)
    w2p = w2p.at[:, :, c_head:c_head + 3].set(w2[:, :, 3:6])                 # dim dup
    w2p = w2p.at[:, :, c_head + 3:c_head + 3 + num_class].set(w2[:, :, 8:])  # hm dup
    w2p = w2p.astype(jnp.bfloat16)
    b2p = jnp.zeros((C_PAD,), jnp.float32)
    b2p = b2p.at[:c_head].set(b2)
    b2p = b2p.at[c_head:c_head + 3].set(b2[3:6])
    b2p = b2p.at[c_head + 3:c_head + 3 + num_class].set(b2[8:])
    return w1f, s1, w2p, b2p.reshape(1, C_PAD)


# --------------------------------- forward ------------------------------------

def center_head_forward(params, x_nchw, cfg):
    N, C_in, H, W = x_nchw.shape
    nc = cfg['num_class']
    c_head = 8 + nc
    x_nhwc = jnp.transpose(x_nchw, (0, 2, 3, 1)).astype(jnp.float32)

    w1f, s1, w2p, b2p = _prepare_head_params(params, nc)
    out = centerhead_conv_pallas(x_nhwc, w1f, s1, w2p, b2p, nc)   # (N, H, W, 128)

    HW = H * W
    out_f = out.reshape(N, HW, C_PAD)
    center = out_f[..., 0:2]
    center_z = out_f[..., 2:3]
    rot = out_f[..., 6:8]
    dim_exp = out_f[..., c_head:c_head + 3]                   # exp() fused in kernel
    hm_sig = out_f[..., c_head + 3:c_head + 3 + nc]           # sigmoid fused in kernel

    K = min(cfg['max_obj'], HW)     # torch.topk requires K <= H*W
    pcr = jnp.array(cfg['point_cloud_range'], jnp.float32)
    boxes, scores, class_ids, mask = decode_bbox(
        hm_sig, center, center_z, dim_exp, rot, width=W, K=K,
        voxel_size=cfg['voxel_size'], pcr=pcr,
        stride=cfg['feature_map_stride'], score_thresh=cfg['score_thresh'])

    # TODO(synk): class_agnostic_nms (model_nms_utils) is not provided and the
    # per-sample ragged masking has no clean Pallas equivalent; results are
    # returned dense (B, K, ...) with a validity mask instead.
    ret = {
        'pred_boxes': boxes,                 # (N, K, 7)
        'pred_scores': scores,               # (N, K)
        'pred_labels': class_ids + 1,        # identity class_id_mapping, +1
        'valid_mask': mask,                  # (N, K)
    }

    # raw_* maps: mean over heads (single head -> identity), NCHW like torch.
    lo = {'center': 0, 'center_z': 2, 'dim': 3, 'rot': 6, 'hm': 8}
    sz = {'center': 2, 'center_z': 1, 'dim': 3, 'rot': 2, 'hm': nc}

    def to_nchw(name):
        a = out[..., lo[name]:lo[name] + sz[name]]
        return jnp.transpose(a, (0, 3, 1, 2))

    ret['raw_hm'] = to_nchw('hm')
    ret['raw_center'] = to_nchw('center')
    ret['raw_center_z'] = to_nchw('center_z')
    ret['raw_dim'] = to_nchw('dim')
    ret['raw_rot'] = to_nchw('rot')
    return ret


def make_forward(cfg):
    @jax.jit
    def fwd(params, x_nchw):
        return center_head_forward(params, x_nchw, cfg)
    return fwd


# ----------------------------------- main --------------------------------------

if __name__ == "__main__":
    class_names = ['car', 'pedestrian', 'cyclist']
    cfg = dict(
        num_class=len(class_names),
        point_cloud_range=[-51.2, -51.2, -5.0, 51.2, 51.2, 3.0],
        voxel_size=[0.8, 0.8, 0.2],
        feature_map_stride=8,
        score_thresh=[0.2, 0.3, 0.3],
        max_obj=500,
    )

    key = jax.random.PRNGKey(0)
    k_x, k_p = jax.random.split(key)
    N, C_in, H, W = 2, 32, 16, 16
    x = jax.random.normal(k_x, (N, C_in, H, W), jnp.float32)
    params = init_params(k_p, C_in, cfg['num_class'])

    fwd = make_forward(cfg)
    out_dict = fwd(params, x)
    out_dict = jax.tree_util.tree_map(jax.block_until_ready, out_dict)

    # ---- correctness: fused Pallas convs vs pure-JAX reference (same bf16 casts)
    nc = cfg['num_class']
    c_head = 8 + nc
    x_nhwc = jnp.transpose(x, (0, 2, 3, 1))
    w1f, s1, w2p, b2p = _prepare_head_params(params, nc)
    out = centerhead_conv_pallas(x_nhwc, w1f, s1, w2p, b2p, nc)       # (N,H,W,128)

    xq = x_nhwc.astype(jnp.bfloat16).astype(jnp.float32)
    w1r = w1f.astype(jnp.float32).reshape(3, 3, C_in, C_MID)
    feat_ref = lax.conv_general_dilated(
        xq, w1r, (1, 1), 'SAME', dimension_numbers=('NHWC', 'HWIO', 'NHWC'))
    feat_ref = jnp.maximum(feat_ref + params['shared_shift'], 0.0)
    featq = feat_ref.astype(jnp.bfloat16).astype(jnp.float32)
    w2r = w2p.astype(jnp.float32).reshape(3, 3, C_MID, C_PAD)
    raw_ref = lax.conv_general_dilated(
        featq, w2r, (1, 1), 'SAME', dimension_numbers=('NHWC', 'HWIO', 'NHWC'))
    raw_ref = raw_ref + b2p[0]
    np.testing.assert_allclose(np.asarray(out[..., :c_head]),
                               np.asarray(raw_ref[..., :c_head]),
                               rtol=1e-2, atol=1e-2)

    # fused decode activations are consistent with the kernel's own raw channels
    np.testing.assert_allclose(np.asarray(out[..., c_head:c_head + 3]),
                               np.asarray(jnp.exp(out[..., 3:6])),
                               rtol=2e-3, atol=2e-3)
    np.testing.assert_allclose(np.asarray(out[..., c_head + 3:c_head + 3 + nc]),
                               np.asarray(jax.nn.sigmoid(out[..., 8:8 + nc])),
                               rtol=2e-3, atol=2e-3)

    K = min(cfg['max_obj'], H * W)
    assert out_dict['pred_boxes'].shape == (N, K, 7)
    assert out_dict['pred_scores'].shape == (N, K)
    assert out_dict['raw_hm'].shape == (N, nc, H, W)
    assert out_dict['raw_dim'].shape == (N, 3, H, W)
    print("KERNEL_OK")
</pallas_src>

<mosaic_0001>
module attributes {stable_mosaic.version = 11 : i64} {
  func.func @_centerhead_kernel(%arg0: i32, %arg1: i32, %arg2: memref<1x704x32xbf16, #tpu.memory_space<vmem>>, %arg3: memref<1x352x1xf32, #tpu.memory_space<vmem>>, %arg4: memref<9x32x64xbf16, #tpu.memory_space<vmem>>, %arg5: memref<1x64xf32, #tpu.memory_space<vmem>>, %arg6: memref<9x64x128xbf16, #tpu.memory_space<vmem>>, %arg7: memref<1x128xf32, #tpu.memory_space<vmem>>, %arg8: memref<1x256x128xf32, #tpu.memory_space<vmem>>) attributes {dimension_semantics = [#tpu.dimension_semantics<parallel>, #tpu.dimension_semantics<parallel>], iteration_bounds = array<i64: 2, 2>, scalar_prefetch = 0 : i64, scratch_operands = 0 : i64, tpu.core_type = #tpu.core_type<tc>, window_params = [{transform_indices = @transform_0, window_bounds = array<i64: 1, 704, 32>}, {transform_indices = @transform_1, window_bounds = array<i64: 1, 352, 1>}, {pipeline_mode = #tpu.pipeline_mode<synchronous>, transform_indices = @transform_2, window_bounds = array<i64: 9, 32, 64>}, {pipeline_mode = #tpu.pipeline_mode<synchronous>, transform_indices = @transform_3, window_bounds = array<i64: 1, 64>}, {pipeline_mode = #tpu.pipeline_mode<synchronous>, transform_indices = @transform_4, window_bounds = array<i64: 9, 64, 128>}, {pipeline_mode = #tpu.pipeline_mode<synchronous>, transform_indices = @transform_5, window_bounds = array<i64: 1, 128>}, {transform_indices = @transform_6, window_bounds = array<i64: 1, 256, 128>}]} {
    %c256_i32 = arith.constant 256 : i32
    %0 = arith.muli %arg1, %c256_i32 : i32
    %1 = tpu.assume_multiple %0, 16 : i32
    %c0 = arith.constant 0 : index
    %2 = arith.index_cast %1 : i32 to index
    %c0_0 = arith.constant 0 : index
    %3 = vector.load %arg2[%c0, %2, %c0_0] : memref<1x704x32xbf16, #tpu.memory_space<vmem>>, vector<1x448x32xbf16>
    %4 = vector.shape_cast %3 : vector<1x448x32xbf16> to vector<448x32xbf16>
    %cst = arith.constant 0.000000e+00 : f32
    %5 = vector.broadcast %cst : f32 to vector<352x64xf32>
    %6 = vector.extract_strided_slice %4 {offsets = [0, 0], sizes = [354, 32], strides = [1, 1]} : vector<448x32xbf16> to vector<354x32xbf16>
    %c0_1 = arith.constant 0 : index
    %c0_2 = arith.constant 0 : index
    %c0_3 = arith.constant 0 : index
    %7 = vector.load %arg4[%c0_1, %c0_2, %c0_3] : memref<9x32x64xbf16, #tpu.memory_space<vmem>>, vector<1x32x64xbf16>
    %8 = vector.shape_cast %7 : vector<1x32x64xbf16> to vector<32x64xbf16>
    %cst_4 = arith.constant dense<0.000000e+00> : vector<354x64xf32>
    %9 = tpu.matmul %6, %8, %cst_4 {dimension_numbers = #tpu.dot_dimension_numbers<[1], [0], [0], [1], [0, 0, 1, 1], [], []>} : vector<354x32xbf16>, vector<32x64xbf16>, vector<354x64xf32> -> vector<354x64xf32>
    %10 = vector.extract_strided_slice %9 {offsets = [0, 0], sizes = [352, 64], strides = [1, 1]} : vector<354x64xf32> to vector<352x64xf32>
    %11 = arith.addf %5, %10 : vector<352x64xf32>
    %c1 = arith.constant 1 : index
    %c0_5 = arith.constant 0 : index
    %c0_6 = arith.constant 0 : index
    %12 = vector.load %arg4[%c1, %c0_5, %c0_6] : memref<9x32x64xbf16, #tpu.memory_space<vmem>>, vector<1x32x64xbf16>
    %13 = vector.shape_cast %12 : vector<1x32x64xbf16> to vector<32x64xbf16>
    %cst_7 = arith.constant dense<0.000000e+00> : vector<354x64xf32>
    %14 = tpu.matmul %6, %13, %cst_7 {dimension_numbers = #tpu.dot_dimension_numbers<[1], [0], [0], [1], [0, 0, 1, 1], [], []>} : vector<354x32xbf16>, vector<32x64xbf16>, vector<354x64xf32> -> vector<354x64xf32>
    %15 = vector.extract_strided_slice %14 {offsets = [1, 0], sizes = [352, 64], strides = [1, 1]} : vector<354x64xf32> to vector<352x64xf32>
    %16 = arith.addf %11, %15 : vector<352x64xf32>
    %c2 = arith.constant 2 : index
    %c0_8 = arith.constant 0 : index
    %c0_9 = arith.constant 0 : index
    %17 = vector.load %arg4[%c2, %c0_8, %c0_9] : memref<9x32x64xbf16, #tpu.memory_space<vmem>>, vector<1x32x64xbf16>
    %18 = vector.shape_cast %17 : vector<1x32x64xbf16> to vector<32x64xbf16>
    %cst_10 = arith.constant dense<0.000000e+00> : vector<354x64xf32>
    %19 = tpu.matmul %6, %18, %cst_10 {dimension_numbers = #tpu.dot_dimension_numbers<[1], [0], [0], [1], [0, 0, 1, 1], [], []>} : vector<354x32xbf16>, vector<32x64xbf16>, vector<354x64xf32> -> vector<354x64xf32>
    %20 = vector.extract_strided_slice %19 {offsets = [2, 0], sizes = [352, 64], strides = [1, 1]} : vector<354x64xf32> to vector<352x64xf32>
    %21 = arith.addf %16, %20 : vector<352x64xf32>
    %22 = vector.extract_strided_slice %4 {offsets = [32, 0], sizes = [354, 32], strides = [1, 1]} : vector<448x32xbf16> to vector<354x32xbf16>
    %c3 = arith.constant 3 : index
    %c0_11 = arith.constant 0 : index
    %c0_12 = arith.constant 0 : index
    %23 = vector.load %arg4[%c3, %c0_11, %c0_12] : memref<9x32x64xbf16, #tpu.memory_space<vmem>>, vector<1x32x64xbf16>
    %24 = vector.shape_cast %23 : vector<1x32x64xbf16> to vector<32x64xbf16>
    %cst_13 = arith.constant dense<0.000000e+00> : vector<354x64xf32>
    %25 = tpu.matmul %22, %24, %cst_13 {dimension_numbers = #tpu.dot_dimension_numbers<[1], [0], [0], [1], [0, 0, 1, 1], [], []>} : vector<354x32xbf16>, vector<32x64xbf16>, vector<354x64xf32> -> vector<354x64xf32>
    %26 = vector.extract_strided_slice %25 {offsets = [0, 0], sizes = [352, 64], strides = [1, 1]} : vector<354x64xf32> to vector<352x64xf32>
    %27 = arith.addf %21, %26 : vector<352x64xf32>
    %c4 = arith.constant 4 : index
    %c0_14 = arith.constant 0 : index
    %c0_15 = arith.constant 0 : index
    %28 = vector.load %arg4[%c4, %c0_14, %c0_15] : memref<9x32x64xbf16, #tpu.memory_space<vmem>>, vector<1x32x64xbf16>
    %29 = vector.shape_cast %28 : vector<1x32x64xbf16> to vector<32x64xbf16>
    %cst_16 = arith.constant dense<0.000000e+00> : vector<354x64xf32>
    %30 = tpu.matmul %22, %29, %cst_16 {dimension_numbers = #tpu.dot_dimension_numbers<[1], [0], [0], [1], [0, 0, 1, 1], [], []>} : vector<354x32xbf16>, vector<32x64xbf16>, vector<354x64xf32> -> vector<354x64xf32>
    %31 = vector.extract_strided_slice %30 {offsets = [1, 0], sizes = [352, 64], strides = [1, 1]} : vector<354x64xf32> to vector<352x64xf32>
    %32 = arith.addf %27, %31 : vector<352x64xf32>
    %c5 = arith.constant 5 : index
    %c0_17 = arith.constant 0 : index
    %c0_18 = arith.constant 0 : index
    %33 = vector.load %arg4[%c5, %c0_17, %c0_18] : memref<9x32x64xbf16, #tpu.memory_space<vmem>>, vector<1x32x64xbf16>
    %34 = vector.shape_cast %33 : vector<1x32x64xbf16> to vector<32x64xbf16>
    %cst_19 = arith.constant dense<0.000000e+00> : vector<354x64xf32>
    %35 = tpu.matmul %22, %34, %cst_19 {dimension_numbers = #tpu.dot_dimension_numbers<[1], [0], [0], [1], [0, 0, 1, 1], [], []>} : vector<354x32xbf16>, vector<32x64xbf16>, vector<354x64xf32> -> vector<354x64xf32>
    %36 = vector.extract_strided_slice %35 {offsets = [2, 0], sizes = [352, 64], strides = [1, 1]} : vector<354x64xf32> to vector<352x64xf32>
    %37 = arith.addf %32, %36 : vector<352x64xf32>
    %38 = vector.extract_strided_slice %4 {offsets = [64, 0], sizes = [354, 32], strides = [1, 1]} : vector<448x32xbf16> to vector<354x32xbf16>
    %c6 = arith.constant 6 : index
    %c0_20 = arith.constant 0 : index
    %c0_21 = arith.constant 0 : index
    %39 = vector.load %arg4[%c6, %c0_20, %c0_21] : memref<9x32x64xbf16, #tpu.memory_space<vmem>>, vector<1x32x64xbf16>
    %40 = vector.shape_cast %39 : vector<1x32x64xbf16> to vector<32x64xbf16>
    %cst_22 = arith.constant dense<0.000000e+00> : vector<354x64xf32>
    %41 = tpu.matmul %38, %40, %cst_22 {dimension_numbers = #tpu.dot_dimension_numbers<[1], [0], [0], [1], [0, 0, 1, 1], [], []>} : vector<354x32xbf16>, vector<32x64xbf16>, vector<354x64xf32> -> vector<354x64xf32>
    %42 = vector.extract_strided_slice %41 {offsets = [0, 0], sizes = [352, 64], strides = [1, 1]} : vector<354x64xf32> to vector<352x64xf32>
    %43 = arith.addf %37, %42 : vector<352x64xf32>
    %c7 = arith.constant 7 : index
    %c0_23 = arith.constant 0 : index
    %c0_24 = arith.constant 0 : index
    %44 = vector.load %arg4[%c7, %c0_23, %c0_24] : memref<9x32x64xbf16, #tpu.memory_space<vmem>>, vector<1x32x64xbf16>
    %45 = vector.shape_cast %44 : vector<1x32x64xbf16> to vector<32x64xbf16>
    %cst_25 = arith.constant dense<0.000000e+00> : vector<354x64xf32>
    %46 = tpu.matmul %38, %45, %cst_25 {dimension_numbers = #tpu.dot_dimension_numbers<[1], [0], [0], [1], [0, 0, 1, 1], [], []>} : vector<354x32xbf16>, vector<32x64xbf16>, vector<354x64xf32> -> vector<354x64xf32>
    %47 = vector.extract_strided_slice %46 {offsets = [1, 0], sizes = [352, 64], strides = [1, 1]} : vector<354x64xf32> to vector<352x64xf32>
    %48 = arith.addf %43, %47 : vector<352x64xf32>
    %c8 = arith.constant 8 : index
    %c0_26 = arith.constant 0 : index
    %c0_27 = arith.constant 0 : index
    %49 = vector.load %arg4[%c8, %c0_26, %c0_27] : memref<9x32x64xbf16, #tpu.memory_space<vmem>>, vector<1x32x64xbf16>
    %50 = vector.shape_cast %49 : vector<1x32x64xbf16> to vector<32x64xbf16>
    %cst_28 = arith.constant dense<0.000000e+00> : vector<354x64xf32>
    %51 = tpu.matmul %38, %50, %cst_28 {dimension_numbers = #tpu.dot_dimension_numbers<[1], [0], [0], [1], [0, 0, 1, 1], [], []>} : vector<354x32xbf16>, vector<32x64xbf16>, vector<354x64xf32> -> vector<354x64xf32>
    %52 = vector.extract_strided_slice %51 {offsets = [2, 0], sizes = [352, 64], strides = [1, 1]} : vector<354x64xf32> to vector<352x64xf32>
    %53 = arith.addf %48, %52 : vector<352x64xf32>
    %c0_29 = arith.constant 0 : index
    %c0_30 = arith.constant 0 : index
    %54 = vector.load %arg5[%c0_29, %c0_30] : memref<1x64xf32, #tpu.memory_space<vmem>>, vector<1x64xf32>
    %55 = vector.broadcast %54 : vector<1x64xf32> to vector<352x64xf32>
    %56 = arith.addf %53, %55 : vector<352x64xf32>
    %cst_31 = arith.constant 0.000000e+00 : f32
    %57 = vector.broadcast %cst_31 : f32 to vector<352x64xf32>
    %58 = arith.maximumf %56, %57 : vector<352x64xf32>
    %c0_32 = arith.constant 0 : index
    %c0_33 = arith.constant 0 : index
    %c0_34 = arith.constant 0 : index
    %59 = vector.load %arg3[%c0_32, %c0_33, %c0_34] : memref<1x352x1xf32, #tpu.memory_space<vmem>>, vector<1x352x1xf32>
    %60 = vector.shape_cast %59 : vector<1x352x1xf32> to vector<352x1xf32>
    %61 = vector.broadcast %60 : vector<352x1xf32> to vector<352x64xf32>
    %62 = arith.mulf %58, %61 : vector<352x64xf32>
    %63 = arith.truncf %62 : vector<352x64xf32> to vector<352x64xbf16>
    %cst_35 = arith.constant 0.000000e+00 : f32
    %64 = vector.broadcast %cst_35 : f32 to vector<256x128xf32>
    %65 = vector.extract_strided_slice %63 {offsets = [0, 0], sizes = [258, 64], strides = [1, 1]} : vector<352x64xbf16> to vector<258x64xbf16>
    %c0_36 = arith.constant 0 : index
    %c0_37 = arith.constant 0 : index
    %c0_38 = arith.constant 0 : index
    %66 = vector.load %arg6[%c0_36, %c0_37, %c0_38] : memref<9x64x128xbf16, #tpu.memory_space<vmem>>, vector<1x64x128xbf16>
    %67 = vector.shape_cast %66 : vector<1x64x128xbf16> to vector<64x128xbf16>
    %cst_39 = arith.constant dense<0.000000e+00> : vector<258x128xf32>
    %68 = tpu.matmul %65, %67, %cst_39 {dimension_numbers = #tpu.dot_dimension_numbers<[1], [0], [0], [1], [0, 0, 1, 1], [], []>} : vector<258x64xbf16>, vector<64x128xbf16>, vector<258x128xf32> -> vector<258x128xf32>
    %69 = vector.extract_strided_slice %68 {offsets = [0, 0], sizes = [256, 128], strides = [1, 1]} : vector<258x128xf32> to vector<256x128xf32>
    %70 = arith.addf %64, %69 : vector<256x128xf32>
    %c1_40 = arith.constant 1 : index
    %c0_41 = arith.constant 0 : index
    %c0_42 = arith.constant 0 : index
    %71 = vector.load %arg6[%c1_40, %c0_41, %c0_42] : memref<9x64x128xbf16, #tpu.memory_space<vmem>>, vector<1x64x128xbf16>
    %72 = vector.shape_cast %71 : vector<1x64x128xbf16> to vector<64x128xbf16>
    %cst_43 = arith.constant dense<0.000000e+00> : vector<258x128xf32>
    %73 = tpu.matmul %65, %72, %cst_43 {dimension_numbers = #tpu.dot_dimension_numbers<[1], [0], [0], [1], [0, 0, 1, 1], [], []>} : vector<258x64xbf16>, vector<64x128xbf16>, vector<258x128xf32> -> vector<258x128xf32>
    %74 = vector.extract_strided_slice %73 {offsets = [1, 0], sizes = [256, 128], strides = [1, 1]} : vector<258x128xf32> to vector<256x128xf32>
    %75 = arith.addf %70, %74 : vector<256x128xf32>
    %c2_44 = arith.constant 2 : index
    %c0_45 = arith.constant 0 : index
    %c0_46 = arith.constant 0 : index
    %76 = vector.load %arg6[%c2_44, %c0_45, %c0_46] : memref<9x64x128xbf16, #tpu.memory_space<vmem>>, vector<1x64x128xbf16>
    %77 = vector.shape_cast %76 : vector<1x64x128xbf16> to vector<64x128xbf16>
    %cst_47 = arith.constant dense<0.000000e+00> : vector<258x128xf32>
    %78 = tpu.matmul %65, %77, %cst_47 {dimension_numbers = #tpu.dot_dimension_numbers<[1], [0], [0], [1], [0, 0, 1, 1], [], []>} : vector<258x64xbf16>, vector<64x128xbf16>, vector<258x128xf32> -> vector<258x128xf32>
    %79 = vector.extract_strided_slice %78 {offsets = [2, 0], sizes = [256, 128], strides = [1, 1]} : vector<258x128xf32> to vector<256x128xf32>
    %80 = arith.addf %75, %79 : vector<256x128xf32>
    %81 = vector.extract_strided_slice %63 {offsets = [32, 0], sizes = [258, 64], strides = [1, 1]} : vector<352x64xbf16> to vector<258x64xbf16>
    %c3_48 = arith.constant 3 : index
    %c0_49 = arith.constant 0 : index
    %c0_50 = arith.constant 0 : index
    %82 = vector.load %arg6[%c3_48, %c0_49, %c0_50] : memref<9x64x128xbf16, #tpu.memory_space<vmem>>, vector<1x64x128xbf16>
    %83 = vector.shape_cast %82 : vector<1x64x128xbf16> to vector<64x128xbf16>
    %cst_51 = arith.constant dense<0.000000e+00> : vector<258x128xf32>
    %84 = tpu.matmul %81, %83, %cst_51 {dimension_numbers = #tpu.dot_dimension_numbers<[1], [0], [0], [1], [0, 0, 1, 1], [], []>} : vector<258x64xbf16>, vector<64x128xbf16>, vector<258x128xf32> -> vector<258x128xf32>
    %85 = vector.extract_strided_slice %84 {offsets = [0, 0], sizes = [256, 128], strides = [1, 1]} : vector<258x128xf32> to vector<256x128xf32>
    %86 = arith.addf %80, %85 : vector<256x128xf32>
    %c4_52 = arith.constant 4 : index
    %c0_53 = arith.constant 0 : index
    %c0_54 = arith.constant 0 : index
    %87 = vector.load %arg6[%c4_52, %c0_53, %c0_54] : memref<9x64x128xbf16, #tpu.memory_space<vmem>>, vector<1x64x128xbf16>
    %88 = vector.shape_cast %87 : vector<1x64x128xbf16> to vector<64x128xbf16>
    %cst_55 = arith.constant dense<0.000000e+00> : vector<258x128xf32>
    %89 = tpu.matmul %81, %88, %cst_55 {dimension_numbers = #tpu.dot_dimension_numbers<[1], [0], [0], [1], [0, 0, 1, 1], [], []>} : vector<258x64xbf16>, vector<64x128xbf16>, vector<258x128xf32> -> vector<258x128xf32>
    %90 = vector.extract_strided_slice %89 {offsets = [1, 0], sizes = [256, 128], strides = [1, 1]} : vector<258x128xf32> to vector<256x128xf32>
    %91 = arith.addf %86, %90 : vector<256x128xf32>
    %c5_56 = arith.constant 5 : index
    %c0_57 = arith.constant 0 : index
    %c0_58 = arith.constant 0 : index
    %92 = vector.load %arg6[%c5_56, %c0_57, %c0_58] : memref<9x64x128xbf16, #tpu.memory_space<vmem>>, vector<1x64x128xbf16>
    %93 = vector.shape_cast %92 : vector<1x64x128xbf16> to vector<64x128xbf16>
    %cst_59 = arith.constant dense<0.000000e+00> : vector<258x128xf32>
    %94 = tpu.matmul %81, %93, %cst_59 {dimension_numbers = #tpu.dot_dimension_numbers<[1], [0], [0], [1], [0, 0, 1, 1], [], []>} : vector<258x64xbf16>, vector<64x128xbf16>, vector<258x128xf32> -> vector<258x128xf32>
    %95 = vector.extract_strided_slice %94 {offsets = [2, 0], sizes = [256, 128], strides = [1, 1]} : vector<258x128xf32> to vector<256x128xf32>
    %96 = arith.addf %91, %95 : vector<256x128xf32>
    %97 = vector.extract_strided_slice %63 {offsets = [64, 0], sizes = [258, 64], strides = [1, 1]} : vector<352x64xbf16> to vector<258x64xbf16>
    %c6_60 = arith.constant 6 : index
    %c0_61 = arith.constant 0 : index
    %c0_62 = arith.constant 0 : index
    %98 = vector.load %arg6[%c6_60, %c0_61, %c0_62] : memref<9x64x128xbf16, #tpu.memory_space<vmem>>, vector<1x64x128xbf16>
    %99 = vector.shape_cast %98 : vector<1x64x128xbf16> to vector<64x128xbf16>
    %cst_63 = arith.constant dense<0.000000e+00> : vector<258x128xf32>
    %100 = tpu.matmul %97, %99, %cst_63 {dimension_numbers = #tpu.dot_dimension_numbers<[1], [0], [0], [1], [0, 0, 1, 1], [], []>} : vector<258x64xbf16>, vector<64x128xbf16>, vector<258x128xf32> -> vector<258x128xf32>
    %101 = vector.extract_strided_slice %100 {offsets = [0, 0], sizes = [256, 128], strides = [1, 1]} : vector<258x128xf32> to vector<256x128xf32>
    %102 = arith.addf %96, %101 : vector<256x128xf32>
    %c7_64 = arith.constant 7 : index
    %c0_65 = arith.constant 0 : index
    %c0_66 = arith.constant 0 : index
    %103 = vector.load %arg6[%c7_64, %c0_65, %c0_66] : memref<9x64x128xbf16, #tpu.memory_space<vmem>>, vector<1x64x128xbf16>
    %104 = vector.shape_cast %103 : vector<1x64x128xbf16> to vector<64x128xbf16>
    %cst_67 = arith.constant dense<0.000000e+00> : vector<258x128xf32>
    %105 = tpu.matmul %97, %104, %cst_67 {dimension_numbers = #tpu.dot_dimension_numbers<[1], [0], [0], [1], [0, 0, 1, 1], [], []>} : vector<258x64xbf16>, vector<64x128xbf16>, vector<258x128xf32> -> vector<258x128xf32>
    %106 = vector.extract_strided_slice %105 {offsets = [1, 0], sizes = [256, 128], strides = [1, 1]} : vector<258x128xf32> to vector<256x128xf32>
    %107 = arith.addf %102, %106 : vector<256x128xf32>
    %c8_68 = arith.constant 8 : index
    %c0_69 = arith.constant 0 : index
    %c0_70 = arith.constant 0 : index
    %108 = vector.load %arg6[%c8_68, %c0_69, %c0_70] : memref<9x64x128xbf16, #tpu.memory_space<vmem>>, vector<1x64x128xbf16>
    %109 = vector.shape_cast %108 : vector<1x64x128xbf16> to vector<64x128xbf16>
    %cst_71 = arith.constant dense<0.000000e+00> : vector<258x128xf32>
    %110 = tpu.matmul %97, %109, %cst_71 {dimension_numbers = #tpu.dot_dimension_numbers<[1], [0], [0], [1], [0, 0, 1, 1], [], []>} : vector<258x64xbf16>, vector<64x128xbf16>, vector<258x128xf32> -> vector<258x128xf32>
    %111 = vector.extract_strided_slice %110 {offsets = [2, 0], sizes = [256, 128], strides = [1, 1]} : vector<258x128xf32> to vector<256x128xf32>
    %112 = arith.addf %107, %111 : vector<256x128xf32>
    %c0_72 = arith.constant 0 : index
    %c0_73 = arith.constant 0 : index
    %113 = vector.load %arg7[%c0_72, %c0_73] : memref<1x128xf32, #tpu.memory_space<vmem>>, vector<1x128xf32>
    %114 = vector.broadcast %113 : vector<1x128xf32> to vector<256x128xf32>
    %115 = arith.addf %112, %114 : vector<256x128xf32>
    %116 = tpu.iota {dimensions = array<i32: 1>} : vector<256x128xi32>
    %c11_i32 = arith.constant 11 : i32
    %117 = vector.broadcast %c11_i32 : i32 to vector<256x128xi32>
    %118 = arith.cmpi sge, %116, %117 : vector<256x128xi32>
    %c14_i32 = arith.constant 14 : i32
    %119 = vector.broadcast %c14_i32 : i32 to vector<256x128xi32>
    %120 = arith.cmpi slt, %116, %119 : vector<256x128xi32>
    %121 = arith.andi %118, %120 : vector<256x128xi1>
    %c14_i32_74 = arith.constant 14 : i32
    %122 = vector.broadcast %c14_i32_74 : i32 to vector<256x128xi32>
    %123 = arith.cmpi sge, %116, %122 : vector<256x128xi32>
    %c17_i32 = arith.constant 17 : i32
    %124 = vector.broadcast %c17_i32 : i32 to vector<256x128xi32>
    %125 = arith.cmpi slt, %116, %124 : vector<256x128xi32>
    %126 = arith.andi %123, %125 : vector<256x128xi1>
    %cst_75 = arith.constant 0.000000e+00 : f32
    %127 = vector.broadcast %cst_75 : f32 to vector<256x128xf32>
    %128 = arith.select %121, %115, %127 : vector<256x128xi1>, vector<256x128xf32>
    %129 = math.exp %128 : vector<256x128xf32>
    %130 = arith.negf %115 : vector<256x128xf32>
    %131 = math.exp %130 : vector<256x128xf32>
    %cst_76 = arith.constant 1.000000e+00 : f32
    %132 = vector.broadcast %cst_76 : f32 to vector<256x128xf32>
    %133 = arith.addf %132, %131 : vector<256x128xf32>
    %134 = arith.divf %132, %133 : vector<256x128xf32>
    %135 = arith.select %126, %134, %115 : vector<256x128xi1>, vector<256x128xf32>
    %136 = arith.select %121, %129, %135 : vector<256x128xi1>, vector<256x128xf32>
    %c0_77 = arith.constant 0 : index
    %c0_78 = arith.constant 0 : index
    %c0_79 = arith.constant 0 : index
    %137 = vector.load %arg8[%c0_77, %c0_78, %c0_79] : memref<1x256x128xf32, #tpu.memory_space<vmem>>, vector<1x256x128xf32>
    %138 = vector.shape_cast %137 : vector<1x256x128xf32> to vector<256x128xf32>
    %139 = vector.shape_cast %136 : vector<256x128xf32> to vector<1x256x128xf32>
    tpu.vector_store %arg8[%c0_77, %c0_78, %c0_79], %139 {strides = array<i32>} : memref<1x256x128xf32, #tpu.memory_space<vmem>>, vector<1x256x128xf32>,
    return
  }
  func.func @transform_0(%arg0: i32, %arg1: i32) -> (i32, i32, i32) {
    %c0_i32 = arith.constant 0 : i32
    %c0_i32_0 = arith.constant 0 : i32
    %c0_i32_1 = arith.constant 0 : i32
    return %arg0, %c0_i32, %c0_i32_0 : i32, i32, i32
  }
  func.func @transform_1(%arg0: i32, %arg1: i32) -> (i32, i32, i32) {
    %c0_i32 = arith.constant 0 : i32
    %c0_i32_0 = arith.constant 0 : i32
    %c0_i32_1 = arith.constant 0 : i32
    return %arg1, %c0_i32, %c0_i32_0 : i32, i32, i32
  }
  func.func @transform_2(%arg0: i32, %arg1: i32) -> (i32, i32, i32) {
    %c0_i32 = arith.constant 0 : i32
    %c0_i32_0 = arith.constant 0 : i32
    %c0_i32_1 = arith.constant 0 : i32
    %c0_i32_2 = arith.constant 0 : i32
    return %c0_i32, %c0_i32_0, %c0_i32_1 : i32, i32, i32
  }
  func.func @transform_3(%arg0: i32, %arg1: i32) -> (i32, i32) {
    %c0_i32 = arith.constant 0 : i32
    %c0_i32_0 = arith.constant 0 : i32
    %c0_i32_1 = arith.constant 0 : i32
    return %c0_i32, %c0_i32_0 : i32, i32
  }
  func.func @transform_4(%arg0: i32, %arg1: i32) -> (i32, i32, i32) {
    %c0_i32 = arith.constant 0 : i32
    %c0_i32_0 = arith.constant 0 : i32
    %c0_i32_1 = arith.constant 0 : i32
    %c0_i32_2 = arith.constant 0 : i32
    return %c0_i32, %c0_i32_0, %c0_i32_1 : i32, i32, i32
  }
  func.func @transform_5(%arg0: i32, %arg1: i32) -> (i32, i32) {
    %c0_i32 = arith.constant 0 : i32
    %c0_i32_0 = arith.constant 0 : i32
    %c0_i32_1 = arith.constant 0 : i32
    return %c0_i32, %c0_i32_0 : i32, i32
  }
  func.func @transform_6(%arg0: i32, %arg1: i32) -> (i32, i32, i32) {
    %c0_i32 = arith.constant 0 : i32
    %c0_i32_0 = arith.constant 0 : i32
    return %arg0, %arg1, %c0_i32 : i32, i32, i32
  }
}

</mosaic_0001>

<bundles_post_ra>
// kernel: fwd.1
= control target key start
LH: loop header
LB: loop body
LE: loop exit
PB: predicated region body
PF: predicated region fallthrough
CT: control target
= control target key end

     0   :  { %s10922_s21 = smov 0   ;;  %s10924_s22 = smov 0   ;;  %s15641_s0 = inlined_call_operand.vmem [shape: bf16[2,704,32], index: 0, kind: input, shape index: {}]   ;;  %s15642_s1 = inlined_call_operand.vmem [shape: f32[2,352,1], index: 1, kind: input, shape index: {}]   ;;  %s15643_s2 = inlined_call_operand.vmem [shape: bf16[9,32,64], index: 2, kind: input, shape index: {}]   ;;  %s15644_s3 = inlined_call_operand.vmem [shape: f32[1,64], index: 3, kind: input, shape index: {}]   ;;  %s15645_s4 = inlined_call_operand.vmem [shape: bf16[9,64,128], index: 4, kind: input, shape index: {}]   ;;  %s15646_s5 = inlined_call_operand.vmem [shape: f32[1,128], index: 5, kind: input, shape index: {}]   ;;  %s15647_s6 = inlined_call_operand.vmem [shape: f32[2,512,128], index: 6, kind: output, shape index: {}]  }
   0x1   :  { %s10926_s23 = smov 0   ;;  %s10928_s24 = smov 0  }
   0x2   :  { %s10930_s25 = smov 0  }
   0x3 LB: > { %s25_s26 = sadd.s32 1, %s10874_s23  ;;  %s28_s27 = sadd.s32 1, %s10878_s24  ;;  %s10882_s25 = sphi %s10930_s25, %s16_s25   ;;  %s10878_s24 = sphi %s10928_s24, %s16005_s24   ;;  %s10874_s23 = sphi %s10926_s23, %s16004_s23   ;;  %s10870_s22 = sphi %s10924_s22, %s16003_s22   ;;  %s10866_s21 = sphi %s10922_s21, %s16002_s21  }
   0x4   : > { %p26_p0 = scmp.ge.s32.totalorder %s25_s26, 2  ;;  %p7928_p1 = scmp.ge.s32.totalorder %s10882_s25, 1 }
   0x5   : > { %p236_p2 = scmp.lt.s32.totalorder %s10882_s25, 5 }
   0x6   : > { %s16007_s26 = smov (%p26_p0, %s25_s26), 0  ;;  %s16009_s27 = smov (!%p26_p0, %s28_s27), %s10878_s24 }
   0x7   : > { %p237_p3 = pnand %p7928_p1, %p236_p2  ;;  %p30_p4 = scmp.ge.s32.totalorder %s16009_s27, 2 }
   0x9   : > { %s16011_s27 = smov (%p30_p4, %s16009_s27), 0  ;;  %240 = sbr.rel (%p237_p3) target bundleno = 1894 (0x766), region = 44 }
  0x10   : > { %v10524_v0 = vld [vmem:[%s15643_s2] sm:$0xff]   ;;  %v15648_v1 = vmov 0.0   ;;  %v10525_v2 = vld [vmem:[%s15643_s2 + $0x8] sm:$0xff]   ;;  %p275_p5 = scmp.lt.s32.totalorder %s10870_s22, 1  ;;  %s7934_s8 = sshll.u32 %s10866_s21, 8  ;;  %vm10885_vm0 = vmmov 0  }
  0x11   : > { %8925 = vmatprep.subr.bf16.mxu0 %v15648_v1  ;;  %10473 = vmatprep.subr.bf16.mxu1 %v15648_v1  ;;  %s297_s9 = sshra.s32 %s7934_s8, 3  ;;  %vm483_vm1 = vcmask 261120   ;;  %v10528_v3 = vld [vmem:[%s15643_s2 + $0x20] sm:$0xff]   ;;  %v10534_v4 = vld [vmem:[%s15643_s2 + $0x10] sm:$0xff]   ;;  %v10544_v7 = vld [vmem:[%s15643_s2 + $0x28] sm:$0xff]   ;;  %vm1082_vm2 = vcmask 1046528  }
  0x12   : > { %8926 = vmatpush3.bf16.msra.mxu0 %v10524_v0  ;;  %10475 = vmatpush3.bf16.msra.mxu1 %v10524_v0  ;;  %s16013_s22 = smov (!%p275_p5, %s10870_s22), 1  ;;  %s7935_s11 = sshll.u32 %s297_s9, 2  ;;  %v10535_v8 = vld [vmem:[%s15643_s2 + $0x18] sm:$0xff]   ;;  %v10554_v15 = vld [vmem:[%s15643_s2 + $0x30] sm:$0xff]   ;;  %v10555_v33 = vld [vmem:[%s15643_s2 + $0x40] sm:$0xff]   ;;  %vm1526_vm3 = vcmask 1045504  }
  0x13   : > { %8927 = vmatprep.subr.bf16.mxu0 %v15648_v1  ;;  %10474 = vmatprep.subr.bf16.mxu1 %v15648_v1  ;;  %s10477_s10 = smul.u32 352, %s16013_s22  ;;  %v10556_v22 = vld [vmem:[%s15643_s2 + $0x38] sm:$0xff]   ;;  %v10557_v34 = vld [vmem:[%s15643_s2 + $0x48] sm:$0xff]   ;;  %v10558_v43 = vld [vmem:[%s15643_s2 + $0x50] sm:$0xff]   ;;  %p280_p6 = scmp.lt.s32.totalorder %s10866_s21, 1  ;;  %vm4490_vm4 = vcmask 523264  }
  0x14   : > { %8929 = vmatprep.mubr.msk.bf16.mxu0 %vm10885_vm0, %v15648_v1  ;;  %9009 = vmatprep.mubr.msk.bf16.mxu1 %vm10885_vm0, %v15648_v1  ;;  %s7931_s13 = sshll.u32 %s10866_s21, 5 }
  0x15   : > { %s279_s16 = scalar_lea.vmem %s15641_s0, %s10477_s10  ;;  %p288_p7 = scmp.lt.s32.totalorder %s7931_s13, 63 }
  0x16   : > { %8928 = vmatpush3.bf16.msra.mxu0 %v10525_v2  ;;  %10476 = vmatpush3.bf16.msra.mxu1 %v10525_v2  ;;  %s10984_s17 = scalar_lea.vmem %s279_s16, %s7935_s11 }
  0x17   : > { %9117 = vmatprep.subr.bf16.mxu0 %v15648_v1  ;;  %9021 = vmatprep.subr.bf16.mxu1 %v15648_v1  ;;  %v10990_v5 = vld [vmem:[%s10984_s17] sm:$0xff]   ;;  %v11011_v9 = vld [vmem:[%s10984_s17 + $0x8] sm:$0xff]   ;;  %v345_v11 = vld [vmem:[%s10984_s17 + $0xb0] sm:$0xf]  ;;  %s281_s15 = scalar_select %p280_p6, %s10866_s21, 1 }
  0x18   : > { %v10993_v6 = vld [vmem:[%s10984_s17 + $0xa0] sm:$0xff]   ;;  %v11015_v10 = vld [vmem:[%s10984_s17 + $0xa8] sm:$0xff]   ;;  %v11029_v12 = vld [vmem:[%s10984_s17 + $0x10] sm:$0xff]   ;;  %v11031_v13 = vcombine.low %v345_v11, %v345_v11  ;;  %s16015_s13 = smov (!%p288_p7, %s7931_s13), 63  ;;  %s7932_s21 = sshll.u32 %s16013_s22, 6 }
  0x19   : > { %8930 = vmatmul.mubr.msk.bf16.vlgmr.msra.gmra.mrb[0].mxu0 %vm483_vm1, %v10990_v5  ;;  %9010 = vmatmul.mubr.msk.bf16.vlgmr.msra.gmra.mrb[0].mxu1 %vm483_vm1, %v10993_v6  ;;  %v11042_v14 = vld [vmem:[%s10984_s17 + $0x18] sm:$0xff]   ;;  %v11056_v16 = vld [vmem:[%s10984_s17 + $0x20] sm:$0xff]   ;;  %v11068_v17 = vld [vmem:[%s10984_s17 + $0x28] sm:$0xff]   ;;  %s10478_s16 = smul.u32 352, %s281_s15  ;;  %s15151_s14 = sadd.s32 %s7932_s21, %s16015_s13 }
  0x1a   : > { %9118 = vmatpush3.bf16.msra.mxu0 %v10528_v3  ;;  %8933 = vmatprep.mubr.msk.bf16.mxu0 %vm10885_vm0, %v15648_v1  ;;  %v11079_v18 = vld [vmem:[%s10984_s17 + $0x30] sm:$0xff]   ;;  %v11090_v19 = vld [vmem:[%s10984_s17 + $0x38] sm:$0xff]   ;;  %v11101_v20 = vld [vmem:[%s10984_s17 + $0x40] sm:$0xff]   ;;  %s7933_s22 = sshll.u32 %s15151_s14, 3 }
  0x1b   : > { %9013 = vmatprep.mubr.msk.bf16.mxu1 %vm10885_vm0, %v15648_v1  ;;  %9022 = vmatpush3.bf16.msra.mxu1 %v10534_v4  ;;  %v11112_v21 = vld [vmem:[%s10984_s17 + $0x48] sm:$0xff]   ;;  %v11126_v23 = vld [vmem:[%s10984_s17 + $0x50] sm:$0xff]   ;;  %v11138_v24 = vld [vmem:[%s10984_s17 + $0x58] sm:$0xff]   ;;  %s12386_s20 = scalar_lea.vmem %s15642_s1, %s10478_s16  ;;  %s15184_s18 = scalar_lea.vmem %s15647_s6, %s7933_s22 }
  0x1c   : > { %9119 = vmatprep.subr.bf16.mxu0 %v15648_v1  ;;  %9023 = vmatprep.subr.bf16.mxu1 %v15648_v1  ;;  %v11149_v25 = vld [vmem:[%s10984_s17 + $0x60] sm:$0xff]   ;;  %v11160_v26 = vld [vmem:[%s10984_s17 + $0x68] sm:$0xff]   ;;  %v11171_v27 = vld [vmem:[%s10984_s17 + $0x70] sm:$0xff]  }
  0x1d   : > { %v11182_v28 = vld [vmem:[%s10984_s17 + $0x78] sm:$0xff]   ;;  %v11193_v29 = vld [vmem:[%s10984_s17 + $0x80] sm:$0xff]   ;;  %v11204_v30 = vld [vmem:[%s10984_s17 + $0x88] sm:$0xff]  }
  0x1e   : > { %9120 = vmatpush3.bf16.msra.mxu0 %v10544_v7  ;;  %v11215_v31 = vld [vmem:[%s10984_s17 + $0x90] sm:$0xff]   ;;  %v11226_v32 = vld [vmem:[%s10984_s17 + $0x98] sm:$0xff]  }
  0x1f   : > { %9309 = vmatprep.subr.bf16.mxu0 %v15648_v1  ;;  %9024 = vmatpush3.bf16.msra.mxu1 %v10535_v8 }
  0x20   : > { %9213 = vmatprep.subr.bf16.mxu1 %v15648_v1 }
  0x21   : > { %8934 = vmatmul.mubr.msk.bf16.gmra.mrb[4].mxu0 %vm483_vm1, %v11011_v9  ;;  %9014 = vmatmul.mubr.msk.bf16.gmra.mrb[4].mxu1 %vm483_vm1, %v11015_v10 }
  0x22   : > { %8937 = vmatprep.mubr.msk.bf16.mxu0 %vm10885_vm0, %v15648_v1  ;;  %9017 = vmatprep.mubr.msk.bf16.mxu1 %vm10885_vm0, %v15648_v1 }
  0x29   : > { %8938 = vmatmul.mubr.msk.bf16.gmra.mrb[8].mxu0 %vm483_vm1, %v11029_v12  ;;  %9018 = vmatmul.mubr.msk.bf16.gmra.mrb[8].mxu1 %vm483_vm1, %v11031_v13 }
  0x2a   : > { %8941 = vmatprep.mubr.msk.bf16.mxu0 %vm10885_vm0, %v15648_v1  ;;  %9025 = vmatprep.mubr.msk.bf16.mxu1 %vm10885_vm0, %v15648_v1 }
  0x31   : > { %8942 = vmatmul.mubr.msk.bf16.gmra.mrb[12].mxu0 %vm483_vm1, %v11042_v14  ;;  %9026 = vmatmul.mubr.msk.bf16.vlgmr.msra.gmra.mrb[12].mxu1 %vm483_vm1, %v10990_v5 }
  0x32   : > { %8945 = vmatprep.mubr.msk.bf16.mxu0 %vm10885_vm0, %v15648_v1  ;;  %9029 = vmatprep.mubr.msk.bf16.mxu1 %vm10885_vm0, %v15648_v1 }
  0x33   : > { %9214 = vmatpush3.bf16.msra.mxu1 %v10554_v15 }
  0x34   : > { %9215 = vmatprep.subr.bf16.mxu1 %v15648_v1 }
  0x37   : > { %9216 = vmatpush3.bf16.msra.mxu1 %v10556_v22 }
  0x38   : > { %9405 = vmatprep.subr.bf16.mxu1 %v15648_v1 }
  0x39   : > { %8946 = vmatmul.mubr.msk.bf16.gmra.mrb[16].mxu0 %vm483_vm1, %v11056_v16  ;;  %9030 = vmatmul.mubr.msk.bf16.gmra.mrb[16].mxu1 %vm483_vm1, %v11011_v9 }
  0x3a   : > { %8949 = vmatprep.mubr.msk.bf16.mxu0 %vm10885_vm0, %v15648_v1  ;;  %9033 = vmatprep.mubr.msk.bf16.mxu1 %vm10885_vm0, %v15648_v1 }
  0x41   : > { %8950 = vmatmul.mubr.msk.bf16.gmra.mrb[20].mxu0 %vm483_vm1, %v11068_v17  ;;  %9034 = vmatmul.mubr.msk.bf16.gmra.mrb[20].mxu1 %vm483_vm1, %v11029_v12 }
  0x42   : > { %8953 = vmatprep.mubr.msk.bf16.mxu0 %vm10885_vm0, %v15648_v1  ;;  %9037 = vmatprep.mubr.msk.bf16.mxu1 %vm10885_vm0, %v15648_v1 }
  0x49   : > { %8954 = vmatmul.mubr.msk.bf16.gmra.mrb[24].mxu0 %vm483_vm1, %v11079_v18  ;;  %9038 = vmatmul.mubr.msk.bf16.gmra.mrb[24].mxu1 %vm483_vm1, %v11042_v14 }
  0x4a   : > { %8957 = vmatprep.mubr.msk.bf16.mxu0 %vm10885_vm0, %v15648_v1  ;;  %9041 = vmatprep.mubr.msk.bf16.mxu1 %vm10885_vm0, %v15648_v1 }
  0x51   : > { %8958 = vmatmul.mubr.msk.bf16.gmra.mrb[28].mxu0 %vm483_vm1, %v11090_v19  ;;  %9042 = vmatmul.mubr.msk.bf16.gmra.mrb[28].mxu1 %vm483_vm1, %v11056_v16 }
  0x52   : > { %8961 = vmatprep.mubr.msk.bf16.mxu0 %vm10885_vm0, %v15648_v1  ;;  %9045 = vmatprep.mubr.msk.bf16.mxu1 %vm10885_vm0, %v15648_v1 }
  0x59   : > { %8962 = vmatmul.mubr.msk.bf16.gmra.mrb[32].mxu0 %vm483_vm1, %v11101_v20  ;;  %9046 = vmatmul.mubr.msk.bf16.gmra.mrb[32].mxu1 %vm483_vm1, %v11068_v17 }
  0x5a   : > { %8965 = vmatprep.mubr.msk.bf16.mxu0 %vm10885_vm0, %v15648_v1  ;;  %9049 = vmatprep.mubr.msk.bf16.mxu1 %vm10885_vm0, %v15648_v1 }
  0x61   : > { %8966 = vmatmul.mubr.msk.bf16.gmra.mrb[36].mxu0 %vm483_vm1, %v11112_v21  ;;  %9050 = vmatmul.mubr.msk.bf16.gmra.mrb[36].mxu1 %vm483_vm1, %v11079_v18 }
  0x62   : > { %8969 = vmatprep.mubr.msk.bf16.mxu0 %vm10885_vm0, %v15648_v1  ;;  %9053 = vmatprep.mubr.msk.bf16.mxu1 %vm10885_vm0, %v15648_v1 }
  0x69   : > { %8970 = vmatmul.mubr.msk.bf16.gmra.mrb[40].mxu0 %vm483_vm1, %v11126_v23  ;;  %9054 = vmatmul.mubr.msk.bf16.gmra.mrb[40].mxu1 %vm483_vm1, %v11090_v19 }
  0x6a   : > { %8973 = vmatprep.mubr.msk.bf16.mxu0 %vm10885_vm0, %v15648_v1  ;;  %9057 = vmatprep.mubr.msk.bf16.mxu1 %vm10885_vm0, %v15648_v1 }
  0x71   : > { %8974 = vmatmul.mubr.msk.bf16.gmra.mrb[44].mxu0 %vm483_vm1, %v11138_v24  ;;  %9058 = vmatmul.mubr.msk.bf16.gmra.mrb[44].mxu1 %vm483_vm1, %v11101_v20 }
  0x72   : > { %8977 = vmatprep.mubr.msk.bf16.mxu0 %vm10885_vm0, %v15648_v1  ;;  %9061 = vmatprep.mubr.msk.bf16.mxu1 %vm10885_vm0, %v15648_v1 }
  0x79   : > { %8978 = vmatmul.mubr.msk.bf16.gmra.mrb[48].mxu0 %vm483_vm1, %v11149_v25  ;;  %9062 = vmatmul.mubr.msk.bf16.gmra.mrb[48].mxu1 %vm483_vm1, %v11112_v21 }
  0x7a   : > { %8981 = vmatprep.mubr.msk.bf16.mxu0 %vm10885_vm0, %v15648_v1  ;;  %9065 = vmatprep.mubr.msk.bf16.mxu1 %vm10885_vm0, %v15648_v1 }
  0x81   : > { %8982 = vmatmul.mubr.msk.bf16.gmra.mrb[52].mxu0 %vm483_vm1, %v11160_v26  ;;  %9066 = vmatmul.mubr.msk.bf16.gmra.mrb[52].mxu1 %vm483_vm1, %v11126_v23 }
  0x82   : > { %8985 = vmatprep.mubr.msk.bf16.mxu0 %vm10885_vm0, %v15648_v1  ;;  %9069 = vmatprep.mubr.msk.bf16.mxu1 %vm10885_vm0, %v15648_v1 }
  0x89   : > { %8986 = vmatmul.mubr.msk.bf16.gmra.mrb[56].mxu0 %vm483_vm1, %v11171_v27  ;;  %9070 = vmatmul.mubr.msk.bf16.gmra.mrb[56].mxu1 %vm483_vm1, %v11138_v24 }
  0x8a   : > { %8989 = vmatprep.mubr.msk.bf16.mxu0 %vm10885_vm0, %v15648_v1  ;;  %9073 = vmatprep.mubr.msk.bf16.mxu1 %vm10885_vm0, %v15648_v1 }
  0x91   : > { %8990 = vmatmul.mubr.msk.bf16.gmra.mrb[60].mxu0 %vm483_vm1, %v11182_v28  ;;  %9074 = vmatmul.mubr.msk.bf16.gmra.mrb[60].mxu1 %vm483_vm1, %v11149_v25 }
  0x92   : > { %8993 = vmatprep.mubr.msk.bf16.mxu0 %vm10885_vm0, %v15648_v1  ;;  %9077 = vmatprep.mubr.msk.bf16.mxu1 %vm10885_vm0, %v15648_v1 }
  0x99   : > { %8994 = vmatmul.mubr.msk.bf16.gmra.mrb[64].mxu0 %vm483_vm1, %v11193_v29  ;;  %9078 = vmatmul.mubr.msk.bf16.gmra.mrb[64].mxu1 %vm483_vm1, %v11160_v26 }
  0x9a   : > { %8997 = vmatprep.mubr.msk.bf16.mxu0 %vm10885_vm0, %v15648_v1  ;;  %9081 = vmatprep.mubr.msk.bf16.mxu1 %vm10885_vm0, %v15648_v1 }
  0xa1   : > { %8998 = vmatmul.mubr.msk.bf16.gmra.mrb[68].mxu0 %vm483_vm1, %v11204_v30  ;;  %9082 = vmatmul.mubr.msk.bf16.gmra.mrb[68].mxu1 %vm483_vm1, %v11171_v27 }
  0xa2   : > { %9001 = vmatprep.mubr.msk.bf16.mxu0 %vm10885_vm0, %v15648_v1  ;;  %9085 = vmatprep.mubr.msk.bf16.mxu1 %vm10885_vm0, %v15648_v1 }
  0xa9   : > { %9002 = vmatmul.mubr.msk.bf16.gmra.mrb[72].mxu0 %vm483_vm1, %v11215_v31  ;;  %9086 = vmatmul.mubr.msk.bf16.gmra.mrb[72].mxu1 %vm483_vm1, %v11182_v28 }
  0xaa   : > { %9005 = vmatprep.mubr.msk.bf16.mxu0 %vm10885_vm0, %v15648_v1  ;;  %9089 = vmatprep.mubr.msk.bf16.mxu1 %vm10885_vm0, %v15648_v1 }
  0xb1   : > { %9006 = vmatmul.mubr.msk.bf16.gmra.mrb[76].mxu0 %vm483_vm1, %v11226_v32  ;;  %9090 = vmatmul.mubr.msk.bf16.gmra.mrb[76].mxu1 %vm483_vm1, %v11193_v29 }
  0xb2   : > { %9121 = vmatprep.mubr.msk.bf16.mxu0 %vm10885_vm0, %v15648_v1  ;;  %9093 = vmatprep.mubr.msk.bf16.mxu1 %vm10885_vm0, %v15648_v1 }
  0xb9   : > { %9122 = vmatmul.mubr.msk.bf16.vlgmr.msra.gmra.mrb[80].mxu0 %vm483_vm1, %v10990_v5  ;;  %9094 = vmatmul.mubr.msk.bf16.gmra.mrb[80].mxu1 %vm483_vm1, %v11204_v30 }
  0xba   : > { %9310 = vmatpush3.bf16.msra.mxu0 %v10555_v33  ;;  %9097 = vmatprep.mubr.msk.bf16.mxu1 %vm10885_vm0, %v15648_v1 }
  0xbb   : > { %9125 = vmatprep.mubr.msk.bf16.mxu0 %vm10885_vm0, %v15648_v1  ;;  %9311 = vmatprep.subr.bf16.mxu0 %v15648_v1 }
  0xbe   : > { %9312 = vmatpush3.bf16.msra.mxu0 %v10557_v34 }
  0xbf   : > { %9501 = vmatprep.subr.bf16.mxu0 %v15648_v1 }
  0xc1   : > { %9126 = vmatmul.mubr.msk.bf16.gmra.mrb[84].mxu0 %vm483_vm1, %v11011_v9  ;;  %9098 = vmatmul.mubr.msk.bf16.gmra.mrb[84].mxu1 %vm483_vm1, %v11215_v31 }
  0xc2   : > { %9129 = vmatprep.mubr.msk.bf16.mxu0 %vm10885_vm0, %v15648_v1  ;;  %9101 = vmatprep.mubr.msk.bf16.mxu1 %vm10885_vm0, %v15648_v1 }
  0xc9   : > { %9130 = vmatmul.mubr.msk.bf16.gmra.mrb[88].mxu0 %vm483_vm1, %v11029_v12  ;;  %9102 = vmatmul.mubr.msk.bf16.gmra.mrb[88].mxu1 %vm483_vm1, %v11226_v32 }
  0xca   : > { %9133 = vmatprep.mubr.msk.bf16.mxu0 %vm10885_vm0, %v15648_v1  ;;  %9105 = vmatprep.mubr.msk.bf16.mxu1 %vm10885_vm0, %v15648_v1 }
  0xd1   : > { %9134 = vmatmul.mubr.msk.bf16.gmra.mrb[92].mxu0 %vm483_vm1, %v11042_v14  ;;  %9106 = vmatmul.mubr.msk.bf16.gmra.mrb[92].mxu1 %vm483_vm1, %v10993_v6 }
  0xd2   : > { %9137 = vmatprep.mubr.msk.bf16.mxu0 %vm10885_vm0, %v15648_v1  ;;  %9109 = vmatprep.mubr.msk.bf16.mxu1 %vm10885_vm0, %v15648_v1 }
  0xd9   : > { %9138 = vmatmul.mubr.msk.bf16.gmra.mrb[96].mxu0 %vm483_vm1, %v11056_v16  ;;  %9110 = vmatmul.mubr.msk.bf16.gmra.mrb[96].mxu1 %vm483_vm1, %v11015_v10 }
  0xda   : > { %9141 = vmatprep.mubr.msk.bf16.mxu0 %vm10885_vm0, %v15648_v1  ;;  %9113 = vmatprep.mubr.msk.bf16.mxu1 %vm10885_vm0, %v15648_v1 }
  0xe1   : > { %9142 = vmatmul.mubr.msk.bf16.gmra.mrb[100].mxu0 %vm483_vm1, %v11068_v17  ;;  %9114 = vmatmul.mubr.msk.bf16.gmra.mrb[100].mxu1 %vm483_vm1, %v11031_v13 }
  0xe2   : > { %9145 = vmatprep.mubr.msk.bf16.mxu0 %vm10885_vm0, %v15648_v1  ;;  %9217 = vmatprep.mubr.msk.bf16.mxu1 %vm10885_vm0, %v15648_v1 }
  0xe9   : > { %9146 = vmatmul.mubr.msk.bf16.gmra.mrb[104].mxu0 %vm483_vm1, %v11079_v18  ;;  %9218 = vmatmul.mubr.msk.bf16.vlgmr.msra.gmra.mrb[104].mxu1 %vm483_vm1, %v11029_v12 }
  0xea   : > { %9149 = vmatprep.mubr.msk.bf16.mxu0 %vm10885_vm0, %v15648_v1  ;;  %9221 = vmatprep.mubr.msk.bf16.mxu1 %vm10885_vm0, %v15648_v1 }
  0xeb   : > { %9406 = vmatpush3.bf16.msra.mxu1 %v10558_v43 }
  0xec   : > { %v587_v35 = vpop.f32.mrb[0].mxu0  ;;  %v11300_v37 = vpop.f32.mrb[0].mxu1  ;;  %9407 = vmatprep.subr.bf16.mxu1 %v15648_v1 }
  0xed   : > { %v8931_v36 = vpop.f32.mrb[1].mxu0  ;;  %v9011_v39 = vpop.f32.mrb[1].mxu1 }
  0xee   : > { %v11302_v38 = vpop.f32.mrb[2].mxu0  ;;  %v11304_v41 = vpop.f32.mrb[2].mxu1 }
  0xef   : > { %v8932_v40 = vpop.f32.mrb[3].mxu0  ;;  %v9012_v42 = vpop.f32.mrb[3].mxu1 }
  0xf1   : > { %9150 = vmatmul.mubr.msk.bf16.gmra.mrb[108].mxu0 %vm483_vm1, %v11090_v19  ;;  %9222 = vmatmul.mubr.msk.bf16.gmra.mrb[108].mxu1 %vm483_vm1, %v11042_v14 }
  0xf2   : > { %9153 = vmatprep.mubr.msk.bf16.mxu0 %vm10885_vm0, %v15648_v1  ;;  %9225 = vmatprep.mubr.msk.bf16.mxu1 %vm10885_vm0, %v15648_v1 }
  0xf4   : > { %v595_v44 = vpop.f32.mrb[4].mxu0  ;;  %v755_v46 = vpop.f32.mrb[4].mxu1 }
  0xf5   : > { %v8935_v45 = vpop.f32.mrb[5].mxu0  ;;  %v9015_v48 = vpop.f32.mrb[5].mxu1 }
  0xf6   : > { %v11318_v47 = vpop.f32.mrb[6].mxu0  ;;  %v757_v50 = vpop.f32.mrb[6].mxu1 }
  0xf7   : > { %v8936_v49 = vpop.f32.mrb[7].mxu0  ;;  %v9016_v51 = vpop.f32.mrb[7].mxu1 }
  0xf9   : > { %9154 = vmatmul.mubr.msk.bf16.gmra.mrb[112].mxu0 %vm483_vm1, %v11101_v20  ;;  %9226 = vmatmul.mubr.msk.bf16.gmra.mrb[112].mxu1 %vm483_vm1, %v11056_v16 }
  0xfa   : > { %9157 = vmatprep.mubr.msk.bf16.mxu0 %vm10885_vm0, %v15648_v1  ;;  %9229 = vmatprep.mubr.msk.bf16.mxu1 %vm10885_vm0, %v15648_v1 }
  0xfc   : > { %v11328_v52 = vpop.f32.mrb[8].mxu0  ;;  %v761_v54 = vpop.f32.mrb[8].mxu1 }
  0xfd   : > { %v8939_v53 = vpop.f32.mrb[9].mxu0  ;;  %v9019_v56 = vpop.f32.mrb[9].mxu1 }
  0xfe   : > { %v11330_v55 = vpop.f32.mrb[10].mxu0  ;;  %v763_v58 = vpop.f32.mrb[10].mxu1 }
  0xff   : > { %v8940_v57 = vpop.f32.mrb[11].mxu0  ;;  %v9020_v59 = vpop.f32.mrb[11].mxu1 }
 0x101   : > { %9158 = vmatmul.mubr.msk.bf16.gmra.mrb[116].mxu0 %vm483_vm1, %v11112_v21  ;;  %9230 = vmatmul.mubr.msk.bf16.gmra.mrb[116].mxu1 %vm483_vm1, %v11068_v17 }
 0x102   : > { %9161 = vmatprep.mubr.msk.bf16.mxu0 %vm10885_vm0, %v15648_v1  ;;  %9233 = vmatprep.mubr.msk.bf16.mxu1 %vm10885_vm0, %v15648_v1 }
 0x104   : > { %v11340_v60 = vpop.f32.mrb[12].mxu0  ;;  %v859_v61 = vpop.f32.mrb[12].mxu1 }
 0x105   : > { %v8943_v62 = vpop.f32.mrb[13].mxu0  ;;  %v1083_v63 = vrot.slane %v859_v61, 1  ;;  %v9027_v0 = vpop.f32.mrb[13].mxu1 }
 0x106   : > { %v11342_v2 = vpop.f32.mrb[14].mxu0  ;;  %v862_v3 = vpop.f32.mrb[14].mxu1 }
 0x107   : > { %v8944_v4 = vpop.f32.mrb[15].mxu0  ;;  %v1084_v5 = vrot.slane %v862_v3, 1  ;;  %v9028_v6 = vpop.f32.mrb[15].mxu1 }
 0x109   : > { %9162 = vmatmul.mubr.msk.bf16.gmra.mrb[120].mxu0 %vm483_vm1, %v11126_v23  ;;  %v1085_v7 = vsel %vm1082_vm2, %v1083_v63, %v1084_v5  ;;  %9234 = vmatmul.mubr.msk.bf16.gmra.mrb[120].mxu1 %vm483_vm1, %v11079_v18 }
 0x10a   : > { %9165 = vmatprep.mubr.msk.bf16.mxu0 %vm10885_vm0, %v15648_v1  ;;  %9237 = vmatprep.mubr.msk.bf16.mxu1 %vm10885_vm0, %v15648_v1  ;;  %v11353_v8 = vadd.f32 %v1085_v7, %v587_v35 }
 0x10c   : > { %v11355_v9 = vpop.f32.mrb[16].mxu0  ;;  %v867_v10 = vpop.f32.mrb[16].mxu1 }
 0x10d   : > { %v8947_v11 = vpop.f32.mrb[17].mxu0  ;;  %v1086_v12 = vrot.slane %v867_v10, 1  ;;  %v9031_v14 = vpop.f32.mrb[17].mxu1 }
 0x10e   : > { %v11357_v15 = vpop.f32.mrb[18].mxu0  ;;  %v870_v16 = vpop.f32.mrb[18].mxu1 }
 0x10f   : > { %v8948_v17 = vpop.f32.mrb[19].mxu0  ;;  %v1087_v22 = vsel %vm1082_vm2, %v1084_v5, %v1086_v12  ;;  %v1088_v33 = vrot.slane %v870_v16, 1  ;;  %v9032_v34 = vpop.f32.mrb[19].mxu1 }
 0x110   : > { %v11363_v35 = vadd.f32 %v1087_v22, %v11302_v38 }
 0x111   : > { %9166 = vmatmul.mubr.msk.bf16.gmra.mrb[124].mxu0 %vm483_vm1, %v11138_v24  ;;  %v1089_v36 = vsel %vm1082_vm2, %v1086_v12, %v1088_v33  ;;  %9238 = vmatmul.mubr.msk.bf16.gmra.mrb[124].mxu1 %vm483_vm1, %v11090_v19 }
 0x112   : > { %9169 = vmatprep.mubr.msk.bf16.mxu0 %vm10885_vm0, %v15648_v1  ;;  %9241 = vmatprep.mubr.msk.bf16.mxu1 %vm10885_vm0, %v15648_v1  ;;  %v11372_v39 = vadd.f32 %v1089_v36, %v595_v44 }
 0x114   : > { %v11374_v40 = vpop.f32.mrb[20].mxu0  ;;  %v875_v42 = vpop.f32.mrb[20].mxu1 }
 0x115   : > { %v8951_v43 = vpop.f32.mrb[21].mxu0  ;;  %v1090_v45 = vrot.slane %v875_v42, 1  ;;  %v9035_v38 = vpop.f32.mrb[21].mxu1 }
 0x116   : > { %v11376_v46 = vpop.f32.mrb[22].mxu0  ;;  %v878_v48 = vpop.f32.mrb[22].mxu1 }
 0x117   : > { %v8952_v49 = vpop.f32.mrb[23].mxu0  ;;  %v1091_v50 = vsel %vm1082_vm2, %v1088_v33, %v1090_v45  ;;  %v1092_v51 = vrot.slane %v878_v48, 1  ;;  %v9036_v53 = vpop.f32.mrb[23].mxu1 }
 0x118   : > { %v11382_v44 = vadd.f32 %v1091_v50, %v11318_v47  ;;  %v10563_v47 = vld [vmem:[%s15643_s2 + $0x58] sm:$0xff]  }
 0x119   : > { %9170 = vmatmul.mubr.msk.bf16.gmra.mrb[128].mxu0 %vm483_vm1, %v11149_v25  ;;  %v1093_v54 = vsel %vm1082_vm2, %v1090_v45, %v1092_v51  ;;  %9242 = vmatmul.mubr.msk.bf16.gmra.mrb[128].mxu1 %vm483_vm1, %v11101_v20 }
 0x11a   : > { %9173 = vmatprep.mubr.msk.bf16.mxu0 %vm10885_vm0, %v15648_v1  ;;  %9245 = vmatprep.mubr.msk.bf16.mxu1 %vm10885_vm0, %v15648_v1  ;;  %v11392_v56 = vadd.f32 %v1093_v54, %v11328_v52 }
 0x11b   : > { %9408 = vmatpush3.bf16.msra.mxu1 %v10563_v47 }
 0x11c   : > { %v11394_v57 = vpop.f32.mrb[24].mxu0  ;;  %v883_v58 = vpop.f32.mrb[24].mxu1  ;;  %9597 = vmatprep.subr.bf16.mxu1 %v15648_v1 }
 0x11d   : > { %v8955_v59 = vpop.f32.mrb[25].mxu0  ;;  %v1094_v61 = vrot.slane %v883_v58, 1  ;;  %v9039_v62 = vpop.f32.mrb[25].mxu1 }
 0x11e   : > { %v11399_v20 = vpop.f32.mrb[26].mxu0  ;;  %v886_v63 = vpop.f32.mrb[26].mxu1 }
 0x11f   : > { %v8956_v0 = vpop.f32.mrb[27].mxu0  ;;  %v1095_v3 = vsel %vm1082_vm2, %v1092_v51, %v1094_v61  ;;  %v1096_v4 = vrot.slane %v886_v63, 1  ;;  %v9040_v52 = vpop.f32.mrb[27].mxu1 }
 0x120   : > { %v11406_v5 = vadd.f32 %v1095_v3, %v11330_v55 }
 0x121   : > { %9174 = vmatmul.mubr.msk.bf16.gmra.mrb[132].mxu0 %vm483_vm1, %v11160_v26  ;;  %v1097_v6 = vsel %vm1082_vm2, %v1094_v61, %v1096_v4  ;;  %9246 = vmatmul.mubr.msk.bf16.gmra.mrb[132].mxu1 %vm483_vm1, %v11112_v21 }
 0x122   : > { %9177 = vmatprep.mubr.msk.bf16.mxu0 %vm10885_vm0, %v15648_v1  ;;  %9249 = vmatprep.mubr.msk.bf16.mxu1 %vm10885_vm0, %v15648_v1  ;;  %v11416_v7 = vadd.f32 %v1097_v6, %v11340_v60 }
 0x124   : > { %v11418_v10 = vpop.f32.mrb[28].mxu0  ;;  %v891_v11 = vpop.f32.mrb[28].mxu1 }
 0x125   : > { %v8959_v12 = vpop.f32.mrb[29].mxu0  ;;  %v1098_v55 = vrot.slane %v891_v11, 1  ;;  %v9043_v14 = vpop.f32.mrb[29].mxu1 }
 0x126   : > { %v11420_v16 = vpop.f32.mrb[30].mxu0  ;;  %v894_v17 = vpop.f32.mrb[30].mxu1 }
 0x127   : > { %v8960_v22 = vpop.f32.mrb[31].mxu0  ;;  %v1099_v21 = vsel %vm1082_vm2, %v1096_v4, %v1098_v55  ;;  %v1100_v33 = vrot.slane %v894_v17, 1  ;;  %v9044_v34 = vpop.f32.mrb[31].mxu1 }
 0x128   : > { %v11426_v60 = vadd.f32 %v1099_v21, %v11342_v2 }
 0x129   : > { %9178 = vmatmul.mubr.msk.bf16.gmra.mrb[136].mxu0 %vm483_vm1, %v11171_v27  ;;  %v1101_v36 = vsel %vm1082_vm2, %v1098_v55, %v1100_v33  ;;  %9250 = vmatmul.mubr.msk.bf16.gmra.mrb[136].mxu1 %vm483_vm1, %v11126_v23 }
 0x12a   : > { %9181 = vmatprep.mubr.msk.bf16.mxu0 %vm10885_vm0, %v15648_v1  ;;  %9253 = vmatprep.mubr.msk.bf16.mxu1 %vm10885_vm0, %v15648_v1  ;;  %v11436_v42 = vadd.f32 %v1101_v36, %v11355_v9 }
 0x12c   : > { %v11438_v43 = vpop.f32.mrb[32].mxu0  ;;  %v899_v45 = vpop.f32.mrb[32].mxu1 }
 0x12d   : > { %v8963_v38 = vpop.f32.mrb[33].mxu0  ;;  %v1102_v2 = vrot.slane %v899_v45, 1  ;;  %v9047_v48 = vpop.f32.mrb[33].mxu1 }
 0x12e   : > { %v11440_v49 = vpop.f32.mrb[34].mxu0  ;;  %v902_v50 = vpop.f32.mrb[34].mxu1 }
 0x12f   : > { %v8964_v51 = vpop.f32.mrb[35].mxu0  ;;  %v1103_v23 = vsel %vm1082_vm2, %v1100_v33, %v1102_v2  ;;  %v1104_v53 = vrot.slane %v902_v50, 1  ;;  %v9048_v54 = vpop.f32.mrb[35].mxu1 }
 0x130   : > { %v11446_v9 = vadd.f32 %v1103_v23, %v11357_v15 }
 0x131   : > { %9182 = vmatmul.mubr.msk.bf16.gmra.mrb[140].mxu0 %vm483_vm1, %v11182_v28  ;;  %v1105_v58 = vsel %vm1082_vm2, %v1102_v2, %v1104_v53  ;;  %9254 = vmatmul.mubr.msk.bf16.gmra.mrb[140].mxu1 %vm483_vm1, %v11138_v24 }
 0x132   : > { %9185 = vmatprep.mubr.msk.bf16.mxu0 %vm10885_vm0, %v15648_v1  ;;  %9257 = vmatprep.mubr.msk.bf16.mxu1 %vm10885_vm0, %v15648_v1  ;;  %v11456_v59 = vadd.f32 %v1105_v58, %v11374_v40 }
 0x134   : > { %v11458_v47 = vpop.f32.mrb[36].mxu0  ;;  %v907_v61 = vpop.f32.mrb[36].mxu1 }
 0x135   : > { %v8967_v62 = vpop.f32.mrb[37].mxu0  ;;  %v1106_v15 = vrot.slane %v907_v61, 1  ;;  %v9051_v63 = vpop.f32.mrb[37].mxu1 }
 0x136   : > { %v11460_v0 = vpop.f32.mrb[38].mxu0  ;;  %v910_v3 = vpop.f32.mrb[38].mxu1 }
 0x137   : > { %v8968_v4 = vpop.f32.mrb[39].mxu0  ;;  %v1107_v24 = vsel %vm1082_vm2, %v1104_v53, %v1106_v15  ;;  %v1108_v52 = vrot.slane %v910_v3, 1  ;;  %v9052_v6 = vpop.f32.mrb[39].mxu1 }
 0x138   : > { %v11466_v40 = vadd.f32 %v1107_v24, %v11376_v46 }
 0x139   : > { %9186 = vmatmul.mubr.msk.bf16.gmra.mrb[144].mxu0 %vm483_vm1, %v11193_v29  ;;  %v1109_v11 = vsel %vm1082_vm2, %v1106_v15, %v1108_v52  ;;  %9258 = vmatmul.mubr.msk.bf16.gmra.mrb[144].mxu1 %vm483_vm1, %v11149_v25 }
 0x13a   : > { %9189 = vmatprep.mubr.msk.bf16.mxu0 %vm10885_vm0, %v15648_v1  ;;  %9261 = vmatprep.mubr.msk.bf16.mxu1 %vm10885_vm0, %v15648_v1  ;;  %v11476_v12 = vadd.f32 %v1109_v11, %v11394_v57 }
 0x13c   : > { %v11478_v55 = vpop.f32.mrb[40].mxu0  ;;  %v915_v14 = vpop.f32.mrb[40].mxu1 }
 0x13d   : > { %v8971_v17 = vpop.f32.mrb[41].mxu0  ;;  %v1110_v46 = vrot.slane %v915_v14, 1  ;;  %v9055_v22 = vpop.f32.mrb[41].mxu1 }
 0x13e   : > { %v11480_v21 = vpop.f32.mrb[42].mxu0  ;;  %v918_v33 = vpop.f32.mrb[42].mxu1 }
 0x13f   : > { %v8972_v34 = vpop.f32.mrb[43].mxu0  ;;  %v1111_v25 = vsel %vm1082_vm2, %v1108_v52, %v1110_v46  ;;  %v1112_v36 = vrot.slane %v918_v33, 1  ;;  %v9056_v45 = vpop.f32.mrb[43].mxu1 }
 0x140   : > { %v11486_v57 = vadd.f32 %v1111_v25, %v11399_v20 }
 0x141   : > { %9190 = vmatmul.mubr.msk.bf16.gmra.mrb[148].mxu0 %vm483_vm1, %v11204_v30  ;;  %v1113_v38 = vsel %vm1082_vm2, %v1110_v46, %v1112_v36  ;;  %9262 = vmatmul.mubr.msk.bf16.gmra.mrb[148].mxu1 %vm483_vm1, %v11160_v26 }
 0x142   : > { %9193 = vmatprep.mubr.msk.bf16.mxu0 %vm10885_vm0, %v15648_v1  ;;  %9265 = vmatprep.mubr.msk.bf16.mxu1 %vm10885_vm0, %v15648_v1  ;;  %v11496_v2 = vadd.f32 %v1113_v38, %v11418_v10 }
 0x144   : > { %v11498_v48 = vpop.f32.mrb[44].mxu0  ;;  %v923_v50 = vpop.f32.mrb[44].mxu1 }
 0x145   : > { %v8975_v51 = vpop.f32.mrb[45].mxu0  ;;  %v1114_v20 = vrot.slane %v923_v50, 1  ;;  %v9059_v23 = vpop.f32.mrb[45].mxu1 }
 0x146   : > { %v11500_v53 = vpop.f32.mrb[46].mxu0  ;;  %v926_v54 = vpop.f32.mrb[46].mxu1 }
 0x147   : > { %v8976_v58 = vpop.f32.mrb[47].mxu0  ;;  %v1115_v26 = vsel %vm1082_vm2, %v1112_v36, %v1114_v20  ;;  %v1116_v61 = vrot.slane %v926_v54, 1  ;;  %v9060_v62 = vpop.f32.mrb[47].mxu1  ;;  %v11544_v54 = vld [vmem:[%s10984_s17 + $0xa0] sm:$0xff]  }
 0x148   : > { %v11506_v10 = vadd.f32 %v1115_v26, %v11420_v16 }
 0x149   : > { %9194 = vmatmul.mubr.msk.bf16.gmra.mrb[152].mxu0 %vm483_vm1, %v11215_v31  ;;  %v1117_v15 = vsel %vm1082_vm2, %v1114_v20, %v1116_v61  ;;  %9266 = vmatmul.mubr.msk.bf16.gmra.mrb[152].mxu1 %vm483_vm1, %v11171_v27 }
 0x14a   : > { %9197 = vmatprep.mubr.msk.bf16.mxu0 %vm10885_vm0, %v15648_v1  ;;  %9269 = vmatprep.mubr.msk.bf16.mxu1 %vm10885_vm0, %v15648_v1  ;;  %v11516_v63 = vadd.f32 %v1117_v15, %v11438_v43 }
 0x14c   : > { %v11518_v3 = vpop.f32.mrb[48].mxu0  ;;  %v931_v4 = vpop.f32.mrb[48].mxu1 }
 0x14d   : > { %v8979_v24 = vpop.f32.mrb[49].mxu0  ;;  %v1118_v16 = vrot.slane %v931_v4, 1  ;;  %v9063_v52 = vpop.f32.mrb[49].mxu1 }
 0x14e   : > { %v11520_v6 = vpop.f32.mrb[50].mxu0  ;;  %v934_v11 = vpop.f32.mrb[50].mxu1 }
 0x14f   : > { %v8980_v14 = vpop.f32.mrb[51].mxu0  ;;  %v1119_v27 = vsel %vm1082_vm2, %v1116_v61, %v1118_v16  ;;  %v1120_v17 = vrot.slane %v934_v11, 1  ;;  %v9064_v46 = vpop.f32.mrb[51].mxu1 }
 0x150   : > { %v11526_v43 = vadd.f32 %v1119_v27, %v11440_v49  ;;  %v11567_v27 = vld [vmem:[%s10984_s17 + $0xa8] sm:$0xff]  }
 0x151   : > { %9198 = vmatmul.mubr.msk.bf16.gmra.mrb[156].mxu0 %vm483_vm1, %v11226_v32  ;;  %v1121_v22 = vsel %vm1082_vm2, %v1118_v16, %v1120_v17  ;;  %9270 = vmatmul.mubr.msk.bf16.gmra.mrb[156].mxu1 %vm483_vm1, %v11182_v28  ;;  %15685 = vst [vmem:[#allocation2_spill] sm:$0xff] %v11567_v27 }
 0x152   : > { %9201 = vmatprep.mubr.msk.bf16.mxu0 %vm10885_vm0, %v15648_v1  ;;  %9273 = vmatprep.mubr.msk.bf16.mxu1 %vm10885_vm0, %v15648_v1  ;;  %v11536_v33 = vadd.f32 %v1121_v22, %v11458_v47 }
 0x154   : > { %v11538_v34 = vpop.f32.mrb[52].mxu0  ;;  %v939_v25 = vpop.f32.mrb[52].mxu1 }
 0x155   : > { %v8983_v49 = vpop.f32.mrb[53].mxu0  ;;  %v1122_v36 = vrot.slane %v939_v25, 1  ;;  %v9067_v45 = vpop.f32.mrb[53].mxu1 }
 0x156   : > { %v11540_v38 = vpop.f32.mrb[54].mxu0  ;;  %v942_v50 = vpop.f32.mrb[54].mxu1 }
 0x157   : > { %v8984_v51 = vpop.f32.mrb[55].mxu0  ;;  %v1123_v28 = vsel %vm1082_vm2, %v1120_v17, %v1122_v36  ;;  %v1124_v20 = vrot.slane %v942_v50, 1  ;;  %v9068_v23 = vpop.f32.mrb[55].mxu1 }
 0x158   : > { %v11549_v47 = vadd.f32 %v1123_v28, %v11460_v0 }
 0x159   : > { %9202 = vmatmul.mubr.msk.bf16.gmra.mrb[160].mxu0 %vm483_vm1, %v11544_v54  ;;  %v1125_v58 = vsel %vm1082_vm2, %v1122_v36, %v1124_v20  ;;  %9274 = vmatmul.mubr.msk.bf16.gmra.mrb[160].mxu1 %vm483_vm1, %v11193_v29 }
 0x15a   : > { %9205 = vmatprep.mubr.msk.bf16.mxu0 %vm10885_vm0, %v15648_v1  ;;  %9277 = vmatprep.mubr.msk.bf16.mxu1 %vm10885_vm0, %v15648_v1  ;;  %v11559_v26 = vadd.f32 %v1125_v58, %v11478_v55 }
 0x15c   : > { %v11561_v61 = vpop.f32.mrb[56].mxu0  ;;  %v947_v62 = vpop.f32.mrb[56].mxu1 }
 0x15d   : > { %v8987_v0 = vpop.f32.mrb[57].mxu0  ;;  %v1126_v15 = vrot.slane %v947_v62, 1  ;;  %v9071_v4 = vpop.f32.mrb[57].mxu1 }
 0x15e   : > { %v11563_v24 = vpop.f32.mrb[58].mxu0  ;;  %v950_v16 = vpop.f32.mrb[58].mxu1 }
 0x15f   : > { %v8988_v52 = vpop.f32.mrb[59].mxu0  ;;  %v1127_v29 = vsel %vm1082_vm2, %v1124_v20, %v1126_v15  ;;  %v1128_v11 = vrot.slane %v950_v16, 1  ;;  %v9072_v14 = vpop.f32.mrb[59].mxu1 }
 0x160   : > { %v11572_v55 = vadd.f32 %v1127_v29, %v11480_v21 }
 0x161   : > { %9206 = vmatmul.mubr.msk.bf16.gmra.mrb[164].mxu0 %vm483_vm1, %v11567_v27  ;;  %v1129_v17 = vsel %vm1082_vm2, %v1126_v15, %v1128_v11  ;;  %9278 = vmatmul.mubr.msk.bf16.gmra.mrb[164].mxu1 %vm483_vm1, %v11204_v30 }
 0x162   : > { %9209 = vmatprep.mubr.msk.bf16.mxu0 %vm10885_vm0, %v15648_v1  ;;  %9281 = vmatprep.mubr.msk.bf16.mxu1 %vm10885_vm0, %v15648_v1  ;;  %v11582_v46 = vadd.f32 %v1129_v17, %v11498_v48 }
 0x164   : > { %v11584_v22 = vpop.f32.mrb[60].mxu0  ;;  %v955_v25 = vpop.f32.mrb[60].mxu1 }
 0x165   : > { %v8991_v49 = vpop.f32.mrb[61].mxu0  ;;  %v1130_v21 = vrot.slane %v955_v25, 1  ;;  %v9075_v36 = vpop.f32.mrb[61].mxu1 }
 0x166   : > { %v11586_v45 = vpop.f32.mrb[62].mxu0  ;;  %v958_v50 = vpop.f32.mrb[62].mxu1  ;;  %v10564_v49 = vld [vmem:[%s15643_s2 + $0x68] sm:$0xff]  }
 0x167   : > { %v8992_v51 = vpop.f32.mrb[63].mxu0  ;;  %v1131_v30 = vsel %vm1082_vm2, %v1128_v11, %v1130_v21  ;;  %v1132_v28 = vrot.slane %v958_v50, 1  ;;  %v9076_v20 = vpop.f32.mrb[63].mxu1 }
 0x168   : > { %v11592_v48 = vadd.f32 %v1131_v30, %v11500_v53 }
 0x169   : > { %9210 = vmatmul.mubr.msk.bf16.gmra.mrb[168].mxu0 %vm483_vm1, %v11031_v13  ;;  %v1133_v23 = vsel %vm1082_vm2, %v1130_v21, %v1132_v28  ;;  %9282 = vmatmul.mubr.msk.bf16.gmra.mrb[168].mxu1 %vm483_vm1, %v11215_v31  ;;  %v10559_v31 = vld [vmem:[%s15643_s2 + $0x60] sm:$0xff]  }
 0x16a   : > { %9313 = vmatprep.mubr.msk.bf16.mxu0 %vm10885_vm0, %v15648_v1  ;;  %9285 = vmatprep.mubr.msk.bf16.mxu1 %vm10885_vm0, %v15648_v1  ;;  %v11602_v58 = vadd.f32 %v1133_v23, %v11518_v3  ;;  %v11613_v3 = vld [vmem:[%s10984_s17 + $0x10] sm:$0xff]  }
 0x16c   : > { %v11604_v62 = vpop.f32.mrb[64].mxu0  ;;  %v963_v13 = vpop.f32.mrb[64].mxu1 }
 0x16d   : > { %v8995_v53 = vpop.f32.mrb[65].mxu0  ;;  %v1134_v0 = vrot.slane %v963_v13, 1  ;;  %v9079_v15 = vpop.f32.mrb[65].mxu1 }
 0x16e   : > { %v11606_v4 = vpop.f32.mrb[66].mxu0  ;;  %v966_v16 = vpop.f32.mrb[66].mxu1  ;;  %v11641_v53 = vld [vmem:[%s10984_s17 + $0x18] sm:$0xff]  }
 0x16f   : > { %v8996_v52 = vpop.f32.mrb[67].mxu0  ;;  %v1135_v29 = vsel %vm1082_vm2, %v1132_v28, %v1134_v0  ;;  %v1136_v11 = vrot.slane %v966_v16, 1  ;;  %v9080_v14 = vpop.f32.mrb[67].mxu1 }
 0x170   : > { %v11618_v17 = vadd.f32 %v1135_v29, %v11520_v6 }
 0x171   : > { %9314 = vmatmul.mubr.msk.bf16.vlgmr.msra.gmra.mrb[172].mxu0 %vm483_vm1, %v11613_v3  ;;  %v1137_v25 = vsel %vm1082_vm2, %v1134_v0, %v1136_v11  ;;  %9286 = vmatmul.mubr.msk.bf16.gmra.mrb[172].mxu1 %vm483_vm1, %v11226_v32 }
 0x172   : > { %9502 = vmatpush3.bf16.msra.mxu0 %v10559_v31  ;;  %9289 = vmatprep.mubr.msk.bf16.mxu1 %vm10885_vm0, %v15648_v1  ;;  %v11631_v6 = vadd.f32 %v1137_v25, %v11538_v34 }
 0x173   : > { %9317 = vmatprep.mubr.msk.bf16.mxu0 %vm10885_vm0, %v15648_v1  ;;  %9503 = vmatprep.subr.bf16.mxu0 %v15648_v1 }
 0x174   : > { %v11633_v21 = vpop.f32.mrb[68].mxu0  ;;  %v971_v32 = vpop.f32.mrb[68].mxu1 }
 0x175   : > { %v8999_v36 = vpop.f32.mrb[69].mxu0  ;;  %v1138_v50 = vrot.slane %v971_v32, 1  ;;  %v9083_v51 = vpop.f32.mrb[69].mxu1 }
 0x176   : > { %v11636_v30 = vpop.f32.mrb[70].mxu0  ;;  %9504 = vmatpush3.bf16.msra.mxu0 %v10564_v49  ;;  %v974_v28 = vpop.f32.mrb[70].mxu1  ;;  %v11664_v51 = vld [vmem:[%s10984_s17 + $0x20] sm:$0xff]  }
 0x177   : > { %v9000_v20 = vpop.f32.mrb[71].mxu0  ;;  %9693 = vmatprep.subr.bf16.mxu0 %v15648_v1  ;;  %v1139_v23 = vsel %vm1082_vm2, %v1136_v11, %v1138_v50  ;;  %v1140_v13 = vrot.slane %v974_v28, 1  ;;  %v9084_v34 = vpop.f32.mrb[71].mxu1 }
 0x178   : > { %v11646_v0 = vadd.f32 %v1139_v23, %v11540_v38  ;;  %v346_v20 = vld [vmem:[%s10984_s17 + $0xb4] sm:$0xf] }
 0x179   : > { %9318 = vmatmul.mubr.msk.bf16.gmra.mrb[176].mxu0 %vm483_vm1, %v11641_v53  ;;  %v1141_v15 = vsel %vm1082_vm2, %v1138_v50, %v1140_v13  ;;  %9290 = vmatmul.mubr.msk.bf16.gmra.mrb[176].mxu1 %vm483_vm1, %v11544_v54 }
 0x17a   : > { %9321 = vmatprep.mubr.msk.bf16.mxu0 %vm10885_vm0, %v15648_v1  ;;  %9293 = vmatprep.mubr.msk.bf16.mxu1 %vm10885_vm0, %v15648_v1  ;;  %v11656_v31 = vadd.f32 %v1141_v15, %v11561_v61  ;;  %v10804_v15 = vld [vmem:[%s10984_s17 + $0xb0] sm:$0xf] }
 0x17c   : > { %v11658_v16 = vpop.f32.mrb[72].mxu0  ;;  %v979_v52 = vpop.f32.mrb[72].mxu1 }
 0x17d   : > { %v9003_v38 = vpop.f32.mrb[73].mxu0  ;;  %v1142_v29 = vrot.slane %v979_v52, 1  ;;  %v9087_v11 = vpop.f32.mrb[73].mxu1  ;;  %v11685_v52 = vcombine.low %v10804_v15, %v346_v20 }
 0x17e   : > { %v11660_v14 = vpop.f32.mrb[74].mxu0  ;;  %v982_v25 = vpop.f32.mrb[74].mxu1 }
 0x17f   : > { %v9004_v49 = vpop.f32.mrb[75].mxu0  ;;  %v1143_v32 = vsel %vm1082_vm2, %v1140_v13, %v1142_v29  ;;  %v1144_v36 = vrot.slane %v982_v25, 1  ;;  %v9088_v50 = vpop.f32.mrb[75].mxu1  ;;  %15688 = vst [vmem:[#allocation5_spill] sm:$0xff] %v11685_v52 }
 0x180   : > { %v11669_v61 = vadd.f32 %v1143_v32, %v11563_v24 }
 0x181   : > { %9322 = vmatmul.mubr.msk.bf16.gmra.mrb[180].mxu0 %vm483_vm1, %v11664_v51  ;;  %v1145_v28 = vsel %vm1082_vm2, %v1142_v29, %v1144_v36  ;;  %9294 = vmatmul.mubr.msk.bf16.gmra.mrb[180].mxu1 %vm483_vm1, %v11567_v27 }
 0x182   : > { %15686 = vst [vmem:[#allocation3_spill] sm:$0xff] %v11669_v61  ;;  %9325 = vmatprep.mubr.msk.bf16.mxu0 %vm10885_vm0, %v15648_v1  ;;  %9297 = vmatprep.mubr.msk.bf16.mxu1 %vm10885_vm0, %v15648_v1  ;;  %v11680_v23 = vadd.f32 %v1145_v28, %v11584_v22  ;;  %v11691_v22 = vld [vmem:[%s10984_s17 + $0x28] sm:$0xff]  }
 0x184   : > { %15687 = vst [vmem:[#allocation4_spill] sm:$0xff] %v11680_v23  ;;  %v11682_v13 = vpop.f32.mrb[76].mxu0  ;;  %v987_v24 = vpop.f32.mrb[76].mxu1 }
 0x185   : > { %v9007_v34 = vpop.f32.mrb[77].mxu0  ;;  %v1146_v38 = vrot.slane %v987_v24, 1  ;;  %v9091_v29 = vpop.f32.mrb[77].mxu1  ;;  %v15690_v24 = vmov 0.0  }
 0x186   : > { %v11687_v11 = vpop.f32.mrb[78].mxu0  ;;  %v990_v25 = vpop.f32.mrb[78].mxu1 }
 0x187   : > { %v9008_v49 = vpop.f32.mrb[79].mxu0  ;;  %v1147_v32 = vsel %vm1082_vm2, %v1144_v36, %v1146_v38  ;;  %v1148_v50 = vrot.slane %v990_v25, 1  ;;  %v9092_v1 = vpop.f32.mrb[79].mxu1 }
 0x188   : > { %v11696_v28 = vadd.f32 %v1147_v32, %v11586_v45  ;;  %v11709_v49 = vld [vmem:[%s10984_s17 + $0xb8] sm:$0xff]  }
 0x189   : > { %9326 = vmatmul.mubr.msk.bf16.gmra.mrb[184].mxu0 %vm483_vm1, %v11691_v22  ;;  %v1149_v20 = vsel %vm1082_vm2, %v1146_v38, %v1148_v50  ;;  %9298 = vmatmul.mubr.msk.bf16.gmra.mrb[184].mxu1 %vm483_vm1, %v11685_v52  ;;  %15692 = vst [vmem:[#allocation8_spill] sm:$0xff] %v11709_v49 }
 0x18a   : > { %15689 = vst [vmem:[#allocation6_spill] sm:$0xff] %v11696_v28  ;;  %9329 = vmatprep.mubr.msk.bf16.mxu0 %vm10885_vm0, %v15690_v24  ;;  %9301 = vmatprep.mubr.msk.bf16.mxu1 %vm10885_vm0, %v15690_v24  ;;  %v11706_v1 = vadd.f32 %v1149_v20, %v11604_v62 }
 0x18c   : > { %15691 = vst [vmem:[#allocation7_spill] sm:$0xff] %v11706_v1  ;;  %v1303_v36 = vpop.f32.mrb[80].mxu0  ;;  %v995_v34 = vpop.f32.mrb[80].mxu1 }
 0x18d   : > { %v9123_v15 = vpop.f32.mrb[81].mxu0  ;;  %v1150_v29 = vrot.slane %v995_v34, 1  ;;  %v9095_v45 = vpop.f32.mrb[81].mxu1  ;;  %v1527_v38 = vrot.slane %v1303_v36, 2 }
 0x18e   : > { %v1306_v25 = vpop.f32.mrb[82].mxu0  ;;  %v998_v32 = vpop.f32.mrb[82].mxu1 }
 0x18f   : > { %v1528_v52 = vrot.slane %v1306_v25, 2  ;;  %v9124_v28 = vpop.f32.mrb[83].mxu0  ;;  %v1151_v23 = vsel %vm1082_vm2, %v1148_v50, %v1150_v29  ;;  %v1152_v27 = vrot.slane %v998_v32, 1  ;;  %v9096_v61 = vpop.f32.mrb[83].mxu1 }
 0x190   : > { %v11716_v20 = vadd.f32 %v1151_v23, %v11606_v4 }
 0x191   : > { %9330 = vmatmul.mubr.msk.bf16.gmra.mrb[188].mxu0 %vm483_vm1, %v11079_v18  ;;  %v1529_v62 = vsel %vm1526_vm3, %v1527_v38, %v1528_v52  ;;  %v1153_v34 = vsel %vm1082_vm2, %v1150_v29, %v1152_v27  ;;  %9302 = vmatmul.mubr.msk.bf16.gmra.mrb[188].mxu1 %vm483_vm1, %v11709_v49  ;;  %v349_v18 = vld [vmem:[%s10984_s17 + $0xc0] sm:$0xf] }
 0x192   : > { %15693 = vst [vmem:[#allocation9_spill] sm:$0xff] %v11716_v20  ;;  %9333 = vmatprep.mubr.msk.bf16.mxu0 %vm10885_vm0, %v15690_v24  ;;  %v11724_v50 = vadd.f32 %v1529_v62, %v11353_v8  ;;  %9305 = vmatprep.mubr.msk.bf16.mxu1 %vm10885_vm0, %v15690_v24  ;;  %v11730_v61 = vadd.f32 %v1153_v34, %v11633_v21 }
 0x193   : > { %v11732_v25 = vcombine.low %v349_v18, %v349_v18 }
 0x194   : > { %v1311_v4 = vpop.f32.mrb[84].mxu0  ;;  %v1003_v23 = vpop.f32.mrb[84].mxu1 }
 0x195   : > { %v1530_v28 = vrot.slane %v1311_v4, 2  ;;  %v9127_v36 = vpop.f32.mrb[85].mxu0  ;;  %v1154_v15 = vrot.slane %v1003_v23, 1  ;;  %v9099_v29 = vpop.f32.mrb[85].mxu1 }
 0x196   : > { %v1314_v45 = vpop.f32.mrb[86].mxu0  ;;  %v1006_v38 = vpop.f32.mrb[86].mxu1 }
 0x197   : > { %v1532_v32 = vrot.slane %v1314_v45, 2  ;;  %v9128_v8 = vpop.f32.mrb[87].mxu0  ;;  %v1531_v62 = vsel %vm1526_vm3, %v1528_v52, %v1530_v28  ;;  %v1155_v49 = vsel %vm1082_vm2, %v1152_v27, %v1154_v15  ;;  %v1156_v20 = vrot.slane %v1006_v38, 1  ;;  %v9100_v1 = vpop.f32.mrb[87].mxu1 }
 0x198   : > { %v11737_v21 = vadd.f32 %v1531_v62, %v11363_v35  ;;  %v11743_v18 = vadd.f32 %v1155_v49, %v11636_v30  ;;  %v11764_v62 = vld [vmem:[%s10984_s17 + $0x40] sm:$0xff]  }
 0x199   : > { %9334 = vmatmul.mubr.msk.bf16.gmra.mrb[192].mxu0 %vm483_vm1, %v11090_v19  ;;  %v1533_v34 = vsel %vm1526_vm3, %v1530_v28, %v1532_v32  ;;  %v1157_v4 = vsel %vm1082_vm2, %v1154_v15, %v1156_v20  ;;  %9306 = vmatmul.mubr.msk.bf16.gmra.mrb[192].mxu1 %vm483_vm1, %v11732_v25 }
 0x19a   : > { %9337 = vmatprep.mubr.msk.bf16.mxu0 %vm10885_vm0, %v15690_v24  ;;  %v11751_v27 = vadd.f32 %v1533_v34, %v11372_v39  ;;  %9409 = vmatprep.mubr.msk.bf16.mxu1 %vm10885_vm0, %v15690_v24  ;;  %v11756_v19 = vadd.f32 %v1157_v4, %v11658_v16 }
 0x19c   : > { %v1319_v35 = vpop.f32.mrb[88].mxu0  ;;  %v1011_v30 = vpop.f32.mrb[88].mxu1 }
 0x19d   : > { %v1534_v52 = vrot.slane %v1319_v35, 2  ;;  %v9131_v1 = vpop.f32.mrb[89].mxu0  ;;  %v1158_v49 = vrot.slane %v1011_v30, 1  ;;  %v9103_v23 = vpop.f32.mrb[89].mxu1 }
 0x19e   : > { %v1322_v28 = vpop.f32.mrb[90].mxu0  ;;  %v1014_v36 = vpop.f32.mrb[90].mxu1 }
 0x19f   : > { %v1536_v15 = vrot.slane %v1322_v28, 2  ;;  %v9132_v29 = vpop.f32.mrb[91].mxu0  ;;  %v1535_v39 = vsel %vm1526_vm3, %v1532_v32, %v1534_v52  ;;  %v1159_v45 = vsel %vm1082_vm2, %v1156_v20, %v1158_v49  ;;  %v1160_v38 = vrot.slane %v1014_v36, 1  ;;  %v9104_v8 = vpop.f32.mrb[91].mxu1 }
 0x1a0   : > { %v11761_v16 = vadd.f32 %v1535_v39, %v11382_v44  ;;  %v11770_v4 = vadd.f32 %v1159_v45, %v11660_v14  ;;  %v10565_v8 = vld [vmem:[%s15643_s2 + $0x70] sm:$0xff]  }
 0x1a1   : > { %9338 = vmatmul.mubr.msk.bf16.gmra.mrb[196].mxu0 %vm483_vm1, %v11764_v62  ;;  %v1537_v34 = vsel %vm1526_vm3, %v1534_v52, %v1536_v15  ;;  %v1161_v35 = vsel %vm1082_vm2, %v1158_v49, %v1160_v38  ;;  %9410 = vmatmul.mubr.msk.bf16.vlgmr.msra.gmra.mrb[196].mxu1 %vm483_vm1, %v11613_v3 }
 0x1a2   : > { %9341 = vmatprep.mubr.msk.bf16.mxu0 %vm10885_vm0, %v15690_v24  ;;  %v11778_v44 = vadd.f32 %v1537_v34, %v11392_v56  ;;  %9413 = vmatprep.mubr.msk.bf16.mxu1 %vm10885_vm0, %v15690_v24  ;;  %v11783_v20 = vadd.f32 %v1161_v35, %v11682_v13  ;;  %v11794_v34 = vld [vmem:[%s10984_s17 + $0x48] sm:$0xff]  }
 0x1a3   : > { %9598 = vmatpush3.bf16.msra.mxu1 %v10565_v8 }
 0x1a4   : > { %v1327_v32 = vpop.f32.mrb[92].mxu0  ;;  %v1019_v14 = vpop.f32.mrb[92].mxu1  ;;  %9599 = vmatprep.subr.bf16.mxu1 %v15690_v24 }
 0x1a5   : > { %v1538_v30 = vrot.slane %v1327_v32, 2  ;;  %v9135_v52 = vpop.f32.mrb[93].mxu0  ;;  %v1162_v1 = vrot.slane %v1019_v14, 1  ;;  %v9107_v49 = vpop.f32.mrb[93].mxu1 }
 0x1a6   : > { %v1330_v3 = vpop.f32.mrb[94].mxu0  ;;  %v1022_v23 = vpop.f32.mrb[94].mxu1 }
 0x1a7   : > { %v1540_v28 = vrot.slane %v1330_v3, 2  ;;  %v9136_v36 = vpop.f32.mrb[95].mxu0  ;;  %v1539_v56 = vsel %vm1526_vm3, %v1536_v15, %v1538_v30  ;;  %v1163_v29 = vsel %vm1082_vm2, %v1160_v38, %v1162_v1  ;;  %v1164_v39 = vrot.slane %v1022_v23, 1  ;;  %v9108_v45 = vpop.f32.mrb[95].mxu1 }
 0x1a8   : > { %v11788_v13 = vadd.f32 %v1539_v56, %v11406_v5  ;;  %v11800_v15 = vadd.f32 %v1163_v29, %v11687_v11  ;;  %v11822_v45 = vld [vmem:[%s10984_s17 + $0x50] sm:$0xff]  }
 0x1a9   : > { %9342 = vmatmul.mubr.msk.bf16.gmra.mrb[200].mxu0 %vm483_vm1, %v11794_v34  ;;  %v1541_v35 = vsel %vm1526_vm3, %v1538_v30, %v1540_v28  ;;  %v1165_v38 = vsel %vm1082_vm2, %v1162_v1, %v1164_v39  ;;  %9414 = vmatmul.mubr.msk.bf16.gmra.mrb[200].mxu1 %vm483_vm1, %v11641_v53 }
 0x1aa   : > { %9345 = vmatprep.mubr.msk.bf16.mxu0 %vm10885_vm0, %v15690_v24  ;;  %v11808_v5 = vadd.f32 %v1541_v35, %v11416_v7  ;;  %9417 = vmatprep.mubr.msk.bf16.mxu1 %vm10885_vm0, %v15690_v24  ;;  %v11813_v32 = vadd.f32 %v1165_v38, %v11300_v37 }
 0x1ac   : > { %v1335_v11 = vpop.f32.mrb[96].mxu0  ;;  %v1027_v14 = vpop.f32.mrb[96].mxu1 }
 0x1ad   : > { %v1542_v30 = vrot.slane %v1335_v11, 2  ;;  %v9139_v53 = vpop.f32.mrb[97].mxu0  ;;  %v1166_v52 = vrot.slane %v1027_v14, 1  ;;  %v9111_v49 = vpop.f32.mrb[97].mxu1 }
 0x1ae   : > { %v1338_v1 = vpop.f32.mrb[98].mxu0  ;;  %v1030_v23 = vpop.f32.mrb[98].mxu1 }
 0x1af   : > { %v1544_v3 = vrot.slane %v1338_v1, 2  ;;  %v9140_v7 = vpop.f32.mrb[99].mxu0  ;;  %v1543_v36 = vsel %vm1526_vm3, %v1540_v28, %v1542_v30  ;;  %v1167_v56 = vsel %vm1082_vm2, %v1164_v39, %v1166_v52  ;;  %v9112_v29 = vpop.f32.mrb[99].mxu1 }
 0x1b0   : > { %v11819_v37 = vadd.f32 %v1543_v36, %v11426_v60  ;;  %v11828_v35 = vadd.f32 %v1167_v56, %v11304_v41 }
 0x1b1   : > { %9346 = vmatmul.mubr.msk.bf16.gmra.mrb[204].mxu0 %vm483_vm1, %v11822_v45  ;;  %v1545_v8 = vsel %vm1526_vm3, %v1542_v30, %v1544_v3  ;;  %9418 = vmatmul.mubr.msk.bf16.gmra.mrb[204].mxu1 %vm483_vm1, %v11664_v51 }
 0x1b2   : > { %9349 = vmatprep.mubr.msk.bf16.mxu0 %vm10885_vm0, %v15690_v24  ;;  %v11835_v60 = vadd.f32 %v1545_v8, %v11436_v42  ;;  %9421 = vmatprep.mubr.msk.bf16.mxu1 %vm10885_vm0, %v15690_v24  ;;  %v11844_v42 = vld [vmem:[%s10984_s17 + $0x58] sm:$0xff]  }
 0x1b4   : > { %v1343_v28 = vpop.f32.mrb[100].mxu0  ;;  %v1034_v11 = vpop.f32.mrb[100].mxu1 }
 0x1b5   : > { %v1546_v39 = vrot.slane %v1343_v28, 2  ;;  %v9143_v38 = vpop.f32.mrb[101].mxu0  ;;  %v9115_v41 = vpop.f32.mrb[101].mxu1 }
 0x1b6   : > { %v1346_v14 = vpop.f32.mrb[102].mxu0  ;;  %v1036_v52 = vpop.f32.mrb[102].mxu1 }
 0x1b7   : > { %v1548_v30 = vrot.slane %v1346_v14, 2  ;;  %v9144_v53 = vpop.f32.mrb[103].mxu0  ;;  %v1547_v1 = vsel %vm1526_vm3, %v1544_v3, %v1546_v39  ;;  %v9116_v49 = vpop.f32.mrb[103].mxu1 }
 0x1b8   : > { %v11841_v7 = vadd.f32 %v1547_v1, %v11446_v9  ;;  %v11869_v1 = vld [vmem:[%s10984_s17 + $0x60] sm:$0xff]   ;;  %v11875_v49 = vld [vmem:[%s10984_s17 + $0x30] sm:$0xff]  }
 0x1b9   : > { %9350 = vmatmul.mubr.msk.bf16.gmra.mrb[208].mxu0 %vm483_vm1, %v11844_v42  ;;  %v1549_v23 = vsel %vm1526_vm3, %v1546_v39, %v1548_v30  ;;  %9422 = vmatmul.mubr.msk.bf16.gmra.mrb[208].mxu1 %vm483_vm1, %v11691_v22 }
 0x1ba   : > { %9353 = vmatprep.mubr.msk.bf16.mxu0 %vm10885_vm0, %v15690_v24  ;;  %v11854_v36 = vadd.f32 %v1549_v23, %v11456_v59  ;;  %9425 = vmatprep.mubr.msk.bf16.mxu1 %vm10885_vm0, %v15690_v24 }
 0x1bc   : > { %v1351_v9 = vpop.f32.mrb[104].mxu0  ;;  %v1767_v56 = vpop.f32.mrb[104].mxu1 }
 0x1bd   : > { %v1550_v3 = vrot.slane %v1351_v9, 2  ;;  %v9147_v29 = vpop.f32.mrb[105].mxu0  ;;  %v11859_v8 = vadd.f32 %v1767_v56, %v11724_v50  ;;  %v9219_v28 = vpop.f32.mrb[105].mxu1 }
 0x1be   : > { %v1354_v39 = vpop.f32.mrb[106].mxu0  ;;  %v1770_v11 = vpop.f32.mrb[106].mxu1 }
 0x1bf   : > { %v1552_v38 = vrot.slane %v1354_v39, 2  ;;  %v9148_v14 = vpop.f32.mrb[107].mxu0  ;;  %v1551_v59 = vsel %vm1526_vm3, %v1548_v30, %v1550_v3  ;;  %v11863_v41 = vadd.f32 %v1770_v11, %v11737_v21  ;;  %v9220_v53 = vpop.f32.mrb[107].mxu1 }
 0x1c0   : > { %v11866_v52 = vadd.f32 %v1551_v59, %v11466_v40 }
 0x1c1   : > { %9354 = vmatmul.mubr.msk.bf16.gmra.mrb[212].mxu0 %vm483_vm1, %v11869_v1  ;;  %v1553_v50 = vsel %vm1526_vm3, %v1550_v3, %v1552_v38  ;;  %9426 = vmatmul.mubr.msk.bf16.gmra.mrb[212].mxu1 %vm483_vm1, %v11875_v49 }
 0x1c2   : > { %9357 = vmatprep.mubr.msk.bf16.mxu0 %vm10885_vm0, %v15690_v24  ;;  %v11882_v21 = vadd.f32 %v1553_v50, %v11476_v12  ;;  %9429 = vmatprep.mubr.msk.bf16.mxu1 %vm10885_vm0, %v15690_v24  ;;  %v11897_v50 = vld [vmem:[%s10984_s17 + $0x68] sm:$0xff]  }
 0x1c4   : > { %v1359_v40 = vpop.f32.mrb[108].mxu0  ;;  %v1775_v23 = vpop.f32.mrb[108].mxu1 }
 0x1c5   : > { %v1554_v30 = vrot.slane %v1359_v40, 2  ;;  %v9151_v9 = vpop.f32.mrb[109].mxu0  ;;  %v11887_v3 = vadd.f32 %v1775_v23, %v11751_v27  ;;  %v9223_v56 = vpop.f32.mrb[109].mxu1  ;;  %v11903_v40 = vld [vmem:[%s10984_s17 + $0x38] sm:$0xff]  }
 0x1c6   : > { %v1362_v29 = vpop.f32.mrb[110].mxu0  ;;  %v1778_v39 = vpop.f32.mrb[110].mxu1 }
 0x1c7   : > { %v1556_v28 = vrot.slane %v1362_v29, 2  ;;  %v9152_v11 = vpop.f32.mrb[111].mxu0  ;;  %v1555_v12 = vsel %vm1526_vm3, %v1552_v38, %v1554_v30  ;;  %v11891_v14 = vadd.f32 %v1778_v39, %v11761_v16  ;;  %v9224_v59 = vpop.f32.mrb[111].mxu1 }
 0x1c8   : > { %v11894_v53 = vadd.f32 %v1555_v12, %v11486_v57 }
 0x1c9   : > { %15694 = vst [vmem:[#allocation10_spill] sm:$0xff] %v11891_v14  ;;  %9358 = vmatmul.mubr.msk.bf16.gmra.mrb[216].mxu0 %vm483_vm1, %v11897_v50  ;;  %v1557_v27 = vsel %vm1526_vm3, %v1554_v30, %v1556_v28  ;;  %9430 = vmatmul.mubr.msk.bf16.gmra.mrb[216].mxu1 %vm483_vm1, %v11903_v40 }
 0x1ca   : > { %9361 = vmatprep.mubr.msk.bf16.mxu0 %vm10885_vm0, %v15690_v24  ;;  %v11910_v16 = vadd.f32 %v1557_v27, %v11496_v2  ;;  %9433 = vmatprep.mubr.msk.bf16.mxu1 %vm10885_vm0, %v15690_v24 }
 0x1cc   : > { %v1367_v57 = vpop.f32.mrb[112].mxu0  ;;  %v1783_v23 = vpop.f32.mrb[112].mxu1 }
 0x1cd   : > { %v1558_v38 = vrot.slane %v1367_v57, 2  ;;  %v9155_v9 = vpop.f32.mrb[113].mxu0  ;;  %v11915_v30 = vadd.f32 %v1783_v23, %v11778_v44  ;;  %v9227_v56 = vpop.f32.mrb[113].mxu1  ;;  %v11925_v57 = vld [vmem:[%s10984_s17 + $0x70] sm:$0xff]  }
 0x1ce   : > { %v1370_v29 = vpop.f32.mrb[114].mxu0  ;;  %v1786_v11 = vpop.f32.mrb[114].mxu1 }
 0x1cf   : > { %v1560_v39 = vrot.slane %v1370_v29, 2  ;;  %v9156_v12 = vpop.f32.mrb[115].mxu0  ;;  %v1559_v59 = vsel %vm1526_vm3, %v1556_v28, %v1558_v38  ;;  %v11919_v2 = vadd.f32 %v1786_v11, %v11788_v13  ;;  %v9228_v27 = vpop.f32.mrb[115].mxu1 }
 0x1d0   : > { %v11922_v14 = vadd.f32 %v1559_v59, %v11506_v10 }
 0x1d1   : > { %15695 = vst [vmem:[#allocation11_spill] sm:$0xff] %v11919_v2  ;;  %9362 = vmatmul.mubr.msk.bf16.gmra.mrb[220].mxu0 %vm483_vm1, %v11925_v57  ;;  %v1561_v44 = vsel %vm1526_vm3, %v1558_v38, %v1560_v39  ;;  %9434 = vmatmul.mubr.msk.bf16.gmra.mrb[220].mxu1 %vm483_vm1, %v11764_v62  ;;  %v10567_v38 = vld [vmem:[%s15643_s2 + $0x78] sm:$0xff]  }
 0x1d2   : > { %9365 = vmatprep.mubr.msk.bf16.mxu0 %vm10885_vm0, %v15690_v24  ;;  %v11935_v13 = vadd.f32 %v1561_v44, %v11516_v63  ;;  %9437 = vmatprep.mubr.msk.bf16.mxu1 %vm10885_vm0, %v15690_v24  ;;  %v11954_v2 = vld [vmem:[%s10984_s17 + $0x78] sm:$0xff]  }
 0x1d3   : > { %9600 = vmatpush3.bf16.msra.mxu1 %v10567_v38 }
 0x1d4   : > { %v1375_v10 = vpop.f32.mrb[116].mxu0  ;;  %v1791_v23 = vpop.f32.mrb[116].mxu1  ;;  %9789 = vmatprep.subr.bf16.mxu1 %v15690_v24 }
 0x1d5   : > { %v1562_v28 = vrot.slane %v1375_v10, 2  ;;  %v9159_v9 = vpop.f32.mrb[117].mxu0  ;;  %v11943_v56 = vadd.f32 %v1791_v23, %v11808_v5  ;;  %v9231_v29 = vpop.f32.mrb[117].mxu1 }
 0x1d6   : > { %v1378_v11 = vpop.f32.mrb[118].mxu0  ;;  %v1794_v63 = vpop.f32.mrb[118].mxu1 }
 0x1d7   : > { %v1564_v12 = vrot.slane %v1378_v11, 2  ;;  %v9160_v59 = vpop.f32.mrb[119].mxu0  ;;  %v1563_v27 = vsel %vm1526_vm3, %v1560_v39, %v1562_v28  ;;  %v11947_v44 = vadd.f32 %v1794_v63, %v11819_v37  ;;  %v9232_v10 = vpop.f32.mrb[119].mxu1 }
 0x1d8   : > { %v11950_v9 = vadd.f32 %v1563_v27, %v11526_v43 }
 0x1d9   : > { %15696 = vst [vmem:[#allocation12_spill] sm:$0xff] %v11947_v44  ;;  %9366 = vmatmul.mubr.msk.bf16.gmra.mrb[224].mxu0 %vm483_vm1, %v11954_v2  ;;  %v1565_v5 = vsel %vm1526_vm3, %v1562_v28, %v1564_v12  ;;  %9438 = vmatmul.mubr.msk.bf16.gmra.mrb[224].mxu1 %vm483_vm1, %v11794_v34 }
 0x1da   : > { %9369 = vmatprep.mubr.msk.bf16.mxu0 %vm10885_vm0, %v15690_v24  ;;  %v11964_v37 = vadd.f32 %v1565_v5, %v11536_v33  ;;  %9441 = vmatprep.mubr.msk.bf16.mxu1 %vm10885_vm0, %v15690_v24 }
 0x1dc   : > { %v1383_v43 = vpop.f32.mrb[120].mxu0  ;;  %v1799_v23 = vpop.f32.mrb[120].mxu1 }
 0x1dd   : > { %v1566_v39 = vrot.slane %v1383_v43, 2  ;;  %v9163_v38 = vpop.f32.mrb[121].mxu0  ;;  %v11969_v29 = vadd.f32 %v1799_v23, %v11835_v60  ;;  %v9235_v28 = vpop.f32.mrb[121].mxu1  ;;  %v11979_v43 = vld [vmem:[%s10984_s17 + $0x80] sm:$0xff]  }
 0x1de   : > { %v1386_v11 = vpop.f32.mrb[122].mxu0  ;;  %v1802_v59 = vpop.f32.mrb[122].mxu1 }
 0x1df   : > { %v1568_v63 = vrot.slane %v1386_v11, 2  ;;  %v9164_v27 = vpop.f32.mrb[123].mxu0  ;;  %v1567_v10 = vsel %vm1526_vm3, %v1564_v12, %v1566_v39  ;;  %v11973_v33 = vadd.f32 %v1802_v59, %v11841_v7  ;;  %v9236_v5 = vpop.f32.mrb[123].mxu1 }
 0x1e0   : > { %v11976_v44 = vadd.f32 %v1567_v10, %v11549_v47 }
 0x1e1   : > { %15697 = vst [vmem:[#allocation13_spill] sm:$0xff] %v11973_v33  ;;  %9370 = vmatmul.mubr.msk.bf16.gmra.mrb[228].mxu0 %vm483_vm1, %v11979_v43  ;;  %v1569_v60 = vsel %vm1526_vm3, %v1566_v39, %v1568_v63  ;;  %9442 = vmatmul.mubr.msk.bf16.gmra.mrb[228].mxu1 %vm483_vm1, %v11822_v45 }
 0x1e2   : > { %9373 = vmatprep.mubr.msk.bf16.mxu0 %vm10885_vm0, %v15690_v24  ;;  %v11989_v7 = vadd.f32 %v1569_v60, %v11559_v26  ;;  %9445 = vmatprep.mubr.msk.bf16.mxu1 %vm10885_vm0, %v15690_v24 }
 0x1e4   : > { %v1391_v47 = vpop.f32.mrb[124].mxu0  ;;  %v1807_v23 = vpop.f32.mrb[124].mxu1 }
 0x1e5   : > { %v1570_v12 = vrot.slane %v1391_v47, 2  ;;  %v9167_v38 = vpop.f32.mrb[125].mxu0  ;;  %v11994_v28 = vadd.f32 %v1807_v23, %v11854_v36  ;;  %v9239_v39 = vpop.f32.mrb[125].mxu1  ;;  %v12004_v47 = vld [vmem:[%s10984_s17 + $0x88] sm:$0xff]  }
 0x1e6   : > { %v1394_v11 = vpop.f32.mrb[126].mxu0  ;;  %v1810_v27 = vpop.f32.mrb[126].mxu1 }
 0x1e7   : > { %v1572_v59 = vrot.slane %v1394_v11, 2  ;;  %v9168_v10 = vpop.f32.mrb[127].mxu0  ;;  %v1571_v5 = vsel %vm1526_vm3, %v1568_v63, %v1570_v12  ;;  %v11998_v26 = vadd.f32 %v1810_v27, %v11866_v52  ;;  %v9240_v60 = vpop.f32.mrb[127].mxu1 }
 0x1e8   : > { %v12001_v33 = vadd.f32 %v1571_v5, %v11572_v55 }
 0x1e9   : > { %15698 = vst [vmem:[#allocation14_spill] sm:$0xff] %v11998_v26  ;;  %9374 = vmatmul.mubr.msk.bf16.gmra.mrb[232].mxu0 %vm483_vm1, %v12004_v47  ;;  %v1573_v36 = vsel %vm1526_vm3, %v1570_v12, %v1572_v59  ;;  %9446 = vmatmul.mubr.msk.bf16.gmra.mrb[232].mxu1 %vm483_vm1, %v11844_v42 }
 0x1ea   : > { %9377 = vmatprep.mubr.msk.bf16.mxu0 %vm10885_vm0, %v15690_v24  ;;  %v12014_v52 = vadd.f32 %v1573_v36, %v11582_v46  ;;  %9449 = vmatprep.mubr.msk.bf16.mxu1 %vm10885_vm0, %v15690_v24 }
 0x1ec   : > { %v1399_v55 = vpop.f32.mrb[128].mxu0  ;;  %v1815_v23 = vpop.f32.mrb[128].mxu1 }
 0x1ed   : > { %v1574_v63 = vrot.slane %v1399_v55, 2  ;;  %v9171_v38 = vpop.f32.mrb[129].mxu0  ;;  %v12019_v39 = vadd.f32 %v1815_v23, %v11882_v21  ;;  %v9243_v12 = vpop.f32.mrb[129].mxu1  ;;  %v12029_v55 = vld [vmem:[%s10984_s17 + $0x90] sm:$0xff]  }
 0x1ee   : > { %v1402_v11 = vpop.f32.mrb[130].mxu0  ;;  %v1818_v10 = vpop.f32.mrb[130].mxu1 }
 0x1ef   : > { %v1576_v27 = vrot.slane %v1402_v11, 2  ;;  %v9172_v5 = vpop.f32.mrb[131].mxu0  ;;  %v1575_v60 = vsel %vm1526_vm3, %v1572_v59, %v1574_v63  ;;  %v12023_v46 = vadd.f32 %v1818_v10, %v11894_v53  ;;  %v9244_v36 = vpop.f32.mrb[131].mxu1 }
 0x1f0   : > { %v12026_v26 = vadd.f32 %v1575_v60, %v11592_v48 }
 0x1f1   : > { %15699 = vst [vmem:[#allocation15_spill] sm:$0xff] %v12023_v46  ;;  %9378 = vmatmul.mubr.msk.bf16.gmra.mrb[236].mxu0 %vm483_vm1, %v12029_v55  ;;  %v1577_v21 = vsel %vm1526_vm3, %v1574_v63, %v1576_v27  ;;  %9450 = vmatmul.mubr.msk.bf16.gmra.mrb[236].mxu1 %vm483_vm1, %v11869_v1 }
 0x1f2   : > { %9381 = vmatprep.mubr.msk.bf16.mxu0 %vm10885_vm0, %v15690_v24  ;;  %v12039_v53 = vadd.f32 %v1577_v21, %v11602_v58  ;;  %9453 = vmatprep.mubr.msk.bf16.mxu1 %vm10885_vm0, %v15690_v24 }
 0x1f4   : > { %v1407_v48 = vpop.f32.mrb[132].mxu0  ;;  %v1823_v23 = vpop.f32.mrb[132].mxu1 }
 0x1f5   : > { %v1578_v59 = vrot.slane %v1407_v48, 2  ;;  %v9175_v38 = vpop.f32.mrb[133].mxu0  ;;  %v12044_v12 = vadd.f32 %v1823_v23, %v11910_v16  ;;  %v9247_v63 = vpop.f32.mrb[133].mxu1  ;;  %v12054_v48 = vld [vmem:[%s10984_s17 + $0x98] sm:$0xff]  }
 0x1f6   : > { %v1410_v11 = vpop.f32.mrb[134].mxu0  ;;  %v1826_v5 = vpop.f32.mrb[134].mxu1 }
 0x1f7   : > { %v1580_v10 = vrot.slane %v1410_v11, 2  ;;  %v9176_v60 = vpop.f32.mrb[135].mxu0  ;;  %v1579_v36 = vsel %vm1526_vm3, %v1576_v27, %v1578_v59  ;;  %v12048_v58 = vadd.f32 %v1826_v5, %v11922_v14  ;;  %v9248_v21 = vpop.f32.mrb[135].mxu1 }
 0x1f8   : > { %v12051_v46 = vadd.f32 %v1579_v36, %v11618_v17 }
 0x1f9   : > { %15700 = vst [vmem:[#allocation16_spill] sm:$0xff] %v12048_v58  ;;  %9382 = vmatmul.mubr.msk.bf16.gmra.mrb[240].mxu0 %vm483_vm1, %v12054_v48  ;;  %v1581_v16 = vsel %vm1526_vm3, %v1578_v59, %v1580_v10  ;;  %9454 = vmatmul.mubr.msk.bf16.gmra.mrb[240].mxu1 %vm483_vm1, %v11897_v50 }
 0x1fa   : > { %9385 = vmatprep.mubr.msk.bf16.mxu0 %vm10885_vm0, %v15690_v24  ;;  %v12064_v14 = vadd.f32 %v1581_v16, %v11631_v6  ;;  %9457 = vmatprep.mubr.msk.bf16.mxu1 %vm10885_vm0, %v15690_v24 }
 0x1fc   : > { %v1415_v17 = vpop.f32.mrb[136].mxu0  ;;  %v1831_v23 = vpop.f32.mrb[136].mxu1 }
 0x1fd   : > { %v1582_v27 = vrot.slane %v1415_v17, 2  ;;  %v9179_v38 = vpop.f32.mrb[137].mxu0  ;;  %v12069_v63 = vadd.f32 %v1831_v23, %v11935_v13  ;;  %v9251_v59 = vpop.f32.mrb[137].mxu1 }
 0x1fe   : > { %v1418_v11 = vpop.f32.mrb[138].mxu0  ;;  %v1834_v60 = vpop.f32.mrb[138].mxu1 }
 0x1ff   : > { %v1584_v5 = vrot.slane %v1418_v11, 2  ;;  %v9180_v36 = vpop.f32.mrb[139].mxu0  ;;  %v1583_v21 = vsel %vm1526_vm3, %v1580_v10, %v1582_v27  ;;  %v12073_v6 = vadd.f32 %v1834_v60, %v11950_v9  ;;  %v9252_v16 = vpop.f32.mrb[139].mxu1 }
 0x200   : > { %v12076_v58 = vadd.f32 %v1583_v21, %v11646_v0  ;;  %v15704_v16 = vld [vmem:[#allocation3_spill] sm:$0xff] }
 0x201   : > { %15701 = vst [vmem:[#allocation17_spill] sm:$0xff] %v12073_v6  ;;  %9386 = vmatmul.mubr.msk.bf16.gmra.mrb[244].mxu0 %vm483_vm1, %v11544_v54  ;;  %v1585_v13 = vsel %vm1526_vm3, %v1582_v27, %v1584_v5  ;;  %9458 = vmatmul.mubr.msk.bf16.gmra.mrb[244].mxu1 %vm483_vm1, %v11925_v57 }
 0x202   : > { %9389 = vmatprep.mubr.msk.bf16.mxu0 %vm10885_vm0, %v15690_v24  ;;  %v12086_v10 = vadd.f32 %v1585_v13, %v11656_v31  ;;  %9461 = vmatprep.mubr.msk.bf16.mxu1 %vm10885_vm0, %v15690_v24 }
 0x204   : > { %v1423_v9 = vpop.f32.mrb[140].mxu0  ;;  %v1839_v17 = vpop.f32.mrb[140].mxu1 }
 0x205   : > { %v1586_v0 = vrot.slane %v1423_v9, 2  ;;  %v9183_v23 = vpop.f32.mrb[141].mxu0  ;;  %v12091_v54 = vadd.f32 %v1839_v17, %v11964_v37  ;;  %v9255_v27 = vpop.f32.mrb[141].mxu1  ;;  %v15705_v9 = vld [vmem:[#allocation2_spill] sm:$0xff]  ;;  %v15706_v17 = vld [vmem:[#allocation4_spill] sm:$0xff] }
 0x206   : > { %v1426_v38 = vpop.f32.mrb[142].mxu0  ;;  %v1842_v11 = vpop.f32.mrb[142].mxu1 }
 0x207   : > { %15702 = vst [vmem:[#allocation18_spill] sm:$0xff] %v12091_v54  ;;  %v1588_v59 = vrot.slane %v1426_v38, 2  ;;  %v9184_v60 = vpop.f32.mrb[143].mxu0  ;;  %v1587_v36 = vsel %vm1526_vm3, %v1584_v5, %v1586_v0  ;;  %v12095_v31 = vadd.f32 %v1842_v11, %v11976_v44  ;;  %v9256_v21 = vpop.f32.mrb[143].mxu1 }
 0x208   : > { %v12098_v13 = vadd.f32 %v1587_v36, %v15704_v16 }
 0x209   : > { %15703 = vst [vmem:[#allocation19_spill] sm:$0xff] %v12095_v31  ;;  %9390 = vmatmul.mubr.msk.bf16.gmra.mrb[248].mxu0 %vm483_vm1, %v15705_v9  ;;  %v1589_v37 = vsel %vm1526_vm3, %v1586_v0, %v1588_v59  ;;  %9462 = vmatmul.mubr.msk.bf16.gmra.mrb[248].mxu1 %vm483_vm1, %v11954_v2  ;;  %v15709_v31 = vld [vmem:[#allocation6_spill] sm:$0xff] }
 0x20a   : > { %9393 = vmatprep.mubr.msk.bf16.mxu0 %vm10885_vm0, %v15690_v24  ;;  %v12108_v5 = vadd.f32 %v1589_v37, %v15706_v17  ;;  %9465 = vmatprep.mubr.msk.bf16.mxu1 %vm10885_vm0, %v15690_v24 }
 0x20c   : > { %v1431_v44 = vpop.f32.mrb[144].mxu0  ;;  %v1847_v27 = vpop.f32.mrb[144].mxu1 }
 0x20d   : > { %v1590_v23 = vrot.slane %v1431_v44, 2  ;;  %v9187_v38 = vpop.f32.mrb[145].mxu0  ;;  %v12113_v11 = vadd.f32 %v1847_v27, %v11989_v7  ;;  %v9259_v0 = vpop.f32.mrb[145].mxu1  ;;  %v15710_v44 = vld [vmem:[#allocation5_spill] sm:$0xff]  ;;  %v15711_v27 = vld [vmem:[#allocation7_spill] sm:$0xff] }
 0x20e   : > { %v1434_v60 = vpop.f32.mrb[146].mxu0  ;;  %v1850_v21 = vpop.f32.mrb[146].mxu1 }
 0x20f   : > { %15707 = vst [vmem:[#allocation3_spill] sm:$0xff] %v12113_v11  ;;  %v1592_v36 = vrot.slane %v1434_v60, 2  ;;  %v9188_v16 = vpop.f32.mrb[147].mxu0  ;;  %v1591_v9 = vsel %vm1526_vm3, %v1588_v59, %v1590_v23  ;;  %v12117_v37 = vadd.f32 %v1850_v21, %v12001_v33  ;;  %v9260_v17 = vpop.f32.mrb[147].mxu1  ;;  %v15713_v11 = vld [vmem:[#allocation9_spill] sm:$0xff] }
 0x210   : > { %v12120_v54 = vadd.f32 %v1591_v9, %v15709_v31 }
 0x211   : > { %15708 = vst [vmem:[#allocation2_spill] sm:$0xff] %v12117_v37  ;;  %9394 = vmatmul.mubr.msk.bf16.gmra.mrb[252].mxu0 %vm483_vm1, %v15710_v44  ;;  %v1593_v7 = vsel %vm1526_vm3, %v1590_v23, %v1592_v36  ;;  %9466 = vmatmul.mubr.msk.bf16.gmra.mrb[252].mxu1 %vm483_vm1, %v11979_v43 }
 0x212   : > { %9397 = vmatprep.mubr.msk.bf16.mxu0 %vm10885_vm0, %v15690_v24  ;;  %v12130_v59 = vadd.f32 %v1593_v7, %v15711_v27  ;;  %9469 = vmatprep.mubr.msk.bf16.mxu1 %vm10885_vm0, %v15690_v24 }
 0x214   : > { %v1439_v33 = vpop.f32.mrb[148].mxu0  ;;  %v1855_v38 = vpop.f32.mrb[148].mxu1 }
 0x215   : > { %v1594_v31 = vrot.slane %v1439_v33, 2  ;;  %v9191_v0 = vpop.f32.mrb[149].mxu0  ;;  %v12135_v60 = vadd.f32 %v1855_v38, %v12014_v52  ;;  %v9263_v23 = vpop.f32.mrb[149].mxu1  ;;  %v15714_v33 = vld [vmem:[#allocation8_spill] sm:$0xff] }
 0x216   : > { %v1442_v21 = vpop.f32.mrb[150].mxu0  ;;  %v1858_v9 = vpop.f32.mrb[150].mxu1 }
 0x217   : > { %v1596_v16 = vrot.slane %v1442_v21, 2  ;;  %v9192_v17 = vpop.f32.mrb[151].mxu0  ;;  %v1595_v37 = vsel %vm1526_vm3, %v1592_v36, %v1594_v31  ;;  %v12139_v7 = vadd.f32 %v1858_v9, %v12026_v26  ;;  %v9264_v27 = vpop.f32.mrb[151].mxu1 }
 0x218   : > { %v12142_v6 = vadd.f32 %v1595_v37, %v15713_v11 }
 0x219   : > { %15712 = vst [vmem:[#allocation4_spill] sm:$0xff] %v12139_v7  ;;  %9398 = vmatmul.mubr.msk.bf16.gmra.mrb[0].mxu0 %vm483_vm1, %v15714_v33  ;;  %v1597_v52 = vsel %vm1526_vm3, %v1594_v31, %v1596_v16  ;;  %9470 = vmatmul.mubr.msk.bf16.gmra.mrb[0].mxu1 %vm483_vm1, %v12004_v47 }
 0x21a   : > { %9401 = vmatprep.mubr.msk.bf16.mxu0 %vm10885_vm0, %v15690_v24  ;;  %v12152_v36 = vadd.f32 %v1597_v52, %v11730_v61  ;;  %9473 = vmatprep.mubr.msk.bf16.mxu1 %vm10885_vm0, %v15690_v24 }
 0x21c   : > { %v1447_v26 = vpop.f32.mrb[152].mxu0  ;;  %v1863_v37 = vpop.f32.mrb[152].mxu1 }
 0x21d   : > { %v1598_v11 = vrot.slane %v1447_v26, 2  ;;  %v9195_v38 = vpop.f32.mrb[153].mxu0  ;;  %v12157_v0 = vadd.f32 %v1863_v37, %v12039_v53  ;;  %v9267_v31 = vpop.f32.mrb[153].mxu1 }
 0x21e   : > { %v1450_v23 = vpop.f32.mrb[154].mxu0  ;;  %v1866_v9 = vpop.f32.mrb[154].mxu1 }
 0x21f   : > { %v1600_v21 = vrot.slane %v1450_v23, 2  ;;  %v9196_v17 = vpop.f32.mrb[155].mxu0  ;;  %v1599_v27 = vsel %vm1526_vm3, %v1596_v16, %v1598_v11  ;;  %v12161_v61 = vadd.f32 %v1866_v9, %v12051_v46  ;;  %v9268_v52 = vpop.f32.mrb[155].mxu1  ;;  %v10566_v23 = vld [vmem:[%s15643_s2 + $0x80] sm:$0xff]  }
 0x220   : > { %v12164_v7 = vadd.f32 %v1599_v27, %v11743_v18 }
 0x221   : > { %9402 = vmatmul.mubr.msk.bf16.gmra.mrb[4].mxu0 %vm483_vm1, %v11732_v25  ;;  %v1601_v53 = vsel %vm1526_vm3, %v1598_v11, %v1600_v21  ;;  %9474 = vmatmul.mubr.msk.bf16.gmra.mrb[4].mxu1 %vm483_vm1, %v12029_v55 }
 0x222   : > { %9505 = vmatprep.mubr.msk.bf16.mxu0 %vm10885_vm0, %v15690_v24  ;;  %v12174_v16 = vadd.f32 %v1601_v53, %v11756_v19  ;;  %9477 = vmatprep.mubr.msk.bf16.mxu1 %vm10885_vm0, %v15690_v24 }
 0x224   : > { %v1455_v46 = vpop.f32.mrb[156].mxu0  ;;  %v1871_v26 = vpop.f32.mrb[156].mxu1 }
 0x225   : > { %v1602_v18 = vrot.slane %v1455_v46, 2  ;;  %v9199_v37 = vpop.f32.mrb[157].mxu0  ;;  %v12179_v38 = vadd.f32 %v1871_v26, %v12064_v14  ;;  %v9271_v11 = vpop.f32.mrb[157].mxu1 }
 0x226   : > { %v1458_v31 = vpop.f32.mrb[158].mxu0  ;;  %v1874_v17 = vpop.f32.mrb[158].mxu1 }
 0x227   : > { %v1604_v9 = vrot.slane %v1458_v31, 2  ;;  %v9200_v19 = vpop.f32.mrb[159].mxu0  ;;  %v1603_v27 = vsel %vm1526_vm3, %v1600_v21, %v1602_v18  ;;  %v12186_v52 = vadd.f32 %v1874_v17, %v12076_v58  ;;  %v9272_v53 = vpop.f32.mrb[159].mxu1  ;;  %v10568_v58 = vld [vmem:[%s15643_s2 + $0x88] sm:$0xff]  }
 0x228   : > { %v12189_v46 = vadd.f32 %v1603_v27, %v11770_v4 }
 0x229   : > { %9506 = vmatmul.mubr.msk.bf16.vlgmr.msra.gmra.mrb[8].mxu0 %vm483_vm1, %v11664_v51  ;;  %v1605_v14 = vsel %vm1526_vm3, %v1602_v18, %v1604_v9  ;;  %9478 = vmatmul.mubr.msk.bf16.gmra.mrb[8].mxu1 %vm483_vm1, %v12054_v48 }
 0x22a   : > { %9694 = vmatpush3.bf16.msra.mxu0 %v10566_v23  ;;  %v12197_v26 = vadd.f32 %v1605_v14, %v11783_v20  ;;  %9481 = vmatprep.mubr.msk.bf16.mxu1 %vm10885_vm0, %v15690_v24 }
 0x22b   : > { %9509 = vmatprep.mubr.msk.bf16.mxu0 %vm10885_vm0, %v15690_v24  ;;  %9695 = vmatprep.subr.bf16.mxu0 %v15690_v24 }
 0x22c   : > { %v1463_v51 = vpop.f32.mrb[160].mxu0  ;;  %v1879_v21 = vpop.f32.mrb[160].mxu1 }
 0x22d   : > { %v1606_v4 = vrot.slane %v1463_v51, 2  ;;  %v9203_v18 = vpop.f32.mrb[161].mxu0  ;;  %v12208_v20 = vadd.f32 %v1879_v21, %v12086_v10  ;;  %v9275_v37 = vpop.f32.mrb[161].mxu1 }
 0x22e   : > { %v1466_v11 = vpop.f32.mrb[162].mxu0  ;;  %9696 = vmatpush3.bf16.msra.mxu0 %v10568_v58  ;;  %v1882_v23 = vpop.f32.mrb[162].mxu1  ;;  %v12222_v58 = vld [vmem:[%s10984_s17 + $0xa0] sm:$0xff]  }
 0x22f   : > { %v1608_v31 = vrot.slane %v1466_v11, 2  ;;  %v9204_v17 = vpop.f32.mrb[163].mxu0  ;;  %v1607_v19 = vsel %vm1526_vm3, %v1604_v9, %v1606_v4  ;;  %9941 = vmatprep.subr.bf16.mxu0 %v15690_v24  ;;  %v12213_v27 = vadd.f32 %v1882_v23, %v12098_v13  ;;  %v9276_v53 = vpop.f32.mrb[163].mxu1 }
 0x230   : > { %v12216_v14 = vadd.f32 %v1607_v19, %v11800_v15  ;;  %v12246_v53 = vld [vmem:[%s10984_s17 + $0xa8] sm:$0xff]  }
 0x231   : > { %9510 = vmatmul.mubr.msk.bf16.gmra.mrb[12].mxu0 %vm483_vm1, %v11691_v22  ;;  %v1609_v10 = vsel %vm1526_vm3, %v1606_v4, %v1608_v31  ;;  %9482 = vmatmul.mubr.msk.bf16.gmra.mrb[12].mxu1 %vm483_vm1, %v12222_v58 }
 0x232   : > { %9513 = vmatprep.mubr.msk.bf16.mxu0 %vm10885_vm0, %v15690_v24  ;;  %v12229_v13 = vadd.f32 %v1609_v10, %v11813_v32  ;;  %9485 = vmatprep.mubr.msk.bf16.mxu1 %vm10885_vm0, %v15690_v24 }
 0x234   : > { %v1471_v15 = vpop.f32.mrb[164].mxu0  ;;  %v1887_v22 = vpop.f32.mrb[164].mxu1 }
 0x235   : > { %v1610_v9 = vrot.slane %v1471_v15, 2  ;;  %v9207_v51 = vpop.f32.mrb[165].mxu0  ;;  %v12234_v4 = vadd.f32 %v1887_v22, %v12108_v5  ;;  %v9279_v21 = vpop.f32.mrb[165].mxu1 }
 0x236   : > { %v1474_v18 = vpop.f32.mrb[166].mxu0  ;;  %v1890_v37 = vpop.f32.mrb[166].mxu1 }
 0x237   : > { %v9208_v11 = vpop.f32.mrb[167].mxu0  ;;  %v1611_v23 = vsel %vm1526_vm3, %v1608_v31, %v1610_v9  ;;  %v12238_v32 = vadd.f32 %v1890_v37, %v12120_v54  ;;  %v9280_v17 = vpop.f32.mrb[167].mxu1 }
 0x238   : > { %v12241_v19 = vadd.f32 %v1611_v23, %v11828_v35 }
 0x239   : > { %9514 = vmatmul.mubr.msk.bf16.gmra.mrb[16].mxu0 %vm483_vm1, %v11875_v49  ;;  %9486 = vmatmul.mubr.msk.bf16.gmra.mrb[16].mxu1 %vm483_vm1, %v12246_v53 }
 0x23a   : > { %9517 = vmatprep.mubr.msk.bf16.mxu0 %vm10885_vm0, %v15690_v24  ;;  %9489 = vmatprep.mubr.msk.bf16.mxu1 %vm10885_vm0, %v15690_v24 }
 0x23c   : > { %v1478_v54 = vpop.f32.mrb[168].mxu0  ;;  %v1895_v5 = vpop.f32.mrb[168].mxu1 }
 0x23d   : > { %v9211_v31 = vpop.f32.mrb[169].mxu0  ;;  %v12255_v35 = vadd.f32 %v1895_v5, %v12130_v59  ;;  %v9283_v10 = vpop.f32.mrb[169].mxu1 }
 0x23e   : > { %v1480_v15 = vpop.f32.mrb[170].mxu0  ;;  %v1898_v9 = vpop.f32.mrb[170].mxu1 }
 0x23f   : > { %v9212_v22 = vpop.f32.mrb[171].mxu0  ;;  %v12258_v51 = vadd.f32 %v1898_v9, %v12142_v6  ;;  %v9284_v21 = vpop.f32.mrb[171].mxu1 }
 0x241   : > { %9518 = vmatmul.mubr.msk.bf16.gmra.mrb[20].mxu0 %vm483_vm1, %v11903_v40  ;;  %9490 = vmatmul.mubr.msk.bf16.gmra.mrb[20].mxu1 %vm483_vm1, %v15710_v44 }
 0x242   : > { %9521 = vmatprep.mubr.msk.bf16.mxu0 %vm10885_vm0, %v15690_v24  ;;  %9493 = vmatprep.mubr.msk.bf16.mxu1 %vm10885_vm0, %v15690_v24 }
 0x244   : > { %v2039_v59 = vpop.f32.mrb[172].mxu0  ;;  %v1903_v18 = vpop.f32.mrb[172].mxu1 }
 0x245   : > { %v9315_v37 = vpop.f32.mrb[173].mxu0  ;;  %v12269_v11 = vadd.f32 %v1903_v18, %v12152_v36  ;;  %v9287_v6 = vpop.f32.mrb[173].mxu1  ;;  %v2262_v17 = vrot.slane %v2039_v59, 1 }
 0x246   : > { %v2042_v23 = vpop.f32.mrb[174].mxu0  ;;  %v1906_v54 = vpop.f32.mrb[174].mxu1 }
 0x247   : > { %v2263_v5 = vrot.slane %v2042_v23, 1  ;;  %v9316_v31 = vpop.f32.mrb[175].mxu0  ;;  %v12272_v10 = vadd.f32 %v1906_v54, %v12164_v7  ;;  %v9288_v15 = vpop.f32.mrb[175].mxu1 }
 0x249   : > { %v2264_v9 = vsel %vm1082_vm2, %v2262_v17, %v2263_v5  ;;  %9522 = vmatmul.mubr.msk.bf16.gmra.mrb[24].mxu0 %vm483_vm1, %v11764_v62  ;;  %9494 = vmatmul.mubr.msk.bf16.gmra.mrb[24].mxu1 %vm483_vm1, %v15714_v33 }
 0x24a   : > { %9525 = vmatprep.mubr.msk.bf16.mxu0 %vm10885_vm0, %v15690_v24  ;;  %v12282_v36 = vadd.f32 %v2264_v9, %v11859_v8  ;;  %9497 = vmatprep.mubr.msk.bf16.mxu1 %vm10885_vm0, %v15690_v24 }
 0x24c   : > { %v2047_v7 = vpop.f32.mrb[176].mxu0  ;;  %v1911_v22 = vpop.f32.mrb[176].mxu1 }
 0x24d   : > { %v2265_v21 = vrot.slane %v2047_v7, 1  ;;  %v9319_v59 = vpop.f32.mrb[177].mxu0  ;;  %v12287_v18 = vadd.f32 %v1911_v22, %v12174_v16  ;;  %v9291_v62 = vpop.f32.mrb[177].mxu1 }
 0x24e   : > { %v2050_v37 = vpop.f32.mrb[178].mxu0  ;;  %v1914_v6 = vpop.f32.mrb[178].mxu1 }
 0x24f   : > { %v2266_v33 = vsel %vm1082_vm2, %v2263_v5, %v2265_v21  ;;  %v2267_v23 = vrot.slane %v2050_v37, 1  ;;  %v9320_v17 = vpop.f32.mrb[179].mxu0  ;;  %v12291_v8 = vadd.f32 %v1914_v6, %v12189_v46  ;;  %v9292_v54 = vpop.f32.mrb[179].mxu1 }
 0x250   : > { %v12294_v31 = vadd.f32 %v2266_v33, %v11863_v41  ;;  %v15715_v33 = vld [vmem:[#allocation10_spill] sm:$0xff] }
 0x251   : > { %v2268_v15 = vsel %vm1082_vm2, %v2265_v21, %v2267_v23  ;;  %9526 = vmatmul.mubr.msk.bf16.gmra.mrb[28].mxu0 %vm483_vm1, %v11794_v34  ;;  %9498 = vmatmul.mubr.msk.bf16.gmra.mrb[28].mxu1 %vm483_vm1, %v11732_v25 }
 0x252   : > { %9529 = vmatprep.mubr.msk.bf16.mxu0 %vm10885_vm0, %v15690_v24  ;;  %v12304_v16 = vadd.f32 %v2268_v15, %v11887_v3  ;;  %9601 = vmatprep.mubr.msk.bf16.mxu1 %vm10885_vm0, %v15690_v24 }
 0x254   : > { %v2055_v46 = vpop.f32.mrb[180].mxu0  ;;  %v1919_v41 = vpop.f32.mrb[180].mxu1 }
 0x255   : > { %v2269_v5 = vrot.slane %v2055_v46, 1  ;;  %v9323_v9 = vpop.f32.mrb[181].mxu0  ;;  %v12309_v7 = vadd.f32 %v1919_v41, %v12197_v26  ;;  %v9295_v34 = vpop.f32.mrb[181].mxu1  ;;  %v12322_v26 = vld [vmem:[%s10984_s17 + $0x20] sm:$0xff]  }
 0x256   : > { %v2058_v22 = vpop.f32.mrb[182].mxu0  ;;  %v1922_v21 = vpop.f32.mrb[182].mxu1 }
 0x257   : > { %v2270_v25 = vsel %vm1082_vm2, %v2267_v23, %v2269_v5  ;;  %v2271_v59 = vrot.slane %v2058_v22, 1  ;;  %v9324_v62 = vpop.f32.mrb[183].mxu0  ;;  %v12313_v3 = vadd.f32 %v1922_v21, %v12216_v14  ;;  %v9296_v37 = vpop.f32.mrb[183].mxu1 }
 0x258   : > { %v12316_v6 = vadd.f32 %v2270_v25, %v15715_v33  ;;  %v15716_v62 = vld [vmem:[#allocation11_spill] sm:$0xff] }
 0x259   : > { %v2272_v17 = vsel %vm1082_vm2, %v2269_v5, %v2271_v59  ;;  %9530 = vmatmul.mubr.msk.bf16.gmra.mrb[32].mxu0 %vm483_vm1, %v11822_v45  ;;  %9602 = vmatmul.mubr.msk.bf16.vlgmr.msra.gmra.mrb[32].mxu1 %vm483_vm1, %v12322_v26 }
 0x25a   : > { %9533 = vmatprep.mubr.msk.bf16.mxu0 %vm10885_vm0, %v15690_v24  ;;  %v12329_v14 = vadd.f32 %v2272_v17, %v11915_v30  ;;  %9605 = vmatprep.mubr.msk.bf16.mxu1 %vm10885_vm0, %v15690_v24 }
 0x25c   : > { %v2063_v23 = vpop.f32.mrb[184].mxu0  ;;  %v1927_v54 = vpop.f32.mrb[184].mxu1 }
 0x25d   : > { %v2273_v15 = vrot.slane %v2063_v23, 1  ;;  %v9327_v46 = vpop.f32.mrb[185].mxu0  ;;  %v12334_v45 = vadd.f32 %v1927_v54, %v12229_v13  ;;  %v9299_v41 = vpop.f32.mrb[185].mxu1  ;;  %v12347_v13 = vld [vmem:[%s10984_s17 + $0x28] sm:$0xff]  }
 0x25e   : > { %v2066_v5 = vpop.f32.mrb[186].mxu0  ;;  %v1930_v34 = vpop.f32.mrb[186].mxu1 }
 0x25f   : > { %v2274_v9 = vsel %vm1082_vm2, %v2271_v59, %v2273_v15  ;;  %v2275_v22 = vrot.slane %v2066_v5, 1  ;;  %v9328_v25 = vpop.f32.mrb[187].mxu0  ;;  %v12338_v30 = vadd.f32 %v1930_v34, %v12241_v19  ;;  %v9300_v21 = vpop.f32.mrb[187].mxu1 }
 0x260   : > { %v12341_v37 = vadd.f32 %v2274_v9, %v15716_v62  ;;  %v15717_v25 = vld [vmem:[#allocation12_spill] sm:$0xff] }
 0x261   : > { %v2276_v33 = vsel %vm1082_vm2, %v2273_v15, %v2275_v22  ;;  %9534 = vmatmul.mubr.msk.bf16.gmra.mrb[36].mxu0 %vm483_vm1, %v11844_v42  ;;  %9606 = vmatmul.mubr.msk.bf16.gmra.mrb[36].mxu1 %vm483_vm1, %v12347_v13 }
 0x262   : > { %9537 = vmatprep.mubr.msk.bf16.mxu0 %vm10885_vm0, %v15690_v24  ;;  %v12354_v19 = vadd.f32 %v2276_v33, %v11943_v56  ;;  %9609 = vmatprep.mubr.msk.bf16.mxu1 %vm10885_vm0, %v15690_v24 }
 0x264   : > { %v2071_v59 = vpop.f32.mrb[188].mxu0  ;;  %v1935_v54 = vpop.f32.mrb[188].mxu1 }
 0x265   : > { %v2277_v17 = vrot.slane %v2071_v59, 1  ;;  %v9331_v23 = vpop.f32.mrb[189].mxu0  ;;  %v9303_v15 = vpop.f32.mrb[189].mxu1 }
 0x266   : > { %v2074_v42 = vpop.f32.mrb[190].mxu0  ;;  %v1937_v9 = vpop.f32.mrb[190].mxu1 }
 0x267   : > { %v2278_v46 = vsel %vm1082_vm2, %v2275_v22, %v2277_v17  ;;  %v2279_v41 = vrot.slane %v2074_v42, 1  ;;  %v9332_v5 = vpop.f32.mrb[191].mxu0  ;;  %v9304_v34 = vpop.f32.mrb[191].mxu1 }
 0x268   : > { %v12360_v56 = vadd.f32 %v2278_v46, %v15717_v25  ;;  %v10886_v34 = vmov 0  }
 0x269   : > { %v2280_v21 = vsel %vm1082_vm2, %v2277_v17, %v2279_v41  ;;  %9538 = vmatmul.mubr.msk.bf16.gmra.mrb[40].mxu0 %vm483_vm1, %v11869_v1  ;;  %9610 = vmatmul.mubr.msk.bf16.gmra.mrb[40].mxu1 %vm483_vm1, %v11875_v49 }
 0x26a   : > { %9541 = vmatprep.mubr.msk.bf16.mxu0 %vm10885_vm0, %v15690_v24  ;;  %v12370_v22 = vadd.f32 %v2280_v21, %v11969_v29  ;;  %9613 = vmatprep.mubr.msk.bf16.mxu1 %vm10885_vm0, %v15690_v24  ;;  %v15718_v29 = vld [vmem:[#allocation13_spill] sm:$0xff] }
 0x26b   : > { %10522 = vset.pattern.permute.xlu0 %v10886_v34  ;;  %10523 = vset.pattern.permute.xlu1 %v10886_v34 }
 0x26c   : > { %v2079_v62 = vpop.f32.mrb[192].mxu0  ;;  %v1941_v17 = vpop.f32.mrb[192].mxu1 }
 0x26d   : > { %v2281_v33 = vrot.slane %v2079_v62, 1  ;;  %v9335_v59 = vpop.f32.mrb[193].mxu0  ;;  %v9307_v1 = vpop.f32.mrb[193].mxu1 }
 0x26e   : > { %v2082_v23 = vpop.f32.mrb[194].mxu0  ;;  %v1943_v15 = vpop.f32.mrb[194].mxu1 }
 0x26f   : > { %v2282_v54 = vsel %vm1082_vm2, %v2279_v41, %v2281_v33  ;;  %v2283_v49 = vrot.slane %v2082_v23, 1  ;;  %v9336_v42 = vpop.f32.mrb[195].mxu0  ;;  %v9308_v46 = vpop.f32.mrb[195].mxu1  ;;  %v4143_v41 = vld [vmem:[%s12386_s20] sm:$0xff]  ;;  %v4144_v23 = vld [vmem:[%s12386_s20 + $0x8] sm:$0xff] }
 0x270   : > { %v12378_v5 = vadd.f32 %v2282_v54, %v15718_v29  ;;  %4187 = vperm.xlu0 %10522, %v4143_v41   ;;  %v15719_v29 = vld [vmem:[#allocation14_spill] sm:$0xff] }
 0x271   : > { %v2284_v9 = vsel %vm1082_vm2, %v2281_v33, %v2283_v49  ;;  %9542 = vmatmul.mubr.msk.bf16.gmra.mrb[44].mxu0 %vm483_vm1, %v11897_v50  ;;  %9614 = vmatmul.mubr.msk.bf16.gmra.mrb[44].mxu1 %vm483_vm1, %v11903_v40  ;;  %v12407_v41 = vld [vmem:[%s10984_s17 + $0x40] sm:$0xff]  }
 0x272   : > { %9545 = vmatprep.mubr.msk.bf16.mxu0 %vm10885_vm0, %v15690_v24  ;;  %v12394_v25 = vadd.f32 %v2284_v9, %v11994_v28  ;;  %9617 = vmatprep.mubr.msk.bf16.mxu1 %vm10885_vm0, %v15690_v24 }
 0x274   : > { %v2087_v50 = vpop.f32.mrb[196].mxu0  ;;  %v2482_v62 = vpop.f32.mrb[196].mxu1  ;;  %4192 = vperm.xlu0 %10522, %v4144_v23  }
 0x275   : > { %v2285_v21 = vrot.slane %v2087_v50, 1  ;;  %v9339_v33 = vpop.f32.mrb[197].mxu0  ;;  %v2705_v59 = vrot.slane %v2482_v62, 2  ;;  %v9411_v17 = vpop.f32.mrb[197].mxu1  ;;  %v4147_v50 = vld [vmem:[%s12386_s20 + $0x20] sm:$0xff] }
 0x276   : > { %v2090_v40 = vpop.f32.mrb[198].mxu0  ;;  %v2485_v54 = vpop.f32.mrb[198].mxu1 }
 0x277   : > { %v2286_v1 = vsel %vm1082_vm2, %v2283_v49, %v2285_v21  ;;  %v2287_v28 = vrot.slane %v2090_v40, 1  ;;  %v9340_v42 = vpop.f32.mrb[199].mxu0  ;;  %v2706_v15 = vrot.slane %v2485_v54, 2  ;;  %v9412_v46 = vpop.f32.mrb[199].mxu1  ;;  %v4145_v49 = vld [vmem:[%s12386_s20 + $0x10] sm:$0xff] }
 0x278   : > { %v12401_v9 = vadd.f32 %v2286_v1, %v15719_v29  ;;  %4197 = vperm.xlu1 %10523, %v4145_v49   ;;  %4207 = vperm.xlu0 %10522, %v4147_v50   ;;  %v4149_v46 = vld [vmem:[%s12386_s20 + $0x30] sm:$0xff] }
 0x279   : > { %v2288_v34 = vsel %vm1082_vm2, %v2285_v21, %v2287_v28  ;;  %9546 = vmatmul.mubr.msk.bf16.gmra.mrb[48].mxu0 %vm483_vm1, %v11925_v57  ;;  %9618 = vmatmul.mubr.msk.bf16.gmra.mrb[48].mxu1 %vm483_vm1, %v12407_v41  ;;  %v2707_v62 = vsel %vm1526_vm3, %v2705_v59, %v2706_v15  ;;  %v4146_v59 = vld [vmem:[%s12386_s20 + $0x18] sm:$0xff] }
 0x27a   : > { %9549 = vmatprep.mubr.msk.bf16.mxu0 %vm10885_vm0, %v15690_v24  ;;  %v12417_v33 = vadd.f32 %v2288_v34, %v12019_v39  ;;  %9621 = vmatprep.mubr.msk.bf16.mxu1 %vm10885_vm0, %v15690_v24  ;;  %v12422_v57 = vadd.f32 %v2707_v62, %v12282_v36 }
 0x27c   : > { %v2095_v21 = vpop.f32.mrb[200].mxu0  ;;  %v2490_v40 = vpop.f32.mrb[200].mxu1  ;;  %4202 = vperm.xlu1 %10523, %v4146_v59   ;;  %4217 = vperm.xlu0 %10522, %v4149_v46  }
 0x27d   : > { %v2289_v17 = vrot.slane %v2095_v21, 1  ;;  %v9343_v23 = vpop.f32.mrb[201].mxu0  ;;  %v2708_v1 = vrot.slane %v2490_v40, 2  ;;  %v9415_v54 = vpop.f32.mrb[201].mxu1  ;;  %v15720_v21 = vld [vmem:[#allocation15_spill] sm:$0xff] }
 0x27e   : > { %v2098_v42 = vpop.f32.mrb[202].mxu0  ;;  %v2493_v34 = vpop.f32.mrb[202].mxu1  ;;  %v12438_v54 = vld [vmem:[%s10984_s17 + $0x48] sm:$0xff]  }
 0x27f   : > { %v2290_v39 = vsel %vm1082_vm2, %v2287_v28, %v2289_v17  ;;  %v2291_v29 = vrot.slane %v2098_v42, 1  ;;  %v9344_v49 = vpop.f32.mrb[203].mxu0  ;;  %v2710_v36 = vrot.slane %v2493_v34, 2  ;;  %v9416_v62 = vpop.f32.mrb[203].mxu1  ;;  %v2709_v50 = vsel %vm1526_vm3, %v2706_v15, %v2708_v1  ;;  %15721 = vst [vmem:[#allocation6_spill] sm:$0xff] %v12438_v54  ;;  %v4148_v15 = vld [vmem:[%s12386_s20 + $0x28] sm:$0xff] }
 0x280   : > { %v12429_v40 = vadd.f32 %v2290_v39, %v15720_v21  ;;  %v12435_v28 = vadd.f32 %v2709_v50, %v12294_v31  ;;  %v4151_v42 = vld [vmem:[%s12386_s20 + $0x40] sm:$0xff]  ;;  %4212 = vperm.xlu1 %10523, %v4148_v15  }
 0x281   : > { %v2292_v23 = vsel %vm1082_vm2, %v2289_v17, %v2291_v29  ;;  %9550 = vmatmul.mubr.msk.bf16.gmra.mrb[52].mxu0 %vm483_vm1, %v11954_v2  ;;  %9622 = vmatmul.mubr.msk.bf16.gmra.mrb[52].mxu1 %vm483_vm1, %v12438_v54  ;;  %v2711_v17 = vsel %vm1526_vm3, %v2708_v1, %v2710_v36  ;;  %v4150_v1 = vld [vmem:[%s12386_s20 + $0x38] sm:$0xff] }
 0x282   : > { %9553 = vmatprep.mubr.msk.bf16.mxu0 %vm10885_vm0, %v15690_v24  ;;  %v12448_v59 = vadd.f32 %v2292_v23, %v12044_v12  ;;  %9625 = vmatprep.mubr.msk.bf16.mxu1 %vm10885_vm0, %v15690_v24  ;;  %v12453_v2 = vadd.f32 %v2711_v17, %v12304_v16  ;;  %v4153_v12 = vld [vmem:[%s12386_s20 + $0x50] sm:$0xff] }
 0x283   : > { %4227 = vperm.xlu0 %10522, %v4151_v42  }
 0x284   : > { %v2103_v31 = vpop.f32.mrb[204].mxu0  ;;  %v2498_v39 = vpop.f32.mrb[204].mxu1  ;;  %4222 = vperm.xlu1 %10523, %v4150_v1  }
 0x285   : > { %v2293_v46 = vrot.slane %v2103_v31, 1  ;;  %v9347_v34 = vpop.f32.mrb[205].mxu0  ;;  %v2712_v49 = vrot.slane %v2498_v39, 2  ;;  %v9419_v62 = vpop.f32.mrb[205].mxu1  ;;  %v15722_v31 = vld [vmem:[#allocation16_spill] sm:$0xff] }
 0x286   : > { %v2106_v50 = vpop.f32.mrb[206].mxu0  ;;  %v2501_v15 = vpop.f32.mrb[206].mxu1 }
 0x287   : > { %v2294_v21 = vsel %vm1082_vm2, %v2291_v29, %v2293_v46  ;;  %v2295_v23 = vrot.slane %v2106_v50, 1  ;;  %v9348_v54 = vpop.f32.mrb[207].mxu0  ;;  %v2714_v16 = vrot.slane %v2501_v15, 2  ;;  %v9420_v17 = vpop.f32.mrb[207].mxu1  ;;  %4237 = vperm.xlu0 %10522, %v4153_v12   ;;  %v2713_v42 = vsel %vm1526_vm3, %v2710_v36, %v2712_v49  ;;  %v4152_v29 = vld [vmem:[%s12386_s20 + $0x48] sm:$0xff]  ;;  %v4155_v50 = vld [vmem:[%s12386_s20 + $0x60] sm:$0xff] }
 0x288   : > { %v12460_v39 = vadd.f32 %v2294_v21, %v15722_v31  ;;  %v12466_v62 = vadd.f32 %v2713_v42, %v12316_v6  ;;  %v12471_v54 = vld [vmem:[%s10984_s17 + $0x50] sm:$0xff]   ;;  %4232 = vperm.xlu1 %10523, %v4152_v29  }
 0x289   : > { %v2296_v34 = vsel %vm1082_vm2, %v2293_v46, %v2295_v23  ;;  %9554 = vmatmul.mubr.msk.bf16.gmra.mrb[56].mxu0 %vm483_vm1, %v11979_v43  ;;  %15723 = vst [vmem:[#allocation5_spill] sm:$0xff] %v12471_v54  ;;  %9626 = vmatmul.mubr.msk.bf16.gmra.mrb[56].mxu1 %vm483_vm1, %v12471_v54  ;;  %v2715_v36 = vsel %vm1526_vm3, %v2712_v49, %v2714_v16  ;;  %v4154_v49 = vld [vmem:[%s12386_s20 + $0x58] sm:$0xff] }
 0x28a   : > { %9557 = vmatprep.mubr.msk.bf16.mxu0 %vm10885_vm0, %v15690_v24  ;;  %v12479_v46 = vadd.f32 %v2296_v34, %v12069_v63  ;;  %9629 = vmatprep.mubr.msk.bf16.mxu1 %vm10885_vm0, %v15690_v24  ;;  %v12484_v43 = vadd.f32 %v2715_v36, %v12329_v14  ;;  %v4157_v63 = vld [vmem:[%s12386_s20 + $0x70] sm:$0xff] }
 0x28b   : > { %4247 = vperm.xlu0 %10522, %v4155_v50  }
 0x28c   : > { %v2111_v6 = vpop.f32.mrb[208].mxu0  ;;  %v2506_v12 = vpop.f32.mrb[208].mxu1  ;;  %4242 = vperm.xlu1 %10523, %v4154_v49   ;;  %v12505_v49 = vld [vmem:[%s10984_s17 + $0x58] sm:$0xff]  }
 0x28d   : > { %v2297_v1 = vrot.slane %v2111_v6, 1  ;;  %v9351_v21 = vpop.f32.mrb[209].mxu0  ;;  %v2716_v15 = vrot.slane %v2506_v12, 2  ;;  %v9423_v17 = vpop.f32.mrb[209].mxu1  ;;  %v15724_v6 = vld [vmem:[#allocation17_spill] sm:$0xff]  ;;  %15725 = vst [vmem:[#allocation7_spill] sm:$0xff] %v12505_v49 }
 0x28e   : > { %v2114_v42 = vpop.f32.mrb[210].mxu0  ;;  %v2509_v29 = vpop.f32.mrb[210].mxu1  ;;  %v4156_v17 = vld [vmem:[%s12386_s20 + $0x68] sm:$0xff] }
 0x28f   : > { %v2298_v31 = vsel %vm1082_vm2, %v2295_v23, %v2297_v1  ;;  %v2299_v34 = vrot.slane %v2114_v42, 1  ;;  %v9352_v54 = vpop.f32.mrb[211].mxu0  ;;  %v2718_v14 = vrot.slane %v2509_v29, 2  ;;  %v9424_v36 = vpop.f32.mrb[211].mxu1  ;;  %4257 = vperm.xlu0 %10522, %v4157_v63   ;;  %v2717_v50 = vsel %vm1526_vm3, %v2714_v16, %v2716_v15  ;;  %v4159_v42 = vld [vmem:[%s12386_s20 + $0x80] sm:$0xff] }
 0x290   : > { %v12491_v12 = vadd.f32 %v2298_v31, %v15724_v6  ;;  %v12497_v23 = vadd.f32 %v2717_v50, %v12341_v37  ;;  %v10571_v54 = vld [vmem:[%s15645_s4] sm:$0xff]   ;;  %4252 = vperm.xlu1 %10523, %v4156_v17  }
 0x291   : > { %v2300_v21 = vsel %vm1082_vm2, %v2297_v1, %v2299_v34  ;;  %9558 = vmatmul.mubr.msk.bf16.gmra.mrb[60].mxu0 %vm483_vm1, %v12004_v47  ;;  %9630 = vmatmul.mubr.msk.bf16.gmra.mrb[60].mxu1 %vm483_vm1, %v12505_v49  ;;  %v2719_v47 = vsel %vm1526_vm3, %v2716_v15, %v2718_v14  ;;  %v15726_v16 = vld [vmem:[#allocation18_spill] sm:$0xff] }
 0x292   : > { %9561 = vmatprep.mubr.msk.bf16.mxu0 %vm10885_vm0, %v15690_v24  ;;  %v12513_v37 = vadd.f32 %v2300_v21, %v15726_v16  ;;  %9633 = vmatprep.mubr.msk.bf16.mxu1 %vm10885_vm0, %v15690_v24  ;;  %v12518_v1 = vadd.f32 %v2719_v47, %v12354_v19  ;;  %v4158_v21 = vld [vmem:[%s12386_s20 + $0x78] sm:$0xff]  ;;  %v4161_v16 = vld [vmem:[%s12386_s20 + $0x90] sm:$0xff] }
 0x293   : > { %4267 = vperm.xlu0 %10522, %v4159_v42   ;;  %9790 = vmatpush3.bf16.msra.mxu1 %v10571_v54 }
 0x294   : > { %15727 = vst [vmem:[#allocation9_spill] sm:$0xff] %v12518_v1  ;;  %v2119_v63 = vpop.f32.mrb[212].mxu0  ;;  %v2514_v29 = vpop.f32.mrb[212].mxu1  ;;  %9791 = vmatprep.subr.bf16.mxu1 %v15690_v24  ;;  %4262 = vperm.xlu1 %10523, %v4158_v21  }
 0x295   : > { %v2301_v31 = vrot.slane %v2119_v63, 1  ;;  %v9355_v36 = vpop.f32.mrb[213].mxu0  ;;  %v2720_v15 = vrot.slane %v2514_v29, 2  ;;  %v9427_v50 = vpop.f32.mrb[213].mxu1 }
 0x296   : > { %v2122_v6 = vpop.f32.mrb[214].mxu0  ;;  %v2517_v47 = vpop.f32.mrb[214].mxu1  ;;  %v15728_v36 = vld [vmem:[#allocation19_spill] sm:$0xff] }
 0x297   : > { %v2302_v17 = vsel %vm1082_vm2, %v2299_v34, %v2301_v31  ;;  %v2303_v19 = vrot.slane %v2122_v6, 1  ;;  %v9356_v49 = vpop.f32.mrb[215].mxu0  ;;  %v2722_v42 = vrot.slane %v2517_v47, 2  ;;  %v9428_v54 = vpop.f32.mrb[215].mxu1  ;;  %4277 = vperm.xlu0 %10522, %v4161_v16   ;;  %v2721_v63 = vsel %vm1526_vm3, %v2718_v14, %v2720_v15  ;;  %v4160_v34 = vld [vmem:[%s12386_s20 + $0x88] sm:$0xff]  ;;  %v4163_v6 = vld [vmem:[%s12386_s20 + $0xa0] sm:$0xff] }
 0x298   : > { %v12526_v29 = vadd.f32 %v2302_v17, %v15728_v36  ;;  %v12532_v1 = vadd.f32 %v2721_v63, %v12360_v56  ;;  %v12537_v49 = vld [vmem:[%s10984_s17 + $0x60] sm:$0xff]   ;;  %4272 = vperm.xlu1 %10523, %v4160_v34  }
 0x299   : > { %v2304_v50 = vsel %vm1082_vm2, %v2301_v31, %v2303_v19  ;;  %9562 = vmatmul.mubr.msk.bf16.gmra.mrb[64].mxu0 %vm483_vm1, %v12029_v55  ;;  %15730 = vst [vmem:[#allocation10_spill] sm:$0xff] %v12537_v49  ;;  %9634 = vmatmul.mubr.msk.bf16.gmra.mrb[64].mxu1 %vm483_vm1, %v12537_v49  ;;  %v2723_v14 = vsel %vm1526_vm3, %v2720_v15, %v2722_v42  ;;  %v15731_v31 = vld [vmem:[#allocation3_spill] sm:$0xff]  ;;  %v4162_v15 = vld [vmem:[%s12386_s20 + $0x98] sm:$0xff] }
 0x29a   : > { %15729 = vst [vmem:[#allocation8_spill] sm:$0xff] %v12532_v1  ;;  %9565 = vmatprep.mubr.msk.bf16.mxu0 %vm10885_vm0, %v15690_v24  ;;  %v12545_v21 = vadd.f32 %v2304_v50, %v15731_v31  ;;  %9637 = vmatprep.mubr.msk.bf16.mxu1 %vm10885_vm0, %v15690_v24  ;;  %v12550_v55 = vadd.f32 %v2723_v14, %v12370_v22  ;;  %v4165_v50 = vld [vmem:[%s12386_s20 + $0xb0] sm:$0xff] }
 0x29b   : > { %4287 = vperm.xlu0 %10522, %v4163_v6  }
 0x29c   : > { %v2127_v56 = vpop.f32.mrb[216].mxu0  ;;  %v2522_v17 = vpop.f32.mrb[216].mxu1  ;;  %4282 = vperm.xlu1 %10523, %v4162_v15  }
 0x29d   : > { %v2305_v16 = vrot.slane %v2127_v56, 1  ;;  %v9359_v47 = vpop.f32.mrb[217].mxu0  ;;  %v2724_v54 = vrot.slane %v2522_v17, 2  ;;  %v9431_v63 = vpop.f32.mrb[217].mxu1  ;;  %v15732_v56 = vld [vmem:[#allocation2_spill] sm:$0xff] }
 0x29e   : > { %v2130_v36 = vpop.f32.mrb[218].mxu0  ;;  %v2525_v34 = vpop.f32.mrb[218].mxu1 }
 0x29f   : > { %v2306_v31 = vsel %vm1082_vm2, %v2303_v19, %v2305_v16  ;;  %v2307_v49 = vrot.slane %v2130_v36, 1  ;;  %v9360_v1 = vpop.f32.mrb[219].mxu0  ;;  %v2726_v22 = vrot.slane %v2525_v34, 2  ;;  %v9432_v14 = vpop.f32.mrb[219].mxu1  ;;  %4297 = vperm.xlu0 %10522, %v4165_v50   ;;  %v2725_v6 = vsel %vm1526_vm3, %v2722_v42, %v2724_v54  ;;  %v4164_v19 = vld [vmem:[%s12386_s20 + $0xa8] sm:$0xff]  ;;  %v4166_v34 = vld [vmem:[%s12386_s20 + $0xb8] sm:$0xff] }
 0x2a0   : > { %v12557_v17 = vadd.f32 %v2306_v31, %v15732_v56  ;;  %v12563_v63 = vadd.f32 %v2725_v6, %v12378_v5  ;;  %v4167_v1 = vld [vmem:[%s12386_s20 + $0xc0] sm:$0xff]  ;;  %v12568_v36 = vld [vmem:[%s10984_s17 + $0x68] sm:$0xff]   ;;  %4292 = vperm.xlu1 %10523, %v4164_v19   ;;  %v4169_v14 = vld [vmem:[%s12386_s20 + $0xd0] sm:$0xff] }
 0x2a1   : > { %v2308_v47 = vsel %vm1082_vm2, %v2305_v16, %v2307_v49  ;;  %9566 = vmatmul.mubr.msk.bf16.gmra.mrb[68].mxu0 %vm483_vm1, %v12054_v48  ;;  %15733 = vst [vmem:[#allocation11_spill] sm:$0xff] %v12568_v36  ;;  %9638 = vmatmul.mubr.msk.bf16.gmra.mrb[68].mxu1 %vm483_vm1, %v12568_v36  ;;  %v2727_v42 = vsel %vm1526_vm3, %v2724_v54, %v2726_v22 }
 0x2a2   : > { %9569 = vmatprep.mubr.msk.bf16.mxu0 %vm10885_vm0, %v15690_v24  ;;  %v12576_v16 = vadd.f32 %v2308_v47, %v12135_v60  ;;  %9641 = vmatprep.mubr.msk.bf16.mxu1 %vm10885_vm0, %v15690_v24  ;;  %v12581_v48 = vadd.f32 %v2727_v42, %v12394_v25 }
 0x2a3   : > { %4307 = vperm.xlu0 %10522, %v4167_v1  }
 0x2a4   : > { %v2135_v5 = vpop.f32.mrb[220].mxu0  ;;  %v2530_v50 = vpop.f32.mrb[220].mxu1  ;;  %4302 = vperm.xlu1 %10523, %v4166_v34  }
 0x2a5   : > { %v2309_v15 = vrot.slane %v2135_v5, 1  ;;  %v9363_v31 = vpop.f32.mrb[221].mxu0  ;;  %v2728_v6 = vrot.slane %v2530_v50, 2  ;;  %v9435_v54 = vpop.f32.mrb[221].mxu1  ;;  %v15734_v5 = vld [vmem:[#allocation4_spill] sm:$0xff] }
 0x2a6   : > { %v2138_v60 = vpop.f32.mrb[222].mxu0  ;;  %v2533_v19 = vpop.f32.mrb[222].mxu1 }
 0x2a7   : > { %v2310_v56 = vsel %vm1082_vm2, %v2307_v49, %v2309_v15  ;;  %v2311_v47 = vrot.slane %v2138_v60, 1  ;;  %v9364_v36 = vpop.f32.mrb[223].mxu0  ;;  %v2730_v25 = vrot.slane %v2533_v19, 2  ;;  %v9436_v42 = vpop.f32.mrb[223].mxu1  ;;  %4317 = vperm.xlu0 %10522, %v4169_v14   ;;  %v2729_v1 = vsel %vm1526_vm3, %v2726_v22, %v2728_v6  ;;  %v4168_v49 = vld [vmem:[%s12386_s20 + $0xc8] sm:$0xff]  ;;  %v4171_v60 = vld [vmem:[%s12386_s20 + $0xe0] sm:$0xff] }
 0x2a8   : > { %v12588_v31 = vadd.f32 %v2310_v56, %v15734_v5  ;;  %v12594_v54 = vadd.f32 %v2729_v1, %v12401_v9  ;;  %v12599_v36 = vld [vmem:[%s10984_s17 + $0x70] sm:$0xff]   ;;  %4312 = vperm.xlu1 %10523, %v4168_v49  }
 0x2a9   : > { %v2312_v50 = vsel %vm1082_vm2, %v2309_v15, %v2311_v47  ;;  %9570 = vmatmul.mubr.msk.bf16.gmra.mrb[72].mxu0 %vm483_vm1, %v12222_v58  ;;  %15735 = vst [vmem:[#allocation12_spill] sm:$0xff] %v12599_v36  ;;  %9642 = vmatmul.mubr.msk.bf16.gmra.mrb[72].mxu1 %vm483_vm1, %v12599_v36  ;;  %v2731_v22 = vsel %vm1526_vm3, %v2728_v6, %v2730_v25  ;;  %v4170_v6 = vld [vmem:[%s12386_s20 + $0xd8] sm:$0xff]  ;;  %v4173_v5 = vld [vmem:[%s12386_s20 + $0xf0] sm:$0xff] }
 0x2aa   : > { %9573 = vmatprep.mubr.msk.bf16.mxu0 %vm10885_vm0, %v15690_v24  ;;  %v12607_v15 = vadd.f32 %v2312_v50, %v12157_v0  ;;  %9645 = vmatprep.mubr.msk.bf16.mxu1 %vm10885_vm0, %v15690_v24  ;;  %v12612_v58 = vadd.f32 %v2731_v22, %v12417_v33 }
 0x2ab   : > { %4327 = vperm.xlu0 %10522, %v4171_v60  }
 0x2ac   : > { %v2143_v9 = vpop.f32.mrb[224].mxu0  ;;  %v2538_v14 = vpop.f32.mrb[224].mxu1  ;;  %4322 = vperm.xlu1 %10523, %v4170_v6  }
 0x2ad   : > { %v2313_v34 = vrot.slane %v2143_v9, 1  ;;  %v9367_v56 = vpop.f32.mrb[225].mxu0  ;;  %v2732_v19 = vrot.slane %v2538_v14, 2  ;;  %v9439_v42 = vpop.f32.mrb[225].mxu1 }
 0x2ae   : > { %v2146_v1 = vpop.f32.mrb[226].mxu0  ;;  %v2541_v49 = vpop.f32.mrb[226].mxu1  ;;  %v12628_v56 = vld [vmem:[%s10984_s17 + $0x78] sm:$0xff]  }
 0x2af   : > { %v2314_v0 = vsel %vm1082_vm2, %v2311_v47, %v2313_v34  ;;  %v2315_v50 = vrot.slane %v2146_v1, 1  ;;  %v9368_v36 = vpop.f32.mrb[227].mxu0  ;;  %v2734_v33 = vrot.slane %v2541_v49, 2  ;;  %v9440_v22 = vpop.f32.mrb[227].mxu1  ;;  %4337 = vperm.xlu0 %10522, %v4173_v5   ;;  %v2733_v60 = vsel %vm1526_vm3, %v2730_v25, %v2732_v19  ;;  %v4172_v25 = vld [vmem:[%s12386_s20 + $0xe8] sm:$0xff] }
 0x2b0   : > { %v12619_v9 = vadd.f32 %v2314_v0, %v12161_v61  ;;  %v12625_v47 = vadd.f32 %v2733_v60, %v12429_v40  ;;  %v4175_v61 = vld [vmem:[%s12386_s20 + $0x100] sm:$0xff]  ;;  %4332 = vperm.xlu1 %10523, %v4172_v25   ;;  %v4177_v22 = vld [vmem:[%s12386_s20 + $0x110] sm:$0xff] }
 0x2b1   : > { %v2316_v14 = vsel %vm1082_vm2, %v2313_v34, %v2315_v50  ;;  %9574 = vmatmul.mubr.msk.bf16.gmra.mrb[76].mxu0 %vm483_vm1, %v12246_v53  ;;  %9646 = vmatmul.mubr.msk.bf16.gmra.mrb[76].mxu1 %vm483_vm1, %v12628_v56  ;;  %v2735_v36 = vsel %vm1526_vm3, %v2732_v19, %v2734_v33  ;;  %v4174_v19 = vld [vmem:[%s12386_s20 + $0xf8] sm:$0xff] }
 0x2b2   : > { %9577 = vmatprep.mubr.msk.bf16.mxu0 %vm10885_vm0, %v15690_v24  ;;  %v12638_v34 = vadd.f32 %v2316_v14, %v12179_v38  ;;  %9649 = vmatprep.mubr.msk.bf16.mxu1 %vm10885_vm0, %v15690_v24  ;;  %v12643_v53 = vadd.f32 %v2735_v36, %v12448_v59 }
 0x2b3   : > { %4347 = vperm.xlu0 %10522, %v4175_v61  }
 0x2b4   : > { %v2151_v40 = vpop.f32.mrb[228].mxu0  ;;  %v2546_v1 = vpop.f32.mrb[228].mxu1  ;;  %4342 = vperm.xlu1 %10523, %v4174_v19  }
 0x2b5   : > { %v2317_v42 = vrot.slane %v2151_v40, 1  ;;  %v9371_v6 = vpop.f32.mrb[229].mxu0  ;;  %v2736_v5 = vrot.slane %v2546_v1, 2  ;;  %v9443_v0 = vpop.f32.mrb[229].mxu1 }
 0x2b6   : > { %v2154_v49 = vpop.f32.mrb[230].mxu0  ;;  %v2549_v14 = vpop.f32.mrb[230].mxu1  ;;  %v12659_v6 = vld [vmem:[%s10984_s17 + $0x80] sm:$0xff]  }
 0x2b7   : > { %v2318_v38 = vsel %vm1082_vm2, %v2315_v50, %v2317_v42  ;;  %v2319_v60 = vrot.slane %v2154_v49, 1  ;;  %v9372_v25 = vpop.f32.mrb[231].mxu0  ;;  %v2738_v59 = vrot.slane %v2549_v14, 2  ;;  %v9444_v36 = vpop.f32.mrb[231].mxu1  ;;  %4357 = vperm.xlu0 %10522, %v4177_v22   ;;  %v2737_v61 = vsel %vm1526_vm3, %v2734_v33, %v2736_v5  ;;  %15736 = vst [vmem:[#allocation13_spill] sm:$0xff] %v12659_v6  ;;  %v4176_v33 = vld [vmem:[%s12386_s20 + $0x108] sm:$0xff] }
 0x2b8   : > { %v12650_v40 = vadd.f32 %v2318_v38, %v12186_v52  ;;  %v12656_v50 = vadd.f32 %v2737_v61, %v12460_v39  ;;  %v4179_v52 = vld [vmem:[%s12386_s20 + $0x120] sm:$0xff]  ;;  %4352 = vperm.xlu1 %10523, %v4176_v33  }
 0x2b9   : > { %v2320_v1 = vsel %vm1082_vm2, %v2317_v42, %v2319_v60  ;;  %9578 = vmatmul.mubr.msk.bf16.gmra.mrb[80].mxu0 %vm483_vm1, %v15710_v44  ;;  %9650 = vmatmul.mubr.msk.bf16.gmra.mrb[80].mxu1 %vm483_vm1, %v12659_v6  ;;  %v2739_v42 = vsel %vm1526_vm3, %v2736_v5, %v2738_v59  ;;  %v4178_v5 = vld [vmem:[%s12386_s20 + $0x118] sm:$0xff] }
 0x2ba   : > { %9581 = vmatprep.mubr.msk.bf16.mxu0 %vm10885_vm0, %v15690_v24  ;;  %v12669_v0 = vadd.f32 %v2320_v1, %v12208_v20  ;;  %9653 = vmatprep.mubr.msk.bf16.mxu1 %vm10885_vm0, %v15690_v24  ;;  %v12674_v39 = vadd.f32 %v2739_v42, %v12479_v46  ;;  %v4181_v20 = vld [vmem:[%s12386_s20 + $0x130] sm:$0xff] }
 0x2bb   : > { %4367 = vperm.xlu0 %10522, %v4179_v52  }
 0x2bc   : > { %v2159_v49 = vpop.f32.mrb[232].mxu0  ;;  %v2554_v22 = vpop.f32.mrb[232].mxu1  ;;  %4362 = vperm.xlu1 %10523, %v4178_v5   ;;  %v12694_v5 = vld [vmem:[%s10984_s17 + $0x88] sm:$0xff]  }
 0x2bd   : > { %v2321_v19 = vrot.slane %v2159_v49, 1  ;;  %v9375_v38 = vpop.f32.mrb[233].mxu0  ;;  %v2740_v14 = vrot.slane %v2554_v22, 2  ;;  %v9447_v25 = vpop.f32.mrb[233].mxu1  ;;  %15738 = vst [vmem:[#allocation15_spill] sm:$0xff] %v12694_v5 }
 0x2be   : > { %v2162_v36 = vpop.f32.mrb[234].mxu0  ;;  %v2557_v33 = vpop.f32.mrb[234].mxu1  ;;  %v12685_v25 = vld [vmem:[%s10984_s17 + $0xb8] sm:$0xff]  }
 0x2bf   : > { %v2322_v61 = vsel %vm1082_vm2, %v2319_v60, %v2321_v19  ;;  %v2323_v1 = vrot.slane %v2162_v36, 1  ;;  %v9376_v46 = vpop.f32.mrb[235].mxu0  ;;  %v2742_v52 = vrot.slane %v2557_v33, 2  ;;  %v9448_v42 = vpop.f32.mrb[235].mxu1  ;;  %4377 = vperm.xlu0 %10522, %v4181_v20   ;;  %v2741_v49 = vsel %vm1526_vm3, %v2738_v59, %v2740_v14  ;;  %v350_v36 = vld [vmem:[%s10984_s17 + $0xc4] sm:$0xf] }
 0x2c0   : > { %v12681_v22 = vadd.f32 %v2322_v61, %v12213_v27  ;;  %v12690_v60 = vadd.f32 %v2741_v49, %v12491_v12  ;;  %v4180_v27 = vld [vmem:[%s12386_s20 + $0x128] sm:$0xff]  ;;  %v4183_v59 = vld [vmem:[%s12386_s20 + $0x140] sm:$0xff] }
 0x2c1   : > { %v2324_v38 = vsel %vm1082_vm2, %v2321_v19, %v2323_v1  ;;  %9582 = vmatmul.mubr.msk.bf16.gmra.mrb[84].mxu0 %vm483_vm1, %v12685_v25  ;;  %9654 = vmatmul.mubr.msk.bf16.gmra.mrb[84].mxu1 %vm483_vm1, %v12694_v5  ;;  %v2743_v19 = vsel %vm1526_vm3, %v2740_v14, %v2742_v52  ;;  %v10572_v12 = vld [vmem:[%s15645_s4 + $0x8] sm:$0xff]   ;;  %v10835_v46 = vld [vmem:[%s10984_s17 + $0xc0] sm:$0xf] }
 0x2c2   : > { %15737 = vst [vmem:[#allocation14_spill] sm:$0xff] %v12690_v60  ;;  %9585 = vmatprep.mubr.msk.bf16.mxu0 %vm10885_vm0, %v15690_v24  ;;  %v12704_v20 = vadd.f32 %v2324_v38, %v12234_v4  ;;  %9657 = vmatprep.mubr.msk.bf16.mxu1 %vm10885_vm0, %v15690_v24  ;;  %v12712_v61 = vadd.f32 %v2743_v19, %v12513_v37  ;;  %v4182_v60 = vld [vmem:[%s12386_s20 + $0x138] sm:$0xff] }
 0x2c3   : > { %4372 = vperm.xlu1 %10523, %v4180_v27   ;;  %4387 = vperm.xlu0 %10522, %v4183_v59   ;;  %v12715_v42 = vcombine.low %v10835_v46, %v350_v36 }
 0x2c4   : > { %v2167_v33 = vpop.f32.mrb[236].mxu0  ;;  %v2562_v4 = vpop.f32.mrb[236].mxu1  ;;  %9792 = vmatpush3.bf16.msra.mxu1 %v10572_v12 }
 0x2c5   : > { %v2325_v14 = vrot.slane %v2167_v33, 1  ;;  %v9379_v49 = vpop.f32.mrb[237].mxu0  ;;  %v2744_v38 = vrot.slane %v2562_v4, 2  ;;  %v9451_v5 = vpop.f32.mrb[237].mxu1  ;;  %9793 = vmatprep.subr.bf16.mxu1 %v15690_v24 }
 0x2c6   : > { %v2170_v6 = vpop.f32.mrb[238].mxu0  ;;  %v2565_v19 = vpop.f32.mrb[238].mxu1 }
 0x2c7   : > { %v2326_v37 = vsel %vm1082_vm2, %v2323_v1, %v2325_v14  ;;  %v2327_v27 = vrot.slane %v2170_v6, 1  ;;  %v9380_v59 = vpop.f32.mrb[239].mxu0  ;;  %4382 = vperm.xlu1 %10523, %v4182_v60   ;;  %v2746_v36 = vrot.slane %v2565_v19, 2  ;;  %v9452_v46 = vpop.f32.mrb[239].mxu1  ;;  %v2745_v33 = vsel %vm1526_vm3, %v2742_v52, %v2744_v38  ;;  %v12731_v6 = vld [vmem:[%s10984_s17 + $0x90] sm:$0xff]   ;;  %v4184_v1 = vld [vmem:[%s12386_s20 + $0x148] sm:$0xff] }
 0x2c8   : > { %v12722_v12 = vadd.f32 %v2326_v37, %v12238_v32  ;;  %v12728_v4 = vadd.f32 %v2745_v33, %v12526_v29  ;;  %15740 = vst [vmem:[#allocation17_spill] sm:$0xff] %v12731_v6  ;;  %v12748_v19 = vld [vmem:[%s10984_s17 + $0xc8] sm:$0xff]  }
 0x2c9   : > { %v2328_v5 = vsel %vm1082_vm2, %v2325_v14, %v2327_v27  ;;  %9586 = vmatmul.mubr.msk.bf16.gmra.mrb[88].mxu0 %vm483_vm1, %v12715_v42  ;;  %9658 = vmatmul.mubr.msk.bf16.gmra.mrb[88].mxu1 %vm483_vm1, %v12731_v6  ;;  %v2747_v32 = vsel %vm1526_vm3, %v2744_v38, %v2746_v36 }
 0x2ca   : > { %15739 = vst [vmem:[#allocation16_spill] sm:$0xff] %v12728_v4  ;;  %9589 = vmatprep.mubr.msk.bf16.mxu0 %vm10885_vm0, %v15690_v24  ;;  %v12740_v52 = vadd.f32 %v2328_v5, %v12255_v35  ;;  %9661 = vmatprep.mubr.msk.bf16.mxu1 %vm10885_vm0, %v15690_v24  ;;  %v12745_v29 = vadd.f32 %v2747_v32, %v12545_v21 }
 0x2cb   : > { %4392 = vperm.xlu1 %10523, %v4184_v1  }
 0x2cc   : > { %v2175_v60 = vpop.f32.mrb[240].mxu0  ;;  %v2570_v49 = vpop.f32.mrb[240].mxu1 }
 0x2cd   : > { %v2329_v14 = vrot.slane %v2175_v60, 1  ;;  %v9383_v37 = vpop.f32.mrb[241].mxu0  ;;  %v2748_v59 = vrot.slane %v2570_v49, 2  ;;  %v9455_v46 = vpop.f32.mrb[241].mxu1 }
 0x2ce   : > { %v2178_v38 = vpop.f32.mrb[242].mxu0  ;;  %v2573_v5 = vpop.f32.mrb[242].mxu1 }
 0x2cf   : > { %v2330_v35 = vsel %vm1082_vm2, %v2327_v27, %v2329_v14  ;;  %v2331_v33 = vrot.slane %v2178_v38, 1  ;;  %v9384_v6 = vpop.f32.mrb[243].mxu0  ;;  %v2750_v4 = vrot.slane %v2573_v5, 2  ;;  %v9456_v1 = vpop.f32.mrb[243].mxu1  ;;  %v2749_v21 = vsel %vm1526_vm3, %v2746_v36, %v2748_v59  ;;  %v12762_v27 = vld [vmem:[%s10984_s17 + $0x98] sm:$0xff]  }
 0x2d0   : > { %v12753_v32 = vadd.f32 %v2330_v35, %v12258_v51  ;;  %v12759_v49 = vadd.f32 %v2749_v21, %v12557_v17  ;;  %15742 = vst [vmem:[#allocation19_spill] sm:$0xff] %v12762_v27  ;;  %v12778_v38 = vld [vmem:[%s10984_s17 + $0xd0] ss:$0 sps:$4 sm:$0xff]  }
 0x2d1   : > { %v2332_v60 = vsel %vm1082_vm2, %v2329_v14, %v2331_v33  ;;  %9590 = vmatmul.mubr.msk.bf16.gmra.mrb[92].mxu0 %vm483_vm1, %v12748_v19  ;;  %9662 = vmatmul.mubr.msk.bf16.gmra.mrb[92].mxu1 %vm483_vm1, %v12762_v27  ;;  %v2751_v36 = vsel %vm1526_vm3, %v2748_v59, %v2750_v4 }
 0x2d2   : > { %15741 = vst [vmem:[#allocation18_spill] sm:$0xff] %v12759_v49  ;;  %9593 = vmatprep.mubr.msk.bf16.mxu0 %vm10885_vm0, %v15690_v24  ;;  %v12770_v51 = vadd.f32 %v2332_v60, %v12269_v11  ;;  %9665 = vmatprep.mubr.msk.bf16.mxu1 %vm10885_vm0, %v15690_v24  ;;  %v12775_v6 = vadd.f32 %v2751_v36, %v12576_v16 }
 0x2d4   : > { %v2183_v17 = vpop.f32.mrb[244].mxu0  ;;  %v2578_v37 = vpop.f32.mrb[244].mxu1 }
 0x2d5   : > { %v2333_v14 = vrot.slane %v2183_v17, 1  ;;  %v9387_v46 = vpop.f32.mrb[245].mxu0  ;;  %v2752_v35 = vrot.slane %v2578_v37, 2  ;;  %v9459_v5 = vpop.f32.mrb[245].mxu1 }
 0x2d6   : > { %v2186_v1 = vpop.f32.mrb[246].mxu0  ;;  %v2581_v21 = vpop.f32.mrb[246].mxu1  ;;  %v12792_v46 = vld [vmem:[%s10984_s17 + $0xa0] sm:$0xff]  }
 0x2d7   : > { %v2334_v59 = vsel %vm1082_vm2, %v2331_v33, %v2333_v14  ;;  %v2335_v11 = vrot.slane %v2186_v1, 1  ;;  %v9388_v60 = vpop.f32.mrb[247].mxu0  ;;  %v2754_v27 = vrot.slane %v2581_v21, 2  ;;  %v9460_v49 = vpop.f32.mrb[247].mxu1  ;;  %v2753_v16 = vsel %vm1526_vm3, %v2750_v4, %v2752_v35  ;;  %15744 = vst [vmem:[#allocation2_spill] sm:$0xff] %v12792_v46 }
 0x2d8   : > { %v12783_v36 = vadd.f32 %v2334_v59, %v12272_v10  ;;  %v12789_v37 = vadd.f32 %v2753_v16, %v12588_v31 }
 0x2d9   : > { %v2336_v17 = vsel %vm1082_vm2, %v2333_v14, %v2335_v11  ;;  %9594 = vmatmul.mubr.msk.bf16.gmra.mrb[96].mxu0 %vm483_vm1, %v12778_v38  ;;  %9666 = vmatmul.mubr.msk.bf16.gmra.mrb[96].mxu1 %vm483_vm1, %v12792_v46  ;;  %v2755_v4 = vsel %vm1526_vm3, %v2752_v35, %v2754_v27 }
 0x2da   : > { %15743 = vst [vmem:[#allocation3_spill] sm:$0xff] %v12789_v37  ;;  %9697 = vmatprep.mubr.msk.bf16.mxu0 %vm10885_vm0, %v15690_v24  ;;  %v12800_v10 = vadd.f32 %v2336_v17, %v12287_v18  ;;  %9669 = vmatprep.mubr.msk.bf16.mxu1 %vm10885_vm0, %v15690_v24  ;;  %v12805_v33 = vadd.f32 %v2755_v4, %v12607_v15 }
 0x2dc   : > { %v2191_v31 = vpop.f32.mrb[248].mxu0  ;;  %v2586_v14 = vpop.f32.mrb[248].mxu1 }
 0x2dd   : > { %v2337_v49 = vrot.slane %v2191_v31, 1  ;;  %v9391_v5 = vpop.f32.mrb[249].mxu0  ;;  %v2756_v1 = vrot.slane %v2586_v14, 2  ;;  %v9463_v59 = vpop.f32.mrb[249].mxu1  ;;  %v12819_v14 = vld [vmem:[%s10984_s17 + $0xa8] sm:$0xff]  }
 0x2de   : > { %v2194_v21 = vpop.f32.mrb[250].mxu0  ;;  %v2589_v16 = vpop.f32.mrb[250].mxu1  ;;  %15745 = vst [vmem:[#allocation4_spill] sm:$0xff] %v12819_v14 }
 0x2df   : > { %v2338_v60 = vsel %vm1082_vm2, %v2335_v11, %v2337_v49  ;;  %v2339_v35 = vrot.slane %v2194_v21, 1  ;;  %v9392_v18 = vpop.f32.mrb[251].mxu0  ;;  %v2758_v17 = vrot.slane %v2589_v16, 2  ;;  %v9464_v46 = vpop.f32.mrb[251].mxu1  ;;  %v2757_v37 = vsel %vm1526_vm3, %v2754_v27, %v2756_v1 }
 0x2e0   : > { %v12810_v15 = vadd.f32 %v2338_v60, %v12291_v8  ;;  %v12816_v31 = vadd.f32 %v2757_v37, %v12619_v9 }
 0x2e1   : > { %v2340_v4 = vsel %vm1082_vm2, %v2337_v49, %v2339_v35  ;;  %9698 = vmatmul.mubr.msk.bf16.vlgmr.msra.gmra.mrb[100].mxu0 %vm483_vm1, %v12322_v26  ;;  %9670 = vmatmul.mubr.msk.bf16.gmra.mrb[100].mxu1 %vm483_vm1, %v12819_v14  ;;  %v2759_v27 = vsel %vm1526_vm3, %v2756_v1, %v2758_v17 }
 0x2e2   : > { %9701 = vmatprep.mubr.msk.bf16.mxu0 %vm10885_vm0, %v15690_v24  ;;  %v12827_v8 = vadd.f32 %v2340_v4, %v12309_v7  ;;  %9673 = vmatprep.mubr.msk.bf16.mxu1 %vm10885_vm0, %v15690_v24  ;;  %v12832_v26 = vadd.f32 %v2759_v27, %v12638_v34 }
 0x2e4   : > { %v2199_v9 = vpop.f32.mrb[252].mxu0  ;;  %v2594_v37 = vpop.f32.mrb[252].mxu1 }
 0x2e5   : > { %v2341_v11 = vrot.slane %v2199_v9, 1  ;;  %v9395_v46 = vpop.f32.mrb[253].mxu0  ;;  %v2760_v49 = vrot.slane %v2594_v37, 2  ;;  %v9467_v5 = vpop.f32.mrb[253].mxu1 }
 0x2e6   : > { %v2202_v59 = vpop.f32.mrb[254].mxu0  ;;  %v2597_v1 = vpop.f32.mrb[254].mxu1 }
 0x2e7   : > { %v2342_v21 = vsel %vm1082_vm2, %v2339_v35, %v2341_v11  ;;  %v2343_v60 = vrot.slane %v2202_v59, 1  ;;  %v9396_v16 = vpop.f32.mrb[255].mxu0  ;;  %v2762_v7 = vrot.slane %v2597_v1, 2  ;;  %v9468_v18 = vpop.f32.mrb[255].mxu1  ;;  %v2761_v4 = vsel %vm1526_vm3, %v2758_v17, %v2760_v49 }
 0x2e8   : > { %v12837_v14 = vadd.f32 %v2342_v21, %v12313_v3  ;;  %v12843_v27 = vadd.f32 %v2761_v4, %v12650_v40 }
 0x2e9   : > { %v2344_v34 = vsel %vm1082_vm2, %v2341_v11, %v2343_v60  ;;  %9702 = vmatmul.mubr.msk.bf16.gmra.mrb[104].mxu0 %vm483_vm1, %v12347_v13  ;;  %9674 = vmatmul.mubr.msk.bf16.gmra.mrb[104].mxu1 %vm483_vm1, %v15710_v44  ;;  %v2763_v35 = vsel %vm1526_vm3, %v2760_v49, %v2762_v7 }
 0x2ea   : > { %9705 = vmatprep.mubr.msk.bf16.mxu0 %vm10885_vm0, %v15690_v24  ;;  %v12851_v17 = vadd.f32 %v2344_v34, %v12334_v45  ;;  %9677 = vmatprep.mubr.msk.bf16.mxu1 %vm10885_vm0, %v15690_v24  ;;  %v12856_v3 = vadd.f32 %v2763_v35, %v12669_v0  ;;  %v10840_v0 = vld [vmem:[%s10984_s17 + $0x30] sm:$0xff]  }
 0x2ec   : > { %v2207_v13 = vpop.f32.mrb[0].mxu0  ;;  %v2602_v9 = vpop.f32.mrb[0].mxu1 }
 0x2ed   : > { %v2345_v40 = vrot.slane %v2207_v13, 1  ;;  %v9399_v11 = vpop.f32.mrb[1].mxu0  ;;  %v2764_v37 = vrot.slane %v2602_v9, 2  ;;  %v9471_v46 = vpop.f32.mrb[1].mxu1 }
 0x2ee   : > { %v2210_v5 = vpop.f32.mrb[2].mxu0  ;;  %v2605_v49 = vpop.f32.mrb[2].mxu1 }
 0x2ef   : > { %v2346_v59 = vsel %vm1082_vm2, %v2343_v60, %v2345_v40  ;;  %v9400_v21 = vpop.f32.mrb[3].mxu0  ;;  %v2766_v45 = vrot.slane %v2605_v49, 2  ;;  %v9472_v1 = vpop.f32.mrb[3].mxu1  ;;  %v2765_v16 = vsel %vm1526_vm3, %v2762_v7, %v2764_v37  ;;  %v10841_v49 = vld [vmem:[%s10984_s17 + $0x38] sm:$0xff]  }
 0x2f0   : > { %v12861_v18 = vadd.f32 %v2346_v59, %v12338_v30  ;;  %v12866_v4 = vadd.f32 %v2765_v16, %v12681_v22  ;;  %v10573_v30 = vld [vmem:[%s15645_s4 + $0x10] sm:$0xff]  }
 0x2f1   : > { %9706 = vmatmul.mubr.msk.bf16.gmra.mrb[108].mxu0 %vm483_vm1, %v10840_v0  ;;  %9678 = vmatmul.mubr.msk.bf16.gmra.mrb[108].mxu1 %vm483_vm1, %v12685_v25  ;;  %v2767_v60 = vsel %vm1526_vm3, %v2764_v37, %v2766_v45 }
 0x2f2   : > { %9709 = vmatprep.mubr.msk.bf16.mxu0 %vm10885_vm0, %v15690_v24  ;;  %9681 = vmatprep.mubr.msk.bf16.mxu1 %vm10885_vm0, %v15690_v24  ;;  %v12879_v7 = vadd.f32 %v2767_v60, %v12704_v20 }
 0x2f3   : > { %9794 = vmatpush3.bf16.msra.mxu1 %v10573_v30 }
 0x2f4   : > { %v2214_v22 = vpop.f32.mrb[4].mxu0  ;;  %v2610_v34 = vpop.f32.mrb[4].mxu1  ;;  %9795 = vmatprep.subr.bf16.mxu1 %v15690_v24 }
 0x2f5   : > { %v9403_v35 = vpop.f32.mrb[5].mxu0  ;;  %v2768_v13 = vrot.slane %v2610_v34, 2  ;;  %v9475_v40 = vpop.f32.mrb[5].mxu1 }
 0x2f6   : > { %v2216_v9 = vpop.f32.mrb[6].mxu0  ;;  %v2613_v11 = vpop.f32.mrb[6].mxu1 }
 0x2f7   : > { %v9404_v37 = vpop.f32.mrb[7].mxu0  ;;  %v2770_v46 = vrot.slane %v2613_v11, 2  ;;  %v9476_v5 = vpop.f32.mrb[7].mxu1  ;;  %v2769_v59 = vsel %vm1526_vm3, %v2766_v45, %v2768_v13 }
 0x2f8   : > { %v12886_v20 = vadd.f32 %v2769_v59, %v12722_v12 }
 0x2f9   : > { %9710 = vmatmul.mubr.msk.bf16.gmra.mrb[112].mxu0 %vm483_vm1, %v10841_v49  ;;  %9682 = vmatmul.mubr.msk.bf16.gmra.mrb[112].mxu1 %vm483_vm1, %v12715_v42  ;;  %v2771_v21 = vsel %vm1526_vm3, %v2768_v13, %v2770_v46 }
 0x2fa   : > { %9713 = vmatprep.mubr.msk.bf16.mxu0 %vm10885_vm0, %v15690_v24  ;;  %9685 = vmatprep.mubr.msk.bf16.mxu1 %vm10885_vm0, %v15690_v24  ;;  %v12896_v1 = vadd.f32 %v2771_v21, %v12740_v52 }
 0x2fc   : > { %v2945_v45 = vpop.f32.mrb[8].mxu0  ;;  %v2618_v16 = vpop.f32.mrb[8].mxu1 }
 0x2fd   : > { %v12899_v0 = vadd.f32 %v2945_v45, %v12422_v57  ;;  %v9507_v12 = vpop.f32.mrb[9].mxu0  ;;  %v2772_v60 = vrot.slane %v2618_v16, 2  ;;  %v9479_v30 = vpop.f32.mrb[9].mxu1 }
 0x2fe   : > { %v2948_v22 = vpop.f32.mrb[10].mxu0  ;;  %v2621_v34 = vpop.f32.mrb[10].mxu1  ;;  %v15746_v30 = vld [vmem:[#allocation6_spill] sm:$0xff] }
 0x2ff   : > { %v12902_v35 = vadd.f32 %v2948_v22, %v12435_v28  ;;  %v9508_v13 = vpop.f32.mrb[11].mxu0  ;;  %v2774_v40 = vrot.slane %v2621_v34, 2  ;;  %v9480_v9 = vpop.f32.mrb[11].mxu1  ;;  %v2773_v11 = vsel %vm1526_vm3, %v2770_v46, %v2772_v60 }
 0x300   : > { %v12908_v52 = vadd.f32 %v2773_v11, %v12753_v32 }
 0x301   : > { %9714 = vmatmul.mubr.msk.bf16.gmra.mrb[116].mxu0 %vm483_vm1, %v12407_v41  ;;  %9686 = vmatmul.mubr.msk.bf16.gmra.mrb[116].mxu1 %vm483_vm1, %v12748_v19  ;;  %v2775_v57 = vsel %vm1526_vm3, %v2772_v60, %v2774_v40 }
 0x302   : > { %9717 = vmatprep.mubr.msk.bf16.mxu0 %vm10885_vm0, %v15690_v24  ;;  %v12916_v28 = vadd.f32 %v2775_v57, %v12770_v51  ;;  %9689 = vmatprep.mubr.msk.bf16.mxu1 %vm10885_vm0, %v15690_v24 }
 0x304   : > { %v2953_v37 = vpop.f32.mrb[12].mxu0  ;;  %v2626_v46 = vpop.f32.mrb[12].mxu1 }
 0x305   : > { %v12921_v41 = vadd.f32 %v2953_v37, %v12453_v2  ;;  %v9511_v32 = vpop.f32.mrb[13].mxu0  ;;  %v2776_v5 = vrot.slane %v2626_v46, 2  ;;  %v9483_v59 = vpop.f32.mrb[13].mxu1 }
 0x306   : > { %v2956_v49 = vpop.f32.mrb[14].mxu0  ;;  %v2629_v21 = vpop.f32.mrb[14].mxu1 }
 0x307   : > { %v12924_v45 = vadd.f32 %v2956_v49, %v12466_v62  ;;  %v9512_v16 = vpop.f32.mrb[15].mxu0  ;;  %v2778_v12 = vrot.slane %v2629_v21, 2  ;;  %v9484_v51 = vpop.f32.mrb[15].mxu1  ;;  %v2777_v60 = vsel %vm1526_vm3, %v2774_v40, %v2776_v5  ;;  %v15747_v49 = vld [vmem:[#allocation5_spill] sm:$0xff] }
 0x308   : > { %v12930_v22 = vadd.f32 %v2777_v60, %v12783_v36  ;;  %v15748_v60 = vld [vmem:[#allocation9_spill] sm:$0xff] }
 0x309   : > { %9718 = vmatmul.mubr.msk.bf16.gmra.mrb[120].mxu0 %vm483_vm1, %v15746_v30  ;;  %v2779_v2 = vsel %vm1526_vm3, %v2776_v5, %v2778_v12  ;;  %9690 = vmatmul.mubr.msk.bf16.gmra.mrb[120].mxu1 %vm483_vm1, %v12778_v38 }
 0x30a   : > { %9721 = vmatprep.mubr.msk.bf16.mxu0 %vm10885_vm0, %v15690_v24  ;;  %v12938_v62 = vadd.f32 %v2779_v2, %v12800_v10  ;;  %9797 = vmatprep.mubr.msk.bf16.mxu1 %vm10885_vm0, %v15690_v24 }
 0x30c   : > { %v2961_v34 = vpop.f32.mrb[16].mxu0  ;;  %v2634_v13 = vpop.f32.mrb[16].mxu1 }
 0x30d   : > { %v12943_v40 = vadd.f32 %v2961_v34, %v12484_v43  ;;  %v9515_v36 = vpop.f32.mrb[17].mxu0  ;;  %v2780_v9 = vrot.slane %v2634_v13, 2  ;;  %v9487_v11 = vpop.f32.mrb[17].mxu1 }
 0x30e   : > { %v2964_v57 = vpop.f32.mrb[18].mxu0  ;;  %v2637_v37 = vpop.f32.mrb[18].mxu1 }
 0x30f   : > { %v12946_v46 = vadd.f32 %v2964_v57, %v12497_v23  ;;  %v9516_v32 = vpop.f32.mrb[19].mxu0  ;;  %v2782_v5 = vrot.slane %v2637_v37, 2  ;;  %v9488_v10 = vpop.f32.mrb[19].mxu1  ;;  %v2781_v59 = vsel %vm1526_vm3, %v2778_v12, %v2780_v9 }
 0x310   : > { %v12952_v21 = vadd.f32 %v2781_v59, %v12810_v15  ;;  %v15749_v15 = vld [vmem:[#allocation8_spill] sm:$0xff] }
 0x311   : > { %9722 = vmatmul.mubr.msk.bf16.gmra.mrb[124].mxu0 %vm483_vm1, %v15747_v49  ;;  %v2783_v43 = vsel %vm1526_vm3, %v2780_v9, %v2782_v5 }
 0x312   : > { %9725 = vmatprep.mubr.msk.bf16.mxu0 %vm10885_vm0, %v15690_v24  ;;  %v12958_v16 = vadd.f32 %v2783_v43, %v12827_v8  ;;  %v15750_v8 = vld [vmem:[#allocation7_spill] sm:$0xff] }
 0x314   : > { %v2969_v23 = vpop.f32.mrb[20].mxu0  ;;  %v2642_v51 = vpop.f32.mrb[20].mxu1 }
 0x315   : > { %v12961_v30 = vadd.f32 %v2969_v23, %v15748_v60  ;;  %v9519_v12 = vpop.f32.mrb[21].mxu0  ;;  %v2784_v2 = vrot.slane %v2642_v51, 2  ;;  %v9491_v34 = vpop.f32.mrb[21].mxu1 }
 0x316   : > { %v2972_v13 = vpop.f32.mrb[22].mxu0  ;;  %v2645_v36 = vpop.f32.mrb[22].mxu1 }
 0x317   : > { %v12964_v11 = vadd.f32 %v2972_v13, %v15749_v15  ;;  %v9520_v57 = vpop.f32.mrb[23].mxu0  ;;  %v2786_v37 = vrot.slane %v2645_v36, 2  ;;  %v9492_v32 = vpop.f32.mrb[23].mxu1  ;;  %v2785_v9 = vsel %vm1526_vm3, %v2782_v5, %v2784_v2 }
 0x318   : > { %v12970_v10 = vadd.f32 %v2785_v9, %v12837_v14  ;;  %v15751_v57 = vld [vmem:[#allocation10_spill] sm:$0xff] }
 0x319   : > { %9726 = vmatmul.mubr.msk.bf16.gmra.mrb[128].mxu0 %vm483_vm1, %v15750_v8  ;;  %v2787_v59 = vsel %vm1526_vm3, %v2784_v2, %v2786_v37 }
 0x31a   : > { %9729 = vmatprep.mubr.msk.bf16.mxu0 %vm10885_vm0, %v15690_v24  ;;  %v12976_v49 = vadd.f32 %v2787_v59, %v12851_v17  ;;  %v10575_v17 = vld [vmem:[%s15645_s4 + $0x40] sm:$0xff]  }
 0x31b   : > { %9942 = vmatpush3.bf16.msra.mxu0 %v10575_v17 }
 0x31c   : > { %v2977_v43 = vpop.f32.mrb[24].mxu0  ;;  %v2650_v23 = vpop.f32.mrb[24].mxu1  ;;  %9943 = vmatprep.subr.bf16.mxu0 %v15690_v24 }
 0x31d   : > { %v12979_v51 = vadd.f32 %v2977_v43, %v12550_v55  ;;  %v9523_v5 = vpop.f32.mrb[25].mxu0  ;;  %v2788_v60 = vrot.slane %v2650_v23, 2  ;;  %v9495_v34 = vpop.f32.mrb[25].mxu1  ;;  %v10574_v55 = vld [vmem:[%s15645_s4 + $0x18] sm:$0xff]  }
 0x31e   : > { %v2980_v12 = vpop.f32.mrb[26].mxu0  ;;  %v2653_v36 = vpop.f32.mrb[26].mxu1  ;;  %9796 = vmatpush3.bf16.msra.mxu1 %v10574_v55 }
 0x31f   : > { %v12982_v14 = vadd.f32 %v2980_v12, %v12563_v63  ;;  %v9524_v13 = vpop.f32.mrb[27].mxu0  ;;  %v9496_v15 = vpop.f32.mrb[27].mxu1  ;;  %v2789_v2 = vsel %vm1526_vm3, %v2786_v37, %v2788_v60  ;;  %9865 = vmatprep.subr.bf16.mxu1 %v15690_v24  ;;  %v15752_v12 = vld [vmem:[#allocation11_spill] sm:$0xff] }
 0x320   : > { %v12994_v32 = vadd.f32 %v2789_v2, %v12861_v18 }
 0x321   : > { %9730 = vmatmul.mubr.msk.bf16.gmra.mrb[132].mxu0 %vm483_vm1, %v15751_v57 }
 0x322   : > { %9733 = vmatprep.mubr.msk.bf16.mxu0 %vm10885_vm0, %v15690_v24 }
 0x324   : > { %v2985_v63 = vpop.f32.mrb[28].mxu0  ;;  %v2657_v8 = vpop.f32.mrb[28].mxu1 }
 0x325   : > { %v13001_v37 = vadd.f32 %v2985_v63, %v12581_v48  ;;  %v9527_v9 = vpop.f32.mrb[29].mxu0  ;;  %v9499_v43 = vpop.f32.mrb[29].mxu1  ;;  %v15753_v8 = vld [vmem:[#allocation12_spill] sm:$0xff] }
 0x326   : > { %v2988_v59 = vpop.f32.mrb[30].mxu0  ;;  %v2659_v5 = vpop.f32.mrb[30].mxu1 }
 0x327   : > { %v13004_v18 = vadd.f32 %v2988_v59, %v12594_v54  ;;  %v9528_v23 = vpop.f32.mrb[31].mxu0  ;;  %v9500_v60 = vpop.f32.mrb[31].mxu1 }
 0x329   : > { %9734 = vmatmul.mubr.msk.bf16.gmra.mrb[136].mxu0 %vm483_vm1, %v15752_v12 }
 0x32a   : > { %9737 = vmatprep.mubr.msk.bf16.mxu0 %vm10885_vm0, %v15690_v24 }
 0x32c   : > { %v2993_v34 = vpop.f32.mrb[32].mxu0  ;;  %v3217_v13 = vpop.f32.mrb[32].mxu1 }
 0x32d   : > { %v13011_v48 = vadd.f32 %v2993_v34, %v12612_v58  ;;  %v9531_v36 = vpop.f32.mrb[33].mxu0  ;;  %v3440_v15 = vrot.slane %v3217_v13, 1  ;;  %v9603_v2 = vpop.f32.mrb[33].mxu1 }
 0x32e   : > { %v2996_v57 = vpop.f32.mrb[34].mxu0  ;;  %v3220_v55 = vpop.f32.mrb[34].mxu1 }
 0x32f   : > { %v13014_v54 = vadd.f32 %v2996_v57, %v12625_v47  ;;  %v9532_v17 = vpop.f32.mrb[35].mxu0  ;;  %v3441_v63 = vrot.slane %v3220_v55, 1  ;;  %v9604_v9 = vpop.f32.mrb[35].mxu1 }
 0x331   : > { %9738 = vmatmul.mubr.msk.bf16.gmra.mrb[140].mxu0 %vm483_vm1, %v15753_v8  ;;  %v3442_v59 = vsel %vm1082_vm2, %v3440_v15, %v3441_v63 }
 0x332   : > { %9741 = vmatprep.mubr.msk.bf16.mxu0 %vm10885_vm0, %v15690_v24  ;;  %v13022_v58 = vadd.f32 %v3442_v59, %v12899_v0 }
 0x334   : > { %v3001_v43 = vpop.f32.mrb[36].mxu0  ;;  %v3225_v47 = vpop.f32.mrb[36].mxu1 }
 0x335   : > { %v13025_v23 = vadd.f32 %v3001_v43, %v12643_v53  ;;  %v9535_v5 = vpop.f32.mrb[37].mxu0  ;;  %v3443_v60 = vrot.slane %v3225_v47, 1  ;;  %v9607_v12 = vpop.f32.mrb[37].mxu1  ;;  %v15754_v47 = vld [vmem:[#allocation14_spill] sm:$0xff] }
 0x336   : > { %v3004_v34 = vpop.f32.mrb[38].mxu0  ;;  %v3228_v36 = vpop.f32.mrb[38].mxu1 }
 0x337   : > { %v13028_v13 = vadd.f32 %v3004_v34, %v12656_v50  ;;  %v9536_v15 = vpop.f32.mrb[39].mxu0  ;;  %v3444_v2 = vsel %vm1082_vm2, %v3441_v63, %v3443_v60  ;;  %v3445_v57 = vrot.slane %v3228_v36, 1  ;;  %v9608_v55 = vpop.f32.mrb[39].mxu1 }
 0x338   : > { %v13032_v0 = vadd.f32 %v3444_v2, %v12902_v35  ;;  %v15755_v15 = vld [vmem:[#allocation13_spill] sm:$0xff] }
 0x339   : > { %9742 = vmatmul.mubr.msk.bf16.gmra.mrb[144].mxu0 %vm483_vm1, %v12628_v56  ;;  %v3446_v53 = vsel %vm1082_vm2, %v3443_v60, %v3445_v57  ;;  %v10576_v56 = vld [vmem:[%s15645_s4 + $0x48] sm:$0xff]  }
 0x33a   : > { %9745 = vmatprep.mubr.msk.bf16.mxu0 %vm10885_vm0, %v15690_v24  ;;  %v13040_v50 = vadd.f32 %v3446_v53, %v12921_v41  ;;  %9944 = vmatpush3.bf16.msra.mxu0 %v10576_v56 }
 0x33b   : > { %9945 = vmatprep.subr.bf16.mxu0 %v15690_v24 }
 0x33c   : > { %v3009_v17 = vpop.f32.mrb[40].mxu0  ;;  %v3233_v63 = vpop.f32.mrb[40].mxu1 }
 0x33d   : > { %v13043_v9 = vadd.f32 %v3009_v17, %v12674_v39  ;;  %v9539_v8 = vpop.f32.mrb[41].mxu0  ;;  %v3447_v59 = vrot.slane %v3233_v63, 1  ;;  %v9611_v35 = vpop.f32.mrb[41].mxu1 }
 0x33e   : > { %v3012_v43 = vpop.f32.mrb[42].mxu0  ;;  %v3236_v60 = vpop.f32.mrb[42].mxu1 }
 0x33f   : > { %v13049_v5 = vadd.f32 %v3012_v43, %v15754_v47  ;;  %v9540_v12 = vpop.f32.mrb[43].mxu0  ;;  %v3448_v41 = vsel %vm1082_vm2, %v3445_v57, %v3447_v59  ;;  %v3449_v34 = vrot.slane %v3236_v60, 1  ;;  %v9612_v36 = vpop.f32.mrb[43].mxu1  ;;  %v10577_v57 = vld [vmem:[%s15645_s4 + $0x50] sm:$0xff]  }
 0x340   : > { %v13053_v39 = vadd.f32 %v3448_v41, %v12924_v45  ;;  %9946 = vmatpush3.bf16.msra.mxu0 %v10577_v57  ;;  %v15756_v43 = vld [vmem:[#allocation16_spill] sm:$0xff] }
 0x341   : > { %9746 = vmatmul.mubr.msk.bf16.gmra.mrb[148].mxu0 %vm483_vm1, %v15755_v15  ;;  %v3450_v2 = vsel %vm1082_vm2, %v3447_v59, %v3449_v34  ;;  %9947 = vmatprep.subr.bf16.mxu0 %v15690_v24  ;;  %v15757_v15 = vld [vmem:[#allocation15_spill] sm:$0xff] }
 0x342   : > { %9749 = vmatprep.mubr.msk.bf16.mxu0 %vm10885_vm0, %v15690_v24  ;;  %v13065_v55 = vadd.f32 %v3450_v2, %v12943_v40  ;;  %v10578_v40 = vld [vmem:[%s15645_s4 + $0x58] sm:$0xff]  }
 0x344   : > { %v3017_v53 = vpop.f32.mrb[44].mxu0  ;;  %v3241_v17 = vpop.f32.mrb[44].mxu1  ;;  %9948 = vmatpush3.bf16.msra.mxu0 %v10578_v40 }
 0x345   : > { %v13068_v45 = vadd.f32 %v3017_v53, %v12712_v61  ;;  %v9543_v63 = vpop.f32.mrb[45].mxu0  ;;  %v3451_v8 = vrot.slane %v3241_v17, 1  ;;  %v9615_v59 = vpop.f32.mrb[45].mxu1  ;;  %10093 = vmatprep.subr.bf16.mxu0 %v15690_v24 }
 0x346   : > { %v3020_v35 = vpop.f32.mrb[46].mxu0  ;;  %v3244_v47 = vpop.f32.mrb[46].mxu1 }
 0x347   : > { %v13072_v56 = vadd.f32 %v3020_v35, %v15756_v43  ;;  %v9544_v60 = vpop.f32.mrb[47].mxu0  ;;  %v3452_v12 = vsel %vm1082_vm2, %v3449_v34, %v3451_v8  ;;  %v3453_v61 = vrot.slane %v3244_v47, 1  ;;  %v9616_v41 = vpop.f32.mrb[47].mxu1  ;;  %v15758_v43 = vld [vmem:[#allocation18_spill] sm:$0xff] }
 0x348   : > { %v13079_v36 = vadd.f32 %v3452_v12, %v12946_v46 }
 0x349   : > { %9750 = vmatmul.mubr.msk.bf16.gmra.mrb[152].mxu0 %vm483_vm1, %v15757_v15  ;;  %v3454_v2 = vsel %vm1082_vm2, %v3451_v8, %v3453_v61  ;;  %v15759_v15 = vld [vmem:[#allocation17_spill] sm:$0xff] }
 0x34a   : > { %9753 = vmatprep.mubr.msk.bf16.mxu0 %vm10885_vm0, %v15690_v24  ;;  %v13087_v57 = vadd.f32 %v3454_v2, %v12961_v30 }
 0x34c   : > { %v3025_v34 = vpop.f32.mrb[48].mxu0  ;;  %v3249_v46 = vpop.f32.mrb[48].mxu1 }
 0x34d   : > { %v13091_v53 = vadd.f32 %v3025_v34, %v12745_v29  ;;  %v9547_v17 = vpop.f32.mrb[49].mxu0  ;;  %v3455_v63 = vrot.slane %v3249_v46, 1  ;;  %v9619_v59 = vpop.f32.mrb[49].mxu1 }
 0x34e   : > { %v3028_v35 = vpop.f32.mrb[50].mxu0  ;;  %v3252_v47 = vpop.f32.mrb[50].mxu1 }
 0x34f   : > { %v13094_v8 = vadd.f32 %v3028_v35, %v15758_v43  ;;  %v9548_v60 = vpop.f32.mrb[51].mxu0  ;;  %v3456_v40 = vsel %vm1082_vm2, %v3453_v61, %v3455_v63  ;;  %v3457_v30 = vrot.slane %v3252_v47, 1  ;;  %v9620_v12 = vpop.f32.mrb[51].mxu1  ;;  %v15760_v43 = vld [vmem:[#allocation3_spill] sm:$0xff] }
 0x350   : > { %v13098_v41 = vadd.f32 %v3456_v40, %v12964_v11 }
 0x351   : > { %9754 = vmatmul.mubr.msk.bf16.gmra.mrb[156].mxu0 %vm483_vm1, %v15759_v15  ;;  %v3458_v29 = vsel %vm1082_vm2, %v3455_v63, %v3457_v30 }
 0x352   : > { %9757 = vmatprep.mubr.msk.bf16.mxu0 %vm10885_vm0, %v15690_v24  ;;  %v13106_v2 = vadd.f32 %v3458_v29, %v12979_v51  ;;  %v15761_v29 = vld [vmem:[#allocation19_spill] sm:$0xff] }
 0x354   : > { %v3033_v34 = vpop.f32.mrb[52].mxu0  ;;  %v3257_v61 = vpop.f32.mrb[52].mxu1 }
 0x355   : > { %v13109_v46 = vadd.f32 %v3033_v34, %v12775_v6  ;;  %v9551_v17 = vpop.f32.mrb[53].mxu0  ;;  %v3459_v59 = vrot.slane %v3257_v61, 1  ;;  %v9623_v11 = vpop.f32.mrb[53].mxu1 }
 0x356   : > { %v3036_v35 = vpop.f32.mrb[54].mxu0  ;;  %v3260_v60 = vpop.f32.mrb[54].mxu1 }
 0x357   : > { %v13112_v47 = vadd.f32 %v3036_v35, %v15760_v43  ;;  %v9552_v63 = vpop.f32.mrb[55].mxu0  ;;  %v3460_v40 = vsel %vm1082_vm2, %v3457_v30, %v3459_v59  ;;  %v3461_v12 = vrot.slane %v3260_v60, 1  ;;  %v9624_v15 = vpop.f32.mrb[55].mxu1 }
 0x358   : > { %v13116_v51 = vadd.f32 %v3460_v40, %v12982_v14 }
 0x359   : > { %9758 = vmatmul.mubr.msk.bf16.gmra.mrb[160].mxu0 %vm483_vm1, %v15761_v29  ;;  %v3462_v6 = vsel %vm1082_vm2, %v3459_v59, %v3461_v12 }
 0x35a   : > { %9761 = vmatprep.mubr.msk.bf16.mxu0 %vm10885_vm0, %v15690_v24  ;;  %v13124_v34 = vadd.f32 %v3462_v6, %v13001_v37  ;;  %v15762_v6 = vld [vmem:[#allocation2_spill] sm:$0xff] }
 0x35c   : > { %v3041_v61 = vpop.f32.mrb[56].mxu0  ;;  %v3265_v30 = vpop.f32.mrb[56].mxu1 }
 0x35d   : > { %v13127_v17 = vadd.f32 %v3041_v61, %v12805_v33  ;;  %v9555_v11 = vpop.f32.mrb[57].mxu0  ;;  %v3463_v35 = vrot.slane %v3265_v30, 1  ;;  %v9627_v14 = vpop.f32.mrb[57].mxu1 }
 0x35e   : > { %v3044_v43 = vpop.f32.mrb[58].mxu0  ;;  %v3268_v63 = vpop.f32.mrb[58].mxu1 }
 0x35f   : > { %v13130_v60 = vadd.f32 %v3044_v43, %v12816_v31  ;;  %v9556_v59 = vpop.f32.mrb[59].mxu0  ;;  %v3464_v40 = vsel %vm1082_vm2, %v3461_v12, %v3463_v35  ;;  %v3465_v15 = vrot.slane %v3268_v63, 1  ;;  %v9628_v29 = vpop.f32.mrb[59].mxu1 }
 0x360   : > { %v13134_v37 = vadd.f32 %v3464_v40, %v13004_v18 }
 0x361   : > { %9762 = vmatmul.mubr.msk.bf16.gmra.mrb[164].mxu0 %vm483_vm1, %v15762_v6  ;;  %v3466_v33 = vsel %vm1082_vm2, %v3463_v35, %v3465_v15 }
 0x362   : > { %9765 = vmatprep.mubr.msk.bf16.mxu0 %vm10885_vm0, %v15690_v24  ;;  %v13142_v31 = vadd.f32 %v3466_v33, %v13011_v48  ;;  %v15763_v33 = vld [vmem:[#allocation4_spill] sm:$0xff] }
 0x364   : > { %v3049_v61 = vpop.f32.mrb[60].mxu0  ;;  %v3273_v12 = vpop.f32.mrb[60].mxu1 }
 0x365   : > { %v13145_v30 = vadd.f32 %v3049_v61, %v12832_v26  ;;  %v9559_v11 = vpop.f32.mrb[61].mxu0  ;;  %v3467_v14 = vrot.slane %v3273_v12, 1  ;;  %v9631_v18 = vpop.f32.mrb[61].mxu1 }
 0x366   : > { %v3052_v43 = vpop.f32.mrb[62].mxu0  ;;  %v3276_v59 = vpop.f32.mrb[62].mxu1 }
 0x367   : > { %v13148_v63 = vadd.f32 %v3052_v43, %v12843_v27  ;;  %v9560_v35 = vpop.f32.mrb[63].mxu0  ;;  %v3468_v40 = vsel %vm1082_vm2, %v3465_v15, %v3467_v14  ;;  %v3469_v29 = vrot.slane %v3276_v59, 1  ;;  %v9632_v6 = vpop.f32.mrb[63].mxu1 }
 0x368   : > { %v13152_v48 = vadd.f32 %v3468_v40, %v13014_v54 }
 0x369   : > { %9766 = vmatmul.mubr.msk.bf16.gmra.mrb[168].mxu0 %vm483_vm1, %v15763_v33  ;;  %v3470_v26 = vsel %vm1082_vm2, %v3467_v14, %v3469_v29 }
 0x36a   : > { %9769 = vmatprep.mubr.msk.bf16.mxu0 %vm10885_vm0, %v15690_v24  ;;  %v13160_v27 = vadd.f32 %v3470_v26, %v13025_v23 }
 0x36c   : > { %v3057_v61 = vpop.f32.mrb[64].mxu0  ;;  %v3281_v15 = vpop.f32.mrb[64].mxu1 }
 0x36d   : > { %v13163_v12 = vadd.f32 %v3057_v61, %v12856_v3  ;;  %v9563_v11 = vpop.f32.mrb[65].mxu0  ;;  %v3471_v18 = vrot.slane %v3281_v15, 1  ;;  %v9635_v54 = vpop.f32.mrb[65].mxu1 }
 0x36e   : > { %v3060_v43 = vpop.f32.mrb[66].mxu0  ;;  %v3284_v35 = vpop.f32.mrb[66].mxu1 }
 0x36f   : > { %v13166_v59 = vadd.f32 %v3060_v43, %v12866_v4  ;;  %v9564_v14 = vpop.f32.mrb[67].mxu0  ;;  %v3472_v40 = vsel %vm1082_vm2, %v3469_v29, %v3471_v18  ;;  %v3473_v6 = vrot.slane %v3284_v35, 1  ;;  %v9636_v33 = vpop.f32.mrb[67].mxu1 }
 0x370   : > { %v13170_v23 = vadd.f32 %v3472_v40, %v13028_v13 }
 0x371   : > { %9770 = vmatmul.mubr.msk.bf16.gmra.mrb[172].mxu0 %vm483_vm1, %v15710_v44  ;;  %v3474_v3 = vsel %vm1082_vm2, %v3471_v18, %v3473_v6 }
 0x372   : > { %9773 = vmatprep.mubr.msk.bf16.mxu0 %vm10885_vm0, %v15690_v24  ;;  %v13178_v4 = vadd.f32 %v3474_v3, %v13043_v9 }
 0x374   : > { %v3065_v26 = vpop.f32.mrb[68].mxu0  ;;  %v3289_v29 = vpop.f32.mrb[68].mxu1 }
 0x375   : > { %v13181_v61 = vadd.f32 %v3065_v26, %v12879_v7  ;;  %v9567_v15 = vpop.f32.mrb[69].mxu0  ;;  %v3475_v11 = vrot.slane %v3289_v29, 1  ;;  %v9639_v13 = vpop.f32.mrb[69].mxu1 }
 0x376   : > { %v3068_v54 = vpop.f32.mrb[70].mxu0  ;;  %v3292_v44 = vpop.f32.mrb[70].mxu1 }
 0x377   : > { %v13184_v43 = vadd.f32 %v3068_v54, %v12886_v20  ;;  %v9568_v18 = vpop.f32.mrb[71].mxu0  ;;  %v3476_v35 = vsel %vm1082_vm2, %v3473_v6, %v3475_v11  ;;  %v3477_v14 = vrot.slane %v3292_v44, 1  ;;  %v9640_v40 = vpop.f32.mrb[71].mxu1 }
 0x378   : > { %v13188_v9 = vadd.f32 %v3476_v35, %v13049_v5 }
 0x379   : > { %9774 = vmatmul.mubr.msk.bf16.gmra.mrb[176].mxu0 %vm483_vm1, %v12685_v25  ;;  %v3478_v7 = vsel %vm1082_vm2, %v3475_v11, %v3477_v14 }
 0x37a   : > { %9777 = vmatprep.mubr.msk.bf16.mxu0 %vm10885_vm0, %v15690_v24  ;;  %v13196_v20 = vadd.f32 %v3478_v7, %v13068_v45 }
 0x37c   : > { %v3073_v33 = vpop.f32.mrb[72].mxu0  ;;  %v3297_v6 = vpop.f32.mrb[72].mxu1 }
 0x37d   : > { %v13199_v3 = vadd.f32 %v3073_v33, %v12896_v1  ;;  %v9571_v26 = vpop.f32.mrb[73].mxu0  ;;  %v3479_v29 = vrot.slane %v3297_v6, 1  ;;  %v9643_v5 = vpop.f32.mrb[73].mxu1 }
 0x37e   : > { %v3076_v15 = vpop.f32.mrb[74].mxu0  ;;  %v3300_v25 = vpop.f32.mrb[74].mxu1 }
 0x37f   : > { %v13202_v13 = vadd.f32 %v3076_v15, %v12908_v52  ;;  %v9572_v11 = vpop.f32.mrb[75].mxu0  ;;  %v3480_v54 = vsel %vm1082_vm2, %v3477_v14, %v3479_v29  ;;  %v3481_v44 = vrot.slane %v3300_v25, 1  ;;  %v9644_v18 = vpop.f32.mrb[75].mxu1 }
 0x380   : > { %v13206_v45 = vadd.f32 %v3480_v54, %v13072_v56 }
 0x381   : > { %9778 = vmatmul.mubr.msk.bf16.gmra.mrb[180].mxu0 %vm483_vm1, %v12715_v42  ;;  %v3482_v1 = vsel %vm1082_vm2, %v3479_v29, %v3481_v44 }
 0x382   : > { %9781 = vmatprep.mubr.msk.bf16.mxu0 %vm10885_vm0, %v15690_v24  ;;  %v13214_v52 = vadd.f32 %v3482_v1, %v13091_v53 }
 0x384   : > { %v3081_v35 = vpop.f32.mrb[76].mxu0  ;;  %v3305_v14 = vpop.f32.mrb[76].mxu1 }
 0x385   : > { %v13217_v40 = vadd.f32 %v3081_v35, %v12916_v28  ;;  %v9575_v7 = vpop.f32.mrb[77].mxu0  ;;  %v3483_v33 = vrot.slane %v3305_v14, 1  ;;  %v9647_v56 = vpop.f32.mrb[77].mxu1 }
 0x386   : > { %v3084_v6 = vpop.f32.mrb[78].mxu0  ;;  %v3308_v42 = vpop.f32.mrb[78].mxu1 }
 0x387   : > { %v13220_v26 = vadd.f32 %v3084_v6, %v12930_v22  ;;  %v9576_v29 = vpop.f32.mrb[79].mxu0  ;;  %v3484_v5 = vsel %vm1082_vm2, %v3481_v44, %v3483_v33  ;;  %v3485_v15 = vrot.slane %v3308_v42, 1  ;;  %v9648_v25 = vpop.f32.mrb[79].mxu1 }
 0x388   : > { %v13224_v53 = vadd.f32 %v3484_v5, %v13094_v8 }
 0x389   : > { %9782 = vmatmul.mubr.msk.bf16.gmra.mrb[184].mxu0 %vm483_vm1, %v12748_v19  ;;  %v3486_v28 = vsel %vm1082_vm2, %v3483_v33, %v3485_v15 }
 0x38a   : > { %9785 = vmatprep.mubr.msk.bf16.mxu0 %vm10885_vm0, %v15690_v24  ;;  %v13232_v22 = vadd.f32 %v3486_v28, %v13109_v46 }
 0x38c   : > { %v3089_v11 = vpop.f32.mrb[80].mxu0  ;;  %v3313_v44 = vpop.f32.mrb[80].mxu1 }
 0x38d   : > { %v13235_v54 = vadd.f32 %v3089_v11, %v12938_v62  ;;  %v9579_v18 = vpop.f32.mrb[81].mxu0  ;;  %v3487_v1 = vrot.slane %v3313_v44, 1  ;;  %v9651_v8 = vpop.f32.mrb[81].mxu1 }
 0x38e   : > { %v3092_v35 = vpop.f32.mrb[82].mxu0  ;;  %v3316_v19 = vpop.f32.mrb[82].mxu1 }
 0x38f   : > { %v13238_v14 = vadd.f32 %v3092_v35, %v12952_v21  ;;  %v9580_v7 = vpop.f32.mrb[83].mxu0  ;;  %v3488_v33 = vsel %vm1082_vm2, %v3485_v15, %v3487_v1  ;;  %v3489_v56 = vrot.slane %v3316_v19, 1  ;;  %v9652_v6 = vpop.f32.mrb[83].mxu1 }
 0x390   : > { %v13242_v46 = vadd.f32 %v3488_v33, %v13112_v47 }
 0x391   : > { %9786 = vmatmul.mubr.msk.bf16.gmra.mrb[188].mxu0 %vm483_vm1, %v12778_v38  ;;  %v3490_v62 = vsel %vm1082_vm2, %v3487_v1, %v3489_v56 }
 0x392   : > { %9949 = vmatprep.mubr.msk.bf16.mxu0 %vm10885_vm0, %v15690_v24  ;;  %v13250_v21 = vadd.f32 %v3490_v62, %v13127_v17 }
 0x394   : > { %v3097_v42 = vpop.f32.mrb[84].mxu0  ;;  %v3321_v5 = vpop.f32.mrb[84].mxu1 }
 0x395   : > { %v13253_v29 = vadd.f32 %v3097_v42, %v12958_v16  ;;  %v9583_v15 = vpop.f32.mrb[85].mxu0  ;;  %v3491_v25 = vrot.slane %v3321_v5, 1  ;;  %v9655_v47 = vpop.f32.mrb[85].mxu1 }
 0x396   : > { %v3100_v28 = vpop.f32.mrb[86].mxu0  ;;  %v3324_v38 = vpop.f32.mrb[86].mxu1 }
 0x397   : > { %v13256_v11 = vadd.f32 %v3100_v28, %v12970_v10  ;;  %v9584_v44 = vpop.f32.mrb[87].mxu0  ;;  %v3492_v18 = vsel %vm1082_vm2, %v3489_v56, %v3491_v25  ;;  %v3493_v1 = vrot.slane %v3324_v38, 1  ;;  %v9656_v8 = vpop.f32.mrb[87].mxu1 }
 0x398   : > { %v13260_v17 = vadd.f32 %v3492_v18, %v13130_v60 }
 0x399   : > { %v3494_v16 = vsel %vm1082_vm2, %v3491_v25, %v3493_v1 }
 0x39a   : > { %v13264_v35 = vadd.f32 %v3494_v16, %v13145_v30 }
 0x39c   : > { %v3105_v19 = vpop.f32.mrb[88].mxu0  ;;  %v3329_v10 = vpop.f32.mrb[88].mxu1 }
 0x39d   : > { %v13267_v7 = vadd.f32 %v3105_v19, %v12976_v49  ;;  %v9587_v33 = vpop.f32.mrb[89].mxu0  ;;  %v3495_v6 = vrot.slane %v3329_v10, 1  ;;  %v9659_v62 = vpop.f32.mrb[89].mxu1 }
 0x39e   : > { %v3108_v42 = vpop.f32.mrb[90].mxu0  ;;  %v3332_v5 = vpop.f32.mrb[90].mxu1 }
 0x39f   : > { %v13270_v56 = vadd.f32 %v3108_v42, %v12994_v32  ;;  %v9588_v60 = vpop.f32.mrb[91].mxu0  ;;  %v3496_v15 = vsel %vm1082_vm2, %v3493_v1, %v3495_v6  ;;  %v3497_v25 = vrot.slane %v3332_v5, 1  ;;  %v9660_v47 = vpop.f32.mrb[91].mxu1 }
 0x3a0   : > { %v13274_v30 = vadd.f32 %v3496_v15, %v13148_v63 }
 0x3a1   : > { %v3498_v49 = vsel %vm1082_vm2, %v3495_v6, %v3497_v25 }
 0x3a2   : > { %v13278_v28 = vadd.f32 %v3498_v49, %v13163_v12 }
 0x3a4   : > { %v3113_v38 = vpop.f32.mrb[92].mxu0  ;;  %v3337_v44 = vpop.f32.mrb[92].mxu1 }
 0x3a5   : > { %v9591_v18 = vpop.f32.mrb[93].mxu0  ;;  %v3499_v8 = vrot.slane %v3337_v44, 1  ;;  %v9663_v32 = vpop.f32.mrb[93].mxu1 }
 0x3a6   : > { %v3115_v16 = vpop.f32.mrb[94].mxu0  ;;  %v3340_v19 = vpop.f32.mrb[94].mxu1 }
 0x3a7   : > { %v9592_v10 = vpop.f32.mrb[95].mxu0  ;;  %v3500_v1 = vsel %vm1082_vm2, %v3497_v25, %v3499_v8  ;;  %v3501_v33 = vrot.slane %v3340_v19, 1  ;;  %v9664_v62 = vpop.f32.mrb[95].mxu1 }
 0x3a8   : > { %v13282_v63 = vadd.f32 %v3500_v1, %v13166_v59 }
 0x3a9   : > { %v3502_v6 = vsel %vm1082_vm2, %v3499_v8, %v3501_v33 }
 0x3aa   : > { %v13286_v12 = vadd.f32 %v3502_v6, %v13181_v61 }
 0x3ac   : > { %v3119_v42 = vpop.f32.mrb[96].mxu0  ;;  %v3345_v5 = vpop.f32.mrb[96].mxu1 }
 0x3ad   : > { %v9595_v60 = vpop.f32.mrb[97].mxu0  ;;  %v3503_v15 = vrot.slane %v3345_v5, 1  ;;  %v9667_v47 = vpop.f32.mrb[97].mxu1 }
 0x3ae   : > { %v3121_v49 = vpop.f32.mrb[98].mxu0  ;;  %v3348_v38 = vpop.f32.mrb[98].mxu1 }
 0x3af   : > { %v9596_v44 = vpop.f32.mrb[99].mxu0  ;;  %v3504_v25 = vsel %vm1082_vm2, %v3501_v33, %v3503_v15  ;;  %v3505_v18 = vrot.slane %v3348_v38, 1  ;;  %v9668_v32 = vpop.f32.mrb[99].mxu1 }
 0x3b0   : > { %v13290_v59 = vadd.f32 %v3504_v25, %v13184_v43  ;;  %v13309_v32 = vld [vmem:[%s15644_s3] ss:$0 sm:$0xff] }
 0x3b1   : > { %v3506_v8 = vsel %vm1082_vm2, %v3503_v15, %v3505_v18 }
 0x3b2   : > { %v13294_v61 = vadd.f32 %v3506_v8, %v13199_v3 }
 0x3b4   : > { %v3660_v16 = vpop.f32.mrb[100].mxu0  ;;  %v3353_v19 = vpop.f32.mrb[100].mxu1 }
 0x3b5   : > { %v9699_v10 = vpop.f32.mrb[101].mxu0  ;;  %v3507_v1 = vrot.slane %v3353_v19, 1  ;;  %v9671_v62 = vpop.f32.mrb[101].mxu1  ;;  %v3883_v42 = vrot.slane %v3660_v16, 2 }
 0x3b6   : > { %v3663_v6 = vpop.f32.mrb[102].mxu0  ;;  %v3356_v5 = vpop.f32.mrb[102].mxu1 }
 0x3b7   : > { %v3884_v60 = vrot.slane %v3663_v6, 2  ;;  %v9700_v33 = vpop.f32.mrb[103].mxu0  ;;  %v3508_v47 = vsel %vm1082_vm2, %v3505_v18, %v3507_v1  ;;  %v3509_v49 = vrot.slane %v3356_v5, 1  ;;  %v9672_v43 = vpop.f32.mrb[103].mxu1 }
 0x3b8   : > { %v13298_v38 = vadd.f32 %v3508_v47, %v13202_v13  ;;  %v4188_v18 = vpop.permute.xlu0 %4187 }
 0x3b9   : > { %v3885_v3 = vsel %vm1526_vm3, %v3883_v42, %v3884_v60  ;;  %v3510_v15 = vsel %vm1082_vm2, %v3507_v1, %v3509_v49 }
 0x3ba   : > { %v4010_v44 = vadd.f32 %v3885_v3, %v13022_v58  ;;  %v13304_v25 = vadd.f32 %v3510_v15, %v13217_v40 }
 0x3bc   : > { %15764 = vst [vmem:[#allocation6_spill] sm:$0xff] %v13304_v25  ;;  %v3668_v8 = vpop.f32.mrb[104].mxu0  ;;  %v3361_v16 = vpop.f32.mrb[104].mxu1  ;;  %v4059_v10 = vadd.f32 %v13309_v32, %v4010_v44 }
 0x3bd   : > { %v3886_v19 = vrot.slane %v3668_v8, 2  ;;  %v9703_v13 = vpop.f32.mrb[105].mxu0  ;;  %v3511_v62 = vrot.slane %v3361_v16, 1  ;;  %v9675_v6 = vpop.f32.mrb[105].mxu1 }
 0x3be   : > { %v3671_v1 = vpop.f32.mrb[106].mxu0  ;;  %v3364_v42 = vpop.f32.mrb[106].mxu1  ;;  %v4101_v44 = vmax.f32 %v4059_v10, 0.0 }
 0x3bf   : > { %v3887_v58 = vsel %vm1526_vm3, %v3884_v60, %v3886_v19  ;;  %v3888_v40 = vrot.slane %v3671_v1, 2  ;;  %v9704_v5 = vpop.f32.mrb[107].mxu0  ;;  %v3512_v33 = vsel %vm1082_vm2, %v3509_v49, %v3511_v62  ;;  %v3513_v43 = vrot.slane %v3364_v42, 1  ;;  %v9676_v3 = vpop.f32.mrb[107].mxu1 }
 0x3c0   : > { %v4011_v47 = vadd.f32 %v3887_v58, %v13032_v0  ;;  %v13316_v15 = vadd.f32 %v3512_v33, %v13220_v26  ;;  %v4193_v6 = vpop.permute.xlu0 %4192  ;;  %v4198_v49 = vpop.permute.xlu1 %4197  ;;  %v4395_v33 = vmul.f32 %v4188_v18, %v4101_v44 }
 0x3c1   : > { %v3889_v8 = vsel %vm1526_vm3, %v3886_v19, %v3888_v40  ;;  %v3514_v13 = vsel %vm1082_vm2, %v3511_v62, %v3513_v43 }
 0x3c2   : > { %15765 = vst [vmem:[#allocation5_spill] sm:$0xff] %v13316_v15  ;;  %v4060_v16 = vadd.f32 %v13309_v32, %v4011_v47  ;;  %v4012_v60 = vadd.f32 %v3889_v8, %v13040_v50  ;;  %v13323_v1 = vadd.f32 %v3514_v13, %v13235_v54  ;;  %v10579_v54 = vld [vmem:[%s15645_s4 + $0x20] sm:$0xff]  }
 0x3c4   : > { %v4102_v0 = vmax.f32 %v4060_v16, 0.0  ;;  %v3676_v58 = vpop.f32.mrb[108].mxu0  ;;  %v3369_v42 = vpop.f32.mrb[108].mxu1  ;;  %v4061_v19 = vadd.f32 %v13309_v32, %v4012_v60 }
 0x3c5   : > { %v3890_v5 = vrot.slane %v3676_v58, 2  ;;  %v9707_v26 = vpop.f32.mrb[109].mxu0  ;;  %v3515_v10 = vrot.slane %v3369_v42, 1  ;;  %v9679_v47 = vpop.f32.mrb[109].mxu1 }
 0x3c6   : > { %v4396_v3 = vmul.f32 %v4193_v6, %v4102_v0  ;;  %v3679_v15 = vpop.f32.mrb[110].mxu0  ;;  %v3372_v50 = vpop.f32.mrb[110].mxu1 }
 0x3c7   : > { %v3891_v62 = vsel %vm1526_vm3, %v3888_v40, %v3890_v5  ;;  %v3892_v8 = vrot.slane %v3679_v15, 2  ;;  %v9708_v25 = vpop.f32.mrb[111].mxu0  ;;  %v3516_v18 = vsel %vm1082_vm2, %v3513_v43, %v3515_v10  ;;  %v9680_v13 = vpop.f32.mrb[111].mxu1  ;;  %v3517_v6 = vrot.slane %v3372_v50, 1 }
 0x3c8   : > { %v13330_v16 = vpack.c.bf16 %v4396_v3, %v4395_v33  ;;  %v4013_v44 = vadd.f32 %v3891_v62, %v13053_v39  ;;  %v13335_v60 = vadd.f32 %v3516_v18, %v13238_v14  ;;  %v10583_v25 = vld [vmem:[%s15645_s4 + $0x80] sm:$0xff]   ;;  %v4103_v15 = vmax.f32 %v4061_v19, 0.0  ;;  %v10580_v14 = vld [vmem:[%s15645_s4 + $0x28] sm:$0xff]   ;;  %v4203_v43 = vpop.permute.xlu1 %4202 }
 0x3c9   : > { %v3893_v40 = vsel %vm1526_vm3, %v3890_v5, %v3892_v8  ;;  %v3518_v39 = vsel %vm1082_vm2, %v3515_v10, %v3517_v6  ;;  %v10584_v19 = vld [vmem:[%s15645_s4 + $0x88] sm:$0xff]  }
 0x3ca   : > { %v4062_v0 = vadd.f32 %v13309_v32, %v4013_v44  ;;  %v4014_v58 = vadd.f32 %v3893_v40, %v13065_v55  ;;  %9798 = vmatmul.mubr.msk.bf16.vlgmr.msra.gmra.mrb[124].mxu1 %vm4490_vm4, %v13330_v16  ;;  %9950 = vmatmul.mubr.msk.bf16.vlgmr.msra.gmra.mrb[192].mxu0 %vm4490_vm4, %v13330_v16  ;;  %v13354_v55 = vadd.f32 %v3518_v39, %v13253_v29 }
 0x3cb   : > { %9866 = vmatpush3.bf16.msra.mxu1 %v10579_v54  ;;  %9801 = vmatprep.mubr.msk.bf16.mxu1 %vm10885_vm0, %v15690_v24  ;;  %v4397_v10 = vmul.f32 %v4198_v49, %v4103_v15 }
 0x3cc   : > { %v4104_v42 = vmax.f32 %v4062_v0, 0.0  ;;  %v3684_v5 = vpop.f32.mrb[112].mxu0  ;;  %9953 = vmatprep.mubr.msk.bf16.mxu0 %vm10885_vm0, %v15690_v24  ;;  %9867 = vmatprep.subr.bf16.mxu1 %v15690_v24  ;;  %v3377_v26 = vpop.f32.mrb[112].mxu1  ;;  %v4063_v62 = vadd.f32 %v13309_v32, %v4014_v58  ;;  %v10581_v58 = vld [vmem:[%s15645_s4 + $0x30] sm:$0xff]  }
 0x3cd   : > { %v3894_v33 = vrot.slane %v3684_v5, 2  ;;  %v9711_v3 = vpop.f32.mrb[113].mxu0  ;;  %10094 = vmatpush3.bf16.msra.mxu0 %v10583_v25  ;;  %v3519_v29 = vrot.slane %v3377_v26, 1  ;;  %v9683_v50 = vpop.f32.mrb[113].mxu1 }
 0x3ce   : > { %v4398_v47 = vmul.f32 %v4203_v43, %v4104_v42  ;;  %v3687_v54 = vpop.f32.mrb[114].mxu0  ;;  %10095 = vmatprep.subr.bf16.mxu0 %v15690_v24  ;;  %v3380_v44 = vpop.f32.mrb[114].mxu1 }
 0x3cf   : > { %v3895_v18 = vsel %vm1526_vm3, %v3892_v8, %v3894_v33  ;;  %v3896_v13 = vrot.slane %v3687_v54, 2  ;;  %v9712_v40 = vpop.f32.mrb[115].mxu0  ;;  %9868 = vmatpush3.bf16.msra.mxu1 %v10580_v14  ;;  %v3520_v0 = vsel %vm1082_vm2, %v3517_v6, %v3519_v29  ;;  %v9684_v15 = vpop.f32.mrb[115].mxu1  ;;  %v3521_v8 = vrot.slane %v3380_v44, 1  ;;  %v10585_v6 = vld [vmem:[%s15645_s4 + $0x90] sm:$0xff]  }
 0x3d0   : > { %v13365_v25 = vpack.c.bf16 %v4398_v47, %v4397_v10  ;;  %v4015_v49 = vadd.f32 %v3895_v18, %v13079_v36  ;;  %9869 = vmatprep.subr.bf16.mxu1 %v15690_v24  ;;  %v13374_v39 = vadd.f32 %v3520_v0, %v13256_v11  ;;  %v4105_v14 = vmax.f32 %v4063_v62, 0.0  ;;  %v4208_v11 = vpop.permute.xlu0 %4207  ;;  %v4213_v26 = vpop.permute.xlu1 %4212 }
 0x3d1   : > { %v3897_v43 = vsel %vm1526_vm3, %v3894_v33, %v3896_v13  ;;  %10096 = vmatpush3.bf16.msra.mxu0 %v10584_v19  ;;  %v3522_v5 = vsel %vm1082_vm2, %v3519_v29, %v3521_v8  ;;  %v10582_v19 = vld [vmem:[%s15645_s4 + $0x38] sm:$0xff]  }
 0x3d2   : > { %v4064_v36 = vadd.f32 %v13309_v32, %v4015_v49  ;;  %v4016_v42 = vadd.f32 %v3897_v43, %v13087_v57  ;;  %9802 = vmatmul.mubr.msk.bf16.gmra.mrb[128].mxu1 %vm4490_vm4, %v13365_v25  ;;  %9954 = vmatmul.mubr.msk.bf16.gmra.mrb[196].mxu0 %vm4490_vm4, %v13365_v25  ;;  %v13392_v3 = vadd.f32 %v3522_v5, %v13267_v7  ;;  %v10586_v29 = vld [vmem:[%s15645_s4 + $0x98] sm:$0xff]  }
 0x3d3   : > { %9805 = vmatprep.mubr.msk.bf16.mxu1 %vm10885_vm0, %v15690_v24  ;;  %9957 = vmatprep.mubr.msk.bf16.mxu0 %vm10885_vm0, %v15690_v24  ;;  %v4399_v7 = vmul.f32 %v4208_v11, %v4105_v14 }
 0x3d4   : > { %v4106_v33 = vmax.f32 %v4064_v36, 0.0  ;;  %v3692_v57 = vpop.f32.mrb[116].mxu0  ;;  %9870 = vmatpush3.bf16.msra.mxu1 %v10581_v58  ;;  %10097 = vmatprep.subr.bf16.mxu0 %v15690_v24  ;;  %v3385_v10 = vpop.f32.mrb[116].mxu1  ;;  %v4065_v54 = vadd.f32 %v13309_v32, %v4016_v42 }
 0x3d5   : > { %v3898_v47 = vrot.slane %v3692_v57, 2  ;;  %v9715_v62 = vpop.f32.mrb[117].mxu0  ;;  %9871 = vmatprep.subr.bf16.mxu1 %v15690_v24  ;;  %10098 = vmatpush3.bf16.msra.mxu0 %v10585_v6  ;;  %v3523_v18 = vrot.slane %v3385_v10, 1  ;;  %v9687_v40 = vpop.f32.mrb[117].mxu1 }
 0x3d6   : > { %v4400_v50 = vmul.f32 %v4213_v26, %v4106_v33  ;;  %v3695_v44 = vpop.f32.mrb[118].mxu0  ;;  %10099 = vmatprep.subr.bf16.mxu0 %v15690_v24  ;;  %v3388_v58 = vpop.f32.mrb[118].mxu1 }
 0x3d7   : > { %v3899_v0 = vsel %vm1526_vm3, %v3896_v13, %v3898_v47  ;;  %v3900_v49 = vrot.slane %v3695_v44, 2  ;;  %v9716_v15 = vpop.f32.mrb[119].mxu0  ;;  %v3524_v6 = vsel %vm1082_vm2, %v3521_v8, %v3523_v18  ;;  %v9688_v14 = vpop.f32.mrb[119].mxu1  ;;  %v4107_v13 = vmax.f32 %v4065_v54, 0.0 }
 0x3d8   : > { %v13405_v43 = vpack.c.bf16 %v4400_v50, %v4399_v7  ;;  %v4017_v36 = vadd.f32 %v3899_v0, %v13098_v41  ;;  %9872 = vmatpush3.bf16.msra.mxu1 %v10582_v19  ;;  %v13410_v42 = vadd.f32 %v3524_v6, %v13270_v56  ;;  %v4218_v41 = vpop.permute.xlu0 %4217  ;;  %v4223_v56 = vpop.permute.xlu1 %4222 }
 0x3d9   : > { %v3901_v11 = vsel %vm1526_vm3, %v3898_v47, %v3900_v49  ;;  %10100 = vmatpush3.bf16.msra.mxu0 %v10586_v29  ;;  %10017 = vmatprep.subr.bf16.mxu1 %v15690_v24  ;;  %v4401_v10 = vmul.f32 %v4218_v41, %v4107_v13 }
 0x3da   : > { %v4066_v5 = vadd.f32 %v13309_v32, %v4017_v36  ;;  %v4018_v26 = vadd.f32 %v3901_v11, %v13106_v2  ;;  %9806 = vmatmul.mubr.msk.bf16.gmra.mrb[132].mxu1 %vm4490_vm4, %v13405_v43  ;;  %9958 = vmatmul.mubr.msk.bf16.gmra.mrb[200].mxu0 %vm4490_vm4, %v13405_v43 }
 0x3db   : > { %9809 = vmatprep.mubr.msk.bf16.mxu1 %vm10885_vm0, %v15690_v24  ;;  %9961 = vmatprep.mubr.msk.bf16.mxu0 %vm10885_vm0, %v15690_v24 }
 0x3dc   : > { %v4108_v8 = vmax.f32 %v4066_v5, 0.0  ;;  %v3700_v33 = vpop.f32.mrb[120].mxu0  ;;  %10245 = vmatprep.subr.bf16.mxu0 %v15690_v24  ;;  %v3392_v19 = vpop.f32.mrb[120].mxu1  ;;  %v4067_v62 = vadd.f32 %v13309_v32, %v4018_v26 }
 0x3dd   : > { %v3902_v57 = vrot.slane %v3700_v33, 2  ;;  %v9719_v2 = vpop.f32.mrb[121].mxu0  ;;  %v9691_v7 = vpop.f32.mrb[121].mxu1 }
 0x3de   : > { %v4402_v47 = vmul.f32 %v4223_v56, %v4108_v8  ;;  %v3703_v29 = vpop.f32.mrb[122].mxu0  ;;  %v3394_v44 = vpop.f32.mrb[122].mxu1  ;;  %v4109_v6 = vmax.f32 %v4067_v62, 0.0 }
 0x3df   : > { %v3903_v50 = vsel %vm1526_vm3, %v3900_v49, %v3902_v57  ;;  %v3904_v54 = vrot.slane %v3703_v29, 2  ;;  %v9720_v18 = vpop.f32.mrb[123].mxu0  ;;  %v9692_v15 = vpop.f32.mrb[123].mxu1 }
 0x3e0   : > { %v13427_v40 = vpack.c.bf16 %v4402_v47, %v4401_v10  ;;  %v4019_v0 = vadd.f32 %v3903_v50, %v13116_v51  ;;  %v4228_v51 = vpop.permute.xlu0 %4227  ;;  %v4233_v13 = vpop.permute.xlu1 %4232 }
 0x3e1   : > { %v3905_v58 = vsel %vm1526_vm3, %v3902_v57, %v3904_v54  ;;  %v4403_v41 = vmul.f32 %v4228_v51, %v4109_v6 }
 0x3e2   : > { %v4068_v36 = vadd.f32 %v13309_v32, %v4019_v0  ;;  %v4020_v14 = vadd.f32 %v3905_v58, %v13124_v34  ;;  %9810 = vmatmul.mubr.msk.bf16.gmra.mrb[136].mxu1 %vm4490_vm4, %v13427_v40  ;;  %9962 = vmatmul.mubr.msk.bf16.gmra.mrb[204].mxu0 %vm4490_vm4, %v13427_v40 }
 0x3e3   : > { %9813 = vmatprep.mubr.msk.bf16.mxu1 %vm10885_vm0, %v15690_v24  ;;  %9965 = vmatprep.mubr.msk.bf16.mxu0 %vm10885_vm0, %v15690_v24 }
 0x3e4   : > { %v4110_v49 = vmax.f32 %v4068_v36, 0.0  ;;  %v3708_v11 = vpop.f32.mrb[124].mxu0  ;;  %v4069_v56 = vadd.f32 %v13309_v32, %v4020_v14  ;;  %v4243_v18 = vpop.permute.xlu1 %4242 }
 0x3e5   : > { %v3906_v5 = vrot.slane %v3708_v11, 2  ;;  %v9723_v26 = vpop.f32.mrb[125].mxu0 }
 0x3e6   : > { %v4404_v34 = vmul.f32 %v4233_v13, %v4110_v49  ;;  %v3711_v8 = vpop.f32.mrb[126].mxu0  ;;  %v4111_v62 = vmax.f32 %v4069_v56, 0.0 }
 0x3e7   : > { %v3907_v33 = vsel %vm1526_vm3, %v3904_v54, %v3906_v5  ;;  %v3908_v57 = vrot.slane %v3711_v8, 2  ;;  %v9724_v2 = vpop.f32.mrb[127].mxu0 }
 0x3e8   : > { %v13443_v19 = vpack.c.bf16 %v4404_v34, %v4403_v41  ;;  %v4021_v10 = vadd.f32 %v3907_v33, %v13134_v37  ;;  %v4238_v37 = vpop.permute.xlu0 %4237  ;;  %v4253_v8 = vpop.permute.xlu1 %4252 }
 0x3e9   : > { %v3909_v47 = vsel %vm1526_vm3, %v3906_v5, %v3908_v57  ;;  %v4405_v15 = vmul.f32 %v4238_v37, %v4111_v62 }
 0x3ea   : > { %v4070_v29 = vadd.f32 %v13309_v32, %v4021_v10  ;;  %v4022_v7 = vadd.f32 %v3909_v47, %v13142_v31  ;;  %9814 = vmatmul.mubr.msk.bf16.gmra.mrb[140].mxu1 %vm4490_vm4, %v13443_v19  ;;  %9966 = vmatmul.mubr.msk.bf16.gmra.mrb[208].mxu0 %vm4490_vm4, %v13443_v19 }
 0x3eb   : > { %9817 = vmatprep.mubr.msk.bf16.mxu1 %vm10885_vm0, %v15690_v24  ;;  %9969 = vmatprep.mubr.msk.bf16.mxu0 %vm10885_vm0, %v15690_v24 }
 0x3ec   : > { %v4112_v50 = vmax.f32 %v4070_v29, 0.0  ;;  %v3716_v54 = vpop.f32.mrb[128].mxu0  ;;  %v4071_v58 = vadd.f32 %v13309_v32, %v4022_v7 }
 0x3ed   : > { %v3910_v44 = vrot.slane %v3716_v54, 2  ;;  %v9727_v0 = vpop.f32.mrb[129].mxu0 }
 0x3ee   : > { %v4406_v31 = vmul.f32 %v4243_v18, %v4112_v50  ;;  %v3719_v6 = vpop.f32.mrb[130].mxu0  ;;  %v4113_v5 = vmax.f32 %v4071_v58, 0.0  ;;  %v4263_v58 = vpop.permute.xlu1 %4262 }
 0x3ef   : > { %v3911_v36 = vsel %vm1526_vm3, %v3908_v57, %v3910_v44  ;;  %v3912_v14 = vrot.slane %v3719_v6, 2  ;;  %v9728_v51 = vpop.f32.mrb[131].mxu0 }
 0x3f0   : > { %v13459_v49 = vpack.c.bf16 %v4406_v31, %v4405_v15  ;;  %v4023_v11 = vadd.f32 %v3911_v36, %v13152_v48  ;;  %v4248_v48 = vpop.permute.xlu0 %4247 }
 0x3f1   : > { %v3913_v13 = vsel %vm1526_vm3, %v3910_v44, %v3912_v14  ;;  %v4407_v2 = vmul.f32 %v4248_v48, %v4113_v5 }
 0x3f2   : > { %15766 = vst [vmem:[#allocation9_spill] sm:$0xff] %v13459_v49  ;;  %v4072_v26 = vadd.f32 %v13309_v32, %v4023_v11  ;;  %v4024_v41 = vadd.f32 %v3913_v13, %v13160_v27  ;;  %9818 = vmatmul.mubr.msk.bf16.gmra.mrb[144].mxu1 %vm4490_vm4, %v13459_v49  ;;  %9970 = vmatmul.mubr.msk.bf16.gmra.mrb[212].mxu0 %vm4490_vm4, %v13459_v49 }
 0x3f3   : > { %9821 = vmatprep.mubr.msk.bf16.mxu1 %vm10885_vm0, %v15690_v24  ;;  %9973 = vmatprep.mubr.msk.bf16.mxu0 %vm10885_vm0, %v15690_v24 }
 0x3f4   : > { %v4114_v34 = vmax.f32 %v4072_v26, 0.0  ;;  %v3724_v56 = vpop.f32.mrb[132].mxu0  ;;  %v4073_v10 = vadd.f32 %v13309_v32, %v4024_v41 }
 0x3f5   : > { %v3914_v33 = vrot.slane %v3724_v56, 2  ;;  %v9731_v57 = vpop.f32.mrb[133].mxu0 }
 0x3f6   : > { %v4408_v27 = vmul.f32 %v4253_v8, %v4114_v34  ;;  %v3727_v47 = vpop.f32.mrb[134].mxu0  ;;  %v4115_v18 = vmax.f32 %v4073_v10, 0.0 }
 0x3f7   : > { %v3915_v62 = vsel %vm1526_vm3, %v3912_v14, %v3914_v33  ;;  %v3916_v29 = vrot.slane %v3727_v47, 2  ;;  %v9732_v7 = vpop.f32.mrb[135].mxu0 }
 0x3f8   : > { %v13475_v37 = vpack.c.bf16 %v4408_v27, %v4407_v2  ;;  %v4025_v50 = vadd.f32 %v3915_v62, %v13170_v23  ;;  %v4258_v23 = vpop.permute.xlu0 %4257  ;;  %v4273_v27 = vpop.permute.xlu1 %4272 }
 0x3f9   : > { %v3917_v54 = vsel %vm1526_vm3, %v3914_v33, %v3916_v29  ;;  %v4409_v14 = vmul.f32 %v4258_v23, %v4115_v18 }
 0x3fa   : > { %15767 = vst [vmem:[#allocation8_spill] sm:$0xff] %v13475_v37  ;;  %v4074_v44 = vadd.f32 %v13309_v32, %v4025_v50  ;;  %v4026_v0 = vadd.f32 %v3917_v54, %v13178_v4  ;;  %9822 = vmatmul.mubr.msk.bf16.gmra.mrb[148].mxu1 %vm4490_vm4, %v13475_v37  ;;  %9974 = vmatmul.mubr.msk.bf16.gmra.mrb[216].mxu0 %vm4490_vm4, %v13475_v37 }
 0x3fb   : > { %9825 = vmatprep.mubr.msk.bf16.mxu1 %vm10885_vm0, %v15690_v24  ;;  %9977 = vmatprep.mubr.msk.bf16.mxu0 %vm10885_vm0, %v15690_v24 }
 0x3fc   : > { %v4116_v15 = vmax.f32 %v4074_v44, 0.0  ;;  %v3732_v31 = vpop.f32.mrb[136].mxu0  ;;  %v4075_v51 = vadd.f32 %v13309_v32, %v4026_v0 }
 0x3fd   : > { %v3918_v6 = vrot.slane %v3732_v31, 2  ;;  %v9735_v36 = vpop.f32.mrb[137].mxu0 }
 0x3fe   : > { %v4410_v4 = vmul.f32 %v4263_v58, %v4116_v15  ;;  %v3735_v11 = vpop.f32.mrb[138].mxu0  ;;  %v4117_v56 = vmax.f32 %v4075_v51, 0.0 }
 0x3ff   : > { %v3919_v13 = vsel %vm1526_vm3, %v3916_v29, %v3918_v6  ;;  %v3920_v5 = vrot.slane %v3735_v11, 2  ;;  %v9736_v26 = vpop.f32.mrb[139].mxu0 }
 0x400   : > { %v13491_v41 = vpack.c.bf16 %v4410_v4, %v4409_v14  ;;  %v4027_v48 = vadd.f32 %v3919_v13, %v13188_v9  ;;  %v4268_v9 = vpop.permute.xlu0 %4267  ;;  %v4283_v14 = vpop.permute.xlu1 %4282 }
 0x401   : > { %v3921_v34 = vsel %vm1526_vm3, %v3918_v6, %v3920_v5  ;;  %v4411_v62 = vmul.f32 %v4268_v9, %v4117_v56 }
 0x402   : > { %15768 = vst [vmem:[#allocation7_spill] sm:$0xff] %v13491_v41  ;;  %v4076_v8 = vadd.f32 %v13309_v32, %v4027_v48  ;;  %v4028_v33 = vadd.f32 %v3921_v34, %v13196_v20  ;;  %9826 = vmatmul.mubr.msk.bf16.gmra.mrb[152].mxu1 %vm4490_vm4, %v13491_v41  ;;  %9978 = vmatmul.mubr.msk.bf16.gmra.mrb[220].mxu0 %vm4490_vm4, %v13491_v41 }
 0x403   : > { %9829 = vmatprep.mubr.msk.bf16.mxu1 %vm10885_vm0, %v15690_v24  ;;  %9981 = vmatprep.mubr.msk.bf16.mxu0 %vm10885_vm0, %v15690_v24 }
 0x404   : > { %v4118_v57 = vmax.f32 %v4076_v8, 0.0  ;;  %v3740_v2 = vpop.f32.mrb[140].mxu0  ;;  %v4077_v29 = vadd.f32 %v13309_v32, %v4028_v33 }
 0x405   : > { %v3922_v10 = vrot.slane %v3740_v2, 2  ;;  %v9739_v47 = vpop.f32.mrb[141].mxu0 }
 0x406   : > { %v4412_v20 = vmul.f32 %v4273_v27, %v4118_v57  ;;  %v3743_v7 = vpop.f32.mrb[142].mxu0  ;;  %v4119_v15 = vmax.f32 %v4077_v29, 0.0  ;;  %v4293_v47 = vpop.permute.xlu1 %4292 }
 0x407   : > { %v3923_v50 = vsel %vm1526_vm3, %v3920_v5, %v3922_v10  ;;  %v3924_v54 = vrot.slane %v3743_v7, 2  ;;  %v9740_v18 = vpop.f32.mrb[143].mxu0 }
 0x408   : > { %v13507_v44 = vpack.c.bf16 %v4412_v20, %v4411_v62  ;;  %v4029_v0 = vadd.f32 %v3923_v50, %v13206_v45  ;;  %v4278_v45 = vpop.permute.xlu0 %4277 }
 0x409   : > { %v3925_v23 = vsel %vm1526_vm3, %v3922_v10, %v3924_v54  ;;  %v4413_v11 = vmul.f32 %v4278_v45, %v4119_v15 }
 0x40a   : > { %15769 = vst [vmem:[#allocation10_spill] sm:$0xff] %v13507_v44  ;;  %v4078_v31 = vadd.f32 %v13309_v32, %v4029_v0  ;;  %v4030_v58 = vadd.f32 %v3925_v23, %v13214_v52  ;;  %9830 = vmatmul.mubr.msk.bf16.gmra.mrb[156].mxu1 %vm4490_vm4, %v13507_v44  ;;  %9982 = vmatmul.mubr.msk.bf16.gmra.mrb[224].mxu0 %vm4490_vm4, %v13507_v44 }
 0x40b   : > { %9833 = vmatprep.mubr.msk.bf16.mxu1 %vm10885_vm0, %v15690_v24  ;;  %9985 = vmatprep.mubr.msk.bf16.mxu0 %vm10885_vm0, %v15690_v24 }
 0x40c   : > { %v4120_v6 = vmax.f32 %v4078_v31, 0.0  ;;  %v3748_v36 = vpop.f32.mrb[144].mxu0  ;;  %v4079_v13 = vadd.f32 %v13309_v32, %v4030_v58 }
 0x40d   : > { %v3926_v4 = vrot.slane %v3748_v36, 2  ;;  %v9743_v51 = vpop.f32.mrb[145].mxu0 }
 0x40e   : > { %v4414_v52 = vmul.f32 %v4283_v14, %v4120_v6  ;;  %v3751_v5 = vpop.f32.mrb[146].mxu0  ;;  %v4121_v9 = vmax.f32 %v4079_v13, 0.0 }
 0x40f   : > { %v3927_v26 = vsel %vm1526_vm3, %v3924_v54, %v3926_v4  ;;  %v3928_v48 = vrot.slane %v3751_v5, 2  ;;  %v9744_v34 = vpop.f32.mrb[147].mxu0 }
 0x410   : > { %v13523_v56 = vpack.c.bf16 %v4414_v52, %v4413_v11  ;;  %v4031_v8 = vadd.f32 %v3927_v26, %v13224_v53  ;;  %v4288_v53 = vpop.permute.xlu0 %4287 }
 0x411   : > { %v3929_v33 = vsel %vm1526_vm3, %v3926_v4, %v3928_v48  ;;  %v4415_v29 = vmul.f32 %v4288_v53, %v4121_v9  ;;  %v4303_v4 = vpop.permute.xlu1 %4302 }
 0x412   : > { %15770 = vst [vmem:[#allocation11_spill] sm:$0xff] %v13523_v56  ;;  %v4080_v57 = vadd.f32 %v13309_v32, %v4031_v8  ;;  %v4032_v2 = vadd.f32 %v3929_v33, %v13232_v22  ;;  %9834 = vmatmul.mubr.msk.bf16.gmra.mrb[160].mxu1 %vm4490_vm4, %v13523_v56  ;;  %9986 = vmatmul.mubr.msk.bf16.gmra.mrb[228].mxu0 %vm4490_vm4, %v13523_v56 }
 0x413   : > { %9837 = vmatprep.mubr.msk.bf16.mxu1 %vm10885_vm0, %v15690_v24  ;;  %9989 = vmatprep.mubr.msk.bf16.mxu0 %vm10885_vm0, %v15690_v24 }
 0x414   : > { %v4122_v27 = vmax.f32 %v4080_v57, 0.0  ;;  %v3756_v10 = vpop.f32.mrb[148].mxu0  ;;  %v4081_v7 = vadd.f32 %v13309_v32, %v4032_v2 }
 0x415   : > { %v3930_v62 = vrot.slane %v3756_v10, 2  ;;  %v9747_v20 = vpop.f32.mrb[149].mxu0 }
 0x416   : > { %v4416_v22 = vmul.f32 %v4293_v47, %v4122_v27  ;;  %v3759_v50 = vpop.f32.mrb[150].mxu0  ;;  %v4123_v58 = vmax.f32 %v4081_v7, 0.0  ;;  %v4313_v47 = vpop.permute.xlu1 %4312 }
 0x417   : > { %v3931_v54 = vsel %vm1526_vm3, %v3928_v48, %v3930_v62  ;;  %v3932_v18 = vrot.slane %v3759_v50, 2  ;;  %v9748_v0 = vpop.f32.mrb[151].mxu0 }
 0x418   : > { %v13539_v23 = vpack.c.bf16 %v4416_v22, %v4415_v29  ;;  %v4033_v15 = vadd.f32 %v3931_v54, %v13242_v46  ;;  %v4298_v46 = vpop.permute.xlu0 %4297 }
 0x419   : > { %v3933_v31 = vsel %vm1526_vm3, %v3930_v62, %v3932_v18  ;;  %v4417_v52 = vmul.f32 %v4298_v46, %v4123_v58 }
 0x41a   : > { %15771 = vst [vmem:[#allocation12_spill] sm:$0xff] %v13539_v23  ;;  %v4082_v45 = vadd.f32 %v13309_v32, %v4033_v15  ;;  %v4034_v6 = vadd.f32 %v3933_v31, %v13250_v21  ;;  %9838 = vmatmul.mubr.msk.bf16.gmra.mrb[164].mxu1 %vm4490_vm4, %v13539_v23  ;;  %9990 = vmatmul.mubr.msk.bf16.gmra.mrb[232].mxu0 %vm4490_vm4, %v13539_v23 }
 0x41b   : > { %9841 = vmatprep.mubr.msk.bf16.mxu1 %vm10885_vm0, %v15690_v24  ;;  %9993 = vmatprep.mubr.msk.bf16.mxu0 %vm10885_vm0, %v15690_v24 }
 0x41c   : > { %v4124_v36 = vmax.f32 %v4082_v45, 0.0  ;;  %v3764_v14 = vpop.f32.mrb[152].mxu0  ;;  %v4083_v13 = vadd.f32 %v13309_v32, %v4034_v6 }
 0x41d   : > { %v3934_v51 = vrot.slane %v3764_v14, 2  ;;  %v9751_v11 = vpop.f32.mrb[153].mxu0  ;;  %v4323_v14 = vpop.permute.xlu1 %4322 }
 0x41e   : > { %v4418_v21 = vmul.f32 %v4303_v4, %v4124_v36  ;;  %v3767_v5 = vpop.f32.mrb[154].mxu0  ;;  %v4125_v57 = vmax.f32 %v4083_v13, 0.0 }
 0x41f   : > { %v3935_v26 = vsel %vm1526_vm3, %v3932_v18, %v3934_v51  ;;  %v3936_v48 = vrot.slane %v3767_v5, 2  ;;  %v9752_v34 = vpop.f32.mrb[155].mxu0 }
 0x420   : > { %v13555_v8 = vpack.c.bf16 %v4418_v21, %v4417_v52  ;;  %v4035_v33 = vadd.f32 %v3935_v26, %v13260_v17  ;;  %v4308_v17 = vpop.permute.xlu0 %4307 }
 0x421   : > { %v3937_v9 = vsel %vm1526_vm3, %v3934_v51, %v3936_v48  ;;  %v4419_v29 = vmul.f32 %v4308_v17, %v4125_v57 }
 0x422   : > { %15772 = vst [vmem:[#allocation14_spill] sm:$0xff] %v13555_v8  ;;  %v4084_v2 = vadd.f32 %v13309_v32, %v4035_v33  ;;  %v4036_v53 = vadd.f32 %v3937_v9, %v13264_v35  ;;  %9842 = vmatmul.mubr.msk.bf16.gmra.mrb[168].mxu1 %vm4490_vm4, %v13555_v8  ;;  %9994 = vmatmul.mubr.msk.bf16.gmra.mrb[236].mxu0 %vm4490_vm4, %v13555_v8 }
 0x423   : > { %9845 = vmatprep.mubr.msk.bf16.mxu1 %vm10885_vm0, %v15690_v24  ;;  %9997 = vmatprep.mubr.msk.bf16.mxu0 %vm10885_vm0, %v15690_v24 }
 0x424   : > { %v4126_v27 = vmax.f32 %v4084_v2, 0.0  ;;  %v3772_v10 = vpop.f32.mrb[156].mxu0  ;;  %v4085_v22 = vadd.f32 %v13309_v32, %v4036_v53 }
 0x425   : > { %v3938_v62 = vrot.slane %v3772_v10, 2  ;;  %v9755_v20 = vpop.f32.mrb[157].mxu0 }
 0x426   : > { %v4420_v35 = vmul.f32 %v4313_v47, %v4126_v27  ;;  %v3775_v7 = vpop.f32.mrb[158].mxu0  ;;  %v4127_v58 = vmax.f32 %v4085_v22, 0.0  ;;  %v4333_v27 = vpop.permute.xlu1 %4332 }
 0x427   : > { %v3939_v50 = vsel %vm1526_vm3, %v3936_v48, %v3938_v62  ;;  %v3940_v54 = vrot.slane %v3775_v7, 2  ;;  %v9756_v18 = vpop.f32.mrb[159].mxu0 }
 0x428   : > { %v13571_v0 = vpack.c.bf16 %v4420_v35, %v4419_v29  ;;  %v4037_v15 = vadd.f32 %v3939_v50, %v13274_v30  ;;  %v4318_v30 = vpop.permute.xlu0 %4317 }
 0x429   : > { %v3941_v31 = vsel %vm1526_vm3, %v3938_v62, %v3940_v54  ;;  %v4421_v11 = vmul.f32 %v4318_v30, %v4127_v58 }
 0x42a   : > { %15773 = vst [vmem:[#allocation13_spill] sm:$0xff] %v13571_v0  ;;  %v4086_v45 = vadd.f32 %v13309_v32, %v4037_v15  ;;  %v4038_v6 = vadd.f32 %v3941_v31, %v13278_v28  ;;  %9846 = vmatmul.mubr.msk.bf16.gmra.mrb[172].mxu1 %vm4490_vm4, %v13571_v0  ;;  %9998 = vmatmul.mubr.msk.bf16.gmra.mrb[240].mxu0 %vm4490_vm4, %v13571_v0  ;;  %v4343_v30 = vpop.permute.xlu1 %4342 }
 0x42b   : > { %9849 = vmatprep.mubr.msk.bf16.mxu1 %vm10885_vm0, %v15690_v24  ;;  %10001 = vmatprep.mubr.msk.bf16.mxu0 %vm10885_vm0, %v15690_v24 }
 0x42c   : > { %v4128_v46 = vmax.f32 %v4086_v45, 0.0  ;;  %v3780_v36 = vpop.f32.mrb[160].mxu0  ;;  %v4087_v52 = vadd.f32 %v13309_v32, %v4038_v6 }
 0x42d   : > { %v3942_v4 = vrot.slane %v3780_v36, 2  ;;  %v9759_v51 = vpop.f32.mrb[161].mxu0 }
 0x42e   : > { %v4422_v28 = vmul.f32 %v4323_v14, %v4128_v46  ;;  %v3783_v21 = vpop.f32.mrb[162].mxu0  ;;  %v4129_v9 = vmax.f32 %v4087_v52, 0.0 }
 0x42f   : > { %v3943_v13 = vsel %vm1526_vm3, %v3940_v54, %v3942_v4  ;;  %v3944_v5 = vrot.slane %v3783_v21, 2  ;;  %v9760_v26 = vpop.f32.mrb[163].mxu0 }
 0x430   : > { %v13587_v48 = vpack.c.bf16 %v4422_v28, %v4421_v11  ;;  %v4039_v34 = vadd.f32 %v3943_v13, %v13282_v63  ;;  %v4328_v63 = vpop.permute.xlu0 %4327 }
 0x431   : > { %v3945_v33 = vsel %vm1526_vm3, %v3942_v4, %v3944_v5  ;;  %v4423_v62 = vmul.f32 %v4328_v63, %v4129_v9  ;;  %v4353_v63 = vpop.permute.xlu1 %4352 }
 0x432   : > { %v4088_v57 = vadd.f32 %v13309_v32, %v4039_v34  ;;  %v4040_v2 = vadd.f32 %v3945_v33, %v13286_v12  ;;  %9850 = vmatmul.mubr.msk.bf16.gmra.mrb[176].mxu1 %vm4490_vm4, %v13587_v48  ;;  %10002 = vmatmul.mubr.msk.bf16.gmra.mrb[244].mxu0 %vm4490_vm4, %v13587_v48  ;;  %v15774_v33 = vld [vmem:[#allocation6_spill] sm:$0xff] }
 0x433   : > { %9853 = vmatprep.mubr.msk.bf16.mxu1 %vm10885_vm0, %v15690_v24  ;;  %10005 = vmatprep.mubr.msk.bf16.mxu0 %vm10885_vm0, %v15690_v24 }
 0x434   : > { %v4130_v53 = vmax.f32 %v4088_v57, 0.0  ;;  %v3788_v17 = vpop.f32.mrb[164].mxu0  ;;  %v4089_v20 = vadd.f32 %v13309_v32, %v4040_v2 }
 0x435   : > { %v3946_v10 = vrot.slane %v3788_v17, 2  ;;  %v9763_v47 = vpop.f32.mrb[165].mxu0 }
 0x436   : > { %v4424_v12 = vmul.f32 %v4333_v27, %v4130_v53  ;;  %v3791_v29 = vpop.f32.mrb[166].mxu0  ;;  %v4131_v15 = vmax.f32 %v4089_v20, 0.0 }
 0x437   : > { %v3947_v35 = vsel %vm1526_vm3, %v3944_v5, %v3946_v10  ;;  %v3948_v22 = vrot.slane %v3791_v29, 2  ;;  %v9764_v7 = vpop.f32.mrb[167].mxu0 }
 0x438   : > { %v13603_v50 = vpack.c.bf16 %v4424_v12, %v4423_v62  ;;  %v4041_v54 = vadd.f32 %v3947_v35, %v13290_v59  ;;  %v4338_v59 = vpop.permute.xlu0 %4337 }
 0x439   : > { %v3949_v18 = vsel %vm1526_vm3, %v3946_v10, %v3948_v22  ;;  %v4425_v14 = vmul.f32 %v4338_v59, %v4131_v15 }
 0x43a   : > { %v4090_v31 = vadd.f32 %v13309_v32, %v4041_v54  ;;  %v4042_v58 = vadd.f32 %v3949_v18, %v13294_v61  ;;  %9854 = vmatmul.mubr.msk.bf16.gmra.mrb[180].mxu1 %vm4490_vm4, %v13603_v50  ;;  %10006 = vmatmul.mubr.msk.bf16.gmra.mrb[248].mxu0 %vm4490_vm4, %v13603_v50 }
 0x43b   : > { %9857 = vmatprep.mubr.msk.bf16.mxu1 %vm10885_vm0, %v15690_v24  ;;  %10009 = vmatprep.mubr.msk.bf16.mxu0 %vm10885_vm0, %v15690_v24 }
 0x43c   : > { %v4132_v45 = vmax.f32 %v4090_v31, 0.0  ;;  %v3796_v6 = vpop.f32.mrb[168].mxu0  ;;  %v4091_v4 = vadd.f32 %v13309_v32, %v4042_v58 }
 0x43d   : > { %v3950_v46 = vrot.slane %v3796_v6, 2  ;;  %v9767_v36 = vpop.f32.mrb[169].mxu0  ;;  %v4363_v6 = vpop.permute.xlu1 %4362 }
 0x43e   : > { %v4426_v61 = vmul.f32 %v4343_v30, %v4132_v45  ;;  %v3799_v51 = vpop.f32.mrb[170].mxu0  ;;  %v4133_v26 = vmax.f32 %v4091_v4, 0.0 }
 0x43f   : > { %v3951_v11 = vsel %vm1526_vm3, %v3948_v22, %v3950_v46  ;;  %v3952_v28 = vrot.slane %v3799_v51, 2  ;;  %v9768_v52 = vpop.f32.mrb[171].mxu0  ;;  %v15775_v22 = vld [vmem:[#allocation5_spill] sm:$0xff] }
 0x440   : > { %v13619_v21 = vpack.c.bf16 %v4426_v61, %v4425_v14  ;;  %v4043_v13 = vadd.f32 %v3951_v11, %v13298_v38  ;;  %v4348_v38 = vpop.permute.xlu0 %4347  ;;  %v10587_v11 = vld [vmem:[%s15645_s4 + $0x60] sm:$0xff]  }
 0x441   : > { %v3953_v5 = vsel %vm1526_vm3, %v3950_v46, %v3952_v28  ;;  %v4427_v27 = vmul.f32 %v4348_v38, %v4133_v26  ;;  %v10591_v26 = vld [vmem:[%s15645_s4 + $0xc0] sm:$0xff]  }
 0x442   : > { %v4092_v34 = vadd.f32 %v13309_v32, %v4043_v13  ;;  %v4044_v9 = vadd.f32 %v3953_v5, %v15774_v33  ;;  %9858 = vmatmul.mubr.msk.bf16.gmra.mrb[184].mxu1 %vm4490_vm4, %v13619_v21  ;;  %10010 = vmatmul.mubr.msk.bf16.gmra.mrb[252].mxu0 %vm4490_vm4, %v13619_v21 }
 0x443   : > { %9861 = vmatprep.mubr.msk.bf16.mxu1 %vm10885_vm0, %v15690_v24  ;;  %10013 = vmatprep.mubr.msk.bf16.mxu0 %vm10885_vm0, %v15690_v24 }
 0x444   : > { %v4134_v57 = vmax.f32 %v4092_v34, 0.0  ;;  %v3804_v2 = vpop.f32.mrb[172].mxu0  ;;  %v4093_v47 = vadd.f32 %v13309_v32, %v4044_v9  ;;  %v4358_v58 = vpop.permute.xlu0 %4357 }
 0x445   : > { %v3954_v53 = vrot.slane %v3804_v2, 2  ;;  %v9771_v17 = vpop.f32.mrb[173].mxu0 }
 0x446   : > { %v4428_v10 = vmul.f32 %v4353_v63, %v4134_v57  ;;  %v3807_v62 = vpop.f32.mrb[174].mxu0  ;;  %v4135_v18 = vmax.f32 %v4093_v47, 0.0 }
 0x447   : > { %v3955_v12 = vsel %vm1526_vm3, %v3952_v28, %v3954_v53  ;;  %v3956_v20 = vrot.slane %v3807_v62, 2  ;;  %v9772_v29 = vpop.f32.mrb[175].mxu0 }
 0x448   : > { %v13635_v35 = vpack.c.bf16 %v4428_v10, %v4427_v27  ;;  %v4045_v7 = vadd.f32 %v3955_v12, %v15775_v22  ;;  %v4429_v36 = vmul.f32 %v4358_v58, %v4135_v18  ;;  %v4368_v38 = vpop.permute.xlu0 %4367 }
 0x449   : > { %v3957_v54 = vsel %vm1526_vm3, %v3954_v53, %v3956_v20  ;;  %v10592_v53 = vld [vmem:[%s15645_s4 + $0xc8] sm:$0xff]  }
 0x44a   : > { %v4094_v15 = vadd.f32 %v13309_v32, %v4045_v7  ;;  %v4046_v31 = vadd.f32 %v3957_v54, %v13323_v1  ;;  %9862 = vmatmul.mubr.msk.bf16.gmra.mrb[188].mxu1 %vm4490_vm4, %v13635_v35  ;;  %10014 = vmatmul.mubr.msk.bf16.gmra.mrb[0].mxu0 %vm4490_vm4, %v13635_v35  ;;  %v10589_v7 = vld [vmem:[%s15645_s4 + $0x70] sm:$0xff]  }
 0x44b   : > { %9873 = vmatprep.mubr.msk.bf16.mxu1 %vm10885_vm0, %v15690_v24  ;;  %10101 = vmatprep.mubr.msk.bf16.mxu0 %vm10885_vm0, %v15690_v24  ;;  %v10593_v54 = vld [vmem:[%s15645_s4 + $0xd0] sm:$0xff]  }
 0x44c   : > { %v4136_v59 = vmax.f32 %v4094_v15, 0.0  ;;  %v3812_v45 = vpop.f32.mrb[176].mxu0  ;;  %v4095_v14 = vadd.f32 %v13309_v32, %v4046_v31  ;;  %v10842_v15 = vld [vmem:[%s15644_s3] ss:$0 sm:$0xff]  ;;  %v4378_v58 = vpop.permute.xlu0 %4377 }
 0x44d   : > { %v3958_v30 = vrot.slane %v3812_v45, 2  ;;  %v9775_v46 = vpop.f32.mrb[177].mxu0 }
 0x44e   : > { %v4430_v1 = vmul.f32 %v4363_v6, %v4136_v59  ;;  %v3815_v61 = vpop.f32.mrb[178].mxu0  ;;  %v4137_v34 = vmax.f32 %v4095_v14, 0.0  ;;  %v10594_v46 = vld [vmem:[%s15645_s4 + $0xd8] sm:$0xff]  }
 0x44f   : > { %v3959_v4 = vsel %vm1526_vm3, %v3956_v20, %v3958_v30  ;;  %v3960_v51 = vrot.slane %v3815_v61, 2  ;;  %v9776_v28 = vpop.f32.mrb[179].mxu0 }
 0x450   : > { %v13654_v52 = vpack.c.bf16 %v4430_v1, %v4429_v36  ;;  %v4047_v13 = vadd.f32 %v3959_v4, %v13335_v60  ;;  %v10588_v60 = vld [vmem:[%s15645_s4 + $0x68] sm:$0xff]   ;;  %v4431_v17 = vmul.f32 %v4368_v38, %v4137_v34 }
 0x451   : > { %v3961_v5 = vsel %vm1526_vm3, %v3958_v30, %v3960_v51 }
 0x452   : > { %v4096_v33 = vadd.f32 %v13309_v32, %v4047_v13  ;;  %v4048_v9 = vadd.f32 %v3961_v5, %v13354_v55  ;;  %9874 = vmatmul.mubr.msk.bf16.vlgmr.msra.gmra.mrb[192].mxu1 %vm4490_vm4, %v13330_v16  ;;  %10102 = vmatmul.mubr.msk.bf16.vlgmr.msra.gmra.mrb[4].mxu0 %vm4490_vm4, %v13405_v43  ;;  %v4373_v16 = vpop.permute.xlu1 %4372 }
 0x453   : > { %10018 = vmatpush3.bf16.msra.mxu1 %v10587_v11  ;;  %9877 = vmatprep.mubr.msk.bf16.mxu1 %vm10885_vm0, %v15690_v24 }
 0x454   : > { %v4138_v57 = vmax.f32 %v4096_v33, 0.0  ;;  %v3820_v2 = vpop.f32.mrb[180].mxu0  ;;  %10105 = vmatprep.mubr.msk.bf16.mxu0 %vm10885_vm0, %v15690_v24  ;;  %10019 = vmatprep.subr.bf16.mxu1 %v15690_v24  ;;  %v4097_v10 = vadd.f32 %v13309_v32, %v4048_v9 }
 0x455   : > { %v3962_v55 = vrot.slane %v3820_v2, 2  ;;  %v9779_v63 = vpop.f32.mrb[181].mxu0  ;;  %10246 = vmatpush3.bf16.msra.mxu0 %v10591_v26  ;;  %v4388_v26 = vpop.permute.xlu0 %4387 }
 0x456   : > { %v4432_v27 = vmul.f32 %v4373_v16, %v4138_v57  ;;  %v3823_v47 = vpop.f32.mrb[182].mxu0  ;;  %10247 = vmatprep.subr.bf16.mxu0 %v15690_v24  ;;  %v4139_v18 = vmax.f32 %v4097_v10, 0.0 }
 0x457   : > { %v3963_v62 = vsel %vm1526_vm3, %v3960_v51, %v3962_v55  ;;  %v3964_v12 = vrot.slane %v3823_v47, 2  ;;  %v9780_v20 = vpop.f32.mrb[183].mxu0  ;;  %10020 = vmatpush3.bf16.msra.mxu1 %v10588_v60 }
 0x458   : > { %v13681_v29 = vpack.c.bf16 %v4432_v27, %v4431_v17  ;;  %v4049_v22 = vadd.f32 %v3963_v62, %v13374_v39  ;;  %10021 = vmatprep.subr.bf16.mxu1 %v15690_v24  ;;  %v4433_v36 = vmul.f32 %v4378_v58, %v4139_v18 }
 0x459   : > { %v3965_v32 = vsel %vm1526_vm3, %v3962_v55, %v3964_v12  ;;  %10248 = vmatpush3.bf16.msra.mxu0 %v10592_v53 }
 0x45a   : > { %v4098_v31 = vadd.f32 %v10842_v15, %v4049_v22  ;;  %v4050_v39 = vadd.f32 %v3965_v32, %v13392_v3  ;;  %9878 = vmatmul.mubr.msk.bf16.gmra.mrb[196].mxu1 %vm4490_vm4, %v13365_v25  ;;  %10106 = vmatmul.mubr.msk.bf16.gmra.mrb[8].mxu0 %vm4490_vm4, %v13427_v40  ;;  %v10590_v3 = vld [vmem:[%s15645_s4 + $0x78] sm:$0xff]   ;;  %v4383_v25 = vpop.permute.xlu1 %4382 }
 0x45b   : > { %9881 = vmatprep.mubr.msk.bf16.mxu1 %vm10885_vm0, %v15690_v24  ;;  %10109 = vmatprep.mubr.msk.bf16.mxu0 %vm10885_vm0, %v15690_v24 }
 0x45c   : > { %v4140_v59 = vmax.f32 %v4098_v31, 0.0  ;;  %v3828_v45 = vpop.f32.mrb[184].mxu0  ;;  %10022 = vmatpush3.bf16.msra.mxu1 %v10589_v7  ;;  %10249 = vmatprep.subr.bf16.mxu0 %v15690_v24  ;;  %v4099_v14 = vadd.f32 %v10842_v15, %v4050_v39 }
 0x45d   : > { %v3966_v6 = vrot.slane %v3828_v45, 2  ;;  %v9783_v30 = vpop.f32.mrb[185].mxu0  ;;  %10023 = vmatprep.subr.bf16.mxu1 %v15690_v24  ;;  %10250 = vmatpush3.bf16.msra.mxu0 %v10593_v54 }
 0x45e   : > { %v4434_v1 = vmul.f32 %v4383_v25, %v4140_v59  ;;  %v3831_v61 = vpop.f32.mrb[186].mxu0  ;;  %10251 = vmatprep.subr.bf16.mxu0 %v15690_v24  ;;  %v4141_v13 = vmax.f32 %v4099_v14, 0.0  ;;  %v4393_v33 = vpop.permute.xlu1 %4392 }
 0x45f   : > { %v3967_v4 = vsel %vm1526_vm3, %v3964_v12, %v3966_v6  ;;  %v9784_v51 = vpop.f32.mrb[187].mxu0 }
 0x460   : > { %v13714_v11 = vpack.c.bf16 %v4434_v1, %v4433_v36  ;;  %v4051_v28 = vadd.f32 %v3967_v4, %v13410_v42  ;;  %10024 = vmatpush3.bf16.msra.mxu1 %v10590_v3  ;;  %v4435_v60 = vmul.f32 %v4388_v26, %v4141_v13 }
 0x461   : > { %10252 = vmatpush3.bf16.msra.mxu0 %v10594_v46  ;;  %10169 = vmatprep.subr.bf16.mxu1 %v15690_v24 }
 0x462   : > { %v4100_v5 = vadd.f32 %v10842_v15, %v4051_v28  ;;  %9882 = vmatmul.mubr.msk.bf16.gmra.mrb[200].mxu1 %vm4490_vm4, %v13405_v43  ;;  %10110 = vmatmul.mubr.msk.bf16.gmra.mrb[12].mxu0 %vm4490_vm4, %v13443_v19 }
 0x463   : > { %9885 = vmatprep.mubr.msk.bf16.mxu1 %vm10885_vm0, %v15690_v24  ;;  %10113 = vmatprep.mubr.msk.bf16.mxu0 %vm10885_vm0, %v15690_v24 }
 0x464   : > { %v4142_v42 = vmax.f32 %v4100_v5, 0.0  ;;  %v3835_v34 = vpop.f32.mrb[188].mxu0  ;;  %10397 = vmatprep.subr.bf16.mxu0 %v15690_v24 }
 0x465   : > { %v9787_v9 = vpop.f32.mrb[189].mxu0 }
 0x466   : > { %v4436_v38 = vmul.f32 %v4393_v33, %v4142_v42  ;;  %v3837_v57 = vpop.f32.mrb[190].mxu0 }
 0x467   : > { %v9788_v2 = vpop.f32.mrb[191].mxu0 }
 0x468   : > { %v13727_v16 = vpack.c.bf16 %v4436_v38, %v4435_v60 }
 0x46a   : > { %9886 = vmatmul.mubr.msk.bf16.gmra.mrb[204].mxu1 %vm4490_vm4, %v13427_v40  ;;  %10114 = vmatmul.mubr.msk.bf16.gmra.mrb[16].mxu0 %vm4490_vm4, %v13459_v49 }
 0x46b   : > { %9889 = vmatprep.mubr.msk.bf16.mxu1 %vm10885_vm0, %v15690_v24  ;;  %10117 = vmatprep.mubr.msk.bf16.mxu0 %vm10885_vm0, %v15690_v24 }
 0x472   : > { %9890 = vmatmul.mubr.msk.bf16.gmra.mrb[208].mxu1 %vm4490_vm4, %v13443_v19  ;;  %10118 = vmatmul.mubr.msk.bf16.gmra.mrb[20].mxu0 %vm4490_vm4, %v13475_v37 }
 0x473   : > { %9893 = vmatprep.mubr.msk.bf16.mxu1 %vm10885_vm0, %v15690_v24  ;;  %10121 = vmatprep.mubr.msk.bf16.mxu0 %vm10885_vm0, %v15690_v24 }
 0x47a   : > { %9894 = vmatmul.mubr.msk.bf16.gmra.mrb[212].mxu1 %vm4490_vm4, %v13459_v49  ;;  %10122 = vmatmul.mubr.msk.bf16.gmra.mrb[24].mxu0 %vm4490_vm4, %v13491_v41 }
 0x47b   : > { %9897 = vmatprep.mubr.msk.bf16.mxu1 %vm10885_vm0, %v15690_v24  ;;  %10125 = vmatprep.mubr.msk.bf16.mxu0 %vm10885_vm0, %v15690_v24 }
 0x482   : > { %9898 = vmatmul.mubr.msk.bf16.gmra.mrb[216].mxu1 %vm4490_vm4, %v13475_v37  ;;  %10126 = vmatmul.mubr.msk.bf16.gmra.mrb[28].mxu0 %vm4490_vm4, %v13507_v44 }
 0x483   : > { %9901 = vmatprep.mubr.msk.bf16.mxu1 %vm10885_vm0, %v15690_v24  ;;  %10129 = vmatprep.mubr.msk.bf16.mxu0 %vm10885_vm0, %v15690_v24 }
 0x48a   : > { %9902 = vmatmul.mubr.msk.bf16.gmra.mrb[220].mxu1 %vm4490_vm4, %v13491_v41  ;;  %10130 = vmatmul.mubr.msk.bf16.gmra.mrb[32].mxu0 %vm4490_vm4, %v13523_v56 }
 0x48b   : > { %9905 = vmatprep.mubr.msk.bf16.mxu1 %vm10885_vm0, %v15690_v24  ;;  %10133 = vmatprep.mubr.msk.bf16.mxu0 %vm10885_vm0, %v15690_v24 }
 0x492   : > { %9906 = vmatmul.mubr.msk.bf16.gmra.mrb[224].mxu1 %vm4490_vm4, %v13507_v44  ;;  %10134 = vmatmul.mubr.msk.bf16.gmra.mrb[36].mxu0 %vm4490_vm4, %v13539_v23 }
 0x493   : > { %9909 = vmatprep.mubr.msk.bf16.mxu1 %vm10885_vm0, %v15690_v24  ;;  %10137 = vmatprep.mubr.msk.bf16.mxu0 %vm10885_vm0, %v15690_v24 }
 0x49a   : > { %9910 = vmatmul.mubr.msk.bf16.gmra.mrb[228].mxu1 %vm4490_vm4, %v13523_v56  ;;  %10138 = vmatmul.mubr.msk.bf16.gmra.mrb[40].mxu0 %vm4490_vm4, %v13555_v8 }
 0x49b   : > { %9913 = vmatprep.mubr.msk.bf16.mxu1 %vm10885_vm0, %v15690_v24  ;;  %10141 = vmatprep.mubr.msk.bf16.mxu0 %vm10885_vm0, %v15690_v24 }
 0x49d   : > { %v13785_v55 = vpop.f32.mrb[124].mxu1  ;;  %v5171_v63 = vpop.f32.mrb[192].mxu0 }
 0x49e   : > { %v9799_v53 = vpop.f32.mrb[125].mxu1  ;;  %v9951_v17 = vpop.f32.mrb[193].mxu0  ;;  %v5338_v47 = vrot.slane %v5171_v63, 2 }
 0x49f   : > { %v13787_v27 = vpop.f32.mrb[126].mxu1  ;;  %v5174_v10 = vpop.f32.mrb[194].mxu0 }
 0x4a0   : > { %v5339_v62 = vrot.slane %v5174_v10, 2  ;;  %v9800_v12 = vpop.f32.mrb[127].mxu1  ;;  %v9952_v20 = vpop.f32.mrb[195].mxu0 }
 0x4a2   : > { %9914 = vmatmul.mubr.msk.bf16.gmra.mrb[232].mxu1 %vm4490_vm4, %v13539_v23  ;;  %10142 = vmatmul.mubr.msk.bf16.gmra.mrb[44].mxu0 %vm4490_vm4, %v13571_v0  ;;  %v13794_v22 = vsel %vm1526_vm3, %v5338_v47, %v5339_v62 }
 0x4a3   : > { %9917 = vmatprep.mubr.msk.bf16.mxu1 %vm10885_vm0, %v15690_v24  ;;  %10145 = vmatprep.mubr.msk.bf16.mxu0 %vm10885_vm0, %v15690_v24 }
 0x4a5   : > { %v13800_v7 = vpop.f32.mrb[128].mxu1  ;;  %v5179_v32 = vpop.f32.mrb[196].mxu0 }
 0x4a6   : > { %v5341_v54 = vrot.slane %v5179_v32, 2  ;;  %v9803_v18 = vpop.f32.mrb[129].mxu1  ;;  %v9955_v15 = vpop.f32.mrb[197].mxu0 }
 0x4a7   : > { %v13802_v31 = vpop.f32.mrb[130].mxu1  ;;  %v5182_v39 = vpop.f32.mrb[198].mxu0 }
 0x4a8   : > { %v5343_v58 = vrot.slane %v5182_v39, 2  ;;  %v9804_v59 = vpop.f32.mrb[131].mxu1  ;;  %v9956_v45 = vpop.f32.mrb[199].mxu0  ;;  %v13805_v3 = vsel %vm1526_vm3, %v5339_v62, %v5341_v54 }
 0x4aa   : > { %9918 = vmatmul.mubr.msk.bf16.gmra.mrb[236].mxu1 %vm4490_vm4, %v13555_v8  ;;  %10146 = vmatmul.mubr.msk.bf16.gmra.mrb[48].mxu0 %vm4490_vm4, %v13587_v48  ;;  %v13812_v25 = vsel %vm1526_vm3, %v5341_v54, %v5343_v58 }
 0x4ab   : > { %9921 = vmatprep.mubr.msk.bf16.mxu1 %vm10885_vm0, %v15690_v24  ;;  %10149 = vmatprep.mubr.msk.bf16.mxu0 %vm10885_vm0, %v15690_v24 }
 0x4ad   : > { %v13818_v6 = vpop.f32.mrb[132].mxu1  ;;  %v5187_v30 = vpop.f32.mrb[200].mxu0 }
 0x4ae   : > { %v5345_v46 = vrot.slane %v5187_v30, 2  ;;  %v9807_v36 = vpop.f32.mrb[133].mxu1  ;;  %v9959_v1 = vpop.f32.mrb[201].mxu0 }
 0x4af   : > { %v13820_v14 = vpop.f32.mrb[134].mxu1  ;;  %v5190_v61 = vpop.f32.mrb[202].mxu0 }
 0x4b0   : > { %v5347_v4 = vrot.slane %v5190_v61, 2  ;;  %v9808_v51 = vpop.f32.mrb[135].mxu1  ;;  %v9960_v28 = vpop.f32.mrb[203].mxu0  ;;  %v13823_v13 = vsel %vm1526_vm3, %v5343_v58, %v5345_v46 }
 0x4b2   : > { %9922 = vmatmul.mubr.msk.bf16.gmra.mrb[240].mxu1 %vm4490_vm4, %v13571_v0  ;;  %10150 = vmatmul.mubr.msk.bf16.gmra.mrb[52].mxu0 %vm4490_vm4, %v13603_v50  ;;  %v13830_v5 = vsel %vm1526_vm3, %v5345_v46, %v5347_v4 }
 0x4b3   : > { %9925 = vmatprep.mubr.msk.bf16.mxu1 %vm10885_vm0, %v15690_v24  ;;  %10153 = vmatprep.mubr.msk.bf16.mxu0 %vm10885_vm0, %v15690_v24 }
 0x4b5   : > { %v13836_v26 = vpop.f32.mrb[136].mxu1  ;;  %v5195_v42 = vpop.f32.mrb[204].mxu0 }
 0x4b6   : > { %v5349_v34 = vrot.slane %v5195_v42, 2  ;;  %v9811_v33 = vpop.f32.mrb[137].mxu1  ;;  %v9963_v9 = vpop.f32.mrb[205].mxu0 }
 0x4b7   : > { %v13838_v60 = vpop.f32.mrb[138].mxu1  ;;  %v5198_v38 = vpop.f32.mrb[206].mxu0 }
 0x4b8   : > { %v5351_v57 = vrot.slane %v5198_v38, 2  ;;  %v9812_v2 = vpop.f32.mrb[139].mxu1  ;;  %v9964_v63 = vpop.f32.mrb[207].mxu0  ;;  %v13841_v53 = vsel %vm1526_vm3, %v5347_v4, %v5349_v34 }
 0x4ba   : > { %9926 = vmatmul.mubr.msk.bf16.gmra.mrb[244].mxu1 %vm4490_vm4, %v13587_v48  ;;  %10154 = vmatmul.mubr.msk.bf16.gmra.mrb[56].mxu0 %vm4490_vm4, %v13619_v21  ;;  %v13848_v17 = vsel %vm1526_vm3, %v5349_v34, %v5351_v57 }
 0x4bb   : > { %9929 = vmatprep.mubr.msk.bf16.mxu1 %vm10885_vm0, %v15690_v24  ;;  %10157 = vmatprep.mubr.msk.bf16.mxu0 %vm10885_vm0, %v15690_v24 }
 0x4bd   : > { %v13854_v10 = vpop.f32.mrb[140].mxu1  ;;  %v5203_v47 = vpop.f32.mrb[208].mxu0 }
 0x4be   : > { %v5353_v62 = vrot.slane %v5203_v47, 2  ;;  %v9815_v12 = vpop.f32.mrb[141].mxu1  ;;  %v9967_v20 = vpop.f32.mrb[209].mxu0 }
 0x4bf   : > { %v13856_v32 = vpop.f32.mrb[142].mxu1  ;;  %v5206_v54 = vpop.f32.mrb[210].mxu0 }
 0x4c0   : > { %v5355_v18 = vrot.slane %v5206_v54, 2  ;;  %v9816_v15 = vpop.f32.mrb[143].mxu1  ;;  %v9968_v39 = vpop.f32.mrb[211].mxu0  ;;  %v13859_v58 = vsel %vm1526_vm3, %v5351_v57, %v5353_v62 }
 0x4c2   : > { %9930 = vmatmul.mubr.msk.bf16.gmra.mrb[248].mxu1 %vm4490_vm4, %v13603_v50  ;;  %10158 = vmatmul.mubr.msk.bf16.gmra.mrb[60].mxu0 %vm4490_vm4, %v13635_v35  ;;  %v13866_v59 = vsel %vm1526_vm3, %v5353_v62, %v5355_v18 }
 0x4c3   : > { %9933 = vmatprep.mubr.msk.bf16.mxu1 %vm10885_vm0, %v15690_v24  ;;  %10161 = vmatprep.mubr.msk.bf16.mxu0 %vm10885_vm0, %v15690_v24 }
 0x4c5   : > { %v13872_v45 = vpop.f32.mrb[144].mxu1  ;;  %v5211_v30 = vpop.f32.mrb[212].mxu0 }
 0x4c6   : > { %v5357_v46 = vrot.slane %v5211_v30, 2  ;;  %v9819_v36 = vpop.f32.mrb[145].mxu1  ;;  %v9971_v1 = vpop.f32.mrb[213].mxu0 }
 0x4c7   : > { %v13874_v61 = vpop.f32.mrb[146].mxu1  ;;  %v5214_v4 = vpop.f32.mrb[214].mxu0 }
 0x4c8   : > { %v5359_v51 = vrot.slane %v5214_v4, 2  ;;  %v9820_v28 = vpop.f32.mrb[147].mxu1  ;;  %v9972_v42 = vpop.f32.mrb[215].mxu0  ;;  %v13877_v34 = vsel %vm1526_vm3, %v5355_v18, %v5357_v46 }
 0x4c9   : > { %v10595_v28 = vld [vmem:[%s15645_s4 + $0xa0] sm:$0xff]  }
 0x4ca   : > { %9934 = vmatmul.mubr.msk.bf16.gmra.mrb[252].mxu1 %vm4490_vm4, %v13619_v21  ;;  %10162 = vmatmul.mubr.msk.bf16.gmra.mrb[64].mxu0 %vm4490_vm4, %v13654_v52  ;;  %v13884_v33 = vsel %vm1526_vm3, %v5357_v46, %v5359_v51 }
 0x4cb   : > { %9937 = vmatprep.mubr.msk.bf16.mxu1 %vm10885_vm0, %v15690_v24  ;;  %10165 = vmatprep.mubr.msk.bf16.mxu0 %vm10885_vm0, %v15690_v24 }
 0x4cd   : > { %v13890_v9 = vpop.f32.mrb[148].mxu1  ;;  %v5219_v38 = vpop.f32.mrb[216].mxu0 }
 0x4ce   : > { %v5361_v57 = vrot.slane %v5219_v38, 2  ;;  %v9823_v2 = vpop.f32.mrb[149].mxu1  ;;  %v9975_v63 = vpop.f32.mrb[217].mxu0 }
 0x4cf   : > { %v13892_v47 = vpop.f32.mrb[150].mxu1  ;;  %v5222_v62 = vpop.f32.mrb[218].mxu0  ;;  %v10599_v63 = vld [vmem:[%s15645_s4 + $0x100] sm:$0xff]  }
 0x4d0   : > { %v5363_v12 = vrot.slane %v5222_v62, 2  ;;  %v9824_v20 = vpop.f32.mrb[151].mxu1  ;;  %v9976_v54 = vpop.f32.mrb[219].mxu0  ;;  %v13895_v18 = vsel %vm1526_vm3, %v5359_v51, %v5361_v57 }
 0x4d2   : > { %9938 = vmatmul.mubr.msk.bf16.gmra.mrb[0].mxu1 %vm4490_vm4, %v13635_v35  ;;  %10166 = vmatmul.mubr.msk.bf16.gmra.mrb[68].mxu0 %vm4490_vm4, %v13681_v29  ;;  %v13902_v15 = vsel %vm1526_vm3, %v5361_v57, %v5363_v12 }
 0x4d3   : > { %10025 = vmatprep.mubr.msk.bf16.mxu1 %vm10885_vm0, %v15690_v24  ;;  %10253 = vmatprep.mubr.msk.bf16.mxu0 %vm10885_vm0, %v15690_v24 }
 0x4d5   : > { %v13908_v39 = vpop.f32.mrb[152].mxu1  ;;  %v5227_v30 = vpop.f32.mrb[220].mxu0 }
 0x4d6   : > { %v5365_v46 = vrot.slane %v5227_v30, 2  ;;  %v9827_v36 = vpop.f32.mrb[153].mxu1  ;;  %v9979_v1 = vpop.f32.mrb[221].mxu0  ;;  %v10600_v30 = vld [vmem:[%s15645_s4 + $0x108] sm:$0xff]  }
 0x4d7   : > { %v13910_v4 = vpop.f32.mrb[154].mxu1  ;;  %v5230_v51 = vpop.f32.mrb[222].mxu0 }
 0x4d8   : > { %15776 = vst [vmem:[#allocation16_spill] sm:$0xff] %v13910_v4  ;;  %v5367_v42 = vrot.slane %v5230_v51, 2  ;;  %v9828_v38 = vpop.f32.mrb[155].mxu1  ;;  %v9980_v57 = vpop.f32.mrb[223].mxu0  ;;  %v13916_v2 = vsel %vm1526_vm3, %v5363_v12, %v5365_v46  ;;  %v10596_v12 = vld [vmem:[%s15645_s4 + $0xa8] sm:$0xff]  }
 0x4da   : > { %10026 = vmatmul.mubr.msk.bf16.vlgmr.msra.gmra.mrb[4].mxu1 %vm4490_vm4, %v13405_v43  ;;  %10254 = vmatmul.mubr.msk.bf16.vlgmr.msra.gmra.mrb[72].mxu0 %vm4490_vm4, %v13443_v19  ;;  %v13926_v62 = vsel %vm1526_vm3, %v5365_v46, %v5367_v42 }
 0x4db   : > { %10170 = vmatpush3.bf16.msra.mxu1 %v10595_v28  ;;  %10029 = vmatprep.mubr.msk.bf16.mxu1 %vm10885_vm0, %v15690_v24 }
 0x4dc   : > { %10257 = vmatprep.mubr.msk.bf16.mxu0 %vm10885_vm0, %v15690_v24  ;;  %10171 = vmatprep.subr.bf16.mxu1 %v15690_v24 }
 0x4dd   : > { %v13936_v20 = vpop.f32.mrb[156].mxu1  ;;  %v5235_v54 = vpop.f32.mrb[224].mxu0  ;;  %10398 = vmatpush3.bf16.msra.mxu0 %v10599_v63  ;;  %v10597_v63 = vld [vmem:[%s15645_s4 + $0xb0] sm:$0xff]  }
 0x4de   : > { %15777 = vst [vmem:[#allocation15_spill] sm:$0xff] %v13936_v20  ;;  %v5369_v46 = vrot.slane %v5235_v54, 2  ;;  %v9831_v36 = vpop.f32.mrb[157].mxu1  ;;  %v9983_v1 = vpop.f32.mrb[225].mxu0  ;;  %10399 = vmatprep.subr.bf16.mxu0 %v15690_v24  ;;  %v10601_v54 = vld [vmem:[%s15645_s4 + $0x110] sm:$0xff]  }
 0x4df   : > { %v13942_v51 = vpop.f32.mrb[158].mxu1  ;;  %v5238_v28 = vpop.f32.mrb[226].mxu0  ;;  %10172 = vmatpush3.bf16.msra.mxu1 %v10596_v12 }
 0x4e0   : > { %15778 = vst [vmem:[#allocation18_spill] sm:$0xff] %v13942_v51  ;;  %v5371_v38 = vrot.slane %v5238_v28, 2  ;;  %v9832_v57 = vpop.f32.mrb[159].mxu1  ;;  %v9984_v4 = vpop.f32.mrb[227].mxu0  ;;  %10173 = vmatprep.subr.bf16.mxu1 %v15690_v24  ;;  %v13949_v20 = vsel %vm1526_vm3, %v5367_v42, %v5369_v46  ;;  %v10598_v42 = vld [vmem:[%s15645_s4 + $0xb8] sm:$0xff]  }
 0x4e1   : > { %15779 = vst [vmem:[#allocation17_spill] sm:$0xff] %v13949_v20  ;;  %10400 = vmatpush3.bf16.msra.mxu0 %v10600_v30 }
 0x4e2   : > { %10030 = vmatmul.mubr.msk.bf16.gmra.mrb[8].mxu1 %vm4490_vm4, %v13427_v40  ;;  %10258 = vmatmul.mubr.msk.bf16.gmra.mrb[76].mxu0 %vm4490_vm4, %v13459_v49  ;;  %v13959_v4 = vsel %vm1526_vm3, %v5369_v46, %v5371_v38  ;;  %v10602_v46 = vld [vmem:[%s15645_s4 + $0x118] sm:$0xff]  }
 0x4e3   : > { %15780 = vst [vmem:[#allocation3_spill] sm:$0xff] %v13959_v4  ;;  %10033 = vmatprep.mubr.msk.bf16.mxu1 %vm10885_vm0, %v15690_v24  ;;  %10261 = vmatprep.mubr.msk.bf16.mxu0 %vm10885_vm0, %v15690_v24 }
 0x4e4   : > { %10174 = vmatpush3.bf16.msra.mxu1 %v10597_v63  ;;  %10401 = vmatprep.subr.bf16.mxu0 %v15690_v24 }
 0x4e5   : > { %v13969_v12 = vpop.f32.mrb[160].mxu1  ;;  %v5243_v30 = vpop.f32.mrb[228].mxu0  ;;  %10175 = vmatprep.subr.bf16.mxu1 %v15690_v24  ;;  %10402 = vmatpush3.bf16.msra.mxu0 %v10601_v54 }
 0x4e6   : > { %15781 = vst [vmem:[#allocation19_spill] sm:$0xff] %v13969_v12  ;;  %v5373_v36 = vrot.slane %v5243_v30, 2  ;;  %v9835_v1 = vpop.f32.mrb[161].mxu1  ;;  %v9987_v28 = vpop.f32.mrb[229].mxu0  ;;  %10403 = vmatprep.subr.bf16.mxu0 %v15690_v24 }
 0x4e7   : > { %v13976_v57 = vpop.f32.mrb[162].mxu1  ;;  %v5246_v63 = vpop.f32.mrb[230].mxu0 }
 0x4e8   : > { %15782 = vst [vmem:[#allocation2_spill] sm:$0xff] %v13976_v57  ;;  %v5375_v51 = vrot.slane %v5246_v63, 2  ;;  %v9836_v4 = vpop.f32.mrb[163].mxu1  ;;  %v9988_v20 = vpop.f32.mrb[231].mxu0  ;;  %10176 = vmatpush3.bf16.msra.mxu1 %v10598_v42  ;;  %v13979_v12 = vsel %vm1526_vm3, %v5371_v38, %v5373_v36 }
 0x4e9   : > { %10404 = vmatpush3.bf16.msra.mxu0 %v10602_v46  ;;  %10321 = vmatprep.subr.bf16.mxu1 %v15690_v24 }
 0x4ea   : > { %10034 = vmatmul.mubr.msk.bf16.gmra.mrb[12].mxu1 %vm4490_vm4, %v13443_v19  ;;  %10262 = vmatmul.mubr.msk.bf16.gmra.mrb[80].mxu0 %vm4490_vm4, %v13475_v37  ;;  %v13987_v54 = vsel %vm1526_vm3, %v5373_v36, %v5375_v51 }
 0x4eb   : > { %15783 = vst [vmem:[#allocation4_spill] sm:$0xff] %v13987_v54  ;;  %10037 = vmatprep.mubr.msk.bf16.mxu1 %vm10885_vm0, %v15690_v24  ;;  %10265 = vmatprep.mubr.msk.bf16.mxu0 %vm10885_vm0, %v15690_v24 }
 0x4ed   : > { %v13993_v20 = vpop.f32.mrb[164].mxu1  ;;  %v5251_v38 = vpop.f32.mrb[232].mxu0 }
 0x4ee   : > { %15784 = vst [vmem:[#allocation6_spill] sm:$0xff] %v13993_v20  ;;  %v5377_v4 = vrot.slane %v5251_v38, 2  ;;  %v9839_v42 = vpop.f32.mrb[165].mxu1  ;;  %v9991_v30 = vpop.f32.mrb[233].mxu0 }
 0x4ef   : > { %v13995_v46 = vpop.f32.mrb[166].mxu1  ;;  %v5254_v1 = vpop.f32.mrb[234].mxu0 }
 0x4f0   : > { %15785 = vst [vmem:[#allocation5_spill] sm:$0xff] %v13995_v46  ;;  %v5379_v28 = vrot.slane %v5254_v1, 2  ;;  %v9840_v63 = vpop.f32.mrb[167].mxu1  ;;  %v9992_v57 = vpop.f32.mrb[235].mxu0  ;;  %v13998_v36 = vsel %vm1526_vm3, %v5375_v51, %v5377_v4 }
 0x4f1   : > { %15786 = vst [vmem:[#allocation20_spill] sm:$0xff] %v13998_v36 }
 0x4f2   : > { %10038 = vmatmul.mubr.msk.bf16.gmra.mrb[16].mxu1 %vm4490_vm4, %v13459_v49  ;;  %10266 = vmatmul.mubr.msk.bf16.gmra.mrb[84].mxu0 %vm4490_vm4, %v13491_v41  ;;  %v14005_v20 = vsel %vm1526_vm3, %v5377_v4, %v5379_v28 }
 0x4f3   : > { %15787 = vst [vmem:[#allocation21_spill] sm:$0xff] %v14005_v20  ;;  %10041 = vmatprep.mubr.msk.bf16.mxu1 %vm10885_vm0, %v15690_v24  ;;  %10269 = vmatprep.mubr.msk.bf16.mxu0 %vm10885_vm0, %v15690_v24 }
 0x4f5   : > { %v14011_v38 = vpop.f32.mrb[168].mxu1  ;;  %v5259_v57 = vpop.f32.mrb[236].mxu0 }
 0x4f6   : > { %15788 = vst [vmem:[#allocation22_spill] sm:$0xff] %v14011_v38  ;;  %v5381_v51 = vrot.slane %v5259_v57, 2  ;;  %v9843_v42 = vpop.f32.mrb[169].mxu1  ;;  %v9995_v30 = vpop.f32.mrb[237].mxu0 }
 0x4f7   : > { %v14013_v1 = vpop.f32.mrb[170].mxu1  ;;  %v5262_v63 = vpop.f32.mrb[238].mxu0 }
 0x4f8   : > { %15789 = vst [vmem:[#allocation23_spill] sm:$0xff] %v14013_v1  ;;  %v5383_v46 = vrot.slane %v5262_v63, 2  ;;  %v9844_v36 = vpop.f32.mrb[171].mxu1  ;;  %v9996_v54 = vpop.f32.mrb[239].mxu0  ;;  %v14016_v4 = vsel %vm1526_vm3, %v5379_v28, %v5381_v51 }
 0x4f9   : > { %15790 = vst [vmem:[#allocation24_spill] sm:$0xff] %v14016_v4 }
 0x4fa   : > { %10042 = vmatmul.mubr.msk.bf16.gmra.mrb[20].mxu1 %vm4490_vm4, %v13475_v37  ;;  %10270 = vmatmul.mubr.msk.bf16.gmra.mrb[88].mxu0 %vm4490_vm4, %v13507_v44  ;;  %v14023_v38 = vsel %vm1526_vm3, %v5381_v51, %v5383_v46 }
 0x4fb   : > { %15791 = vst [vmem:[#allocation25_spill] sm:$0xff] %v14023_v38  ;;  %10045 = vmatprep.mubr.msk.bf16.mxu1 %vm10885_vm0, %v15690_v24  ;;  %10273 = vmatprep.mubr.msk.bf16.mxu0 %vm10885_vm0, %v15690_v24 }
 0x4fd   : > { %v14029_v36 = vpop.f32.mrb[172].mxu1  ;;  %v5267_v54 = vpop.f32.mrb[240].mxu0 }
 0x4fe   : > { %15792 = vst [vmem:[#allocation26_spill] sm:$0xff] %v14029_v36  ;;  %v5385_v28 = vrot.slane %v5267_v54, 2  ;;  %v9847_v57 = vpop.f32.mrb[173].mxu1  ;;  %v9999_v42 = vpop.f32.mrb[241].mxu0 }
 0x4ff   : > { %v14031_v30 = vpop.f32.mrb[174].mxu1  ;;  %v5270_v63 = vpop.f32.mrb[242].mxu0 }
 0x500   : > { %15793 = vst [vmem:[#allocation27_spill] sm:$0xff] %v14031_v30  ;;  %v5387_v1 = vrot.slane %v5270_v63, 2  ;;  %v9848_v4 = vpop.f32.mrb[175].mxu1  ;;  %v10000_v20 = vpop.f32.mrb[243].mxu0  ;;  %v14034_v51 = vsel %vm1526_vm3, %v5383_v46, %v5385_v28 }
 0x501   : > { %15794 = vst [vmem:[#allocation28_spill] sm:$0xff] %v14034_v51 }
 0x502   : > { %10046 = vmatmul.mubr.msk.bf16.gmra.mrb[24].mxu1 %vm4490_vm4, %v13491_v41  ;;  %10274 = vmatmul.mubr.msk.bf16.gmra.mrb[92].mxu0 %vm4490_vm4, %v13523_v56  ;;  %v14041_v36 = vsel %vm1526_vm3, %v5385_v28, %v5387_v1 }
 0x503   : > { %15795 = vst [vmem:[#allocation29_spill] sm:$0xff] %v14041_v36  ;;  %10049 = vmatprep.mubr.msk.bf16.mxu1 %vm10885_vm0, %v15690_v24  ;;  %10277 = vmatprep.mubr.msk.bf16.mxu0 %vm10885_vm0, %v15690_v24 }
 0x505   : > { %v14047_v4 = vpop.f32.mrb[176].mxu1  ;;  %v5275_v20 = vpop.f32.mrb[244].mxu0 }
 0x506   : > { %15796 = vst [vmem:[#allocation30_spill] sm:$0xff] %v14047_v4  ;;  %v5389_v46 = vrot.slane %v5275_v20, 2  ;;  %v9851_v54 = vpop.f32.mrb[177].mxu1  ;;  %v10003_v57 = vpop.f32.mrb[245].mxu0 }
 0x507   : > { %v14049_v42 = vpop.f32.mrb[178].mxu1  ;;  %v5278_v63 = vpop.f32.mrb[246].mxu0 }
 0x508   : > { %15797 = vst [vmem:[#allocation31_spill] sm:$0xff] %v14049_v42  ;;  %v5391_v30 = vrot.slane %v5278_v63, 2  ;;  %v9852_v51 = vpop.f32.mrb[179].mxu1  ;;  %v10004_v38 = vpop.f32.mrb[247].mxu0  ;;  %v14052_v28 = vsel %vm1526_vm3, %v5387_v1, %v5389_v46 }
 0x509   : > { %15798 = vst [vmem:[#allocation32_spill] sm:$0xff] %v14052_v28 }
 0x50a   : > { %10050 = vmatmul.mubr.msk.bf16.gmra.mrb[28].mxu1 %vm4490_vm4, %v13507_v44  ;;  %10278 = vmatmul.mubr.msk.bf16.gmra.mrb[96].mxu0 %vm4490_vm4, %v13539_v23  ;;  %v14059_v4 = vsel %vm1526_vm3, %v5389_v46, %v5391_v30 }
 0x50b   : > { %15799 = vst [vmem:[#allocation33_spill] sm:$0xff] %v14059_v4  ;;  %10053 = vmatprep.mubr.msk.bf16.mxu1 %vm10885_vm0, %v15690_v24  ;;  %10281 = vmatprep.mubr.msk.bf16.mxu0 %vm10885_vm0, %v15690_v24 }
 0x50d   : > { %v14065_v51 = vpop.f32.mrb[180].mxu1  ;;  %v5283_v38 = vpop.f32.mrb[248].mxu0 }
 0x50e   : > { %15800 = vst [vmem:[#allocation34_spill] sm:$0xff] %v14065_v51  ;;  %v5393_v1 = vrot.slane %v5283_v38, 2  ;;  %v9855_v20 = vpop.f32.mrb[181].mxu1  ;;  %v10007_v54 = vpop.f32.mrb[249].mxu0 }
 0x50f   : > { %v14067_v57 = vpop.f32.mrb[182].mxu1  ;;  %v5286_v63 = vpop.f32.mrb[250].mxu0 }
 0x510   : > { %15801 = vst [vmem:[#allocation35_spill] sm:$0xff] %v14067_v57  ;;  %v5395_v42 = vrot.slane %v5286_v63, 2  ;;  %v9856_v28 = vpop.f32.mrb[183].mxu1  ;;  %v10008_v36 = vpop.f32.mrb[251].mxu0  ;;  %v14070_v46 = vsel %vm1526_vm3, %v5391_v30, %v5393_v1 }
 0x511   : > { %15802 = vst [vmem:[#allocation36_spill] sm:$0xff] %v14070_v46 }
 0x512   : > { %10054 = vmatmul.mubr.msk.bf16.gmra.mrb[32].mxu1 %vm4490_vm4, %v13523_v56  ;;  %10282 = vmatmul.mubr.msk.bf16.gmra.mrb[100].mxu0 %vm4490_vm4, %v13555_v8  ;;  %v14077_v51 = vsel %vm1526_vm3, %v5393_v1, %v5395_v42 }
 0x513   : > { %15803 = vst [vmem:[#allocation37_spill] sm:$0xff] %v14077_v51  ;;  %10057 = vmatprep.mubr.msk.bf16.mxu1 %vm10885_vm0, %v15690_v24  ;;  %10285 = vmatprep.mubr.msk.bf16.mxu0 %vm10885_vm0, %v15690_v24 }
 0x515   : > { %v14083_v28 = vpop.f32.mrb[184].mxu1  ;;  %v5291_v36 = vpop.f32.mrb[252].mxu0 }
 0x516   : > { %15804 = vst [vmem:[#allocation38_spill] sm:$0xff] %v14083_v28  ;;  %v5397_v30 = vrot.slane %v5291_v36, 2  ;;  %v9859_v38 = vpop.f32.mrb[185].mxu1  ;;  %v10011_v20 = vpop.f32.mrb[253].mxu0 }
 0x517   : > { %v14085_v54 = vpop.f32.mrb[186].mxu1  ;;  %v5294_v63 = vpop.f32.mrb[254].mxu0 }
 0x518   : > { %15805 = vst [vmem:[#allocation39_spill] sm:$0xff] %v14085_v54  ;;  %v5399_v57 = vrot.slane %v5294_v63, 2  ;;  %v9860_v46 = vpop.f32.mrb[187].mxu1  ;;  %v10012_v4 = vpop.f32.mrb[255].mxu0  ;;  %v14088_v1 = vsel %vm1526_vm3, %v5395_v42, %v5397_v30 }
 0x519   : > { %15806 = vst [vmem:[#allocation40_spill] sm:$0xff] %v14088_v1 }
 0x51a   : > { %10058 = vmatmul.mubr.msk.bf16.gmra.mrb[36].mxu1 %vm4490_vm4, %v13539_v23  ;;  %10286 = vmatmul.mubr.msk.bf16.gmra.mrb[104].mxu0 %vm4490_vm4, %v13571_v0  ;;  %v14095_v28 = vsel %vm1526_vm3, %v5397_v30, %v5399_v57 }
 0x51b   : > { %15807 = vst [vmem:[#allocation41_spill] sm:$0xff] %v14095_v28  ;;  %10061 = vmatprep.mubr.msk.bf16.mxu1 %vm10885_vm0, %v15690_v24  ;;  %10289 = vmatprep.mubr.msk.bf16.mxu0 %vm10885_vm0, %v15690_v24 }
 0x51d   : > { %v4704_v46 = vpop.f32.mrb[188].mxu1  ;;  %v5299_v4 = vpop.f32.mrb[0].mxu0 }
 0x51e   : > { %v5401_v36 = vrot.slane %v5299_v4, 2  ;;  %v9863_v42 = vpop.f32.mrb[189].mxu1  ;;  %v10015_v38 = vpop.f32.mrb[1].mxu0 }
 0x51f   : > { %v4706_v20 = vpop.f32.mrb[190].mxu1  ;;  %v5302_v63 = vpop.f32.mrb[2].mxu0 }
 0x520   : > { %v9864_v54 = vpop.f32.mrb[191].mxu1  ;;  %v10016_v1 = vpop.f32.mrb[3].mxu0  ;;  %v14102_v51 = vsel %vm1526_vm3, %v5399_v57, %v5401_v36 }
 0x521   : > { %15808 = vst [vmem:[#allocation42_spill] sm:$0xff] %v14102_v51 }
 0x522   : > { %10062 = vmatmul.mubr.msk.bf16.gmra.mrb[40].mxu1 %vm4490_vm4, %v13555_v8  ;;  %10290 = vmatmul.mubr.msk.bf16.gmra.mrb[108].mxu0 %vm4490_vm4, %v13587_v48 }
 0x523   : > { %10065 = vmatprep.mubr.msk.bf16.mxu1 %vm10885_vm0, %v15690_v24  ;;  %10293 = vmatprep.mubr.msk.bf16.mxu0 %vm10885_vm0, %v15690_v24 }
 0x525   : > { %v4808_v30 = vpop.f32.mrb[192].mxu1  ;;  %v5772_v46 = vpop.f32.mrb[4].mxu0 }
 0x526   : > { %v9875_v4 = vpop.f32.mrb[193].mxu1  ;;  %v10103_v54 = vpop.f32.mrb[5].mxu0  ;;  %v4975_v57 = vrot.slane %v4808_v30, 1  ;;  %v5939_v36 = vrot.slane %v5772_v46, 1 }
 0x527   : > { %v4811_v1 = vpop.f32.mrb[194].mxu1  ;;  %v5775_v42 = vpop.f32.mrb[6].mxu0 }
 0x528   : > { %v4976_v38 = vrot.slane %v4811_v1, 1  ;;  %v5940_v20 = vrot.slane %v5775_v42, 1  ;;  %v9876_v63 = vpop.f32.mrb[195].mxu1  ;;  %v10104_v51 = vpop.f32.mrb[7].mxu0 }
 0x52a   : > { %10066 = vmatmul.mubr.msk.bf16.gmra.mrb[44].mxu1 %vm4490_vm4, %v13571_v0  ;;  %10294 = vmatmul.mubr.msk.bf16.gmra.mrb[112].mxu0 %vm4490_vm4, %v13603_v50  ;;  %v4977_v28 = vsel %vm1082_vm2, %v4975_v57, %v4976_v38  ;;  %v14118_v8 = vsel %vm1082_vm2, %v5939_v36, %v5940_v20 }
 0x52b   : > { %15809 = vst [vmem:[#allocation43_spill] sm:$0xff] %v14118_v8  ;;  %10069 = vmatprep.mubr.msk.bf16.mxu1 %vm10885_vm0, %v15690_v24  ;;  %10297 = vmatprep.mubr.msk.bf16.mxu0 %vm10885_vm0, %v15690_v24  ;;  %v5072_v30 = vadd.f32 %v4977_v28, %v13785_v55 }
 0x52d   : > { %v4816_v51 = vpop.f32.mrb[196].mxu1  ;;  %v5780_v46 = vpop.f32.mrb[8].mxu0  ;;  %v14126_v4 = vadd.f32 %v13794_v22, %v5072_v30 }
 0x52e   : > { %v4978_v54 = vrot.slane %v4816_v51, 1  ;;  %v5942_v1 = vrot.slane %v5780_v46, 1  ;;  %v9879_v42 = vpop.f32.mrb[197].mxu1  ;;  %v10107_v57 = vpop.f32.mrb[9].mxu0 }
 0x52f   : > { %v4819_v63 = vpop.f32.mrb[198].mxu1  ;;  %v5783_v36 = vpop.f32.mrb[10].mxu0 }
 0x530   : > { %v4980_v8 = vrot.slane %v4819_v63, 1  ;;  %v5944_v0 = vrot.slane %v5783_v36, 1  ;;  %v9880_v23 = vpop.f32.mrb[199].mxu1  ;;  %v10108_v56 = vpop.f32.mrb[11].mxu0  ;;  %v4979_v44 = vsel %vm1082_vm2, %v4976_v38, %v4978_v54  ;;  %v14130_v41 = vsel %vm1082_vm2, %v5940_v20, %v5942_v1 }
 0x531   : > { %v5073_v55 = vadd.f32 %v4979_v44, %v13787_v27 }
 0x532   : > { %10070 = vmatmul.mubr.msk.bf16.gmra.mrb[48].mxu1 %vm4490_vm4, %v13587_v48  ;;  %10298 = vmatmul.mubr.msk.bf16.gmra.mrb[116].mxu0 %vm4490_vm4, %v13619_v21  ;;  %v4981_v22 = vsel %vm1082_vm2, %v4978_v54, %v4980_v8  ;;  %v14139_v28 = vsel %vm1082_vm2, %v5942_v1, %v5944_v0 }
 0x533   : > { %10073 = vmatprep.mubr.msk.bf16.mxu1 %vm10885_vm0, %v15690_v24  ;;  %10301 = vmatprep.mubr.msk.bf16.mxu0 %vm10885_vm0, %v15690_v24  ;;  %v14146_v56 = vadd.f32 %v13805_v3, %v5073_v55  ;;  %v5074_v44 = vadd.f32 %v4981_v22, %v13800_v7 }
 0x535   : > { %v4824_v23 = vpop.f32.mrb[200].mxu1  ;;  %v5788_v27 = vpop.f32.mrb[12].mxu0  ;;  %v14150_v38 = vadd.f32 %v13812_v25, %v5074_v44 }
 0x536   : > { %v4982_v20 = vrot.slane %v4824_v23, 1  ;;  %v5946_v30 = vrot.slane %v5788_v27, 1  ;;  %v9883_v51 = vpop.f32.mrb[201].mxu1  ;;  %v10111_v46 = vpop.f32.mrb[13].mxu0 }
 0x537   : > { %v4827_v54 = vpop.f32.mrb[202].mxu1  ;;  %v5791_v1 = vpop.f32.mrb[14].mxu0 }
 0x538   : > { %v4984_v42 = vrot.slane %v4827_v54, 1  ;;  %v5948_v57 = vrot.slane %v5791_v1, 1  ;;  %v9884_v63 = vpop.f32.mrb[203].mxu1  ;;  %v10112_v36 = vpop.f32.mrb[15].mxu0  ;;  %v4983_v3 = vsel %vm1082_vm2, %v4980_v8, %v4982_v20  ;;  %v14154_v55 = vsel %vm1082_vm2, %v5944_v0, %v5946_v30 }
 0x539   : > { %v5075_v7 = vadd.f32 %v4983_v3, %v13802_v31 }
 0x53a   : > { %10074 = vmatmul.mubr.msk.bf16.gmra.mrb[52].mxu1 %vm4490_vm4, %v13603_v50  ;;  %10302 = vmatmul.mubr.msk.bf16.gmra.mrb[120].mxu0 %vm4490_vm4, %v13635_v35  ;;  %v4985_v25 = vsel %vm1082_vm2, %v4982_v20, %v4984_v42  ;;  %v14163_v22 = vsel %vm1082_vm2, %v5946_v30, %v5948_v57 }
 0x53b   : > { %10077 = vmatprep.mubr.msk.bf16.mxu1 %vm10885_vm0, %v15690_v24  ;;  %10305 = vmatprep.mubr.msk.bf16.mxu0 %vm10885_vm0, %v15690_v24  ;;  %v14170_v8 = vadd.f32 %v13823_v13, %v5075_v7  ;;  %v5076_v0 = vadd.f32 %v4985_v25, %v13818_v6 }
 0x53d   : > { %v4832_v31 = vpop.f32.mrb[204].mxu1  ;;  %v5796_v44 = vpop.f32.mrb[16].mxu0  ;;  %v14174_v23 = vadd.f32 %v13830_v5, %v5076_v0 }
 0x53e   : > { %v4986_v27 = vrot.slane %v4832_v31, 1  ;;  %v5950_v20 = vrot.slane %v5796_v44, 1  ;;  %v9887_v30 = vpop.f32.mrb[205].mxu1  ;;  %v10115_v51 = vpop.f32.mrb[17].mxu0 }
 0x53f   : > { %v4835_v46 = vpop.f32.mrb[206].mxu1  ;;  %v5799_v54 = vpop.f32.mrb[18].mxu0 }
 0x540   : > { %v4988_v1 = vrot.slane %v4835_v46, 1  ;;  %v5952_v63 = vrot.slane %v5799_v54, 1  ;;  %v9888_v36 = vpop.f32.mrb[207].mxu1  ;;  %v10116_v3 = vpop.f32.mrb[19].mxu0  ;;  %v4987_v13 = vsel %vm1082_vm2, %v4984_v42, %v4986_v27  ;;  %v14178_v7 = vsel %vm1082_vm2, %v5948_v57, %v5950_v20 }
 0x541   : > { %v5077_v6 = vadd.f32 %v4987_v13, %v13820_v14 }
 0x542   : > { %10078 = vmatmul.mubr.msk.bf16.gmra.mrb[56].mxu1 %vm4490_vm4, %v13619_v21  ;;  %10306 = vmatmul.mubr.msk.bf16.gmra.mrb[124].mxu0 %vm4490_vm4, %v13654_v52  ;;  %v4989_v5 = vsel %vm1082_vm2, %v4986_v27, %v4988_v1  ;;  %v14187_v25 = vsel %vm1082_vm2, %v5950_v20, %v5952_v63 }
 0x543   : > { %10081 = vmatprep.mubr.msk.bf16.mxu1 %vm10885_vm0, %v15690_v24  ;;  %10309 = vmatprep.mubr.msk.bf16.mxu0 %vm10885_vm0, %v15690_v24  ;;  %v14194_v42 = vadd.f32 %v13841_v53, %v5077_v6  ;;  %v5078_v14 = vadd.f32 %v4989_v5, %v13836_v26 }
 0x545   : > { %v4840_v57 = vpop.f32.mrb[208].mxu1  ;;  %v5804_v0 = vpop.f32.mrb[20].mxu0  ;;  %v14198_v31 = vadd.f32 %v13848_v17, %v5078_v14 }
 0x546   : > { %v4990_v44 = vrot.slane %v4840_v57, 1  ;;  %v5954_v27 = vrot.slane %v5804_v0, 1  ;;  %v9891_v20 = vpop.f32.mrb[209].mxu1  ;;  %v10119_v30 = vpop.f32.mrb[21].mxu0 }
 0x547   : > { %v4843_v51 = vpop.f32.mrb[210].mxu1  ;;  %v5807_v46 = vpop.f32.mrb[22].mxu0 }
 0x548   : > { %v4991_v54 = vsel %vm1082_vm2, %v4988_v1, %v4990_v44  ;;  %v4992_v36 = vrot.slane %v4843_v51, 1  ;;  %v5956_v3 = vrot.slane %v5807_v46, 1  ;;  %v9892_v13 = vpop.f32.mrb[211].mxu1  ;;  %v10120_v53 = vpop.f32.mrb[23].mxu0  ;;  %v14202_v6 = vsel %vm1082_vm2, %v5952_v63, %v5954_v27 }
 0x549   : > { %v5079_v26 = vadd.f32 %v4991_v54, %v13838_v60 }
 0x54a   : > { %v4993_v17 = vsel %vm1082_vm2, %v4990_v44, %v4992_v36  ;;  %10082 = vmatmul.mubr.msk.bf16.gmra.mrb[60].mxu1 %vm4490_vm4, %v13635_v35  ;;  %10310 = vmatmul.mubr.msk.bf16.gmra.mrb[128].mxu0 %vm4490_vm4, %v13681_v29  ;;  %v14211_v5 = vsel %vm1082_vm2, %v5954_v27, %v5956_v3 }
 0x54b   : > { %10085 = vmatprep.mubr.msk.bf16.mxu1 %vm10885_vm0, %v15690_v24  ;;  %10313 = vmatprep.mubr.msk.bf16.mxu0 %vm10885_vm0, %v15690_v24  ;;  %v14218_v1 = vadd.f32 %v13859_v58, %v5079_v26  ;;  %v5080_v60 = vadd.f32 %v4993_v17, %v13854_v10 }
 0x54d   : > { %v4848_v63 = vpop.f32.mrb[212].mxu1  ;;  %v5812_v14 = vpop.f32.mrb[24].mxu0  ;;  %v14222_v57 = vadd.f32 %v13866_v59, %v5080_v60 }
 0x54e   : > { %v4994_v0 = vrot.slane %v4848_v63, 1  ;;  %v5958_v44 = vrot.slane %v5812_v14, 1  ;;  %v9895_v27 = vpop.f32.mrb[213].mxu1  ;;  %v10123_v20 = vpop.f32.mrb[25].mxu0 }
 0x54f   : > { %v4851_v30 = vpop.f32.mrb[214].mxu1  ;;  %v5815_v51 = vpop.f32.mrb[26].mxu0 }
 0x550   : > { %v4995_v46 = vsel %vm1082_vm2, %v4992_v36, %v4994_v0  ;;  %v4996_v54 = vrot.slane %v4851_v30, 1  ;;  %v5960_v13 = vrot.slane %v5815_v51, 1  ;;  %v9896_v53 = vpop.f32.mrb[215].mxu1  ;;  %v10124_v58 = vpop.f32.mrb[27].mxu0  ;;  %v14226_v26 = vsel %vm1082_vm2, %v5956_v3, %v5958_v44 }
 0x551   : > { %v5081_v10 = vadd.f32 %v4995_v46, %v13856_v32 }
 0x552   : > { %v4997_v59 = vsel %vm1082_vm2, %v4994_v0, %v4996_v54  ;;  %10086 = vmatmul.mubr.msk.bf16.gmra.mrb[64].mxu1 %vm4490_vm4, %v13654_v52  ;;  %10314 = vmatmul.mubr.msk.bf16.gmra.mrb[132].mxu0 %vm4490_vm4, %v13714_v11  ;;  %v14235_v17 = vsel %vm1082_vm2, %v5958_v44, %v5960_v13 }
 0x553   : > { %10089 = vmatprep.mubr.msk.bf16.mxu1 %vm10885_vm0, %v15690_v24  ;;  %10317 = vmatprep.mubr.msk.bf16.mxu0 %vm10885_vm0, %v15690_v24  ;;  %v14242_v36 = vadd.f32 %v13877_v34, %v5081_v10  ;;  %v5082_v32 = vadd.f32 %v4997_v59, %v13872_v45 }
 0x555   : > { %v4856_v3 = vpop.f32.mrb[216].mxu1  ;;  %v5820_v60 = vpop.f32.mrb[28].mxu0  ;;  %v14246_v63 = vadd.f32 %v13884_v33, %v5082_v32 }
 0x556   : > { %v4998_v14 = vrot.slane %v4856_v3, 1  ;;  %v5962_v0 = vrot.slane %v5820_v60, 1  ;;  %v9899_v44 = vpop.f32.mrb[217].mxu1  ;;  %v10127_v27 = vpop.f32.mrb[29].mxu0 }
 0x557   : > { %v4859_v20 = vpop.f32.mrb[218].mxu1  ;;  %v5823_v30 = vpop.f32.mrb[30].mxu0 }
 0x558   : > { %v4999_v51 = vsel %vm1082_vm2, %v4996_v54, %v4998_v14  ;;  %v5000_v46 = vrot.slane %v4859_v20, 1  ;;  %v5964_v53 = vrot.slane %v5823_v30, 1  ;;  %v9900_v58 = vpop.f32.mrb[219].mxu1  ;;  %v10128_v34 = vpop.f32.mrb[31].mxu0  ;;  %v14250_v10 = vsel %vm1082_vm2, %v5960_v13, %v5962_v0  ;;  %v10603_v30 = vld [vmem:[%s15645_s4 + $0xe0] sm:$0xff]  }
 0x559   : > { %v5083_v45 = vadd.f32 %v4999_v51, %v13874_v61 }
 0x55a   : > { %v5001_v33 = vsel %vm1082_vm2, %v4998_v14, %v5000_v46  ;;  %10090 = vmatmul.mubr.msk.bf16.gmra.mrb[68].mxu1 %vm4490_vm4, %v13681_v29  ;;  %10318 = vmatmul.mubr.msk.bf16.gmra.mrb[136].mxu0 %vm4490_vm4, %v13727_v16  ;;  %v14259_v59 = vsel %vm1082_vm2, %v5962_v0, %v5964_v53 }
 0x55b   : > { %10177 = vmatprep.mubr.msk.bf16.mxu1 %vm10885_vm0, %v15690_v24  ;;  %10405 = vmatprep.mubr.msk.bf16.mxu0 %vm10885_vm0, %v15690_v24  ;;  %v14266_v54 = vadd.f32 %v13895_v18, %v5083_v45  ;;  %v5084_v61 = vadd.f32 %v5001_v33, %v13890_v9 }
 0x55d   : > { %v4864_v13 = vpop.f32.mrb[220].mxu1  ;;  %v5828_v32 = vpop.f32.mrb[32].mxu0  ;;  %v14270_v3 = vadd.f32 %v13902_v15, %v5084_v61 }
 0x55e   : > { %v5002_v60 = vrot.slane %v4864_v13, 1  ;;  %v5966_v14 = vrot.slane %v5828_v32, 1  ;;  %v9903_v0 = vpop.f32.mrb[221].mxu1  ;;  %v10131_v44 = vpop.f32.mrb[33].mxu0 }
 0x55f   : > { %v4867_v27 = vpop.f32.mrb[222].mxu1  ;;  %v5831_v20 = vpop.f32.mrb[34].mxu0 }
 0x560   : > { %v5003_v18 = vsel %vm1082_vm2, %v5000_v46, %v5002_v60  ;;  %v5004_v51 = vrot.slane %v4867_v27, 1  ;;  %v5968_v58 = vrot.slane %v5831_v20, 1  ;;  %v9904_v9 = vpop.f32.mrb[223].mxu1  ;;  %v10132_v34 = vpop.f32.mrb[35].mxu0  ;;  %v14277_v45 = vsel %vm1082_vm2, %v5964_v53, %v5966_v14  ;;  %v10604_v46 = vld [vmem:[%s15645_s4 + $0xe8] sm:$0xff]  }
 0x561   : > { %v5085_v15 = vadd.f32 %v5003_v18, %v13892_v47 }
 0x562   : > { %v5005_v33 = vsel %vm1082_vm2, %v5002_v60, %v5004_v51  ;;  %10178 = vmatmul.mubr.msk.bf16.vlgmr.msra.gmra.mrb[72].mxu1 %vm4490_vm4, %v13405_v43  ;;  %10406 = vmatmul.mubr.msk.bf16.vlgmr.msra.gmra.mrb[140].mxu0 %vm4490_vm4, %v13443_v19  ;;  %v14286_v61 = vsel %vm1082_vm2, %v5966_v14, %v5968_v58 }
 0x563   : > { %10322 = vmatpush3.bf16.msra.mxu1 %v10603_v30  ;;  %10181 = vmatprep.mubr.msk.bf16.mxu1 %vm10885_vm0, %v15690_v24  ;;  %v14294_v47 = vadd.f32 %v13916_v2, %v5085_v15  ;;  %v5086_v53 = vadd.f32 %v5005_v33, %v13908_v39  ;;  %v15811_v15 = vld [vmem:[#allocation16_spill] sm:$0xff] }
 0x564   : > { %10409 = vmatprep.mubr.msk.bf16.mxu0 %vm10885_vm0, %v15690_v24  ;;  %10323 = vmatprep.subr.bf16.mxu1 %v15690_v24 }
 0x565   : > { %v4872_v43 = vpop.f32.mrb[224].mxu1  ;;  %v5836_v13 = vpop.f32.mrb[36].mxu0  ;;  %v14301_v32 = vadd.f32 %v13926_v62, %v5086_v53  ;;  %v10605_v62 = vld [vmem:[%s15645_s4 + $0xf0] sm:$0xff]  }
 0x566   : > { %v5006_v60 = vrot.slane %v4872_v43, 1  ;;  %v5970_v14 = vrot.slane %v5836_v13, 1  ;;  %v9907_v0 = vpop.f32.mrb[225].mxu1  ;;  %v10135_v44 = vpop.f32.mrb[37].mxu0  ;;  %v15815_v43 = vld [vmem:[#allocation15_spill] sm:$0xff] }
 0x567   : > { %v4875_v27 = vpop.f32.mrb[226].mxu1  ;;  %v5839_v20 = vpop.f32.mrb[38].mxu0  ;;  %10324 = vmatpush3.bf16.msra.mxu1 %v10604_v46 }
 0x568   : > { %v5007_v2 = vsel %vm1082_vm2, %v5004_v51, %v5006_v60  ;;  %v5008_v39 = vrot.slane %v4875_v27, 1  ;;  %v5972_v30 = vrot.slane %v5839_v20, 1  ;;  %v9908_v18 = vpop.f32.mrb[227].mxu1  ;;  %v10136_v9 = vpop.f32.mrb[39].mxu0  ;;  %10325 = vmatprep.subr.bf16.mxu1 %v15690_v24  ;;  %v14309_v34 = vsel %vm1082_vm2, %v5968_v58, %v5970_v14  ;;  %v15813_v58 = vld [vmem:[#allocation17_spill] sm:$0xff] }
 0x569   : > { %15810 = vst [vmem:[#allocation44_spill] sm:$0xff] %v14309_v34  ;;  %v5087_v33 = vadd.f32 %v5007_v2, %v15811_v15  ;;  %v15818_v34 = vld [vmem:[#allocation18_spill] sm:$0xff] }
 0x56a   : > { %v5009_v53 = vsel %vm1082_vm2, %v5006_v60, %v5008_v39  ;;  %10182 = vmatmul.mubr.msk.bf16.gmra.mrb[76].mxu1 %vm4490_vm4, %v13427_v40  ;;  %10410 = vmatmul.mubr.msk.bf16.gmra.mrb[144].mxu0 %vm4490_vm4, %v13459_v49  ;;  %v14318_v51 = vsel %vm1082_vm2, %v5970_v14, %v5972_v30  ;;  %v10606_v40 = vld [vmem:[%s15645_s4 + $0xf8] sm:$0xff]   ;;  %v15816_v14 = vld [vmem:[#allocation3_spill] sm:$0xff] }
 0x56b   : > { %15812 = vst [vmem:[#allocation16_spill] sm:$0xff] %v14318_v51  ;;  %10185 = vmatprep.mubr.msk.bf16.mxu1 %vm10885_vm0, %v15690_v24  ;;  %10413 = vmatprep.mubr.msk.bf16.mxu0 %vm10885_vm0, %v15690_v24  ;;  %v14325_v46 = vadd.f32 %v15813_v58, %v5087_v33  ;;  %v5088_v13 = vadd.f32 %v5009_v53, %v15815_v43 }
 0x56c   : > { %10326 = vmatpush3.bf16.msra.mxu1 %v10605_v62 }
 0x56d   : > { %15814 = vst [vmem:[#allocation17_spill] sm:$0xff] %v14325_v46  ;;  %v4880_v60 = vpop.f32.mrb[228].mxu1  ;;  %v5844_v0 = vpop.f32.mrb[40].mxu0  ;;  %10327 = vmatprep.subr.bf16.mxu1 %v15690_v24  ;;  %v14333_v44 = vadd.f32 %v15816_v14, %v5088_v13  ;;  %v15822_v14 = vld [vmem:[#allocation4_spill] sm:$0xff] }
 0x56e   : > { %v5010_v27 = vrot.slane %v4880_v60, 1  ;;  %v5974_v20 = vrot.slane %v5844_v0, 1  ;;  %v9911_v2 = vpop.f32.mrb[229].mxu1  ;;  %v10139_v18 = vpop.f32.mrb[41].mxu0 }
 0x56f   : > { %v4883_v9 = vpop.f32.mrb[230].mxu1  ;;  %v5847_v15 = vpop.f32.mrb[42].mxu0 }
 0x570   : > { %v5011_v33 = vsel %vm1082_vm2, %v5008_v39, %v5010_v27  ;;  %v5012_v62 = vrot.slane %v4883_v9, 1  ;;  %v5976_v53 = vrot.slane %v5847_v15, 1  ;;  %v9912_v58 = vpop.f32.mrb[231].mxu1  ;;  %v10140_v43 = vpop.f32.mrb[43].mxu0  ;;  %10328 = vmatpush3.bf16.msra.mxu1 %v10606_v40  ;;  %v14337_v51 = vsel %vm1082_vm2, %v5972_v30, %v5974_v20 }
 0x571   : > { %15817 = vst [vmem:[#allocation15_spill] sm:$0xff] %v14337_v51  ;;  %v5089_v46 = vadd.f32 %v5011_v33, %v15818_v34  ;;  %v15821_v34 = vld [vmem:[#allocation19_spill] sm:$0xff] }
 0x572   : > { %v5013_v13 = vsel %vm1082_vm2, %v5010_v27, %v5012_v62  ;;  %10186 = vmatmul.mubr.msk.bf16.gmra.mrb[80].mxu1 %vm4490_vm4, %v13443_v19  ;;  %10414 = vmatmul.mubr.msk.bf16.gmra.mrb[148].mxu0 %vm4490_vm4, %v13475_v37  ;;  %v14346_v39 = vsel %vm1082_vm2, %v5974_v20, %v5976_v53 }
 0x573   : > { %15819 = vst [vmem:[#allocation3_spill] sm:$0xff] %v14346_v39  ;;  %10189 = vmatprep.mubr.msk.bf16.mxu1 %vm10885_vm0, %v15690_v24  ;;  %10417 = vmatprep.mubr.msk.bf16.mxu0 %vm10885_vm0, %v15690_v24  ;;  %v14353_v30 = vadd.f32 %v13979_v12, %v5089_v46  ;;  %v5090_v40 = vadd.f32 %v5013_v13, %v15821_v34  ;;  %v15825_v13 = vld [vmem:[#allocation2_spill] sm:$0xff] }
 0x575   : > { %15820 = vst [vmem:[#allocation18_spill] sm:$0xff] %v14353_v30  ;;  %v4888_v60 = vpop.f32.mrb[232].mxu1  ;;  %v5852_v0 = vpop.f32.mrb[44].mxu0  ;;  %v14357_v27 = vadd.f32 %v15822_v14, %v5090_v40 }
 0x576   : > { %v5014_v2 = vrot.slane %v4888_v60, 1  ;;  %v5978_v18 = vrot.slane %v5852_v0, 1  ;;  %v9915_v20 = vpop.f32.mrb[233].mxu1  ;;  %v10143_v9 = vpop.f32.mrb[45].mxu0  ;;  %v15826_v60 = vld [vmem:[#allocation7_spill] sm:$0xff] }
 0x577   : > { %15823 = vst [vmem:[#allocation19_spill] sm:$0xff] %v14357_v27  ;;  %v4891_v15 = vpop.f32.mrb[234].mxu1  ;;  %v5855_v33 = vpop.f32.mrb[46].mxu0  ;;  %v15831_v9 = vld [vmem:[#allocation21_spill] sm:$0xff] }
 0x578   : > { %v5015_v58 = vsel %vm1082_vm2, %v5012_v62, %v5014_v2  ;;  %v5016_v43 = vrot.slane %v4891_v15, 1  ;;  %v5980_v39 = vrot.slane %v5855_v33, 1  ;;  %v9916_v51 = vpop.f32.mrb[235].mxu1  ;;  %v10144_v12 = vpop.f32.mrb[47].mxu0  ;;  %v14361_v46 = vsel %vm1082_vm2, %v5976_v53, %v5978_v18  ;;  %v15830_v53 = vld [vmem:[#allocation6_spill] sm:$0xff] }
 0x579   : > { %15824 = vst [vmem:[#allocation4_spill] sm:$0xff] %v14361_v46  ;;  %v5091_v34 = vadd.f32 %v5015_v58, %v15825_v13  ;;  %v15828_v51 = vld [vmem:[#allocation20_spill] sm:$0xff] }
 0x57a   : > { %v5017_v40 = vsel %vm1082_vm2, %v5014_v2, %v5016_v43  ;;  %10190 = vmatmul.mubr.msk.bf16.gmra.mrb[84].mxu1 %vm4490_vm4, %v13459_v49  ;;  %10418 = vmatmul.mubr.msk.bf16.gmra.mrb[152].mxu0 %vm4490_vm4, %v15826_v60  ;;  %v14370_v0 = vsel %vm1082_vm2, %v5978_v18, %v5980_v39 }
 0x57b   : > { %15827 = vst [vmem:[#allocation2_spill] sm:$0xff] %v14370_v0  ;;  %10193 = vmatprep.mubr.msk.bf16.mxu1 %vm10885_vm0, %v15690_v24  ;;  %10421 = vmatprep.mubr.msk.bf16.mxu0 %vm10885_vm0, %v15690_v24  ;;  %v14377_v62 = vadd.f32 %v15828_v51, %v5091_v34  ;;  %v5092_v14 = vadd.f32 %v5017_v40, %v15830_v53  ;;  %v15834_v40 = vld [vmem:[#allocation5_spill] sm:$0xff] }
 0x57d   : > { %15829 = vst [vmem:[#allocation20_spill] sm:$0xff] %v14377_v62  ;;  %v4896_v2 = vpop.f32.mrb[236].mxu1  ;;  %v5860_v20 = vpop.f32.mrb[48].mxu0  ;;  %v14381_v15 = vadd.f32 %v15831_v9, %v5092_v14 }
 0x57e   : > { %v5018_v33 = vrot.slane %v4896_v2, 1  ;;  %v5982_v58 = vrot.slane %v5860_v20, 1  ;;  %v9919_v18 = vpop.f32.mrb[237].mxu1  ;;  %v10147_v12 = vpop.f32.mrb[49].mxu0  ;;  %v15835_v2 = vld [vmem:[#allocation10_spill] sm:$0xff] }
 0x57f   : > { %15832 = vst [vmem:[#allocation6_spill] sm:$0xff] %v14381_v15  ;;  %v4899_v13 = vpop.f32.mrb[238].mxu1  ;;  %v5863_v0 = vpop.f32.mrb[50].mxu0 }
 0x580   : > { %v5019_v46 = vsel %vm1082_vm2, %v5016_v43, %v5018_v33  ;;  %v5020_v27 = vrot.slane %v4899_v13, 1  ;;  %v5984_v49 = vrot.slane %v5863_v0, 1  ;;  %v9920_v30 = vpop.f32.mrb[239].mxu1  ;;  %v10148_v34 = vpop.f32.mrb[51].mxu0  ;;  %v14385_v51 = vsel %vm1082_vm2, %v5980_v39, %v5982_v58  ;;  %v15837_v39 = vld [vmem:[#allocation24_spill] sm:$0xff]  ;;  %v15839_v43 = vld [vmem:[#allocation22_spill] sm:$0xff] }
 0x581   : > { %15833 = vst [vmem:[#allocation21_spill] sm:$0xff] %v14385_v51  ;;  %v5093_v53 = vadd.f32 %v5019_v46, %v15834_v40 }
 0x582   : > { %v5021_v14 = vsel %vm1082_vm2, %v5018_v33, %v5020_v27  ;;  %10194 = vmatmul.mubr.msk.bf16.gmra.mrb[88].mxu1 %vm4490_vm4, %v13475_v37  ;;  %10422 = vmatmul.mubr.msk.bf16.gmra.mrb[156].mxu0 %vm4490_vm4, %v15835_v2  ;;  %v14394_v20 = vsel %vm1082_vm2, %v5982_v58, %v5984_v49  ;;  %v15840_v33 = vld [vmem:[#allocation25_spill] sm:$0xff] }
 0x583   : > { %15836 = vst [vmem:[#allocation5_spill] sm:$0xff] %v14394_v20  ;;  %10197 = vmatprep.mubr.msk.bf16.mxu1 %vm10885_vm0, %v15690_v24  ;;  %10425 = vmatprep.mubr.msk.bf16.mxu0 %vm10885_vm0, %v15690_v24  ;;  %v14401_v30 = vadd.f32 %v15837_v39, %v5093_v53  ;;  %v5094_v46 = vadd.f32 %v5021_v14, %v15839_v43  ;;  %v15843_v14 = vld [vmem:[#allocation23_spill] sm:$0xff] }
 0x585   : > { %15838 = vst [vmem:[#allocation24_spill] sm:$0xff] %v14401_v30  ;;  %v4904_v0 = vpop.f32.mrb[240].mxu1  ;;  %v5868_v9 = vpop.f32.mrb[52].mxu0  ;;  %v14405_v18 = vadd.f32 %v15840_v33, %v5094_v46 }
 0x586   : > { %v5022_v12 = vrot.slane %v4904_v0, 1  ;;  %v5986_v13 = vrot.slane %v5868_v9, 1  ;;  %v9923_v58 = vpop.f32.mrb[241].mxu1  ;;  %v10151_v34 = vpop.f32.mrb[53].mxu0  ;;  %v15844_v0 = vld [vmem:[#allocation11_spill] sm:$0xff] }
 0x587   : > { %15841 = vst [vmem:[#allocation22_spill] sm:$0xff] %v14405_v18  ;;  %v4907_v40 = vpop.f32.mrb[242].mxu1  ;;  %v5871_v20 = vpop.f32.mrb[54].mxu0 }
 0x588   : > { %v5023_v51 = vsel %vm1082_vm2, %v5020_v27, %v5022_v12  ;;  %v5024_v15 = vrot.slane %v4907_v40, 1  ;;  %v5988_v37 = vrot.slane %v5871_v20, 1  ;;  %v9924_v62 = vpop.f32.mrb[243].mxu1  ;;  %v10152_v53 = vpop.f32.mrb[55].mxu0  ;;  %v14409_v39 = vsel %vm1082_vm2, %v5984_v49, %v5986_v13  ;;  %v15846_v49 = vld [vmem:[#allocation28_spill] sm:$0xff] }
 0x589   : > { %15842 = vst [vmem:[#allocation25_spill] sm:$0xff] %v14409_v39  ;;  %v5095_v43 = vadd.f32 %v5023_v51, %v15843_v14  ;;  %v15848_v62 = vld [vmem:[#allocation26_spill] sm:$0xff] }
 0x58a   : > { %v5025_v46 = vsel %vm1082_vm2, %v5022_v12, %v5024_v15  ;;  %10198 = vmatmul.mubr.msk.bf16.gmra.mrb[92].mxu1 %vm4490_vm4, %v15826_v60  ;;  %10426 = vmatmul.mubr.msk.bf16.gmra.mrb[160].mxu0 %vm4490_vm4, %v15844_v0  ;;  %v14418_v9 = vsel %vm1082_vm2, %v5986_v13, %v5988_v37  ;;  %v15849_v12 = vld [vmem:[#allocation29_spill] sm:$0xff] }
 0x58b   : > { %15845 = vst [vmem:[#allocation23_spill] sm:$0xff] %v14418_v9  ;;  %10201 = vmatprep.mubr.msk.bf16.mxu1 %vm10885_vm0, %v15690_v24  ;;  %10429 = vmatprep.mubr.msk.bf16.mxu0 %vm10885_vm0, %v15690_v24  ;;  %v14425_v27 = vadd.f32 %v15846_v49, %v5095_v43  ;;  %v5096_v51 = vadd.f32 %v5025_v46, %v15848_v62  ;;  %v15852_v46 = vld [vmem:[#allocation27_spill] sm:$0xff] }
 0x58d   : > { %15847 = vst [vmem:[#allocation28_spill] sm:$0xff] %v14425_v27  ;;  %v4912_v20 = vpop.f32.mrb[244].mxu1  ;;  %v5876_v33 = vpop.f32.mrb[56].mxu0  ;;  %v14429_v58 = vadd.f32 %v15849_v12, %v5096_v51 }
 0x58e   : > { %v5026_v34 = vrot.slane %v4912_v20, 1  ;;  %v5990_v40 = vrot.slane %v5876_v33, 1  ;;  %v9927_v13 = vpop.f32.mrb[245].mxu1  ;;  %v10155_v53 = vpop.f32.mrb[57].mxu0  ;;  %v15853_v20 = vld [vmem:[#allocation12_spill] sm:$0xff] }
 0x58f   : > { %15850 = vst [vmem:[#allocation26_spill] sm:$0xff] %v14429_v58  ;;  %v4915_v14 = vpop.f32.mrb[246].mxu1  ;;  %v5879_v9 = vpop.f32.mrb[58].mxu0 }
 0x590   : > { %v5027_v39 = vsel %vm1082_vm2, %v5024_v15, %v5026_v34  ;;  %v5028_v18 = vrot.slane %v4915_v14, 1  ;;  %v5992_v60 = vrot.slane %v5879_v9, 1  ;;  %v9928_v30 = vpop.f32.mrb[247].mxu1  ;;  %v10156_v43 = vpop.f32.mrb[59].mxu0  ;;  %v14433_v49 = vsel %vm1082_vm2, %v5988_v37, %v5990_v40  ;;  %v15855_v37 = vld [vmem:[#allocation32_spill] sm:$0xff] }
 0x591   : > { %15851 = vst [vmem:[#allocation29_spill] sm:$0xff] %v14433_v49  ;;  %v5097_v62 = vadd.f32 %v5027_v39, %v15852_v46  ;;  %v15857_v30 = vld [vmem:[#allocation30_spill] sm:$0xff] }
 0x592   : > { %v5029_v51 = vsel %vm1082_vm2, %v5026_v34, %v5028_v18  ;;  %10202 = vmatmul.mubr.msk.bf16.gmra.mrb[96].mxu1 %vm4490_vm4, %v15835_v2  ;;  %10430 = vmatmul.mubr.msk.bf16.gmra.mrb[164].mxu0 %vm4490_vm4, %v15853_v20  ;;  %v14442_v33 = vsel %vm1082_vm2, %v5990_v40, %v5992_v60  ;;  %v15858_v34 = vld [vmem:[#allocation33_spill] sm:$0xff] }
 0x593   : > { %15854 = vst [vmem:[#allocation27_spill] sm:$0xff] %v14442_v33  ;;  %10205 = vmatprep.mubr.msk.bf16.mxu1 %vm10885_vm0, %v15690_v24  ;;  %10433 = vmatprep.mubr.msk.bf16.mxu0 %vm10885_vm0, %v15690_v24  ;;  %v14449_v15 = vadd.f32 %v15855_v37, %v5097_v62  ;;  %v5098_v39 = vadd.f32 %v5029_v51, %v15857_v30  ;;  %v15861_v51 = vld [vmem:[#allocation31_spill] sm:$0xff] }
 0x595   : > { %15856 = vst [vmem:[#allocation32_spill] sm:$0xff] %v14449_v15  ;;  %v4920_v9 = vpop.f32.mrb[248].mxu1  ;;  %v5884_v12 = vpop.f32.mrb[60].mxu0  ;;  %v14453_v13 = vadd.f32 %v15858_v34, %v5098_v39 }
 0x596   : > { %v5030_v53 = vrot.slane %v4920_v9, 1  ;;  %v5994_v14 = vrot.slane %v5884_v12, 1  ;;  %v9931_v40 = vpop.f32.mrb[249].mxu1  ;;  %v10159_v43 = vpop.f32.mrb[61].mxu0  ;;  %v15862_v9 = vld [vmem:[#allocation14_spill] sm:$0xff] }
 0x597   : > { %15859 = vst [vmem:[#allocation30_spill] sm:$0xff] %v14453_v13  ;;  %v4923_v46 = vpop.f32.mrb[250].mxu1  ;;  %v5887_v33 = vpop.f32.mrb[62].mxu0 }
 0x598   : > { %v5031_v49 = vsel %vm1082_vm2, %v5028_v18, %v5030_v53  ;;  %v5032_v58 = vrot.slane %v4923_v46, 1  ;;  %v5996_v2 = vrot.slane %v5887_v33, 1  ;;  %v9932_v27 = vpop.f32.mrb[251].mxu1  ;;  %v10160_v62 = vpop.f32.mrb[63].mxu0  ;;  %v14457_v37 = vsel %vm1082_vm2, %v5992_v60, %v5994_v14  ;;  %v15864_v60 = vld [vmem:[#allocation36_spill] sm:$0xff] }
 0x599   : > { %15860 = vst [vmem:[#allocation33_spill] sm:$0xff] %v14457_v37  ;;  %v5099_v30 = vadd.f32 %v5031_v49, %v15861_v51  ;;  %v15865_v27 = vld [vmem:[#allocation34_spill] sm:$0xff] }
 0x59a   : > { %v5033_v39 = vsel %vm1082_vm2, %v5030_v53, %v5032_v58  ;;  %10206 = vmatmul.mubr.msk.bf16.gmra.mrb[100].mxu1 %vm4490_vm4, %v15844_v0  ;;  %10434 = vmatmul.mubr.msk.bf16.gmra.mrb[168].mxu0 %vm4490_vm4, %v15862_v9  ;;  %v14466_v12 = vsel %vm1082_vm2, %v5994_v14, %v5996_v2  ;;  %v15866_v53 = vld [vmem:[#allocation37_spill] sm:$0xff] }
 0x59b   : > { %15863 = vst [vmem:[#allocation31_spill] sm:$0xff] %v14466_v12  ;;  %10209 = vmatprep.mubr.msk.bf16.mxu1 %vm10885_vm0, %v15690_v24  ;;  %10437 = vmatprep.mubr.msk.bf16.mxu0 %vm10885_vm0, %v15690_v24  ;;  %v14473_v18 = vadd.f32 %v15864_v60, %v5099_v30  ;;  %v5100_v49 = vadd.f32 %v5033_v39, %v15865_v27  ;;  %v15869_v39 = vld [vmem:[#allocation35_spill] sm:$0xff] }
 0x59d   : > { %v4928_v33 = vpop.f32.mrb[252].mxu1  ;;  %v5892_v34 = vpop.f32.mrb[64].mxu0  ;;  %v14477_v40 = vadd.f32 %v15866_v53, %v5100_v49 }
 0x59e   : > { %v5034_v43 = vrot.slane %v4928_v33, 1  ;;  %v5998_v46 = vrot.slane %v5892_v34, 1  ;;  %v9935_v14 = vpop.f32.mrb[253].mxu1  ;;  %v10163_v62 = vpop.f32.mrb[65].mxu0  ;;  %v15870_v33 = vld [vmem:[#allocation13_spill] sm:$0xff] }
 0x59f   : > { %15867 = vst [vmem:[#allocation14_spill] sm:$0xff] %v14477_v40  ;;  %v4931_v51 = vpop.f32.mrb[254].mxu1  ;;  %v5895_v12 = vpop.f32.mrb[66].mxu0 }
 0x5a0   : > { %v5035_v37 = vsel %vm1082_vm2, %v5032_v58, %v5034_v43  ;;  %v5036_v13 = vrot.slane %v4931_v51, 1  ;;  %v6000_v0 = vrot.slane %v5895_v12, 1  ;;  %v9936_v15 = vpop.f32.mrb[255].mxu1  ;;  %v10164_v30 = vpop.f32.mrb[67].mxu0  ;;  %v14481_v60 = vsel %vm1082_vm2, %v5996_v2, %v5998_v46  ;;  %v15872_v2 = vld [vmem:[#allocation40_spill] sm:$0xff] }
 0x5a1   : > { %15868 = vst [vmem:[#allocation36_spill] sm:$0xff] %v14481_v60  ;;  %v5101_v27 = vadd.f32 %v5035_v37, %v15869_v39  ;;  %v15873_v15 = vld [vmem:[#allocation38_spill] sm:$0xff] }
 0x5a2   : > { %v5037_v49 = vsel %vm1082_vm2, %v5034_v43, %v5036_v13  ;;  %10210 = vmatmul.mubr.msk.bf16.gmra.mrb[104].mxu1 %vm4490_vm4, %v15853_v20  ;;  %10438 = vmatmul.mubr.msk.bf16.gmra.mrb[172].mxu0 %vm4490_vm4, %v15870_v33  ;;  %v14490_v34 = vsel %vm1082_vm2, %v5998_v46, %v6000_v0  ;;  %v15874_v43 = vld [vmem:[#allocation41_spill] sm:$0xff] }
 0x5a3   : > { %15871 = vst [vmem:[#allocation34_spill] sm:$0xff] %v14490_v34  ;;  %10213 = vmatprep.mubr.msk.bf16.mxu1 %vm10885_vm0, %v15690_v24  ;;  %10441 = vmatprep.mubr.msk.bf16.mxu0 %vm10885_vm0, %v15690_v24  ;;  %v14497_v58 = vadd.f32 %v15872_v2, %v5101_v27  ;;  %v5102_v37 = vadd.f32 %v5037_v49, %v15873_v15  ;;  %v15875_v2 = vld [vmem:[#allocation39_spill] sm:$0xff] }
 0x5a5   : > { %v4936_v12 = vpop.f32.mrb[0].mxu1  ;;  %v5900_v53 = vpop.f32.mrb[68].mxu0  ;;  %v14501_v14 = vadd.f32 %v15874_v43, %v5102_v37 }
 0x5a6   : > { %v5038_v62 = vrot.slane %v4936_v12, 1  ;;  %v6002_v51 = vrot.slane %v5900_v53, 1  ;;  %v9939_v46 = vpop.f32.mrb[1].mxu1  ;;  %v10167_v30 = vpop.f32.mrb[69].mxu0  ;;  %v15877_v53 = vld [vmem:[#allocation43_spill] sm:$0xff] }
 0x5a7   : > { %v4939_v39 = vpop.f32.mrb[2].mxu1  ;;  %v5903_v34 = vpop.f32.mrb[70].mxu0 }
 0x5a8   : > { %v5039_v60 = vsel %vm1082_vm2, %v5036_v13, %v5038_v62  ;;  %v9940_v40 = vpop.f32.mrb[3].mxu1  ;;  %v10168_v20 = vpop.f32.mrb[71].mxu0  ;;  %v14505_v27 = vsel %vm1082_vm2, %v6000_v0, %v6002_v51  ;;  %v15876_v13 = vld [vmem:[#allocation42_spill] sm:$0xff] }
 0x5a9   : > { %v5103_v49 = vadd.f32 %v5039_v60, %v15875_v2 }
 0x5aa   : > { %10214 = vmatmul.mubr.msk.bf16.gmra.mrb[108].mxu1 %vm4490_vm4, %v15862_v9  ;;  %10442 = vmatmul.mubr.msk.bf16.gmra.mrb[176].mxu0 %vm4490_vm4, %v13587_v48 }
 0x5ab   : > { %10217 = vmatprep.mubr.msk.bf16.mxu1 %vm10885_vm0, %v15690_v24  ;;  %10445 = vmatprep.mubr.msk.bf16.mxu0 %vm10885_vm0, %v15690_v24  ;;  %v14517_v40 = vadd.f32 %v15876_v13, %v5103_v49 }
 0x5ad   : > { %v5540_v20 = vpop.f32.mrb[4].mxu1  ;;  %v14519_v0 = vpop.f32.mrb[72].mxu0 }
 0x5ae   : > { %v5673_v60 = vadd.f32 %v5540_v20, %v14126_v4  ;;  %v10027_v34 = vpop.f32.mrb[5].mxu1  ;;  %v10255_v15 = vpop.f32.mrb[73].mxu0 }
 0x5af   : > { %v5543_v37 = vpop.f32.mrb[6].mxu1  ;;  %v14522_v12 = vpop.f32.mrb[74].mxu0 }
 0x5b0   : > { %v14525_v43 = vadd.f32 %v15877_v53, %v5673_v60  ;;  %v5674_v62 = vadd.f32 %v5543_v37, %v14146_v56  ;;  %v10028_v51 = vpop.f32.mrb[7].mxu1  ;;  %v10256_v46 = vpop.f32.mrb[75].mxu0 }
 0x5b2   : > { %v14529_v30 = vadd.f32 %v14130_v41, %v5674_v62  ;;  %10218 = vmatmul.mubr.msk.bf16.gmra.mrb[112].mxu1 %vm4490_vm4, %v15870_v33  ;;  %10446 = vmatmul.mubr.msk.bf16.gmra.mrb[180].mxu0 %vm4490_vm4, %v13603_v50 }
 0x5b3   : > { %10221 = vmatprep.mubr.msk.bf16.mxu1 %vm10885_vm0, %v15690_v24  ;;  %10449 = vmatprep.mubr.msk.bf16.mxu0 %vm10885_vm0, %v15690_v24 }
 0x5b5   : > { %v5548_v4 = vpop.f32.mrb[8].mxu1  ;;  %v14539_v39 = vpop.f32.mrb[76].mxu0 }
 0x5b6   : > { %v5675_v56 = vadd.f32 %v5548_v4, %v14150_v38  ;;  %v10031_v2 = vpop.f32.mrb[9].mxu1  ;;  %v10259_v41 = vpop.f32.mrb[77].mxu0 }
 0x5b7   : > { %v5551_v49 = vpop.f32.mrb[10].mxu1  ;;  %v14542_v13 = vpop.f32.mrb[78].mxu0 }
 0x5b8   : > { %v14545_v20 = vadd.f32 %v14139_v28, %v5675_v56  ;;  %v5676_v60 = vadd.f32 %v5551_v49, %v14170_v8  ;;  %v10032_v34 = vpop.f32.mrb[11].mxu1  ;;  %v10260_v15 = vpop.f32.mrb[79].mxu0 }
 0x5ba   : > { %v14549_v37 = vadd.f32 %v14154_v55, %v5676_v60  ;;  %10222 = vmatmul.mubr.msk.bf16.gmra.mrb[116].mxu1 %vm4490_vm4, %v13587_v48  ;;  %10450 = vmatmul.mubr.msk.bf16.gmra.mrb[184].mxu0 %vm4490_vm4, %v13619_v21 }
 0x5bb   : > { %10225 = vmatprep.mubr.msk.bf16.mxu1 %vm10885_vm0, %v15690_v24  ;;  %10453 = vmatprep.mubr.msk.bf16.mxu0 %vm10885_vm0, %v15690_v24 }
 0x5bd   : > { %v5556_v28 = vpop.f32.mrb[12].mxu1  ;;  %v14559_v38 = vpop.f32.mrb[80].mxu0 }
 0x5be   : > { %v5677_v8 = vadd.f32 %v5556_v28, %v14174_v23  ;;  %v10035_v53 = vpop.f32.mrb[13].mxu1  ;;  %v10263_v55 = vpop.f32.mrb[81].mxu0 }
 0x5bf   : > { %v5559_v62 = vpop.f32.mrb[14].mxu1  ;;  %v14562_v51 = vpop.f32.mrb[82].mxu0 }
 0x5c0   : > { %v14565_v46 = vadd.f32 %v14163_v22, %v5677_v8  ;;  %v5678_v4 = vadd.f32 %v5559_v62, %v14194_v42  ;;  %v10036_v56 = vpop.f32.mrb[15].mxu1  ;;  %v10264_v2 = vpop.f32.mrb[83].mxu0 }
 0x5c2   : > { %v14569_v41 = vadd.f32 %v14178_v7, %v5678_v4  ;;  %10226 = vmatmul.mubr.msk.bf16.gmra.mrb[120].mxu1 %vm4490_vm4, %v13603_v50  ;;  %10454 = vmatmul.mubr.msk.bf16.gmra.mrb[188].mxu0 %vm4490_vm4, %v13635_v35 }
 0x5c3   : > { %10229 = vmatprep.mubr.msk.bf16.mxu1 %vm10885_vm0, %v15690_v24  ;;  %10457 = vmatprep.mubr.msk.bf16.mxu0 %vm10885_vm0, %v15690_v24 }
 0x5c5   : > { %v5564_v22 = vpop.f32.mrb[16].mxu1  ;;  %v14579_v23 = vpop.f32.mrb[84].mxu0 }
 0x5c6   : > { %v5679_v42 = vadd.f32 %v5564_v22, %v14198_v31  ;;  %v10039_v49 = vpop.f32.mrb[17].mxu1  ;;  %v10267_v7 = vpop.f32.mrb[85].mxu0 }
 0x5c7   : > { %v5567_v60 = vpop.f32.mrb[18].mxu1  ;;  %v14582_v34 = vpop.f32.mrb[86].mxu0 }
 0x5c8   : > { %v14585_v15 = vadd.f32 %v14187_v25, %v5679_v42  ;;  %v5680_v28 = vadd.f32 %v5567_v60, %v14218_v1  ;;  %v10040_v8 = vpop.f32.mrb[19].mxu1  ;;  %v10268_v53 = vpop.f32.mrb[87].mxu0 }
 0x5ca   : > { %v14589_v55 = vadd.f32 %v14202_v6, %v5680_v28  ;;  %10230 = vmatmul.mubr.msk.bf16.gmra.mrb[124].mxu1 %vm4490_vm4, %v13619_v21  ;;  %10458 = vmatmul.mubr.msk.bf16.gmra.mrb[192].mxu0 %vm4490_vm4, %v13654_v52 }
 0x5cb   : > { %10233 = vmatprep.mubr.msk.bf16.mxu1 %vm10885_vm0, %v15690_v24  ;;  %10461 = vmatprep.mubr.msk.bf16.mxu0 %vm10885_vm0, %v15690_v24 }
 0x5cd   : > { %v5572_v25 = vpop.f32.mrb[20].mxu1  ;;  %v14599_v31 = vpop.f32.mrb[88].mxu0 }
 0x5ce   : > { %v5681_v1 = vadd.f32 %v5572_v25, %v14222_v57  ;;  %v10043_v62 = vpop.f32.mrb[21].mxu1  ;;  %v10271_v6 = vpop.f32.mrb[89].mxu0 }
 0x5cf   : > { %v5575_v4 = vpop.f32.mrb[22].mxu1  ;;  %v14602_v56 = vpop.f32.mrb[90].mxu0 }
 0x5d0   : > { %v14605_v2 = vadd.f32 %v14211_v5, %v5681_v1  ;;  %v5682_v22 = vadd.f32 %v5575_v4, %v14242_v36  ;;  %v10044_v42 = vpop.f32.mrb[23].mxu1  ;;  %v10272_v49 = vpop.f32.mrb[91].mxu0 }
 0x5d2   : > { %v14609_v7 = vadd.f32 %v14226_v26, %v5682_v22  ;;  %10234 = vmatmul.mubr.msk.bf16.gmra.mrb[128].mxu1 %vm4490_vm4, %v13635_v35  ;;  %10462 = vmatmul.mubr.msk.bf16.gmra.mrb[196].mxu0 %vm4490_vm4, %v13681_v29 }
 0x5d3   : > { %10237 = vmatprep.mubr.msk.bf16.mxu1 %vm10885_vm0, %v15690_v24  ;;  %10465 = vmatprep.mubr.msk.bf16.mxu0 %vm10885_vm0, %v15690_v24 }
 0x5d5   : > { %v5580_v5 = vpop.f32.mrb[24].mxu1  ;;  %v14619_v57 = vpop.f32.mrb[92].mxu0 }
 0x5d6   : > { %v5683_v36 = vadd.f32 %v5580_v5, %v14246_v63  ;;  %v10047_v60 = vpop.f32.mrb[25].mxu1  ;;  %v10275_v26 = vpop.f32.mrb[93].mxu0 }
 0x5d7   : > { %v5583_v28 = vpop.f32.mrb[26].mxu1  ;;  %v14622_v8 = vpop.f32.mrb[94].mxu0 }
 0x5d8   : > { %v14625_v53 = vadd.f32 %v14235_v17, %v5683_v36  ;;  %v5684_v25 = vadd.f32 %v5583_v28, %v14266_v54  ;;  %v10048_v1 = vpop.f32.mrb[27].mxu1  ;;  %v10276_v62 = vpop.f32.mrb[95].mxu0 }
 0x5da   : > { %v14629_v6 = vadd.f32 %v14250_v10, %v5684_v25  ;;  %10238 = vmatmul.mubr.msk.bf16.gmra.mrb[132].mxu1 %vm4490_vm4, %v13654_v52  ;;  %10466 = vmatmul.mubr.msk.bf16.gmra.mrb[200].mxu0 %vm4490_vm4, %v13714_v11 }
 0x5db   : > { %10241 = vmatprep.mubr.msk.bf16.mxu1 %vm10885_vm0, %v15690_v24  ;;  %10469 = vmatprep.mubr.msk.bf16.mxu0 %vm10885_vm0, %v15690_v24 }
 0x5dd   : > { %v5588_v17 = vpop.f32.mrb[28].mxu1  ;;  %v14639_v63 = vpop.f32.mrb[96].mxu0 }
 0x5de   : > { %v5685_v54 = vadd.f32 %v5588_v17, %v14270_v3  ;;  %v10051_v4 = vpop.f32.mrb[29].mxu1  ;;  %v10279_v10 = vpop.f32.mrb[97].mxu0  ;;  %v15879_v17 = vld [vmem:[#allocation17_spill] sm:$0xff] }
 0x5df   : > { %v5591_v22 = vpop.f32.mrb[30].mxu1  ;;  %v14642_v42 = vpop.f32.mrb[98].mxu0 }
 0x5e0   : > { %v14645_v49 = vadd.f32 %v14259_v59, %v5685_v54  ;;  %v5686_v5 = vadd.f32 %v5591_v22, %v14294_v47  ;;  %v10052_v36 = vpop.f32.mrb[31].mxu1  ;;  %v10280_v60 = vpop.f32.mrb[99].mxu0  ;;  %v15880_v22 = vld [vmem:[#allocation44_spill] sm:$0xff] }
 0x5e2   : > { %v14649_v26 = vadd.f32 %v14277_v45, %v5686_v5  ;;  %10242 = vmatmul.mubr.msk.bf16.gmra.mrb[136].mxu1 %vm4490_vm4, %v13681_v29  ;;  %10470 = vmatmul.mubr.msk.bf16.gmra.mrb[204].mxu0 %vm4490_vm4, %v13727_v16 }
 0x5e3   : > { %10329 = vmatprep.mubr.msk.bf16.mxu1 %vm10885_vm0, %v15690_v24 }
 0x5e5   : > { %v5596_v3 = vpop.f32.mrb[32].mxu1  ;;  %v14657_v28 = vpop.f32.mrb[100].mxu0 }
 0x5e6   : > { %v5687_v59 = vadd.f32 %v5596_v3, %v14301_v32  ;;  %v10055_v47 = vpop.f32.mrb[33].mxu1  ;;  %v10283_v25 = vpop.f32.mrb[101].mxu0 }
 0x5e7   : > { %v5599_v1 = vpop.f32.mrb[34].mxu1  ;;  %v14660_v62 = vpop.f32.mrb[102].mxu0  ;;  %v15883_v25 = vld [vmem:[#allocation16_spill] sm:$0xff] }
 0x5e8   : > { %15878 = vst [vmem:[#allocation37_spill] sm:$0xff] %v14660_v62  ;;  %v14663_v45 = vadd.f32 %v14286_v61, %v5687_v59  ;;  %v5688_v54 = vadd.f32 %v5599_v1, %v15879_v17  ;;  %v10056_v4 = vpop.f32.mrb[35].mxu1  ;;  %v10284_v10 = vpop.f32.mrb[103].mxu0  ;;  %v15885_v17 = vld [vmem:[#allocation18_spill] sm:$0xff]  ;;  %v15888_v62 = vld [vmem:[#allocation9_spill] sm:$0xff] }
 0x5e9   : > { %v15886_v10 = vld [vmem:[#allocation15_spill] sm:$0xff] }
 0x5ea   : > { %v14667_v5 = vadd.f32 %v15880_v22, %v5688_v54  ;;  %10330 = vmatmul.mubr.msk.bf16.vlgmr.msra.gmra.mrb[140].mxu1 %vm4490_vm4, %v13443_v19 }
 0x5eb   : > { %10333 = vmatprep.mubr.msk.bf16.mxu1 %vm10885_vm0, %v15690_v24 }
 0x5ed   : > { %v5604_v32 = vpop.f32.mrb[36].mxu1  ;;  %v14673_v36 = vpop.f32.mrb[104].mxu0 }
 0x5ee   : > { %15881 = vst [vmem:[#allocation35_spill] sm:$0xff] %v14673_v36  ;;  %v5689_v60 = vadd.f32 %v5604_v32, %v14333_v44  ;;  %v10059_v61 = vpop.f32.mrb[37].mxu1  ;;  %v10287_v3 = vpop.f32.mrb[105].mxu0 }
 0x5ef   : > { %v5607_v59 = vpop.f32.mrb[38].mxu1  ;;  %v14676_v47 = vpop.f32.mrb[106].mxu0  ;;  %v15890_v61 = vld [vmem:[#allocation19_spill] sm:$0xff] }
 0x5f0   : > { %15882 = vst [vmem:[#allocation13_spill] sm:$0xff] %v14676_v47  ;;  %v14679_v1 = vadd.f32 %v15883_v25, %v5689_v60  ;;  %v5690_v54 = vadd.f32 %v5607_v59, %v15885_v17  ;;  %v10060_v4 = vpop.f32.mrb[39].mxu1  ;;  %v10288_v19 = vpop.f32.mrb[107].mxu0  ;;  %v15892_v17 = vld [vmem:[#allocation3_spill] sm:$0xff] }
 0x5f2   : > { %15884 = vst [vmem:[#allocation40_spill] sm:$0xff] %v14679_v1  ;;  %v14683_v22 = vadd.f32 %v15886_v10, %v5690_v54  ;;  %10334 = vmatmul.mubr.msk.bf16.gmra.mrb[144].mxu1 %vm4490_vm4, %v15888_v62  ;;  %v15894_v54 = vld [vmem:[#allocation20_spill] sm:$0xff] }
 0x5f3   : > { %10337 = vmatprep.mubr.msk.bf16.mxu1 %vm10885_vm0, %v15690_v24  ;;  %v15897_v1 = vld [vmem:[#allocation8_spill] sm:$0xff] }
 0x5f4   : > { %15887 = vst [vmem:[#allocation38_spill] sm:$0xff] %v14683_v22  ;;  %v15895_v22 = vld [vmem:[#allocation4_spill] sm:$0xff] }
 0x5f5   : > { %v5612_v44 = vpop.f32.mrb[40].mxu1  ;;  %v14689_v32 = vpop.f32.mrb[108].mxu0 }
 0x5f6   : > { %15889 = vst [vmem:[#allocation41_spill] sm:$0xff] %v14689_v32  ;;  %v5691_v3 = vadd.f32 %v5612_v44, %v15890_v61  ;;  %v10063_v60 = vpop.f32.mrb[41].mxu1  ;;  %v10291_v25 = vpop.f32.mrb[109].mxu0 }
 0x5f7   : > { %v5615_v47 = vpop.f32.mrb[42].mxu1  ;;  %v14692_v59 = vpop.f32.mrb[110].mxu0  ;;  %v15899_v60 = vld [vmem:[#allocation6_spill] sm:$0xff] }
 0x5f8   : > { %15891 = vst [vmem:[#allocation39_spill] sm:$0xff] %v14692_v59  ;;  %v14695_v4 = vadd.f32 %v15892_v17, %v5691_v3  ;;  %v5692_v19 = vadd.f32 %v5615_v47, %v15894_v54  ;;  %v10064_v10 = vpop.f32.mrb[43].mxu1  ;;  %v10292_v62 = vpop.f32.mrb[111].mxu0  ;;  %v15901_v54 = vld [vmem:[#allocation2_spill] sm:$0xff] }
 0x5fa   : > { %15893 = vst [vmem:[#allocation42_spill] sm:$0xff] %v14695_v4  ;;  %v14699_v36 = vadd.f32 %v15895_v22, %v5692_v19  ;;  %10338 = vmatmul.mubr.msk.bf16.gmra.mrb[148].mxu1 %vm4490_vm4, %v15897_v1  ;;  %v15903_v22 = vld [vmem:[#allocation24_spill] sm:$0xff]  ;;  %v15906_v4 = vld [vmem:[#allocation7_spill] sm:$0xff] }
 0x5fb   : > { %10341 = vmatprep.mubr.msk.bf16.mxu1 %vm10885_vm0, %v15690_v24 }
 0x5fc   : > { %15896 = vst [vmem:[#allocation43_spill] sm:$0xff] %v14699_v36  ;;  %v15904_v36 = vld [vmem:[#allocation21_spill] sm:$0xff] }
 0x5fd   : > { %v5620_v44 = vpop.f32.mrb[44].mxu1  ;;  %v14705_v61 = vpop.f32.mrb[112].mxu0 }
 0x5fe   : > { %15898 = vst [vmem:[#allocation17_spill] sm:$0xff] %v14705_v61  ;;  %v5693_v25 = vadd.f32 %v5620_v44, %v15899_v60  ;;  %v10067_v3 = vpop.f32.mrb[45].mxu1  ;;  %v10295_v17 = vpop.f32.mrb[113].mxu0 }
 0x5ff   : > { %v5623_v59 = vpop.f32.mrb[46].mxu1  ;;  %v14708_v47 = vpop.f32.mrb[114].mxu0  ;;  %v15908_v3 = vld [vmem:[#allocation22_spill] sm:$0xff] }
 0x600   : > { %15900 = vst [vmem:[#allocation44_spill] sm:$0xff] %v14708_v47  ;;  %v14711_v10 = vadd.f32 %v15901_v54, %v5693_v25  ;;  %v5694_v19 = vadd.f32 %v5623_v59, %v15903_v22  ;;  %v10068_v62 = vpop.f32.mrb[47].mxu1  ;;  %v10296_v1 = vpop.f32.mrb[115].mxu0  ;;  %v15910_v22 = vld [vmem:[#allocation5_spill] sm:$0xff] }
 0x602   : > { %15902 = vst [vmem:[#allocation16_spill] sm:$0xff] %v14711_v10  ;;  %v14715_v32 = vadd.f32 %v15904_v36, %v5694_v19  ;;  %10342 = vmatmul.mubr.msk.bf16.gmra.mrb[152].mxu1 %vm4490_vm4, %v15906_v4  ;;  %v15912_v36 = vld [vmem:[#allocation28_spill] sm:$0xff]  ;;  %v15915_v10 = vld [vmem:[#allocation10_spill] sm:$0xff] }
 0x603   : > { %10345 = vmatprep.mubr.msk.bf16.mxu1 %vm10885_vm0, %v15690_v24 }
 0x604   : > { %15905 = vst [vmem:[#allocation18_spill] sm:$0xff] %v14715_v32  ;;  %v15913_v32 = vld [vmem:[#allocation25_spill] sm:$0xff] }
 0x605   : > { %v5628_v44 = vpop.f32.mrb[48].mxu1  ;;  %v14721_v60 = vpop.f32.mrb[116].mxu0 }
 0x606   : > { %15907 = vst [vmem:[#allocation15_spill] sm:$0xff] %v14721_v60  ;;  %v5695_v17 = vadd.f32 %v5628_v44, %v15908_v3  ;;  %v10071_v25 = vpop.f32.mrb[49].mxu1  ;;  %v10299_v54 = vpop.f32.mrb[117].mxu0 }
 0x607   : > { %v5631_v47 = vpop.f32.mrb[50].mxu1  ;;  %v14724_v59 = vpop.f32.mrb[118].mxu0  ;;  %v15917_v25 = vld [vmem:[#allocation26_spill] sm:$0xff] }
 0x608   : > { %15909 = vst [vmem:[#allocation9_spill] sm:$0xff] %v14724_v59  ;;  %v14727_v62 = vadd.f32 %v15910_v22, %v5695_v17  ;;  %v5696_v19 = vadd.f32 %v5631_v47, %v15912_v36  ;;  %v10072_v1 = vpop.f32.mrb[51].mxu1  ;;  %v10300_v4 = vpop.f32.mrb[119].mxu0  ;;  %v15919_v36 = vld [vmem:[#allocation23_spill] sm:$0xff] }
 0x60a   : > { %15911 = vst [vmem:[#allocation19_spill] sm:$0xff] %v14727_v62  ;;  %v14731_v61 = vadd.f32 %v15913_v32, %v5696_v19  ;;  %10346 = vmatmul.mubr.msk.bf16.gmra.mrb[156].mxu1 %vm4490_vm4, %v15915_v10  ;;  %v15920_v32 = vld [vmem:[#allocation32_spill] sm:$0xff]  ;;  %v15923_v62 = vld [vmem:[#allocation11_spill] sm:$0xff] }
 0x60b   : > { %10349 = vmatprep.mubr.msk.bf16.mxu1 %vm10885_vm0, %v15690_v24 }
 0x60c   : > { %15914 = vst [vmem:[#allocation3_spill] sm:$0xff] %v14731_v61  ;;  %v15921_v61 = vld [vmem:[#allocation29_spill] sm:$0xff] }
 0x60d   : > { %v5636_v44 = vpop.f32.mrb[52].mxu1  ;;  %v14737_v3 = vpop.f32.mrb[120].mxu0 }
 0x60e   : > { %15916 = vst [vmem:[#allocation20_spill] sm:$0xff] %v14737_v3  ;;  %v5697_v54 = vadd.f32 %v5636_v44, %v15917_v25  ;;  %v10075_v17 = vpop.f32.mrb[53].mxu1  ;;  %v10303_v22 = vpop.f32.mrb[121].mxu0  ;;  %v15929_v3 = vld [vmem:[#allocation12_spill] sm:$0xff] }
 0x60f   : > { %v5639_v59 = vpop.f32.mrb[54].mxu1  ;;  %v14740_v47 = vpop.f32.mrb[122].mxu0  ;;  %v15924_v17 = vld [vmem:[#allocation30_spill] sm:$0xff] }
 0x610   : > { %15918 = vst [vmem:[#allocation4_spill] sm:$0xff] %v14740_v47  ;;  %v14743_v1 = vadd.f32 %v15919_v36, %v5697_v54  ;;  %v5698_v19 = vadd.f32 %v5639_v59, %v15920_v32  ;;  %v10076_v4 = vpop.f32.mrb[55].mxu1  ;;  %v10304_v10 = vpop.f32.mrb[123].mxu0  ;;  %v15926_v32 = vld [vmem:[#allocation27_spill] sm:$0xff] }
 0x611   : > { %v15927_v10 = vld [vmem:[#allocation33_spill] sm:$0xff] }
 0x612   : > { %v14747_v60 = vadd.f32 %v15921_v61, %v5698_v19  ;;  %10350 = vmatmul.mubr.msk.bf16.gmra.mrb[160].mxu1 %vm4490_vm4, %v15923_v62 }
 0x613   : > { %10353 = vmatprep.mubr.msk.bf16.mxu1 %vm10885_vm0, %v15690_v24 }
 0x614   : > { %15922 = vst [vmem:[#allocation8_spill] sm:$0xff] %v14747_v60 }
 0x615   : > { %v5644_v44 = vpop.f32.mrb[56].mxu1  ;;  %v14753_v25 = vpop.f32.mrb[124].mxu0 }
 0x616   : > { %v5699_v22 = vadd.f32 %v5644_v44, %v15924_v17  ;;  %v10079_v54 = vpop.f32.mrb[57].mxu1  ;;  %v10307_v36 = vpop.f32.mrb[125].mxu0 }
 0x617   : > { %v5647_v47 = vpop.f32.mrb[58].mxu1  ;;  %v14756_v59 = vpop.f32.mrb[126].mxu0  ;;  %v15930_v54 = vld [vmem:[#allocation14_spill] sm:$0xff] }
 0x618   : > { %15925 = vst [vmem:[#allocation6_spill] sm:$0xff] %v14756_v59  ;;  %v14759_v4 = vadd.f32 %v15926_v32, %v5699_v22  ;;  %v5700_v61 = vadd.f32 %v5647_v47, %v14473_v18  ;;  %v10080_v19 = vpop.f32.mrb[59].mxu1  ;;  %v10308_v62 = vpop.f32.mrb[127].mxu0  ;;  %v15931_v47 = vld [vmem:[#allocation31_spill] sm:$0xff] }
 0x61a   : > { %v14763_v60 = vadd.f32 %v15927_v10, %v5700_v61  ;;  %10354 = vmatmul.mubr.msk.bf16.gmra.mrb[164].mxu1 %vm4490_vm4, %v15929_v3  ;;  %v15932_v10 = vld [vmem:[#allocation36_spill] sm:$0xff] }
 0x61b   : > { %10357 = vmatprep.mubr.msk.bf16.mxu1 %vm10885_vm0, %v15690_v24 }
 0x61c   : > { %15928 = vst [vmem:[#allocation2_spill] sm:$0xff] %v14763_v60 }
 0x61d   : > { %v5652_v44 = vpop.f32.mrb[60].mxu1  ;;  %v14769_v17 = vpop.f32.mrb[128].mxu0 }
 0x61e   : > { %v5701_v36 = vadd.f32 %v5652_v44, %v15930_v54  ;;  %v10083_v22 = vpop.f32.mrb[61].mxu1  ;;  %v10311_v32 = vpop.f32.mrb[129].mxu0 }
 0x61f   : > { %v5655_v59 = vpop.f32.mrb[62].mxu1  ;;  %v14772_v18 = vpop.f32.mrb[130].mxu0 }
 0x620   : > { %v14775_v19 = vadd.f32 %v15931_v47, %v5701_v36  ;;  %v5702_v61 = vadd.f32 %v5655_v59, %v14497_v58  ;;  %v10084_v62 = vpop.f32.mrb[63].mxu1  ;;  %v10312_v3 = vpop.f32.mrb[131].mxu0  ;;  %v15935_v59 = vld [vmem:[#allocation34_spill] sm:$0xff] }
 0x622   : > { %v14779_v60 = vadd.f32 %v15932_v10, %v5702_v61  ;;  %10358 = vmatmul.mubr.msk.bf16.gmra.mrb[168].mxu1 %vm4490_vm4, %v15862_v9 }
 0x623   : > { %10361 = vmatprep.mubr.msk.bf16.mxu1 %vm10885_vm0, %v15690_v24 }
 0x625   : > { %v5660_v44 = vpop.f32.mrb[64].mxu1  ;;  %v14785_v54 = vpop.f32.mrb[132].mxu0 }
 0x626   : > { %15933 = vst [vmem:[#allocation24_spill] sm:$0xff] %v14785_v54  ;;  %v5703_v22 = vadd.f32 %v5660_v44, %v14501_v14  ;;  %v10087_v36 = vpop.f32.mrb[65].mxu1  ;;  %v10315_v32 = vpop.f32.mrb[133].mxu0 }
 0x627   : > { %v5663_v47 = vpop.f32.mrb[66].mxu1  ;;  %v14788_v58 = vpop.f32.mrb[134].mxu0 }
 0x628   : > { %15934 = vst [vmem:[#allocation21_spill] sm:$0xff] %v14788_v58  ;;  %v14791_v62 = vadd.f32 %v15935_v59, %v5703_v22  ;;  %v5704_v61 = vadd.f32 %v5663_v47, %v14517_v40  ;;  %v10088_v3 = vpop.f32.mrb[67].mxu1  ;;  %v10316_v9 = vpop.f32.mrb[135].mxu0 }
 0x62a   : > { %v14795_v10 = vadd.f32 %v14505_v27, %v5704_v61  ;;  %10362 = vmatmul.mubr.msk.bf16.gmra.mrb[172].mxu1 %vm4490_vm4, %v15870_v33 }
 0x62b   : > { %10365 = vmatprep.mubr.msk.bf16.mxu1 %vm10885_vm0, %v15690_v24 }
 0x62c   : > { %15936 = vst [vmem:[#allocation7_spill] sm:$0xff] %v14795_v10 }
 0x62d   : > { %v5668_v14 = vpop.f32.mrb[68].mxu1  ;;  %v6632_v44 = vpop.f32.mrb[136].mxu0 }
 0x62e   : > { %v10091_v36 = vpop.f32.mrb[69].mxu1  ;;  %v10319_v32 = vpop.f32.mrb[137].mxu0 }
 0x62f   : > { %v5670_v58 = vpop.f32.mrb[70].mxu1  ;;  %v6634_v22 = vpop.f32.mrb[138].mxu0 }
 0x630   : > { %v10092_v59 = vpop.f32.mrb[71].mxu1  ;;  %v10320_v54 = vpop.f32.mrb[139].mxu0 }
 0x632   : > { %10366 = vmatmul.mubr.msk.bf16.gmra.mrb[176].mxu1 %vm4490_vm4, %v13587_v48 }
 0x633   : > { %10369 = vmatprep.mubr.msk.bf16.mxu1 %vm10885_vm0, %v15690_v24 }
 0x635   : > { %v6135_v27 = vpop.f32.mrb[72].mxu1  ;;  %v7099_v40 = vpop.f32.mrb[140].mxu0 }
 0x636   : > { %v10179_v33 = vpop.f32.mrb[73].mxu1  ;;  %v10407_v47 = vpop.f32.mrb[141].mxu0  ;;  %v6302_v9 = vrot.slane %v6135_v27, 2  ;;  %v7266_v14 = vrot.slane %v7099_v40, 2 }
 0x637   : > { %v6138_v61 = vpop.f32.mrb[74].mxu1  ;;  %v7102_v3 = vpop.f32.mrb[142].mxu0 }
 0x638   : > { %v6303_v44 = vrot.slane %v6138_v61, 2  ;;  %v7267_v36 = vrot.slane %v7102_v3, 2  ;;  %v10180_v58 = vpop.f32.mrb[75].mxu1  ;;  %v10408_v32 = vpop.f32.mrb[143].mxu0 }
 0x63a   : > { %v6304_v54 = vsel %vm1526_vm3, %v6302_v9, %v6303_v44  ;;  %v14807_v22 = vsel %vm1526_vm3, %v7266_v14, %v7267_v36  ;;  %10370 = vmatmul.mubr.msk.bf16.gmra.mrb[180].mxu1 %vm4490_vm4, %v13603_v50 }
 0x63b   : > { %15937 = vst [vmem:[#allocation22_spill] sm:$0xff] %v14807_v22  ;;  %v6399_v48 = vadd.f32 %v6304_v54, %v14525_v43  ;;  %10373 = vmatprep.mubr.msk.bf16.mxu1 %vm10885_vm0, %v15690_v24 }
 0x63d   : > { %v6143_v59 = vpop.f32.mrb[76].mxu1  ;;  %v7107_v27 = vpop.f32.mrb[144].mxu0  ;;  %v14815_v40 = vadd.f32 %v14519_v0, %v6399_v48 }
 0x63e   : > { %v6305_v33 = vrot.slane %v6143_v59, 2  ;;  %v7269_v47 = vrot.slane %v7107_v27, 2  ;;  %v10183_v61 = vpop.f32.mrb[77].mxu1  ;;  %v10411_v3 = vpop.f32.mrb[145].mxu0 }
 0x63f   : > { %v6146_v9 = vpop.f32.mrb[78].mxu1  ;;  %v7110_v14 = vpop.f32.mrb[146].mxu0 }
 0x640   : > { %v6306_v58 = vsel %vm1526_vm3, %v6303_v44, %v6305_v33  ;;  %v14819_v50 = vsel %vm1526_vm3, %v7267_v36, %v7269_v47  ;;  %v6307_v43 = vrot.slane %v6146_v9, 2  ;;  %v7271_v32 = vrot.slane %v7110_v14, 2  ;;  %v10184_v54 = vpop.f32.mrb[79].mxu1  ;;  %v10412_v22 = vpop.f32.mrb[147].mxu0 }
 0x641   : > { %v6400_v10 = vadd.f32 %v6306_v58, %v14529_v30 }
 0x642   : > { %v6308_v0 = vsel %vm1526_vm3, %v6305_v33, %v6307_v43  ;;  %v14824_v48 = vsel %vm1526_vm3, %v7269_v47, %v7271_v32  ;;  %10374 = vmatmul.mubr.msk.bf16.gmra.mrb[184].mxu1 %vm4490_vm4, %v13619_v21 }
 0x643   : > { %v6401_v59 = vadd.f32 %v6308_v0, %v14545_v20  ;;  %10377 = vmatprep.mubr.msk.bf16.mxu1 %vm10885_vm0, %v15690_v24  ;;  %v14832_v44 = vadd.f32 %v14522_v12, %v6400_v10 }
 0x645   : > { %v6151_v36 = vpop.f32.mrb[80].mxu1  ;;  %v7115_v22 = vpop.f32.mrb[148].mxu0  ;;  %v14835_v30 = vadd.f32 %v14539_v39, %v6401_v59 }
 0x646   : > { %v6309_v27 = vrot.slane %v6151_v36, 2  ;;  %v7273_v33 = vrot.slane %v7115_v22, 2  ;;  %v10187_v47 = vpop.f32.mrb[81].mxu1  ;;  %v10415_v61 = vpop.f32.mrb[149].mxu0 }
 0x647   : > { %v6154_v3 = vpop.f32.mrb[82].mxu1  ;;  %v7118_v9 = vpop.f32.mrb[150].mxu0 }
 0x648   : > { %v6310_v21 = vsel %vm1526_vm3, %v6307_v43, %v6309_v27  ;;  %v14839_v20 = vsel %vm1526_vm3, %v7271_v32, %v7273_v33  ;;  %v6311_v14 = vrot.slane %v6154_v3, 2  ;;  %v7275_v58 = vrot.slane %v7118_v9, 2  ;;  %v10188_v12 = vpop.f32.mrb[83].mxu1  ;;  %v10416_v10 = vpop.f32.mrb[151].mxu0 }
 0x649   : > { %v6402_v54 = vadd.f32 %v6310_v21, %v14549_v37 }
 0x64a   : > { %v6312_v39 = vsel %vm1526_vm3, %v6309_v27, %v6311_v14  ;;  %v14844_v0 = vsel %vm1526_vm3, %v7273_v33, %v7275_v58  ;;  %10378 = vmatmul.mubr.msk.bf16.gmra.mrb[188].mxu1 %vm4490_vm4, %v13635_v35 }
 0x64b   : > { %v6403_v59 = vadd.f32 %v6312_v39, %v14565_v46  ;;  %10381 = vmatprep.mubr.msk.bf16.mxu1 %vm10885_vm0, %v15690_v24  ;;  %v14852_v43 = vadd.f32 %v14542_v13, %v6402_v54 }
 0x64d   : > { %v6159_v32 = vpop.f32.mrb[84].mxu1  ;;  %v7123_v36 = vpop.f32.mrb[152].mxu0  ;;  %v14855_v37 = vadd.f32 %v14559_v38, %v6403_v59 }
 0x64e   : > { %v6313_v22 = vrot.slane %v6159_v32, 2  ;;  %v7277_v27 = vrot.slane %v7123_v36, 2  ;;  %v10191_v33 = vpop.f32.mrb[85].mxu1  ;;  %v10419_v47 = vpop.f32.mrb[153].mxu0 }
 0x64f   : > { %v6162_v61 = vpop.f32.mrb[86].mxu1  ;;  %v7126_v3 = vpop.f32.mrb[154].mxu0 }
 0x650   : > { %v6314_v35 = vsel %vm1526_vm3, %v6311_v14, %v6313_v22  ;;  %v14859_v46 = vsel %vm1526_vm3, %v7275_v58, %v7277_v27  ;;  %v6315_v9 = vrot.slane %v6162_v61, 2  ;;  %v7279_v21 = vrot.slane %v7126_v3, 2  ;;  %v10192_v13 = vpop.f32.mrb[87].mxu1  ;;  %v10420_v12 = vpop.f32.mrb[155].mxu0 }
 0x651   : > { %v6404_v10 = vadd.f32 %v6314_v35, %v14569_v41 }
 0x652   : > { %v6316_v38 = vsel %vm1526_vm3, %v6313_v22, %v6315_v9  ;;  %v14864_v54 = vsel %vm1526_vm3, %v7277_v27, %v7279_v21  ;;  %10382 = vmatmul.mubr.msk.bf16.gmra.mrb[192].mxu1 %vm4490_vm4, %v13654_v52 }
 0x653   : > { %v6405_v39 = vadd.f32 %v6316_v38, %v14585_v15  ;;  %10385 = vmatprep.mubr.msk.bf16.mxu1 %vm10885_vm0, %v15690_v24  ;;  %v14872_v14 = vadd.f32 %v14562_v51, %v6404_v10 }
 0x655   : > { %v6167_v58 = vpop.f32.mrb[88].mxu1  ;;  %v7131_v59 = vpop.f32.mrb[156].mxu0  ;;  %v14875_v41 = vadd.f32 %v14579_v23, %v6405_v39 }
 0x656   : > { %v6317_v32 = vrot.slane %v6167_v58, 2  ;;  %v7281_v36 = vrot.slane %v7131_v59, 2  ;;  %v10195_v22 = vpop.f32.mrb[89].mxu1  ;;  %v10423_v27 = vpop.f32.mrb[157].mxu0 }
 0x657   : > { %v6170_v33 = vpop.f32.mrb[90].mxu1  ;;  %v7134_v47 = vpop.f32.mrb[158].mxu0 }
 0x658   : > { %v6318_v52 = vsel %vm1526_vm3, %v6315_v9, %v6317_v32  ;;  %v14879_v15 = vsel %vm1526_vm3, %v7279_v21, %v7281_v36  ;;  %v6319_v61 = vrot.slane %v6170_v33, 2  ;;  %v7283_v3 = vrot.slane %v7134_v47, 2  ;;  %v10196_v51 = vpop.f32.mrb[91].mxu1  ;;  %v10424_v35 = vpop.f32.mrb[159].mxu0 }
 0x659   : > { %v6406_v13 = vadd.f32 %v6318_v52, %v14589_v55 }
 0x65a   : > { %v6320_v23 = vsel %vm1526_vm3, %v6317_v32, %v6319_v61  ;;  %v14884_v12 = vsel %vm1526_vm3, %v7281_v36, %v7283_v3  ;;  %10386 = vmatmul.mubr.msk.bf16.gmra.mrb[196].mxu1 %vm4490_vm4, %v13681_v29 }
 0x65b   : > { %v6407_v10 = vadd.f32 %v6320_v23, %v14605_v2  ;;  %10389 = vmatprep.mubr.msk.bf16.mxu1 %vm10885_vm0, %v15690_v24  ;;  %v14892_v9 = vadd.f32 %v14582_v34, %v6406_v13 }
 0x65d   : > { %v6175_v21 = vpop.f32.mrb[92].mxu1  ;;  %v7139_v38 = vpop.f32.mrb[160].mxu0  ;;  %v14895_v55 = vadd.f32 %v14599_v31, %v6407_v10 }
 0x65e   : > { %v6321_v39 = vrot.slane %v6175_v21, 2  ;;  %v7285_v58 = vrot.slane %v7139_v38, 2  ;;  %v10199_v59 = vpop.f32.mrb[93].mxu1  ;;  %v10427_v32 = vpop.f32.mrb[161].mxu0 }
 0x65f   : > { %v6178_v36 = vpop.f32.mrb[94].mxu1  ;;  %v7142_v22 = vpop.f32.mrb[162].mxu0 }
 0x660   : > { %v6322_v29 = vsel %vm1526_vm3, %v6319_v61, %v6321_v39  ;;  %v14899_v2 = vsel %vm1526_vm3, %v7283_v3, %v7285_v58  ;;  %v6323_v27 = vrot.slane %v6178_v36, 2  ;;  %v7287_v33 = vrot.slane %v7142_v22, 2  ;;  %v10200_v34 = vpop.f32.mrb[95].mxu1  ;;  %v10428_v47 = vpop.f32.mrb[163].mxu0 }
 0x661   : > { %v6408_v52 = vadd.f32 %v6322_v29, %v14609_v7 }
 0x662   : > { %v6324_v31 = vsel %vm1526_vm3, %v6321_v39, %v6323_v27  ;;  %v14904_v51 = vsel %vm1526_vm3, %v7285_v58, %v7287_v33  ;;  %10390 = vmatmul.mubr.msk.bf16.gmra.mrb[200].mxu1 %vm4490_vm4, %v13714_v11 }
 0x663   : > { %v6409_v35 = vadd.f32 %v6324_v31, %v14625_v53  ;;  %10393 = vmatprep.mubr.msk.bf16.mxu1 %vm10885_vm0, %v15690_v24  ;;  %v14912_v61 = vadd.f32 %v14602_v56, %v6408_v52 }
 0x665   : > { %v6183_v3 = vpop.f32.mrb[96].mxu1  ;;  %v7147_v13 = vpop.f32.mrb[164].mxu0  ;;  %v14915_v7 = vadd.f32 %v14619_v57, %v6409_v35 }
 0x666   : > { %v6325_v23 = vrot.slane %v6183_v3, 2  ;;  %v7289_v10 = vrot.slane %v7147_v13, 2  ;;  %v10203_v21 = vpop.f32.mrb[97].mxu1  ;;  %v10431_v38 = vpop.f32.mrb[165].mxu0 }
 0x667   : > { %v6186_v39 = vpop.f32.mrb[98].mxu1  ;;  %v7150_v58 = vpop.f32.mrb[166].mxu0 }
 0x668   : > { %v6326_v11 = vsel %vm1526_vm3, %v6323_v27, %v6325_v23  ;;  %v14919_v53 = vsel %vm1526_vm3, %v7287_v33, %v7289_v10  ;;  %v6327_v24 = vrot.slane %v6186_v39, 2  ;;  %v7291_v59 = vrot.slane %v7150_v58, 2  ;;  %v10204_v56 = vpop.f32.mrb[99].mxu1  ;;  %v10432_v32 = vpop.f32.mrb[167].mxu0 }
 0x669   : > { %v6410_v36 = vadd.f32 %v6326_v11, %v14629_v6 }
 0x66a   : > { %v6328_v57 = vsel %vm1526_vm3, %v6325_v23, %v6327_v24  ;;  %v14924_v22 = vsel %vm1526_vm3, %v7289_v10, %v7291_v59  ;;  %10394 = vmatmul.mubr.msk.bf16.gmra.mrb[204].mxu1 %vm4490_vm4, %v13727_v16 }
 0x66b   : > { %v6411_v29 = vadd.f32 %v6328_v57, %v14645_v49  ;;  %v14930_v27 = vadd.f32 %v14622_v8, %v6410_v36 }
 0x66d   : > { %v6191_v33 = vpop.f32.mrb[100].mxu1  ;;  %v7155_v34 = vpop.f32.mrb[168].mxu0  ;;  %v14933_v47 = vadd.f32 %v14639_v63, %v6411_v29 }
 0x66e   : > { %v6329_v52 = vrot.slane %v6191_v33, 2  ;;  %v7293_v6 = vrot.slane %v7155_v34, 2  ;;  %v10207_v31 = vpop.f32.mrb[101].mxu1  ;;  %v10435_v35 = vpop.f32.mrb[169].mxu0 }
 0x66f   : > { %v6194_v3 = vpop.f32.mrb[102].mxu1  ;;  %v7158_v13 = vpop.f32.mrb[170].mxu0 }
 0x670   : > { %v6330_v23 = vsel %vm1526_vm3, %v6327_v24, %v6329_v52  ;;  %v14937_v16 = vsel %vm1526_vm3, %v7291_v59, %v7293_v6  ;;  %v6331_v49 = vrot.slane %v6194_v3, 2  ;;  %v7295_v10 = vrot.slane %v7158_v13, 2  ;;  %v10208_v8 = vpop.f32.mrb[103].mxu1  ;;  %v10436_v21 = vpop.f32.mrb[171].mxu0  ;;  %v15938_v13 = vld [vmem:[#allocation40_spill] sm:$0xff] }
 0x671   : > { %v6412_v38 = vadd.f32 %v6330_v23, %v14649_v26  ;;  %v15939_v8 = vld [vmem:[#allocation37_spill] sm:$0xff] }
 0x672   : > { %v6332_v63 = vsel %vm1526_vm3, %v6329_v52, %v6331_v49  ;;  %v14942_v39 = vsel %vm1526_vm3, %v7293_v6, %v7295_v10 }
 0x673   : > { %v6413_v58 = vadd.f32 %v6332_v63, %v14663_v45  ;;  %v14946_v11 = vadd.f32 %v14642_v42, %v6412_v38 }
 0x675   : > { %v6199_v24 = vpop.f32.mrb[104].mxu1  ;;  %v7163_v56 = vpop.f32.mrb[172].mxu0  ;;  %v14949_v59 = vadd.f32 %v14657_v28, %v6413_v58 }
 0x676   : > { %v6333_v32 = vrot.slane %v6199_v24, 2  ;;  %v7297_v36 = vrot.slane %v7163_v56, 2  ;;  %v10211_v57 = vpop.f32.mrb[105].mxu1  ;;  %v10439_v29 = vpop.f32.mrb[173].mxu0 }
 0x677   : > { %v6202_v26 = vpop.f32.mrb[106].mxu1  ;;  %v7166_v33 = vpop.f32.mrb[174].mxu0 }
 0x678   : > { %v6334_v34 = vsel %vm1526_vm3, %v6331_v49, %v6333_v32  ;;  %v14953_v52 = vsel %vm1526_vm3, %v7295_v10, %v7297_v36  ;;  %v6335_v45 = vrot.slane %v6202_v26, 2  ;;  %v7299_v6 = vrot.slane %v7166_v33, 2  ;;  %v10212_v42 = vpop.f32.mrb[107].mxu1  ;;  %v10440_v31 = vpop.f32.mrb[175].mxu0  ;;  %v15940_v10 = vld [vmem:[#allocation35_spill] sm:$0xff] }
 0x679   : > { %v6414_v35 = vadd.f32 %v6334_v34, %v14667_v5  ;;  %v15941_v31 = vld [vmem:[#allocation38_spill] sm:$0xff] }
 0x67a   : > { %v6336_v28 = vsel %vm1526_vm3, %v6333_v32, %v6335_v45  ;;  %v14958_v3 = vsel %vm1526_vm3, %v7297_v36, %v7299_v6 }
 0x67b   : > { %v6415_v23 = vadd.f32 %v6336_v28, %v15938_v13  ;;  %v14962_v21 = vadd.f32 %v15939_v8, %v6414_v35 }
 0x67d   : > { %v6207_v49 = vpop.f32.mrb[108].mxu1  ;;  %v7171_v38 = vpop.f32.mrb[176].mxu0  ;;  %v14965_v63 = vadd.f32 %v15940_v10, %v6415_v23  ;;  %v15943_v23 = vld [vmem:[#allocation42_spill] sm:$0xff] }
 0x67e   : > { %v6337_v58 = vrot.slane %v6207_v49, 2  ;;  %v7301_v24 = vrot.slane %v7171_v38, 2  ;;  %v10215_v56 = vpop.f32.mrb[109].mxu1  ;;  %v10443_v57 = vpop.f32.mrb[177].mxu0  ;;  %v15944_v49 = vld [vmem:[#allocation13_spill] sm:$0xff] }
 0x67f   : > { %v6210_v5 = vpop.f32.mrb[110].mxu1  ;;  %v7174_v29 = vpop.f32.mrb[178].mxu0 }
 0x680   : > { %v6338_v32 = vsel %vm1526_vm3, %v6335_v45, %v6337_v58  ;;  %v14969_v36 = vsel %vm1526_vm3, %v7299_v6, %v7301_v24  ;;  %v6339_v26 = vrot.slane %v6210_v5, 2  ;;  %v7303_v33 = vrot.slane %v7174_v29, 2  ;;  %v10216_v34 = vpop.f32.mrb[111].mxu1  ;;  %v10444_v42 = vpop.f32.mrb[179].mxu0  ;;  %v15945_v6 = vld [vmem:[#allocation41_spill] sm:$0xff] }
 0x681   : > { %v6416_v35 = vadd.f32 %v6338_v32, %v15941_v31 }
 0x682   : > { %v6340_v28 = vsel %vm1526_vm3, %v6337_v58, %v6339_v26  ;;  %v14974_v13 = vsel %vm1526_vm3, %v7301_v24, %v7303_v33 }
 0x683   : > { %15942 = vst [vmem:[#allocation5_spill] sm:$0xff] %v14974_v13  ;;  %v6417_v8 = vadd.f32 %v6340_v28, %v15943_v23  ;;  %v14978_v38 = vadd.f32 %v15944_v49, %v6416_v35  ;;  %v15948_v49 = vld [vmem:[#allocation43_spill] sm:$0xff] }
 0x685   : > { %v6215_v45 = vpop.f32.mrb[112].mxu1  ;;  %v7179_v10 = vpop.f32.mrb[180].mxu0  ;;  %v14981_v56 = vadd.f32 %v15945_v6, %v6417_v8 }
 0x686   : > { %v6341_v57 = vrot.slane %v6215_v45, 2  ;;  %v7305_v5 = vrot.slane %v7179_v10, 2  ;;  %v10219_v29 = vpop.f32.mrb[113].mxu1  ;;  %v10447_v34 = vpop.f32.mrb[181].mxu0  ;;  %v15950_v10 = vld [vmem:[#allocation16_spill] sm:$0xff] }
 0x687   : > { %15946 = vst [vmem:[#allocation28_spill] sm:$0xff] %v14981_v56  ;;  %v6218_v32 = vpop.f32.mrb[114].mxu1  ;;  %v7182_v42 = vpop.f32.mrb[182].mxu0  ;;  %v15951_v29 = vld [vmem:[#allocation39_spill] sm:$0xff] }
 0x688   : > { %v6342_v58 = vsel %vm1526_vm3, %v6339_v26, %v6341_v57  ;;  %v14985_v24 = vsel %vm1526_vm3, %v7303_v33, %v7305_v5  ;;  %v6343_v31 = vrot.slane %v6218_v32, 2  ;;  %v7307_v28 = vrot.slane %v7182_v42, 2  ;;  %v10220_v35 = vpop.f32.mrb[115].mxu1  ;;  %v10448_v23 = vpop.f32.mrb[183].mxu0  ;;  %v15953_v33 = vld [vmem:[#allocation17_spill] sm:$0xff] }
 0x689   : > { %15947 = vst [vmem:[#allocation25_spill] sm:$0xff] %v14985_v24  ;;  %v6418_v13 = vadd.f32 %v6342_v58, %v15948_v49 }
 0x68a   : > { %v6344_v8 = vsel %vm1526_vm3, %v6341_v57, %v6343_v31  ;;  %v14990_v45 = vsel %vm1526_vm3, %v7305_v5, %v7307_v28 }
 0x68b   : > { %15949 = vst [vmem:[#allocation10_spill] sm:$0xff] %v14990_v45  ;;  %v6419_v6 = vadd.f32 %v6344_v8, %v15950_v10  ;;  %v14994_v34 = vadd.f32 %v15951_v29, %v6418_v13  ;;  %v15956_v45 = vld [vmem:[#allocation18_spill] sm:$0xff] }
 0x68d   : > { %15952 = vst [vmem:[#allocation26_spill] sm:$0xff] %v14994_v34  ;;  %v6223_v26 = vpop.f32.mrb[116].mxu1  ;;  %v7187_v56 = vpop.f32.mrb[184].mxu0  ;;  %v14997_v24 = vadd.f32 %v15953_v33, %v6419_v6 }
 0x68e   : > { %v6345_v32 = vrot.slane %v6223_v26, 2  ;;  %v7309_v42 = vrot.slane %v7187_v56, 2  ;;  %v10223_v35 = vpop.f32.mrb[117].mxu1  ;;  %v10451_v23 = vpop.f32.mrb[185].mxu0  ;;  %v15958_v56 = vld [vmem:[#allocation19_spill] sm:$0xff] }
 0x68f   : > { %15954 = vst [vmem:[#allocation23_spill] sm:$0xff] %v14997_v24  ;;  %v6226_v58 = vpop.f32.mrb[118].mxu1  ;;  %v7190_v49 = vpop.f32.mrb[186].mxu0  ;;  %v15959_v35 = vld [vmem:[#allocation44_spill] sm:$0xff] }
 0x690   : > { %v6346_v57 = vsel %vm1526_vm3, %v6343_v31, %v6345_v32  ;;  %v15001_v5 = vsel %vm1526_vm3, %v7307_v28, %v7309_v42  ;;  %v6347_v8 = vrot.slane %v6226_v58, 2  ;;  %v7311_v10 = vrot.slane %v7190_v49, 2  ;;  %v10224_v13 = vpop.f32.mrb[119].mxu1  ;;  %v10452_v29 = vpop.f32.mrb[187].mxu0  ;;  %v15961_v28 = vld [vmem:[#allocation15_spill] sm:$0xff] }
 0x691   : > { %15955 = vst [vmem:[#allocation32_spill] sm:$0xff] %v15001_v5  ;;  %v6420_v34 = vadd.f32 %v6346_v57, %v15956_v45 }
 0x692   : > { %v6348_v6 = vsel %vm1526_vm3, %v6345_v32, %v6347_v8  ;;  %v15006_v26 = vsel %vm1526_vm3, %v7309_v42, %v7311_v10 }
 0x693   : > { %15957 = vst [vmem:[#allocation29_spill] sm:$0xff] %v15006_v26  ;;  %v6421_v33 = vadd.f32 %v6348_v6, %v15958_v56  ;;  %v15010_v23 = vadd.f32 %v15959_v35, %v6420_v34  ;;  %v15963_v26 = vld [vmem:[#allocation3_spill] sm:$0xff] }
 0x695   : > { %15960 = vst [vmem:[#allocation11_spill] sm:$0xff] %v15010_v23  ;;  %v6231_v31 = vpop.f32.mrb[120].mxu1  ;;  %v7195_v24 = vpop.f32.mrb[188].mxu0  ;;  %v15013_v5 = vadd.f32 %v15961_v28, %v6421_v33  ;;  %v15965_v28 = vld [vmem:[#allocation9_spill] sm:$0xff] }
 0x696   : > { %v6349_v58 = vrot.slane %v6231_v31, 2  ;;  %v7313_v49 = vrot.slane %v7195_v24, 2  ;;  %v10227_v13 = vpop.f32.mrb[121].mxu1  ;;  %v10455_v29 = vpop.f32.mrb[189].mxu0 }
 0x697   : > { %v6234_v45 = vpop.f32.mrb[122].mxu1  ;;  %v7198_v57 = vpop.f32.mrb[190].mxu0 }
 0x698   : > { %v6350_v32 = vsel %vm1526_vm3, %v6347_v8, %v6349_v58  ;;  %v15017_v42 = vsel %vm1526_vm3, %v7311_v10, %v7313_v49  ;;  %v6351_v6 = vrot.slane %v6234_v45, 2  ;;  %v7315_v56 = vrot.slane %v7198_v57, 2  ;;  %v10228_v34 = vpop.f32.mrb[123].mxu1  ;;  %v10456_v35 = vpop.f32.mrb[191].mxu0  ;;  %v15967_v10 = vld [vmem:[#allocation20_spill] sm:$0xff] }
 0x699   : > { %15962 = vst [vmem:[#allocation30_spill] sm:$0xff] %v15017_v42  ;;  %v6422_v23 = vadd.f32 %v6350_v32, %v15963_v26 }
 0x69a   : > { %v6352_v33 = vsel %vm1526_vm3, %v6349_v58, %v6351_v6  ;;  %v15022_v31 = vsel %vm1526_vm3, %v7313_v49, %v7315_v56 }
 0x69b   : > { %15964 = vst [vmem:[#allocation27_spill] sm:$0xff] %v15022_v31  ;;  %v6423_v24 = vadd.f32 %v6352_v33, %v14743_v1  ;;  %v15026_v13 = vadd.f32 %v15965_v28, %v6422_v23  ;;  %v15969_v31 = vld [vmem:[#allocation8_spill] sm:$0xff] }
 0x69d   : > { %15966 = vst [vmem:[#allocation33_spill] sm:$0xff] %v15026_v13  ;;  %v6239_v8 = vpop.f32.mrb[124].mxu1  ;;  %v7203_v29 = vpop.f32.mrb[192].mxu0  ;;  %v15029_v42 = vadd.f32 %v15967_v10, %v6423_v24  ;;  %v15971_v10 = vld [vmem:[#allocation4_spill] sm:$0xff] }
 0x69e   : > { %v6353_v45 = vrot.slane %v6239_v8, 2  ;;  %v7317_v57 = vrot.slane %v7203_v29, 2  ;;  %v10231_v34 = vpop.f32.mrb[125].mxu1  ;;  %v10459_v35 = vpop.f32.mrb[193].mxu0 }
 0x69f   : > { %v6242_v26 = vpop.f32.mrb[126].mxu1  ;;  %v7206_v32 = vpop.f32.mrb[194].mxu0 }
 0x6a0   : > { %v6354_v58 = vsel %vm1526_vm3, %v6351_v6, %v6353_v45  ;;  %v15033_v49 = vsel %vm1526_vm3, %v7315_v56, %v7317_v57  ;;  %v6355_v1 = vrot.slane %v6242_v26, 2  ;;  %v7319_v33 = vrot.slane %v7206_v32, 2  ;;  %v10232_v23 = vpop.f32.mrb[127].mxu1  ;;  %v10460_v28 = vpop.f32.mrb[195].mxu0 }
 0x6a1   : > { %15968 = vst [vmem:[#allocation12_spill] sm:$0xff] %v15033_v49  ;;  %v6424_v13 = vadd.f32 %v6354_v58, %v15969_v31 }
 0x6a2   : > { %v6356_v24 = vsel %vm1526_vm3, %v6353_v45, %v6355_v1  ;;  %v15038_v8 = vsel %vm1526_vm3, %v7317_v57, %v7319_v33 }
 0x6a3   : > { %15970 = vst [vmem:[#allocation14_spill] sm:$0xff] %v15038_v8  ;;  %v6425_v29 = vadd.f32 %v6356_v24, %v14759_v4  ;;  %v15042_v34 = vadd.f32 %v15971_v10, %v6424_v13  ;;  %v15972_v8 = vld [vmem:[#allocation2_spill] sm:$0xff] }
 0x6a5   : > { %v6247_v6 = vpop.f32.mrb[128].mxu1  ;;  %v7211_v35 = vpop.f32.mrb[196].mxu0  ;;  %v15045_v56 = vadd.f32 %v14753_v25, %v6425_v29 }
 0x6a6   : > { %v6357_v26 = vrot.slane %v6247_v6, 2  ;;  %v7321_v32 = vrot.slane %v7211_v35, 2  ;;  %v10235_v23 = vpop.f32.mrb[129].mxu1  ;;  %v10463_v28 = vpop.f32.mrb[197].mxu0  ;;  %v15974_v35 = vld [vmem:[#allocation6_spill] sm:$0xff] }
 0x6a7   : > { %v6250_v31 = vpop.f32.mrb[130].mxu1  ;;  %v7214_v58 = vpop.f32.mrb[198].mxu0 }
 0x6a8   : > { %v6358_v45 = vsel %vm1526_vm3, %v6355_v1, %v6357_v26  ;;  %v15049_v57 = vsel %vm1526_vm3, %v7319_v33, %v7321_v32  ;;  %v6359_v4 = vrot.slane %v6250_v31, 2  ;;  %v7323_v24 = vrot.slane %v7214_v58, 2  ;;  %v10236_v13 = vpop.f32.mrb[131].mxu1  ;;  %v10464_v10 = vpop.f32.mrb[199].mxu0 }
 0x6a9   : > { %v6426_v49 = vadd.f32 %v6358_v45, %v15972_v8 }
 0x6aa   : > { %v6360_v25 = vsel %vm1526_vm3, %v6357_v26, %v6359_v4  ;;  %v15054_v29 = vsel %vm1526_vm3, %v7321_v32, %v7323_v24 }
 0x6ab   : > { %15973 = vst [vmem:[#allocation31_spill] sm:$0xff] %v15054_v29  ;;  %v6427_v6 = vadd.f32 %v6360_v25, %v14775_v19  ;;  %v15058_v23 = vadd.f32 %v15974_v35, %v6426_v49 }
 0x6ad   : > { %v6255_v1 = vpop.f32.mrb[132].mxu1  ;;  %v7219_v28 = vpop.f32.mrb[200].mxu0  ;;  %v15061_v33 = vadd.f32 %v14769_v17, %v6427_v6 }
 0x6ae   : > { %v6361_v31 = vrot.slane %v6255_v1, 2  ;;  %v7325_v58 = vrot.slane %v7219_v28, 2  ;;  %v10239_v13 = vpop.f32.mrb[133].mxu1  ;;  %v10467_v10 = vpop.f32.mrb[201].mxu0 }
 0x6af   : > { %v6258_v8 = vpop.f32.mrb[134].mxu1  ;;  %v7222_v45 = vpop.f32.mrb[202].mxu0 }
 0x6b0   : > { %v6362_v26 = vsel %vm1526_vm3, %v6359_v4, %v6361_v31  ;;  %v15065_v32 = vsel %vm1526_vm3, %v7323_v24, %v7325_v58  ;;  %v6363_v19 = vrot.slane %v6258_v8, 2  ;;  %v7327_v25 = vrot.slane %v7222_v45, 2  ;;  %v10240_v49 = vpop.f32.mrb[135].mxu1  ;;  %v10468_v35 = vpop.f32.mrb[203].mxu0  ;;  %v15977_v24 = vld [vmem:[#allocation24_spill] sm:$0xff] }
 0x6b1   : > { %15975 = vst [vmem:[#allocation36_spill] sm:$0xff] %v15065_v32  ;;  %v6428_v29 = vadd.f32 %v6362_v26, %v14779_v60 }
 0x6b2   : > { %v6364_v17 = vsel %vm1526_vm3, %v6361_v31, %v6363_v19  ;;  %v15070_v6 = vsel %vm1526_vm3, %v7325_v58, %v7327_v25 }
 0x6b3   : > { %15976 = vst [vmem:[#allocation34_spill] sm:$0xff] %v15070_v6  ;;  %v6429_v1 = vadd.f32 %v6364_v17, %v14791_v62  ;;  %v15074_v28 = vadd.f32 %v14772_v18, %v6428_v29  ;;  %v15978_v18 = vld [vmem:[#allocation7_spill] sm:$0xff]  ;;  %v15979_v6 = vld [vmem:[#allocation21_spill] sm:$0xff] }
 0x6b5   : > { %v6263_v4 = vpop.f32.mrb[136].mxu1  ;;  %v7227_v13 = vpop.f32.mrb[204].mxu0  ;;  %v15077_v10 = vadd.f32 %v15977_v24, %v6429_v1 }
 0x6b6   : > { %v6365_v8 = vrot.slane %v6263_v4, 2  ;;  %v7329_v45 = vrot.slane %v7227_v13, 2  ;;  %v10243_v49 = vpop.f32.mrb[137].mxu1  ;;  %v10471_v35 = vpop.f32.mrb[205].mxu0 }
 0x6b7   : > { %v6266_v60 = vpop.f32.mrb[138].mxu1  ;;  %v7230_v26 = vpop.f32.mrb[206].mxu0 }
 0x6b8   : > { %v6366_v31 = vsel %vm1526_vm3, %v6363_v19, %v6365_v8  ;;  %v15081_v58 = vsel %vm1526_vm3, %v7327_v25, %v7329_v45  ;;  %v10244_v62 = vpop.f32.mrb[139].mxu1  ;;  %v10472_v17 = vpop.f32.mrb[207].mxu0  ;;  %v7434_v26 = vlaneseq  ;;  %v15092_v25 = vld [vmem:[%s15646_s5] ss:$0 sm:$0xff] }
 0x6b9   : > { %v6430_v29 = vadd.f32 %v6366_v31, %v15978_v18  ;;  %v15980_v8 = vld [vmem:[#allocation22_spill] sm:$0xff] }
 0x6ba   : > { %v15095_v31 = vand.u32 127, %v7434_v26 }
 0x6bb   : > { %v15085_v32 = vadd.f32 %v15979_v6, %v6430_v29 }
 0x6bc   : > { %vm7436_vm5 = vcmp.ge.s32.totalorder %v15095_v31, 11  ;;  %vm7437_vm6 = vcmp.lt.s32.totalorder %v15095_v31, 14  ;;  %vm7439_vm8 = vcmp.ge.s32.totalorder %v15095_v31, 14  ;;  %vm7440_vm9 = vcmp.lt.s32.totalorder %v15095_v31, 17 }
 0x6bd   : > { %v6736_v1 = vpop.f32.mrb[140].mxu1  ;;  %vm15108_vm7 = vmand %vm7436_vm5, %vm7437_vm6 }
 0x6be   : > { %v10331_v24 = vpop.f32.mrb[141].mxu1  ;;  %v6903_v13 = vrot.slane %v6736_v1, 1  ;;  %vm15174_vm10 = vmand %vm7439_vm8, %vm7440_vm9 }
 0x6bf   : > { %v6739_v4 = vpop.f32.mrb[142].mxu1 }
 0x6c0   : > { %v6904_v49 = vrot.slane %v6739_v4, 1  ;;  %v10332_v35 = vpop.f32.mrb[143].mxu1 }
 0x6c2   : > { %v6905_v60 = vsel %vm1082_vm2, %v6903_v13, %v6904_v49 }
 0x6c3   : > { %v7000_v19 = vadd.f32 %v6905_v60, %v14815_v40 }
 0x6c5   : > { %v7363_v45 = vadd.f32 %v15980_v8, %v7000_v19  ;;  %v6744_v6 = vpop.f32.mrb[144].mxu1 }
 0x6c6   : > { %v6906_v62 = vrot.slane %v6744_v6, 1  ;;  %v10335_v17 = vpop.f32.mrb[145].mxu1 }
 0x6c7   : > { %v15098_v18 = vadd.f32 %v15092_v25, %v7363_v45  ;;  %v6747_v29 = vpop.f32.mrb[146].mxu1 }
 0x6c8   : > { %v6907_v1 = vsel %vm1082_vm2, %v6904_v49, %v6906_v62  ;;  %v6908_v24 = vrot.slane %v6747_v29, 1  ;;  %v10336_v40 = vpop.f32.mrb[147].mxu1 }
 0x6c9   : > { %v8477_v4 = vmul.f32 -1.442695, %v15098_v18  ;;  %v7001_v13 = vadd.f32 %v6907_v1, %v14832_v44 }
 0x6ca   : > { %v6909_v35 = vsel %vm1082_vm2, %v6906_v62, %v6908_v24 }
 0x6cb   : > { %10607 = vpow2.f32 %v8477_v4  ;;  %v7364_v60 = vadd.f32 %v14819_v50, %v7001_v13  ;;  %v7002_v26 = vadd.f32 %v6909_v35, %v14835_v30  ;;  %v7442_v30 = vsel %vm15108_vm7, %v15098_v18, 0.0 }
 0x6cc   : > { %v7474_v35 = vmul.f32 1.442695, %v7442_v30 }
 0x6cd   : > { %v15113_v19 = vadd.f32 %v15092_v25, %v7364_v60  ;;  %v7365_v44 = vadd.f32 %v14824_v48, %v7002_v26  ;;  %v6752_v8 = vpop.f32.mrb[148].mxu1 }
 0x6ce   : > { %v6910_v45 = vrot.slane %v6752_v8, 1  ;;  %v10339_v6 = vpop.f32.mrb[149].mxu1 }
 0x6cf   : > { %v8478_v62 = vmul.f32 -1.442695, %v15113_v19  ;;  %v15118_v17 = vadd.f32 %v15092_v25, %v7365_v44  ;;  %v6755_v50 = vpop.f32.mrb[150].mxu1 }
 0x6d0   : > { %v6911_v29 = vsel %vm1082_vm2, %v6908_v24, %v6910_v45  ;;  %v6912_v1 = vrot.slane %v6755_v50, 1  ;;  %v10340_v40 = vpop.f32.mrb[151].mxu1 }
 0x6d1   : > { %10609 = vpow2.f32 %v8478_v62  ;;  %v8479_v48 = vmul.f32 -1.442695, %v15118_v17  ;;  %v7003_v4 = vadd.f32 %v6911_v29, %v14852_v43  ;;  %v7443_v43 = vsel %vm15108_vm7, %v15113_v19, 0.0 }
 0x6d2   : > { %v6913_v13 = vsel %vm1082_vm2, %v6910_v45, %v6912_v1 }
 0x6d3   : > { %10611 = vpow2.f32 %v8479_v48  ;;  %v7366_v60 = vadd.f32 %v14839_v20, %v7003_v4  ;;  %v7004_v26 = vadd.f32 %v6913_v13, %v14855_v37  ;;  %v7476_v4 = vmul.f32 1.442695, %v7443_v43 }
 0x6d4   : > { %10613 = vpow2.f32 %v7474_v35 }
 0x6d5   : > { %v10608_v44 = vpop.eup %10607  ;;  %v15131_v24 = vadd.f32 %v15092_v25, %v7366_v60  ;;  %v7367_v8 = vadd.f32 %v14844_v0, %v7004_v26  ;;  %v6760_v6 = vpop.f32.mrb[152].mxu1  ;;  %v7444_v0 = vsel %vm15108_vm7, %v15118_v17, 0.0 }
 0x6d6   : > { %v7634_v62 = vadd.f32 1.0, %v10608_v44  ;;  %v6914_v45 = vrot.slane %v6760_v6, 1  ;;  %v10343_v50 = vpop.f32.mrb[153].mxu1  ;;  %v7478_v44 = vmul.f32 1.442695, %v7444_v0 }
 0x6d7   : > { %v8480_v20 = vmul.f32 -1.442695, %v15131_v24  ;;  %v15139_v37 = vadd.f32 %v15092_v25, %v7367_v8  ;;  %v6763_v30 = vpop.f32.mrb[154].mxu1 }
 0x6d8   : > { %10615 = vrcp.f32 %v7634_v62  ;;  %v6915_v29 = vsel %vm1082_vm2, %v6912_v1, %v6914_v45  ;;  %v6916_v40 = vrot.slane %v6763_v30, 1  ;;  %v10344_v48 = vpop.f32.mrb[155].mxu1 }
 0x6d9   : > { %10617 = vpow2.f32 %v8480_v20  ;;  %v8481_v13 = vmul.f32 -1.442695, %v15139_v37  ;;  %v7005_v35 = vadd.f32 %v6915_v29, %v14872_v14  ;;  %v7446_v30 = vsel %vm15108_vm7, %v15139_v37, 0.0 }
 0x6da   : > { %v6917_v60 = vsel %vm1082_vm2, %v6914_v45, %v6916_v40  ;;  %v7482_v31 = vmul.f32 1.442695, %v7446_v30 }
 0x6db   : > { %v10610_v26 = vpop.eup %10609  ;;  %10619 = vpow2.f32 %v8481_v13  ;;  %v7368_v8 = vadd.f32 %v14859_v46, %v7005_v35  ;;  %v7006_v6 = vadd.f32 %v6917_v60, %v14875_v41  ;;  %v7445_v41 = vsel %vm15108_vm7, %v15131_v24, 0.0 }
 0x6dc   : > { %v7635_v1 = vadd.f32 1.0, %v10610_v26  ;;  %10621 = vpow2.f32 %v7476_v4  ;;  %v7480_v26 = vmul.f32 1.442695, %v7445_v41 }
 0x6dd   : > { %v10612_v62 = vpop.eup %10611  ;;  %v15156_v14 = vadd.f32 %v15092_v25, %v7368_v8  ;;  %v7369_v43 = vadd.f32 %v14864_v54, %v7006_v6  ;;  %v6768_v45 = vpop.f32.mrb[156].mxu1 }
 0x6de   : > { %10623 = vrcp.f32 %v7635_v1  ;;  %v7636_v46 = vadd.f32 1.0, %v10612_v62  ;;  %v6918_v50 = vrot.slane %v6768_v45, 1  ;;  %v10347_v20 = vpop.f32.mrb[157].mxu1  ;;  %v10614_v60 = vpop.eup %10613 }
 0x6df   : > { %10625 = vpow2.f32 %v7478_v44  ;;  %v8482_v0 = vmul.f32 -1.442695, %v15156_v14  ;;  %v15168_v29 = vadd.f32 %v15092_v25, %v7369_v43  ;;  %v6771_v54 = vpop.f32.mrb[158].mxu1 }
 0x6e0   : > { %10627 = vrcp.f32 %v7636_v46  ;;  %v6919_v4 = vsel %vm1082_vm2, %v6916_v40, %v6918_v50  ;;  %v6920_v13 = vrot.slane %v6771_v54, 1  ;;  %v10348_v35 = vpop.f32.mrb[159].mxu1 }
 0x6e1   : > { %10629 = vpow2.f32 %v8482_v0  ;;  %v8483_v44 = vmul.f32 -1.442695, %v15168_v29  ;;  %v7007_v8 = vadd.f32 %v6919_v4, %v14892_v9 }
 0x6e2   : > { %v10616_v6 = vpop.eup %10615  ;;  %v6921_v1 = vsel %vm1082_vm2, %v6918_v50, %v6920_v13 }
 0x6e3   : > { %v10618_v40 = vpop.eup %10617  ;;  %v7730_v62 = vsel %vm15174_vm10, %v10616_v6, %v15098_v18  ;;  %10631 = vpow2.f32 %v8483_v44  ;;  %v7370_v43 = vadd.f32 %v14879_v15, %v7007_v8  ;;  %v7008_v9 = vadd.f32 %v6921_v1, %v14895_v55 }
 0x6e4   : > { %v7762_v45 = vsel %vm15108_vm7, %v10614_v60, %v7730_v62  ;;  %v7637_v46 = vadd.f32 1.0, %v10618_v40  ;;  %10633 = vpow2.f32 %v7480_v26 }
 0x6e5   : > { %v10620_v41 = vpop.eup %10619  ;;  %7794 = vst [vmem:[%s15184_s18] sm:$0xff] %v7762_v45  ;;  %v15196_v20 = vadd.f32 %v15092_v25, %v7370_v43  ;;  %v7371_v50 = vadd.f32 %v14884_v12, %v7008_v9  ;;  %v6776_v30 = vpop.f32.mrb[160].mxu1  ;;  %v7447_v12 = vsel %vm15108_vm7, %v15156_v14, 0.0  ;;  %v7448_v43 = vsel %vm15108_vm7, %v15168_v29, 0.0 }
 0x6e6   : > { %10635 = vrcp.f32 %v7637_v46  ;;  %v7638_v18 = vadd.f32 1.0, %v10620_v41  ;;  %v6922_v0 = vrot.slane %v6776_v30, 1  ;;  %v10351_v54 = vpop.f32.mrb[161].mxu1  ;;  %v10622_v15 = vpop.eup %10621  ;;  %v7484_v45 = vmul.f32 1.442695, %v7447_v12 }
 0x6e7   : > { %10637 = vpow2.f32 %v7482_v31  ;;  %v8484_v55 = vmul.f32 -1.442695, %v15196_v20  ;;  %v15201_v4 = vadd.f32 %v15092_v25, %v7371_v50  ;;  %v6779_v35 = vpop.f32.mrb[162].mxu1  ;;  %v7486_v54 = vmul.f32 1.442695, %v7448_v43 }
 0x6e8   : > { %v10624_v60 = vpop.eup %10623  ;;  %10639 = vrcp.f32 %v7638_v18  ;;  %v6923_v26 = vsel %vm1082_vm2, %v6920_v13, %v6922_v0  ;;  %v6924_v44 = vrot.slane %v6779_v35, 1  ;;  %v10352_v8 = vpop.f32.mrb[163].mxu1 }
 0x6e9   : > { %v10626_v6 = vpop.eup %10625  ;;  %v7731_v31 = vsel %vm15174_vm10, %v10624_v60, %v15113_v19  ;;  %10641 = vpow2.f32 %v8484_v55  ;;  %v8485_v1 = vmul.f32 -1.442695, %v15201_v4  ;;  %v7009_v13 = vadd.f32 %v6923_v26, %v14912_v61 }
 0x6ea   : > { %v10628_v40 = vpop.eup %10627  ;;  %v7763_v62 = vsel %vm15108_vm7, %v10622_v15, %v7731_v31  ;;  %v6925_v46 = vsel %vm1082_vm2, %v6922_v0, %v6924_v44 }
 0x6eb   : > { %v10630_v9 = vpop.eup %10629  ;;  %7795 = vst [vmem:[%s15184_s18 + $0x8] sm:$0xff] %v7763_v62  ;;  %v7732_v19 = vsel %vm15174_vm10, %v10628_v40, %v15118_v17  ;;  %10643 = vpow2.f32 %v8485_v1  ;;  %v7372_v30 = vadd.f32 %v14899_v2, %v7009_v13  ;;  %v7010_v61 = vadd.f32 %v6925_v46, %v14915_v7 }
 0x6ec   : > { %v7764_v41 = vsel %vm15108_vm7, %v10626_v6, %v7732_v19  ;;  %v7639_v50 = vadd.f32 1.0, %v10630_v9  ;;  %v7449_v2 = vsel %vm15108_vm7, %v15196_v20, 0.0 }
 0x6ed   : > { %v10632_v18 = vpop.eup %10631  ;;  %7796 = vst [vmem:[%s15184_s18 + $0x10] sm:$0xff] %v7764_v41  ;;  %v6784_v15 = vpop.f32.mrb[164].mxu1  ;;  %v15228_v17 = vadd.f32 %v15092_v25, %v7372_v30  ;;  %v7373_v12 = vadd.f32 %v14904_v51, %v7010_v61 }
 0x6ee   : > { %10645 = vrcp.f32 %v7639_v50  ;;  %v7640_v55 = vadd.f32 1.0, %v10632_v18  ;;  %v6926_v35 = vrot.slane %v6784_v15, 1  ;;  %v10355_v60 = vpop.f32.mrb[165].mxu1  ;;  %v10634_v0 = vpop.eup %10633 }
 0x6ef   : > { %10647 = vpow2.f32 %v7484_v45  ;;  %v6787_v26 = vpop.f32.mrb[166].mxu1  ;;  %v8486_v7 = vmul.f32 -1.442695, %v15228_v17  ;;  %v15240_v51 = vadd.f32 %v15092_v25, %v7373_v12  ;;  %v7488_v45 = vmul.f32 1.442695, %v7449_v2 }
 0x6f0   : > { %v10636_v8 = vpop.eup %10635  ;;  %10649 = vrcp.f32 %v7640_v55  ;;  %v6927_v6 = vsel %vm1082_vm2, %v6924_v44, %v6926_v35  ;;  %v10356_v31 = vpop.f32.mrb[167].mxu1  ;;  %v7450_v44 = vsel %vm15108_vm7, %v15201_v4, 0.0  ;;  %v6928_v9 = vrot.slane %v6787_v26, 1 }
 0x6f1   : > { %v10638_v1 = vpop.eup %10637  ;;  %v7733_v40 = vsel %vm15174_vm10, %v10636_v8, %v15131_v24  ;;  %10651 = vpow2.f32 %v7486_v54  ;;  %v7011_v62 = vadd.f32 %v6927_v6, %v14930_v27  ;;  %v8487_v46 = vmul.f32 -1.442695, %v15240_v51 }
 0x6f2   : > { %v10640_v43 = vpop.eup %10639  ;;  %v7765_v13 = vsel %vm15108_vm7, %v10634_v0, %v7733_v40  ;;  %10653 = vpow2.f32 %v8486_v7  ;;  %v7490_v18 = vmul.f32 1.442695, %v7450_v44  ;;  %v6929_v54 = vsel %vm1082_vm2, %v6926_v35, %v6928_v9 }
 0x6f3   : > { %v10642_v19 = vpop.eup %10641  ;;  %7797 = vst [vmem:[%s15184_s18 + $0x18] sm:$0xff] %v7765_v13  ;;  %v7734_v24 = vsel %vm15174_vm10, %v10640_v43, %v15139_v37  ;;  %v7374_v50 = vadd.f32 %v14919_v53, %v7011_v62  ;;  %10655 = vpow2.f32 %v8487_v46  ;;  %v7012_v55 = vadd.f32 %v6929_v54, %v14933_v47 }
 0x6f4   : > { %v7766_v27 = vsel %vm15108_vm7, %v10638_v1, %v7734_v24  ;;  %v7641_v41 = vadd.f32 1.0, %v10642_v19  ;;  %v7451_v53 = vsel %vm15108_vm7, %v15228_v17, 0.0  ;;  %v7452_v24 = vsel %vm15108_vm7, %v15240_v51, 0.0 }
 0x6f5   : > { %v10644_v30 = vpop.eup %10643  ;;  %7798 = vst [vmem:[%s15184_s18 + $0x20] sm:$0xff] %v7766_v27  ;;  %v6792_v61 = vpop.f32.mrb[168].mxu1  ;;  %v15259_v37 = vadd.f32 %v15092_v25, %v7374_v50  ;;  %v7375_v8 = vadd.f32 %v14924_v22, %v7012_v55  ;;  %v7492_v13 = vmul.f32 1.442695, %v7451_v53 }
 0x6f6   : > { %10657 = vrcp.f32 %v7641_v41  ;;  %v7642_v15 = vadd.f32 1.0, %v10644_v30  ;;  %v10359_v60 = vpop.f32.mrb[169].mxu1  ;;  %v6930_v0 = vrot.slane %v6792_v61, 1  ;;  %v7494_v61 = vmul.f32 1.442695, %v7452_v24 }
 0x6f7   : > { %10659 = vpow2.f32 %v7488_v45  ;;  %v6795_v12 = vpop.f32.mrb[170].mxu1  ;;  %v8488_v35 = vmul.f32 -1.442695, %v15259_v37  ;;  %v15274_v62 = vadd.f32 %v15092_v25, %v7375_v8  ;;  %v7453_v41 = vsel %vm15108_vm7, %v15259_v37, 0.0 }
 0x6f8   : > { %v10646_v26 = vpop.eup %10645  ;;  %10661 = vrcp.f32 %v7642_v15  ;;  %v10360_v2 = vpop.f32.mrb[171].mxu1  ;;  %v6931_v6 = vsel %vm1082_vm2, %v6928_v9, %v6930_v0  ;;  %v6932_v31 = vrot.slane %v6795_v12, 1  ;;  %v7496_v53 = vmul.f32 1.442695, %v7453_v41 }
 0x6f9   : > { %v10648_v7 = vpop.eup %10647  ;;  %v7735_v47 = vsel %vm15174_vm10, %v10646_v26, %v15156_v14  ;;  %10663 = vpow2.f32 %v7490_v18  ;;  %v7013_v22 = vadd.f32 %v6931_v6, %v14946_v11  ;;  %v8489_v45 = vmul.f32 -1.442695, %v15274_v62 }
 0x6fa   : > { %v10650_v1 = vpop.eup %10649  ;;  %v7767_v40 = vsel %vm15108_vm7, %v10648_v7, %v7735_v47  ;;  %10665 = vpow2.f32 %v8488_v35  ;;  %v6933_v44 = vsel %vm1082_vm2, %v6930_v0, %v6932_v31 }
 0x6fb   : > { %v10652_v43 = vpop.eup %10651  ;;  %7799 = vst [vmem:[%s15184_s18 + $0x28] sm:$0xff] %v7767_v40  ;;  %v7736_v14 = vsel %vm15174_vm10, %v10650_v1, %v15168_v29  ;;  %v7376_v11 = vadd.f32 %v14937_v16, %v7013_v22  ;;  %v7014_v27 = vadd.f32 %v6933_v44, %v14949_v59  ;;  %10667 = vpow2.f32 %v8489_v45 }
 0x6fc   : > { %v10654_v9 = vpop.eup %10653  ;;  %v7768_v19 = vsel %vm15108_vm7, %v10652_v43, %v7736_v14 }
 0x6fd   : > { %7800 = vst [vmem:[%s15184_s18 + $0x30] sm:$0xff] %v7768_v19  ;;  %v7643_v46 = vadd.f32 1.0, %v10654_v9  ;;  %v6800_v29 = vpop.f32.mrb[172].mxu1  ;;  %v15295_v50 = vadd.f32 %v15092_v25, %v7376_v11  ;;  %v10656_v54 = vpop.eup %10655  ;;  %v7377_v16 = vadd.f32 %v14942_v39, %v7014_v27 }
 0x6fe   : > { %v6934_v30 = vrot.slane %v6800_v29, 1  ;;  %v10363_v18 = vpop.f32.mrb[173].mxu1  ;;  %v7644_v59 = vadd.f32 1.0, %v10656_v54 }
 0x6ff   : > { %10669 = vrcp.f32 %v7643_v46  ;;  %v6803_v15 = vpop.f32.mrb[174].mxu1  ;;  %v8490_v60 = vmul.f32 -1.442695, %v15295_v50  ;;  %v15303_v35 = vadd.f32 %v15092_v25, %v7377_v16 }
 0x700   : > { %v10658_v55 = vpop.eup %10657  ;;  %10671 = vpow2.f32 %v7492_v13  ;;  %v10364_v0 = vpop.f32.mrb[175].mxu1  ;;  %v6935_v39 = vsel %vm1082_vm2, %v6932_v31, %v6934_v30  ;;  %v6936_v47 = vrot.slane %v6803_v15, 1 }
 0x701   : > { %v10660_v12 = vpop.eup %10659  ;;  %v7737_v26 = vsel %vm15174_vm10, %v10658_v55, %v15196_v20  ;;  %10673 = vrcp.f32 %v7644_v59  ;;  %v7015_v7 = vadd.f32 %v6935_v39, %v14962_v21  ;;  %v8491_v1 = vmul.f32 -1.442695, %v15303_v35 }
 0x702   : > { %v10662_v8 = vpop.eup %10661  ;;  %v7769_v2 = vsel %vm15108_vm7, %v10660_v12, %v7737_v26  ;;  %10675 = vpow2.f32 %v7494_v61  ;;  %v7454_v21 = vsel %vm15108_vm7, %v15274_v62, 0.0  ;;  %v6937_v14 = vsel %vm1082_vm2, %v6934_v30, %v6936_v47  ;;  %v15985_v12 = vld [vmem:[#allocation28_spill] sm:$0xff] }
 0x703   : > { %v10664_v6 = vpop.eup %10663  ;;  %7801 = vst [vmem:[%s15184_s18 + $0x38] sm:$0xff] %v7769_v2  ;;  %v7738_v20 = vsel %vm15174_vm10, %v10662_v8, %v15201_v4  ;;  %10677 = vpow2.f32 %v8490_v60  ;;  %v7378_v22 = vadd.f32 %v14953_v52, %v7015_v7  ;;  %v7016_v44 = vadd.f32 %v6937_v14, %v14965_v63 }
 0x704   : > { %v10666_v40 = vpop.eup %10665  ;;  %v7770_v31 = vsel %vm15108_vm7, %v10664_v6, %v7738_v20  ;;  %10679 = vpow2.f32 %v8491_v1  ;;  %v7455_v52 = vsel %vm15108_vm7, %v15295_v50, 0.0  ;;  %v7498_v11 = vmul.f32 1.442695, %v7454_v21  ;;  %v15986_v6 = vld [vmem:[#allocation5_spill] sm:$0xff] }
 0x705   : > { %7802 = vst [vmem:[%s15184_s18 + $0x40] sm:$0xff] %v7770_v31  ;;  %v7645_v43 = vadd.f32 1.0, %v10666_v40  ;;  %v6808_v4 = vpop.f32.mrb[176].mxu1  ;;  %10681 = vpow2.f32 %v7496_v53  ;;  %v15323_v13 = vadd.f32 %v15092_v25, %v7378_v22  ;;  %v10668_v45 = vpop.eup %10667  ;;  %v7379_v27 = vadd.f32 %v14958_v3, %v7016_v44 }
 0x706   : > { %v6938_v9 = vrot.slane %v6808_v4, 1  ;;  %v10367_v19 = vpop.f32.mrb[177].mxu1  ;;  %v7646_v63 = vadd.f32 1.0, %v10668_v45  ;;  %v7500_v15 = vmul.f32 1.442695, %v7455_v52  ;;  %v15987_v45 = vld [vmem:[#allocation26_spill] sm:$0xff] }
 0x707   : > { %10683 = vrcp.f32 %v7645_v43  ;;  %v6811_v24 = vpop.f32.mrb[178].mxu1  ;;  %v8492_v46 = vmul.f32 -1.442695, %v15323_v13  ;;  %v15337_v55 = vadd.f32 %v15092_v25, %v7379_v27 }
 0x708   : > { %v6939_v29 = vsel %vm1082_vm2, %v6936_v47, %v6938_v9  ;;  %v10368_v41 = vpop.f32.mrb[179].mxu1  ;;  %v6940_v54 = vrot.slane %v6811_v24, 1 }
 0x709   : > { %v10670_v30 = vpop.eup %10669  ;;  %v7017_v18 = vadd.f32 %v6939_v29, %v14978_v38  ;;  %10685 = vpow2.f32 %v8492_v46  ;;  %v8493_v0 = vmul.f32 -1.442695, %v15337_v55 }
 0x70a   : > { %v10672_v61 = vpop.eup %10671  ;;  %v7739_v16 = vsel %vm15174_vm10, %v10670_v30, %v15228_v17  ;;  %10687 = vrcp.f32 %v7646_v63  ;;  %v6941_v60 = vsel %vm1082_vm2, %v6938_v9, %v6940_v54  ;;  %v7456_v17 = vsel %vm15108_vm7, %v15303_v35, 0.0  ;;  %v15988_v30 = vld [vmem:[#allocation25_spill] sm:$0xff] }
 0x70b   : > { %v7771_v3 = vsel %vm15108_vm7, %v10672_v61, %v7739_v16  ;;  %v7380_v59 = vadd.f32 %v14969_v36, %v7017_v18  ;;  %v10674_v38 = vpop.eup %10673  ;;  %10689 = vpow2.f32 %v7498_v11  ;;  %v7018_v26 = vadd.f32 %v6941_v60, %v15985_v12 }
 0x70c   : > { %7803 = vst [vmem:[%s15184_s18 + $0x48] sm:$0xff] %v7771_v3  ;;  %v10676_v53 = vpop.eup %10675  ;;  %v7740_v39 = vsel %vm15174_vm10, %v10674_v38, %v15240_v51  ;;  %v7457_v36 = vsel %vm15108_vm7, %v15323_v13, 0.0  ;;  %10691 = vpow2.f32 %v8493_v0  ;;  %v7502_v22 = vmul.f32 1.442695, %v7456_v17  ;;  %v15989_v3 = vld [vmem:[#allocation23_spill] sm:$0xff] }
 0x70d   : > { %v15356_v8 = vadd.f32 %v15092_v25, %v7380_v59  ;;  %v6816_v2 = vpop.f32.mrb[180].mxu1  ;;  %v10678_v7 = vpop.eup %10677  ;;  %v7772_v47 = vsel %vm15108_vm7, %v10676_v53, %v7740_v39  ;;  %v7381_v20 = vadd.f32 %v15986_v6, %v7018_v26  ;;  %10693 = vpow2.f32 %v7500_v15 }
 0x70e   : > { %v6942_v1 = vrot.slane %v6816_v2, 1  ;;  %v10371_v40 = vpop.f32.mrb[181].mxu1  ;;  %v10680_v31 = vpop.eup %10679  ;;  %7804 = vst [vmem:[%s15184_s18 + $0x50] sm:$0xff] %v7772_v47  ;;  %v7647_v51 = vadd.f32 1.0, %v10678_v7  ;;  %v7504_v24 = vmul.f32 1.442695, %v7457_v36 }
 0x70f   : > { %v6819_v43 = vpop.f32.mrb[182].mxu1  ;;  %v10682_v21 = vpop.eup %10681  ;;  %v7648_v14 = vadd.f32 1.0, %v10680_v31  ;;  %v8494_v4 = vmul.f32 -1.442695, %v15356_v8  ;;  %v15364_v44 = vadd.f32 %v15092_v25, %v7381_v20  ;;  %v7459_v7 = vsel %vm15108_vm7, %v15356_v8, 0.0  ;;  %v15990_v47 = vld [vmem:[#allocation10_spill] sm:$0xff] }
 0x710   : > { %v6943_v9 = vsel %vm1082_vm2, %v6940_v54, %v6942_v1  ;;  %v10372_v19 = vpop.f32.mrb[183].mxu1  ;;  %10695 = vrcp.f32 %v7647_v51  ;;  %v6944_v46 = vrot.slane %v6819_v43, 1  ;;  %v7458_v54 = vsel %vm15108_vm7, %v15337_v55, 0.0 }
 0x711   : > { %v10684_v52 = vpop.eup %10683  ;;  %v7019_v11 = vadd.f32 %v6943_v9, %v15987_v45  ;;  %10697 = vrcp.f32 %v7648_v14  ;;  %v8495_v29 = vmul.f32 -1.442695, %v15364_v44  ;;  %v7506_v53 = vmul.f32 1.442695, %v7458_v54  ;;  %v15992_v19 = vld [vmem:[#allocation32_spill] sm:$0xff] }
 0x712   : > { %v7741_v27 = vsel %vm15174_vm10, %v10684_v52, %v15259_v37  ;;  %10699 = vpow2.f32 %v7502_v22  ;;  %v6945_v61 = vsel %vm1082_vm2, %v6942_v1, %v6944_v46  ;;  %v7460_v51 = vsel %vm15108_vm7, %v15364_v44, 0.0  ;;  %v15991_v22 = vld [vmem:[#allocation11_spill] sm:$0xff] }
 0x713   : > { %v7773_v41 = vsel %vm15108_vm7, %v10682_v21, %v7741_v27  ;;  %v7382_v63 = vadd.f32 %v15988_v30, %v7019_v11  ;;  %v10686_v18 = vpop.eup %10685  ;;  %10701 = vpow2.f32 %v8494_v4  ;;  %v7020_v59 = vadd.f32 %v6945_v61, %v15989_v3  ;;  %v15993_v61 = vld [vmem:[#allocation29_spill] sm:$0xff] }
 0x714   : > { %7805 = vst [vmem:[%s15184_s18 + $0x58] sm:$0xff] %v7773_v41  ;;  %v10688_v16 = vpop.eup %10687  ;;  %10703 = vpow2.f32 %v7504_v24  ;;  %v7649_v37 = vadd.f32 1.0, %v10686_v18  ;;  %v7508_v9 = vmul.f32 1.442695, %v7459_v7  ;;  %v15994_v7 = vld [vmem:[#allocation33_spill] sm:$0xff] }
 0x715   : > { %v15381_v15 = vadd.f32 %v15092_v25, %v7382_v63  ;;  %v6824_v60 = vpop.f32.mrb[184].mxu1  ;;  %v10690_v38 = vpop.eup %10689  ;;  %v7742_v17 = vsel %vm15174_vm10, %v10688_v16, %v15274_v62  ;;  %10705 = vpow2.f32 %v8495_v29  ;;  %v7383_v6 = vadd.f32 %v15990_v47, %v7020_v59 }
 0x716   : > { %v6946_v0 = vrot.slane %v6824_v60, 1  ;;  %v10375_v12 = vpop.f32.mrb[185].mxu1  ;;  %v7774_v26 = vsel %vm15108_vm7, %v10690_v38, %v7742_v17  ;;  %10707 = vrcp.f32 %v7649_v37  ;;  %v10692_v2 = vpop.eup %10691 }
 0x717   : > { %v8496_v39 = vmul.f32 -1.442695, %v15381_v15  ;;  %v6827_v36 = vpop.f32.mrb[186].mxu1  ;;  %7806 = vst [vmem:[%s15184_s18 + $0x60] sm:$0xff] %v7774_v26  ;;  %v10694_v40 = vpop.eup %10693  ;;  %v7650_v31 = vadd.f32 1.0, %v10692_v2  ;;  %v15401_v21 = vadd.f32 %v15092_v25, %v7383_v6 }
 0x718   : > { %v6947_v62 = vsel %vm1082_vm2, %v6944_v46, %v6946_v0  ;;  %v6948_v20 = vrot.slane %v6827_v36, 1  ;;  %v10376_v1 = vpop.f32.mrb[187].mxu1  ;;  %v7510_v46 = vmul.f32 1.442695, %v7460_v51 }
 0x719   : > { %10709 = vpow2.f32 %v8496_v39  ;;  %v7021_v43 = vadd.f32 %v6947_v62, %v15991_v22  ;;  %v8497_v27 = vmul.f32 -1.442695, %v15401_v21 }
 0x71a   : > { %v6949_v14 = vsel %vm1082_vm2, %v6946_v0, %v6948_v20  ;;  %v10696_v4 = vpop.eup %10695  ;;  %10711 = vrcp.f32 %v7650_v31 }
 0x71b   : > { %v7384_v52 = vadd.f32 %v15992_v19, %v7021_v43  ;;  %v7022_v24 = vadd.f32 %v6949_v14, %v15013_v5  ;;  %v10698_v45 = vpop.eup %10697  ;;  %v7743_v11 = vsel %vm15174_vm10, %v10696_v4, %v15295_v50  ;;  %10713 = vpow2.f32 %v7506_v53 }
 0x71c   : > { %v10700_v29 = vpop.eup %10699  ;;  %v7775_v41 = vsel %vm15108_vm7, %v10694_v40, %v7743_v11  ;;  %v7744_v30 = vsel %vm15174_vm10, %v10698_v45, %v15303_v35  ;;  %v7461_v5 = vsel %vm15108_vm7, %v15381_v15, 0.0  ;;  %10715 = vpow2.f32 %v8497_v27  ;;  %v15995_v40 = vld [vmem:[#allocation30_spill] sm:$0xff] }
 0x71d   : > { %v15419_v63 = vadd.f32 %v15092_v25, %v7384_v52  ;;  %v6832_v50 = vpop.f32.mrb[188].mxu1  ;;  %v10702_v18 = vpop.eup %10701  ;;  %7807 = vst [vmem:[%s15184_s18 + $0x68] sm:$0xff] %v7775_v41  ;;  %v7776_v54 = vsel %vm15108_vm7, %v10700_v29, %v7744_v30  ;;  %v7385_v16 = vadd.f32 %v15993_v61, %v7022_v24  ;;  %10717 = vpow2.f32 %v7508_v9  ;;  %v15996_v30 = vld [vmem:[#allocation27_spill] sm:$0xff] }
 0x71e   : > { %v6950_v37 = vrot.slane %v6832_v50, 1  ;;  %v10379_v3 = vpop.f32.mrb[189].mxu1  ;;  %v10704_v59 = vpop.eup %10703  ;;  %7808 = vst [vmem:[%s15184_s18 + $0x70] sm:$0xff] %v7776_v54  ;;  %v7651_v35 = vadd.f32 1.0, %v10702_v18  ;;  %v7512_v2 = vmul.f32 1.442695, %v7461_v5 }
 0x71f   : > { %v6835_v60 = vpop.f32.mrb[190].mxu1  ;;  %v10706_v38 = vpop.eup %10705  ;;  %v8498_v17 = vmul.f32 -1.442695, %v15419_v63  ;;  %v15428_v0 = vadd.f32 %v15092_v25, %v7385_v16 }
 0x720   : > { %v6951_v12 = vsel %vm1082_vm2, %v6948_v20, %v6950_v37  ;;  %v6952_v26 = vrot.slane %v6835_v60, 1  ;;  %v10380_v53 = vpop.f32.mrb[191].mxu1  ;;  %v10708_v39 = vpop.eup %10707  ;;  %10719 = vrcp.f32 %v7651_v35  ;;  %v7652_v36 = vadd.f32 1.0, %v10706_v38  ;;  %v15997_v38 = vld [vmem:[#allocation12_spill] sm:$0xff] }
 0x721   : > { %v7023_v47 = vadd.f32 %v6951_v12, %v15994_v7  ;;  %v7745_v6 = vsel %vm15174_vm10, %v10708_v39, %v15323_v13  ;;  %10721 = vpow2.f32 %v7510_v46  ;;  %v8499_v20 = vmul.f32 -1.442695, %v15428_v0 }
 0x722   : > { %v7777_v1 = vsel %vm15108_vm7, %v10704_v59, %v7745_v6  ;;  %10723 = vrcp.f32 %v7652_v36  ;;  %v6953_v22 = vsel %vm1082_vm2, %v6950_v37, %v6952_v26  ;;  %v7462_v13 = vsel %vm15108_vm7, %v15401_v21, 0.0 }
 0x723   : > { %v10710_v62 = vpop.eup %10709  ;;  %v7386_v31 = vadd.f32 %v15995_v40, %v7023_v47  ;;  %7809 = vst [vmem:[%s15184_s18 + $0x78] sm:$0xff] %v7777_v1  ;;  %10725 = vpow2.f32 %v8498_v17  ;;  %v7024_v4 = vadd.f32 %v6953_v22, %v15029_v42  ;;  %v7463_v46 = vsel %vm15108_vm7, %v15419_v63, 0.0 }
 0x724   : > { %v7653_v51 = vadd.f32 1.0, %v10710_v62  ;;  %v10712_v43 = vpop.eup %10711  ;;  %10727 = vpow2.f32 %v7512_v2  ;;  %v7514_v41 = vmul.f32 1.442695, %v7462_v13  ;;  %v7516_v37 = vmul.f32 1.442695, %v7463_v46 }
 0x725   : > { %v15445_v14 = vadd.f32 %v15092_v25, %v7386_v31  ;;  %v6840_v9 = vpop.f32.mrb[192].mxu1  ;;  %v10714_v19 = vpop.eup %10713  ;;  %v7746_v52 = vsel %vm15174_vm10, %v10712_v43, %v15337_v55  ;;  %v7387_v5 = vadd.f32 %v15996_v30, %v7024_v4  ;;  %v7464_v60 = vsel %vm15108_vm7, %v15428_v0, 0.0 }
 0x726   : > { %10729 = vrcp.f32 %v7653_v51  ;;  %v6954_v24 = vrot.slane %v6840_v9, 1  ;;  %v10383_v45 = vpop.f32.mrb[193].mxu1  ;;  %v7778_v11 = vsel %vm15108_vm7, %v10714_v19, %v7746_v52  ;;  %v10716_v29 = vpop.eup %10715  ;;  %v7518_v1 = vmul.f32 1.442695, %v7464_v60 }
 0x727   : > { %10731 = vpow2.f32 %v8499_v20  ;;  %v8500_v27 = vmul.f32 -1.442695, %v15445_v14  ;;  %v6843_v42 = vpop.f32.mrb[194].mxu1  ;;  %7810 = vst [vmem:[%s15184_s18 + $0x80] sm:$0xff] %v7778_v11  ;;  %v10718_v54 = vpop.eup %10717  ;;  %v7654_v61 = vadd.f32 1.0, %v10716_v29  ;;  %v15462_v3 = vadd.f32 %v15092_v25, %v7387_v5 }
 0x728   : > { %v6955_v55 = vsel %vm1082_vm2, %v6952_v26, %v6954_v24  ;;  %v6956_v50 = vrot.slane %v6843_v42, 1  ;;  %v10384_v18 = vpop.f32.mrb[195].mxu1  ;;  %v7465_v2 = vsel %vm15108_vm7, %v15445_v14, 0.0 }
 0x729   : > { %10733 = vpow2.f32 %v8500_v27  ;;  %v7025_v16 = vadd.f32 %v6955_v55, %v15042_v34  ;;  %v8501_v53 = vmul.f32 -1.442695, %v15462_v3  ;;  %v7520_v4 = vmul.f32 1.442695, %v7465_v2  ;;  %v10843_v2 = vld [vmem:[%s15646_s5] ss:$0 sm:$0xff] }
 0x72a   : > { %v6957_v59 = vsel %vm1082_vm2, %v6954_v24, %v6956_v50  ;;  %v10720_v35 = vpop.eup %10719  ;;  %10735 = vrcp.f32 %v7654_v61 }
 0x72b   : > { %v7388_v17 = vadd.f32 %v15997_v38, %v7025_v16  ;;  %v7026_v12 = vadd.f32 %v6957_v59, %v15045_v56  ;;  %v10722_v26 = vpop.eup %10721  ;;  %v7747_v34 = vsel %vm15174_vm10, %v10720_v35, %v15356_v8  ;;  %10737 = vpow2.f32 %v7514_v41  ;;  %v15998_v56 = vld [vmem:[#allocation14_spill] sm:$0xff] }
 0x72c   : > { %v10724_v39 = vpop.eup %10723  ;;  %v7779_v36 = vsel %vm15108_vm7, %v10718_v54, %v7747_v34  ;;  %10739 = vpow2.f32 %v8501_v53 }
 0x72d   : > { %v15480_v7 = vadd.f32 %v15092_v25, %v7388_v17  ;;  %v7389_v47 = vadd.f32 %v15998_v56, %v7026_v12  ;;  %v6848_v6 = vpop.f32.mrb[196].mxu1  ;;  %v10726_v62 = vpop.eup %10725  ;;  %7811 = vst [vmem:[%s15184_s18 + $0x88] sm:$0xff] %v7779_v36  ;;  %v7748_v8 = vsel %vm15174_vm10, %v10724_v39, %v15364_v44  ;;  %10741 = vpow2.f32 %v7516_v37  ;;  %v15999_v17 = vld [vmem:[#allocation31_spill] sm:$0xff] }
 0x72e   : > { %v6958_v20 = vrot.slane %v6848_v6, 1  ;;  %v10387_v40 = vpop.f32.mrb[197].mxu1  ;;  %v10728_v31 = vpop.eup %10727  ;;  %v7780_v51 = vsel %vm15108_vm7, %v10722_v26, %v7748_v8  ;;  %v7655_v22 = vadd.f32 1.0, %v10726_v62  ;;  %v16000_v8 = vld [vmem:[#allocation36_spill] sm:$0xff] }
 0x72f   : > { %v6851_v43 = vpop.f32.mrb[198].mxu1  ;;  %7812 = vst [vmem:[%s15184_s18 + $0x90] sm:$0xff] %v7780_v51  ;;  %v8502_v9 = vmul.f32 -1.442695, %v15480_v7  ;;  %v15492_v19 = vadd.f32 %v15092_v25, %v7389_v47 }
 0x730   : > { %v10730_v13 = vpop.eup %10729  ;;  %v6959_v44 = vsel %vm1082_vm2, %v6956_v50, %v6958_v20  ;;  %v10388_v52 = vpop.f32.mrb[199].mxu1  ;;  %10743 = vrcp.f32 %v7655_v22  ;;  %v6960_v46 = vrot.slane %v6851_v43, 1 }
 0x731   : > { %v10732_v24 = vpop.eup %10731  ;;  %v7749_v45 = vsel %vm15174_vm10, %v10730_v13, %v15381_v15  ;;  %v7027_v11 = vadd.f32 %v6959_v44, %v15058_v23  ;;  %10745 = vpow2.f32 %v7518_v1  ;;  %v8503_v41 = vmul.f32 -1.442695, %v15492_v19 }
 0x732   : > { %v7781_v27 = vsel %vm15108_vm7, %v10728_v31, %v7749_v45  ;;  %v7656_v42 = vadd.f32 1.0, %v10732_v24  ;;  %10747 = vpow2.f32 %v8502_v9  ;;  %v7466_v15 = vsel %vm15108_vm7, %v15462_v3, 0.0 }
 0x733   : > { %v10734_v29 = vpop.eup %10733  ;;  %7813 = vst [vmem:[%s15184_s18 + $0x98] sm:$0xff] %v7781_v27  ;;  %v7390_v30 = vadd.f32 %v15049_v57, %v7027_v11  ;;  %v6961_v23 = vsel %vm1082_vm2, %v6958_v20, %v6960_v46  ;;  %v7522_v35 = vmul.f32 1.442695, %v7466_v15  ;;  %v7468_v31 = vsel %vm15108_vm7, %v15492_v19, 0.0 }
 0x734   : > { %10749 = vrcp.f32 %v7656_v42  ;;  %v7657_v5 = vadd.f32 1.0, %v10734_v29  ;;  %v10736_v55 = vpop.eup %10735  ;;  %v7028_v18 = vadd.f32 %v6961_v23, %v15061_v33  ;;  %v7467_v33 = vsel %vm15108_vm7, %v15480_v7, 0.0 }
 0x735   : > { %10751 = vpow2.f32 %v7520_v4  ;;  %v15509_v50 = vadd.f32 %v15092_v25, %v7390_v30  ;;  %v6856_v54 = vpop.f32.mrb[200].mxu1  ;;  %v10738_v61 = vpop.eup %10737  ;;  %v7750_v57 = vsel %vm15174_vm10, %v10736_v55, %v15401_v21  ;;  %v7524_v62 = vmul.f32 1.442695, %v7467_v33  ;;  %v16001_v4 = vld [vmem:[#allocation34_spill] sm:$0xff] }
 0x736   : > { %10753 = vrcp.f32 %v7657_v5  ;;  %v6962_v16 = vrot.slane %v6856_v54, 1  ;;  %v10391_v37 = vpop.f32.mrb[201].mxu1  ;;  %v7782_v59 = vsel %vm15108_vm7, %v10738_v61, %v7750_v57  ;;  %v10740_v38 = vpop.eup %10739  ;;  %v7391_v12 = vadd.f32 %v15999_v17, %v7028_v18 }
 0x737   : > { %10755 = vpow2.f32 %v8503_v41  ;;  %v8504_v60 = vmul.f32 -1.442695, %v15509_v50  ;;  %v6859_v25 = vpop.f32.mrb[202].mxu1  ;;  %7814 = vst [vmem:[%s15184_s18 + $0xa0] sm:$0xff] %v7782_v59  ;;  %v10742_v53 = vpop.eup %10741  ;;  %v7658_v39 = vadd.f32 1.0, %v10740_v38 }
 0x738   : > { %v6963_v21 = vsel %vm1082_vm2, %v6960_v46, %v6962_v16  ;;  %v6964_v26 = vrot.slane %v6859_v25, 1  ;;  %v10392_v34 = vpop.f32.mrb[203].mxu1  ;;  %v15528_v56 = vadd.f32 %v10843_v2, %v7391_v12  ;;  %v7526_v27 = vmul.f32 1.442695, %v7468_v31 }
 0x739   : > { %10757 = vpow2.f32 %v8504_v60  ;;  %v7029_v36 = vadd.f32 %v6963_v21, %v15074_v28 }
 0x73a   : > { %v6965_v47 = vsel %vm1082_vm2, %v6962_v16, %v6964_v26  ;;  %v10744_v6 = vpop.eup %10743  ;;  %10759 = vrcp.f32 %v7658_v39  ;;  %v8505_v51 = vmul.f32 -1.442695, %v15528_v56 }
 0x73b   : > { %v7392_v1 = vadd.f32 %v16000_v8, %v7029_v36  ;;  %v7030_v20 = vadd.f32 %v6965_v47, %v15077_v10  ;;  %v10746_v40 = vpop.eup %10745  ;;  %v7751_v28 = vsel %vm15174_vm10, %v10744_v6, %v15419_v63  ;;  %10761 = vpow2.f32 %v7522_v35 }
 0x73c   : > { %v10748_v22 = vpop.eup %10747  ;;  %v7783_v43 = vsel %vm15108_vm7, %v10742_v53, %v7751_v28  ;;  %v7469_v63 = vsel %vm15108_vm7, %v15509_v50, 0.0  ;;  %10763 = vpow2.f32 %v8505_v51 }
 0x73d   : > { %v15542_v13 = vadd.f32 %v10843_v2, %v7392_v1  ;;  %v7393_v10 = vadd.f32 %v16001_v4, %v7030_v20  ;;  %v6864_v9 = vpop.f32.mrb[204].mxu1  ;;  %7815 = vst [vmem:[%s15184_s18 + $0xa8] sm:$0xff] %v7783_v43  ;;  %v7659_v52 = vadd.f32 1.0, %v10748_v22  ;;  %10765 = vpow2.f32 %v7524_v62 }
 0x73e   : > { %v10750_v44 = vpop.eup %10749  ;;  %v6966_v24 = vrot.slane %v6864_v9, 1  ;;  %v10395_v45 = vpop.f32.mrb[205].mxu1  ;;  %v7528_v55 = vmul.f32 1.442695, %v7469_v63 }
 0x73f   : > { %v10752_v11 = vpop.eup %10751  ;;  %v7752_v46 = vsel %vm15174_vm10, %v10750_v44, %v15428_v0  ;;  %v8506_v42 = vmul.f32 -1.442695, %v15542_v13  ;;  %v6867_v29 = vpop.f32.mrb[206].mxu1  ;;  %10767 = vrcp.f32 %v7659_v52  ;;  %v15555_v5 = vadd.f32 %v10843_v2, %v7393_v10 }
 0x740   : > { %v10754_v41 = vpop.eup %10753  ;;  %v7784_v30 = vsel %vm15108_vm7, %v10746_v40, %v7752_v46  ;;  %v10396_v15 = vpop.f32.mrb[207].mxu1  ;;  %v6967_v18 = vsel %vm1082_vm2, %v6964_v26, %v6966_v24  ;;  %v7471_v21 = vsel %vm15108_vm7, %v15542_v13, 0.0 }
 0x741   : > { %v10756_v23 = vpop.eup %10755  ;;  %7816 = vst [vmem:[%s15184_s18 + $0xb0] sm:$0xff] %v7784_v30  ;;  %v7753_v0 = vsel %vm15174_vm10, %v10754_v41, %v15445_v14  ;;  %10769 = vpow2.f32 %v8506_v42  ;;  %v8507_v16 = vmul.f32 -1.442695, %v15555_v5  ;;  %v7031_v37 = vadd.f32 %v6967_v18, %v15085_v32 }
 0x742   : > { %v7785_v54 = vsel %vm15108_vm7, %v10752_v11, %v7753_v0  ;;  %v7660_v61 = vadd.f32 1.0, %v10756_v23  ;;  %10771 = vpow2.f32 %v7526_v27  ;;  %v7470_v14 = vsel %vm15108_vm7, %v15528_v56, 0.0 }
 0x743   : > { %v10758_v57 = vpop.eup %10757  ;;  %7817 = vst [vmem:[%s15184_s18 + $0xb8] sm:$0xff] %v7785_v54  ;;  %v7394_v60 = vadd.f32 %v15081_v58, %v7031_v37  ;;  %v7530_v12 = vmul.f32 1.442695, %v7470_v14  ;;  %v7532_v36 = vmul.f32 1.442695, %v7471_v21  ;;  %v7472_v8 = vsel %vm15108_vm7, %v15555_v5, 0.0 }
 0x744   : > { %10773 = vrcp.f32 %v7660_v61  ;;  %v7661_v59 = vadd.f32 1.0, %v10758_v57  ;;  %v10760_v35 = vpop.eup %10759  ;;  %v7534_v51 = vmul.f32 1.442695, %v7472_v8 }
 0x745   : > { %10775 = vpow2.f32 %v7528_v55  ;;  %v10762_v25 = vpop.eup %10761  ;;  %v7754_v38 = vsel %vm15174_vm10, %v10760_v35, %v15462_v3  ;;  %v7433_v32 = vadd.f32 %v10843_v2, %v7394_v60 }
 0x746   : > { %10777 = vrcp.f32 %v7661_v59  ;;  %v7786_v33 = vsel %vm15108_vm7, %v10762_v25, %v7754_v38  ;;  %v10764_v17 = vpop.eup %10763 }
 0x747   : > { %10779 = vpow2.f32 %v8507_v16  ;;  %7818 = vst [vmem:[%s15184_s18 + $0xc0] sm:$0xff] %v7786_v33  ;;  %v10766_v58 = vpop.eup %10765  ;;  %v7662_v26 = vadd.f32 1.0, %v10764_v17  ;;  %v8508_v34 = vmul.f32 -1.442695, %v7433_v32 }
 0x749   : > { %v10768_v53 = vpop.eup %10767  ;;  %10781 = vrcp.f32 %v7662_v26 }
 0x74a   : > { %v7755_v3 = vsel %vm15174_vm10, %v10768_v53, %v15480_v7  ;;  %10783 = vpow2.f32 %v7530_v12 }
 0x74b   : > { %v10770_v39 = vpop.eup %10769  ;;  %v7787_v2 = vsel %vm15108_vm7, %v10766_v58, %v7755_v3  ;;  %10785 = vpow2.f32 %v8508_v34 }
 0x74c   : > { %v7663_v47 = vadd.f32 1.0, %v10770_v39  ;;  %v10772_v6 = vpop.eup %10771  ;;  %7819 = vst [vmem:[%s15184_s18 + $0xc8] sm:$0xff] %v7787_v2 }
 0x74e   : > { %v10774_v62 = vpop.eup %10773  ;;  %10787 = vrcp.f32 %v7663_v47 }
 0x74f   : > { %v10776_v1 = vpop.eup %10775  ;;  %v7756_v7 = vsel %vm15174_vm10, %v10774_v62, %v15492_v19  ;;  %10789 = vpow2.f32 %v7532_v36  ;;  %v7473_v19 = vsel %vm15108_vm7, %v7433_v32, 0.0 }
 0x750   : > { %v10778_v20 = vpop.eup %10777  ;;  %v7788_v40 = vsel %vm15108_vm7, %v10772_v6, %v7756_v7  ;;  %v7536_v52 = vmul.f32 1.442695, %v7473_v19 }
 0x751   : > { %v10780_v28 = vpop.eup %10779  ;;  %7820 = vst [vmem:[%s15184_s18 + $0xd0] sm:$0xff] %v7788_v40  ;;  %v7757_v31 = vsel %vm15174_vm10, %v10778_v20, %v15509_v50 }
 0x752   : > { %v7789_v22 = vsel %vm15108_vm7, %v10776_v1, %v7757_v31  ;;  %v7664_v43 = vadd.f32 1.0, %v10780_v28 }
 0x753   : > { %7821 = vst [vmem:[%s15184_s18 + $0xd8] sm:$0xff] %v7789_v22  ;;  %v10782_v4 = vpop.eup %10781 }
 0x754   : > { %10791 = vrcp.f32 %v7664_v43  ;;  %v10784_v10 = vpop.eup %10783  ;;  %v7758_v9 = vsel %vm15174_vm10, %v10782_v4, %v15528_v56 }
 0x755   : > { %10793 = vpow2.f32 %v7534_v51  ;;  %v10786_v44 = vpop.eup %10785  ;;  %v7790_v50 = vsel %vm15108_vm7, %v10784_v10, %v7758_v9 }
 0x756   : > { %7822 = vst [vmem:[%s15184_s18 + $0xe0] sm:$0xff] %v7790_v50  ;;  %v7665_v24 = vadd.f32 1.0, %v10786_v44 }
 0x758   : > { %v10788_v63 = vpop.eup %10787  ;;  %10795 = vrcp.f32 %v7665_v24 }
 0x759   : > { %v10790_v45 = vpop.eup %10789  ;;  %v7759_v11 = vsel %vm15174_vm10, %v10788_v63, %v15542_v13  ;;  %10797 = vpow2.f32 %v7536_v52 }
 0x75a   : > { %v7791_v46 = vsel %vm15108_vm7, %v10790_v45, %v7759_v11 }
 0x75b   : > { %7823 = vst [vmem:[%s15184_s18 + $0xe8] sm:$0xff] %v7791_v46 }
 0x75e   : > { %v10792_v56 = vpop.eup %10791 }
 0x75f   : > { %v10794_v27 = vpop.eup %10793  ;;  %v7760_v42 = vsel %vm15174_vm10, %v10792_v56, %v15555_v5 }
 0x760   : > { %v7792_v29 = vsel %vm15108_vm7, %v10794_v27, %v7760_v42 }
 0x761   : > { %7824 = vst [vmem:[%s15184_s18 + $0xf0] sm:$0xff] %v7792_v29 }
 0x762   : > { %v10796_v41 = vpop.eup %10795 }
 0x763   : > { %v10798_v30 = vpop.eup %10797  ;;  %v7761_v13 = vsel %vm15174_vm10, %v10796_v41, %v7433_v32 }
 0x764   : > { %v7793_v15 = vsel %vm15108_vm7, %v10798_v30, %v7761_v13 }
 0x765   : > { %7825 = vst [vmem:[%s15184_s18 + $0xf8] sm:$0xff] %v7793_v15 }
 0x766 PF: > { %s16_s25 = sadd.s32 1, %s10882_s25   ;;  %s16002_s21 = smov %s10874_s23 }
 0x767   : > { %p13_p8 = scmp.ge.s32.totalorder %s16_s25, 6   ;;  %s16003_s22 = smov %s10878_s24 }
 0x768   : > { %s16004_s23 = smov %s16007_s26  ;;  %s16005_s24 = smov %s16011_s27 }
 0x769   :  { %15 = sbr.rel (!%p13_p8) target bundleno = 3 (0x3), region = 94 }

</bundles_post_ra>
